<compile_context>
chip_gen: v6e
topology: v6e:2x2x1
jax: 0.10.0
libtpu: 0.0.40
codegen_flags: <defaults>
</compile_context>

<pallas_src>
import jax
import jax.numpy as jnp
from jax.experimental import pallas as pl
from jax.experimental.pallas import tpu as pltpu

# mirrors config.GRAPH_HIDDEN_SIZE / config.GRAPH_HOPS
HIDDEN = 32
HOPS = 3


def _graphnn_kernel(node_ref, edge_ref, n2e_ref, e2n_ref,
                    w_edge_ref,
                    w_z_h_ref, w_z_x_ref, w_r_h_ref, w_r_x_ref,
                    w_t_h_ref, w_t_x_ref,
                    w_fz_f_ref, w_fz_b_ref, w_fz_m_ref, w_fz_d_ref, b_fz_ref,
                    w_max_ref,
                    node_out_ref, gemb_out_ref):
    Bt, N, H = node_ref.shape
    E = edge_ref.shape[1]

    ns = node_ref[...].astype(jnp.float32)       # (Bt, N, H)
    ev = edge_ref[...].astype(jnp.float32)       # (Bt, E, H)
    # binary incidence matrices arrive as bf16 (exact for {0,1}); widen in-register
    n2e = n2e_ref[...].astype(jnp.float32)       # (Bt, E, N)
    e2n = e2n_ref[...].astype(jnp.float32)       # (Bt, N, E)
    b_fz = b_fz_ref[...]                         # (1, 1, H) -> broadcasts over (Bt, N, H)

    # Broadcast the (H, H) weights once (hoisted: broadcast_in_dim is not CSE'd),
    # so every dense linear is a plain batched matmul on the MXU.
    def bcast(ref):
        return jnp.broadcast_to(ref[...], (Bt,) + ref.shape)

    w_edge_b = bcast(w_edge_ref)
    w_z_h_b, w_z_x_b = bcast(w_z_h_ref), bcast(w_z_x_ref)
    w_r_h_b, w_r_x_b = bcast(w_r_h_ref), bcast(w_r_x_ref)
    w_t_h_b, w_t_x_b = bcast(w_t_h_ref), bcast(w_t_x_ref)
    w_fz_f_b, w_fz_b_b = bcast(w_fz_f_ref), bcast(w_fz_b_ref)
    w_fz_m_b, w_fz_d_b = bcast(w_fz_m_ref), bcast(w_fz_d_ref)
    w_max_b = bcast(w_max_ref)

    def bmm(x, w_b):  # (Bt, n, H) @ (Bt, H, H) -> (Bt, n, H), f32 accumulate
        return jnp.einsum('bnh,bhk->bnk', x, w_b, preferred_element_type=jnp.float32)

    # ---- hop-invariant terms (hoisted out of the unrolled hop loop) ----
    edge_emb = bmm(ev, w_edge_b)                 # edge message transform, (Bt, E, H)
    ones_eh = jnp.ones((Bt, E, H), jnp.float32)
    # degree normalization 1/(deg+1), computed once via exact 0/1 matmuls
    inv_bw = 1.0 / (jnp.einsum('bne,beh->bnh', e2n, ones_eh,
                               preferred_element_type=jnp.float32) + 1.0)
    inv_fw = 1.0 / (jnp.einsum('ben,beh->bnh', n2e, ones_eh,
                               preferred_element_type=jnp.float32) + 1.0)

    for _ in range(HOPS):  # graph_hops is a compile-time config -> static unroll
        # backward direction: node2edge @ h + edge_emb ; (edge2node @ msg + h) * inv_deg
        bw_msg = jnp.einsum('ben,bnh->beh', n2e, ns,
                            preferred_element_type=jnp.float32) + edge_emb
        bw = (jnp.einsum('bne,beh->bnh', e2n, bw_msg,
                         preferred_element_type=jnp.float32) + ns) * inv_bw

        # forward direction uses edge2node^T / node2edge^T: transposes are folded
        # into the contraction dims (no transposed incidence copies DMAed in).
        fw_msg = jnp.einsum('bne,bnh->beh', e2n, ns,
                            preferred_element_type=jnp.float32) + edge_emb
        fw = (jnp.einsum('ben,beh->bnh', n2e, fw_msg,
                         preferred_element_type=jnp.float32) + ns) * inv_fw

        # GatedFusion(fw, bw): w_fz split host-side -> no activation concat
        z = jax.nn.sigmoid(bmm(fw, w_fz_f_b) + bmm(bw, w_fz_b_b)
                           + bmm(fw * bw, w_fz_m_b) + bmm(fw - bw, w_fz_d_b) + b_fz)
        agg = (1.0 - z) * fw + z * bw

        # GRUStep(node_state, agg): w_z / w_r / w_t split host-side
        zg = jax.nn.sigmoid(bmm(ns, w_z_h_b) + bmm(agg, w_z_x_b))
        rg = jax.nn.sigmoid(bmm(ns, w_r_h_b) + bmm(agg, w_r_x_b))
        tg = jnp.tanh(bmm(rg * ns, w_t_h_b) + bmm(agg, w_t_x_b))
        ns = (1.0 - zg) * ns + zg * tg

    # node output as a lane-dense (Bt, N*H = 256-lane) slab -> single dense store
    node_out_ref[...] = jnp.concatenate(
        [ns[:, n, :] for n in range(N)], axis=-1).astype(node_out_ref.dtype)

    # graph_max_pool: max over nodes of linear_max(node_state)
    m = bmm(ns, w_max_b)                         # (Bt, N, H)
    pooled = m[:, 0, :]
    for n in range(1, N):
        pooled = jnp.maximum(pooled, m[:, n, :])
    gemb_out_ref[...] = pooled.astype(gemb_out_ref.dtype)


def graphnn_forward(node_state, edge_vec, node2edge, edge2node, params, *, batch_tile=8):
    B, N, H = node_state.shape
    E = edge_vec.shape[1]
    w_edge, w_z, w_r, w_t, w_fz, b_fz, w_max = params

    # Split the stacked weights host-side so the kernel never concatenates activations.
    w_z_h, w_z_x = w_z[:H], w_z[H:]
    w_r_h, w_r_x = w_r[:H], w_r[H:]
    w_t_h, w_t_x = w_t[:H], w_t[H:]
    w_fz_f, w_fz_b, w_fz_m, w_fz_d = w_fz[:H], w_fz[H:2 * H], w_fz[2 * H:3 * H], w_fz[3 * H:]
    b_fz3 = b_fz.reshape(1, 1, H)

    # Binary incidence matrices -> bf16 (exact for {0,1}) to halve the dominant DMA bytes.
    # TODO(synk): on v5e/v6e int8 would shrink them 4x, but v7x's MXU has no int path.
    n2e = node2edge.astype(jnp.bfloat16)
    e2n = edge2node.astype(jnp.bfloat16)

    # Batch-tile several graphs per grid step to amortize per-step overhead.
    bt = max(1, min(batch_tile, B))
    if bt < B:
        bt = max(8, 8 * (bt // 8))          # keep output sublane tiling 8-aligned
    b_pad = pl.cdiv(B, bt) * bt
    ns_p, ev_p = node_state, edge_vec
    if b_pad != B:
        pad = ((0, b_pad - B), (0, 0), (0, 0))
        ns_p = jnp.pad(node_state, pad)
        ev_p = jnp.pad(edge_vec, pad)
        n2e = jnp.pad(n2e, pad)
        e2n = jnp.pad(e2n, pad)
    grid = (b_pad // bt,)

    def batched(arr):
        nd = arr.ndim
        return pl.BlockSpec((bt,) + arr.shape[1:],
                            lambda b, _nd=nd: (b,) + (0,) * (_nd - 1))

    def full_spec(arr):
        nd = arr.ndim
        return pl.BlockSpec(arr.shape, lambda b, _nd=nd: (0,) * _nd)

    weights = (w_edge, w_z_h, w_z_x, w_r_h, w_r_x, w_t_h, w_t_x,
               w_fz_f, w_fz_b, w_fz_m, w_fz_d, b_fz3, w_max)

    in_specs = ([batched(ns_p), batched(ev_p), batched(n2e), batched(e2n)]
                + [full_spec(w) for w in weights])
    out_specs = (pl.BlockSpec((bt, N * H), lambda b: (b, 0)),
                 pl.BlockSpec((bt, H), lambda b: (b, 0)))
    out_shapes = (jax.ShapeDtypeStruct((b_pad, N * H), node_state.dtype),
                  jax.ShapeDtypeStruct((b_pad, H), node_state.dtype))

    # Advisory cost model so XLA schedules this small custom call sensibly.
    flops = b_pad * (2 * E * H * H                      # edge transform
                     + 2 * (2 * N * E * H)              # degree matmuls
                     + HOPS * (4 * (2 * E * N * H)      # incidence message passing
                               + 10 * (2 * N * H * H)   # fusion + GRU linears
                               + 20 * N * H)            # gating elementwise
                     + 2 * N * H * H)                   # max-pool linear
    transcendentals = b_pad * HOPS * 4 * N * H
    bytes_accessed = (4 * b_pad * N * H * 2 + 4 * b_pad * E * H
                      + 2 * b_pad * (E * N + N * E)
                      + 4 * b_pad * H
                      + 4 * (13 * H * H + H) * grid[0])
    cost = pl.CostEstimate(flops=flops, transcendentals=transcendentals,
                           bytes_accessed=bytes_accessed)

    node_flat, gemb = pl.pallas_call(
        _graphnn_kernel,
        out_shape=out_shapes,
        grid=grid,
        in_specs=in_specs,
        out_specs=out_specs,
        compiler_params=pltpu.CompilerParams(dimension_semantics=("parallel",)),
        cost_estimate=cost,
    )(ns_p, ev_p, n2e, e2n, *weights)

    node_out = node_flat[:B].reshape(B, N, H)
    # match PyTorch returns: node_state.transpose(0,1) -> (N, B, H),
    # graph_embedding.unsqueeze(0) -> (1, B, H)
    return jnp.transpose(node_out, (1, 0, 2)), gemb[:B][None, :, :]


def graphnn_reference(node_state, edge_vec, node2edge, edge2node, params):
    """Pure-JAX reference mirroring the PyTorch forward (for correctness check)."""
    w_edge, w_z, w_r, w_t, w_fz, b_fz, w_max = params
    ns = node_state
    edge_emb = edge_vec @ w_edge

    def msg_pass(h, inc, out):
        n2e_emb = inc @ h + edge_emb
        norm = jnp.sum(out, axis=2, keepdims=True) + 1.0
        return (out @ n2e_emb + h) / norm

    for _ in range(HOPS):
        bw = msg_pass(ns, node2edge, edge2node)
        fw = msg_pass(ns, jnp.swapaxes(edge2node, 1, 2), jnp.swapaxes(node2edge, 1, 2))
        cat = jnp.concatenate([fw, bw, fw * bw, fw - bw], axis=-1)
        z = jax.nn.sigmoid(cat @ w_fz + b_fz)
        agg = (1.0 - z) * fw + z * bw
        hx = jnp.concatenate([ns, agg], axis=-1)
        zg = jax.nn.sigmoid(hx @ w_z)
        rg = jax.nn.sigmoid(hx @ w_r)
        tg = jnp.tanh(jnp.concatenate([rg * ns, agg], axis=-1) @ w_t)
        ns = (1.0 - zg) * ns + zg * tg

    pooled = jnp.max(ns @ w_max, axis=1)          # (B, H)
    return jnp.transpose(ns, (1, 0, 2)), pooled[None]


if __name__ == "__main__":
    B, N, E, H = 16, 8, 12, HIDDEN   # 2 batch-tiles of 8 graphs -> grid of 2 (megacore-friendly)
    key = jax.random.PRNGKey(0)
    ks = jax.random.split(key, 11)

    node_state = jax.random.normal(ks[0], (B, N, H), jnp.float32)
    edge_vec = jax.random.normal(ks[1], (B, E, H), jnp.float32)
    node2edge = (jax.random.uniform(ks[2], (B, E, N)) < 0.3).astype(jnp.float32)
    edge2node = (jax.random.uniform(ks[3], (B, N, E)) < 0.3).astype(jnp.float32)

    s = 0.1
    w_edge = s * jax.random.normal(ks[4], (H, H), jnp.float32)
    w_z = s * jax.random.normal(ks[5], (2 * H, H), jnp.float32)
    w_r = s * jax.random.normal(ks[6], (2 * H, H), jnp.float32)
    w_t = s * jax.random.normal(ks[7], (2 * H, H), jnp.float32)
    w_fz = s * jax.random.normal(ks[8], (4 * H, H), jnp.float32)
    b_fz = s * jax.random.normal(ks[9], (1, H), jnp.float32)
    w_max = s * jax.random.normal(ks[10], (H, H), jnp.float32)
    params = (w_edge, w_z, w_r, w_t, w_fz, b_fz, w_max)

    node_out, graph_emb = graphnn_forward(node_state, edge_vec, node2edge, edge2node, params)
    jax.block_until_ready((node_out, graph_emb))

    ref_node, ref_emb = graphnn_reference(node_state, edge_vec, node2edge, edge2node, params)
    assert node_out.shape == (N, B, H) and graph_emb.shape == (1, B, H)
    assert jnp.allclose(node_out, ref_node, atol=5e-4, rtol=5e-4)
    assert jnp.allclose(graph_emb, ref_emb, atol=5e-4, rtol=5e-4)

    print("KERNEL_OK")
</pallas_src>

<mosaic_0001>
module attributes {stable_mosaic.version = 11 : i64} {
  func.func @_graphnn_kernel(%arg0: i32, %arg1: memref<8x8x32xf32, #tpu.memory_space<vmem>>, %arg2: memref<8x12x32xf32, #tpu.memory_space<vmem>>, %arg3: memref<8x12x8xbf16, #tpu.memory_space<vmem>>, %arg4: memref<8x8x12xbf16, #tpu.memory_space<vmem>>, %arg5: memref<32x32xf32, #tpu.memory_space<vmem>>, %arg6: memref<32x32xf32, #tpu.memory_space<vmem>>, %arg7: memref<32x32xf32, #tpu.memory_space<vmem>>, %arg8: memref<32x32xf32, #tpu.memory_space<vmem>>, %arg9: memref<32x32xf32, #tpu.memory_space<vmem>>, %arg10: memref<32x32xf32, #tpu.memory_space<vmem>>, %arg11: memref<32x32xf32, #tpu.memory_space<vmem>>, %arg12: memref<32x32xf32, #tpu.memory_space<vmem>>, %arg13: memref<32x32xf32, #tpu.memory_space<vmem>>, %arg14: memref<32x32xf32, #tpu.memory_space<vmem>>, %arg15: memref<32x32xf32, #tpu.memory_space<vmem>>, %arg16: memref<1x1x32xf32, #tpu.memory_space<vmem>>, %arg17: memref<32x32xf32, #tpu.memory_space<vmem>>, %arg18: memref<8x256xf32, #tpu.memory_space<vmem>>, %arg19: memref<8x32xf32, #tpu.memory_space<vmem>>) attributes {dimension_semantics = [#tpu.dimension_semantics<parallel>], iteration_bounds = array<i64: 2>, scalar_prefetch = 0 : i64, scratch_operands = 0 : i64, tpu.core_type = #tpu.core_type<tc>, window_params = [{transform_indices = @transform_0, window_bounds = array<i64: 8, 8, 32>}, {transform_indices = @transform_1, window_bounds = array<i64: 8, 12, 32>}, {transform_indices = @transform_2, window_bounds = array<i64: 8, 12, 8>}, {transform_indices = @transform_3, window_bounds = array<i64: 8, 8, 12>}, {pipeline_mode = #tpu.pipeline_mode<synchronous>, transform_indices = @transform_4, window_bounds = array<i64: 32, 32>}, {pipeline_mode = #tpu.pipeline_mode<synchronous>, transform_indices = @transform_5, window_bounds = array<i64: 32, 32>}, {pipeline_mode = #tpu.pipeline_mode<synchronous>, transform_indices = @transform_6, window_bounds = array<i64: 32, 32>}, {pipeline_mode = #tpu.pipeline_mode<synchronous>, transform_indices = @transform_7, window_bounds = array<i64: 32, 32>}, {pipeline_mode = #tpu.pipeline_mode<synchronous>, transform_indices = @transform_8, window_bounds = array<i64: 32, 32>}, {pipeline_mode = #tpu.pipeline_mode<synchronous>, transform_indices = @transform_9, window_bounds = array<i64: 32, 32>}, {pipeline_mode = #tpu.pipeline_mode<synchronous>, transform_indices = @transform_10, window_bounds = array<i64: 32, 32>}, {pipeline_mode = #tpu.pipeline_mode<synchronous>, transform_indices = @transform_11, window_bounds = array<i64: 32, 32>}, {pipeline_mode = #tpu.pipeline_mode<synchronous>, transform_indices = @transform_12, window_bounds = array<i64: 32, 32>}, {pipeline_mode = #tpu.pipeline_mode<synchronous>, transform_indices = @transform_13, window_bounds = array<i64: 32, 32>}, {pipeline_mode = #tpu.pipeline_mode<synchronous>, transform_indices = @transform_14, window_bounds = array<i64: 32, 32>}, {pipeline_mode = #tpu.pipeline_mode<synchronous>, transform_indices = @transform_15, window_bounds = array<i64: 1, 1, 32>}, {pipeline_mode = #tpu.pipeline_mode<synchronous>, transform_indices = @transform_16, window_bounds = array<i64: 32, 32>}, {transform_indices = @transform_17, window_bounds = array<i64: 8, 256>}, {transform_indices = @transform_18, window_bounds = array<i64: 8, 32>}]} {
    %c0 = arith.constant 0 : index
    %c0_0 = arith.constant 0 : index
    %c0_1 = arith.constant 0 : index
    %0 = vector.load %arg1[%c0, %c0_0, %c0_1] : memref<8x8x32xf32, #tpu.memory_space<vmem>>, vector<8x8x32xf32>
    %c0_2 = arith.constant 0 : index
    %c0_3 = arith.constant 0 : index
    %c0_4 = arith.constant 0 : index
    %1 = vector.load %arg2[%c0_2, %c0_3, %c0_4] : memref<8x12x32xf32, #tpu.memory_space<vmem>>, vector<8x12x32xf32>
    %c0_5 = arith.constant 0 : index
    %c0_6 = arith.constant 0 : index
    %c0_7 = arith.constant 0 : index
    %2 = vector.load %arg3[%c0_5, %c0_6, %c0_7] : memref<8x12x8xbf16, #tpu.memory_space<vmem>>, vector<8x12x8xbf16>
    %3 = arith.extf %2 : vector<8x12x8xbf16> to vector<8x12x8xf32>
    %c0_8 = arith.constant 0 : index
    %c0_9 = arith.constant 0 : index
    %c0_10 = arith.constant 0 : index
    %4 = vector.load %arg4[%c0_8, %c0_9, %c0_10] : memref<8x8x12xbf16, #tpu.memory_space<vmem>>, vector<8x8x12xbf16>
    %5 = arith.extf %4 : vector<8x8x12xbf16> to vector<8x8x12xf32>
    %c0_11 = arith.constant 0 : index
    %c0_12 = arith.constant 0 : index
    %c0_13 = arith.constant 0 : index
    %6 = vector.load %arg16[%c0_11, %c0_12, %c0_13] : memref<1x1x32xf32, #tpu.memory_space<vmem>>, vector<1x1x32xf32>
    %c0_14 = arith.constant 0 : index
    %c0_15 = arith.constant 0 : index
    %7 = vector.load %arg5[%c0_14, %c0_15] : memref<32x32xf32, #tpu.memory_space<vmem>>, vector<32x32xf32>
    %8 = vector.shape_cast %7 : vector<32x32xf32> to vector<1x32x32xf32>
    %9 = vector.broadcast %8 : vector<1x32x32xf32> to vector<8x32x32xf32>
    %c0_16 = arith.constant 0 : index
    %c0_17 = arith.constant 0 : index
    %10 = vector.load %arg6[%c0_16, %c0_17] : memref<32x32xf32, #tpu.memory_space<vmem>>, vector<32x32xf32>
    %11 = vector.shape_cast %10 : vector<32x32xf32> to vector<1x32x32xf32>
    %12 = vector.broadcast %11 : vector<1x32x32xf32> to vector<8x32x32xf32>
    %c0_18 = arith.constant 0 : index
    %c0_19 = arith.constant 0 : index
    %13 = vector.load %arg7[%c0_18, %c0_19] : memref<32x32xf32, #tpu.memory_space<vmem>>, vector<32x32xf32>
    %14 = vector.shape_cast %13 : vector<32x32xf32> to vector<1x32x32xf32>
    %15 = vector.broadcast %14 : vector<1x32x32xf32> to vector<8x32x32xf32>
    %c0_20 = arith.constant 0 : index
    %c0_21 = arith.constant 0 : index
    %16 = vector.load %arg8[%c0_20, %c0_21] : memref<32x32xf32, #tpu.memory_space<vmem>>, vector<32x32xf32>
    %17 = vector.shape_cast %16 : vector<32x32xf32> to vector<1x32x32xf32>
    %18 = vector.broadcast %17 : vector<1x32x32xf32> to vector<8x32x32xf32>
    %c0_22 = arith.constant 0 : index
    %c0_23 = arith.constant 0 : index
    %19 = vector.load %arg9[%c0_22, %c0_23] : memref<32x32xf32, #tpu.memory_space<vmem>>, vector<32x32xf32>
    %20 = vector.shape_cast %19 : vector<32x32xf32> to vector<1x32x32xf32>
    %21 = vector.broadcast %20 : vector<1x32x32xf32> to vector<8x32x32xf32>
    %c0_24 = arith.constant 0 : index
    %c0_25 = arith.constant 0 : index
    %22 = vector.load %arg10[%c0_24, %c0_25] : memref<32x32xf32, #tpu.memory_space<vmem>>, vector<32x32xf32>
    %23 = vector.shape_cast %22 : vector<32x32xf32> to vector<1x32x32xf32>
    %24 = vector.broadcast %23 : vector<1x32x32xf32> to vector<8x32x32xf32>
    %c0_26 = arith.constant 0 : index
    %c0_27 = arith.constant 0 : index
    %25 = vector.load %arg11[%c0_26, %c0_27] : memref<32x32xf32, #tpu.memory_space<vmem>>, vector<32x32xf32>
    %26 = vector.shape_cast %25 : vector<32x32xf32> to vector<1x32x32xf32>
    %27 = vector.broadcast %26 : vector<1x32x32xf32> to vector<8x32x32xf32>
    %c0_28 = arith.constant 0 : index
    %c0_29 = arith.constant 0 : index
    %28 = vector.load %arg12[%c0_28, %c0_29] : memref<32x32xf32, #tpu.memory_space<vmem>>, vector<32x32xf32>
    %29 = vector.shape_cast %28 : vector<32x32xf32> to vector<1x32x32xf32>
    %30 = vector.broadcast %29 : vector<1x32x32xf32> to vector<8x32x32xf32>
    %c0_30 = arith.constant 0 : index
    %c0_31 = arith.constant 0 : index
    %31 = vector.load %arg13[%c0_30, %c0_31] : memref<32x32xf32, #tpu.memory_space<vmem>>, vector<32x32xf32>
    %32 = vector.shape_cast %31 : vector<32x32xf32> to vector<1x32x32xf32>
    %33 = vector.broadcast %32 : vector<1x32x32xf32> to vector<8x32x32xf32>
    %c0_32 = arith.constant 0 : index
    %c0_33 = arith.constant 0 : index
    %34 = vector.load %arg14[%c0_32, %c0_33] : memref<32x32xf32, #tpu.memory_space<vmem>>, vector<32x32xf32>
    %35 = vector.shape_cast %34 : vector<32x32xf32> to vector<1x32x32xf32>
    %36 = vector.broadcast %35 : vector<1x32x32xf32> to vector<8x32x32xf32>
    %c0_34 = arith.constant 0 : index
    %c0_35 = arith.constant 0 : index
    %37 = vector.load %arg15[%c0_34, %c0_35] : memref<32x32xf32, #tpu.memory_space<vmem>>, vector<32x32xf32>
    %38 = vector.shape_cast %37 : vector<32x32xf32> to vector<1x32x32xf32>
    %39 = vector.broadcast %38 : vector<1x32x32xf32> to vector<8x32x32xf32>
    %c0_36 = arith.constant 0 : index
    %c0_37 = arith.constant 0 : index
    %40 = vector.load %arg17[%c0_36, %c0_37] : memref<32x32xf32, #tpu.memory_space<vmem>>, vector<32x32xf32>
    %41 = vector.shape_cast %40 : vector<32x32xf32> to vector<1x32x32xf32>
    %42 = vector.broadcast %41 : vector<1x32x32xf32> to vector<8x32x32xf32>
    "tpu.trace_start"() <{level = 10 : i32, message = "bnh,bhk->bnk"}> : () -> ()
    %cst = arith.constant dense<0.000000e+00> : vector<8x12x32xf32>
    %43 = tpu.matmul %1, %9, %cst {dimension_numbers = #tpu.dot_dimension_numbers<[2], [1], [1], [2], [0, 0, 0, 1, 1, 2], [0], [0]>} : vector<8x12x32xf32>, vector<8x32x32xf32>, vector<8x12x32xf32> -> vector<8x12x32xf32>
    %cst_38 = arith.constant 1.000000e+00 : f32
    "tpu.trace_stop"() : () -> ()
    %44 = vector.broadcast %cst_38 : f32 to vector<8x12x32xf32>
    "tpu.trace_start"() <{level = 10 : i32, message = "bne,beh->bnh"}> : () -> ()
    %cst_39 = arith.constant dense<0.000000e+00> : vector<8x8x32xf32>
    %45 = tpu.matmul %5, %44, %cst_39 {dimension_numbers = #tpu.dot_dimension_numbers<[2], [1], [1], [2], [0, 0, 0, 1, 1, 2], [0], [0]>} : vector<8x8x12xf32>, vector<8x12x32xf32>, vector<8x8x32xf32> -> vector<8x8x32xf32>
    "tpu.trace_stop"() : () -> ()
    %cst_40 = arith.constant 1.000000e+00 : f32
    %46 = vector.broadcast %cst_40 : f32 to vector<8x8x32xf32>
    %47 = arith.addf %45, %46 : vector<8x8x32xf32>
    %cst_41 = arith.constant 1.000000e+00 : f32
    %48 = vector.broadcast %cst_41 : f32 to vector<8x8x32xf32>
    %49 = arith.divf %48, %47 : vector<8x8x32xf32>
    "tpu.trace_start"() <{level = 10 : i32, message = "ben,beh->bnh"}> : () -> ()
    %cst_42 = arith.constant dense<0.000000e+00> : vector<8x8x32xf32>
    %50 = tpu.matmul %3, %44, %cst_42 {dimension_numbers = #tpu.dot_dimension_numbers<[1], [1], [2], [2], [0, 0, 0, 2, 1, 2], [0], [0]>} : vector<8x12x8xf32>, vector<8x12x32xf32>, vector<8x8x32xf32> -> vector<8x8x32xf32>
    "tpu.trace_stop"() : () -> ()
    %cst_43 = arith.constant 1.000000e+00 : f32
    %51 = vector.broadcast %cst_43 : f32 to vector<8x8x32xf32>
    %52 = arith.addf %50, %51 : vector<8x8x32xf32>
    %cst_44 = arith.constant 1.000000e+00 : f32
    %53 = vector.broadcast %cst_44 : f32 to vector<8x8x32xf32>
    %54 = arith.divf %53, %52 : vector<8x8x32xf32>
    "tpu.trace_start"() <{level = 10 : i32, message = "ben,bnh->beh"}> : () -> ()
    %cst_45 = arith.constant dense<0.000000e+00> : vector<8x12x32xf32>
    %55 = tpu.matmul %3, %0, %cst_45 {dimension_numbers = #tpu.dot_dimension_numbers<[2], [1], [1], [2], [0, 0, 0, 1, 1, 2], [0], [0]>} : vector<8x12x8xf32>, vector<8x8x32xf32>, vector<8x12x32xf32> -> vector<8x12x32xf32>
    "tpu.trace_stop"() : () -> ()
    %56 = arith.addf %55, %43 : vector<8x12x32xf32>
    "tpu.trace_start"() <{level = 10 : i32, message = "bne,beh->bnh"}> : () -> ()
    %cst_46 = arith.constant dense<0.000000e+00> : vector<8x8x32xf32>
    %57 = tpu.matmul %5, %56, %cst_46 {dimension_numbers = #tpu.dot_dimension_numbers<[2], [1], [1], [2], [0, 0, 0, 1, 1, 2], [0], [0]>} : vector<8x8x12xf32>, vector<8x12x32xf32>, vector<8x8x32xf32> -> vector<8x8x32xf32>
    "tpu.trace_stop"() : () -> ()
    %58 = arith.addf %57, %0 : vector<8x8x32xf32>
    %59 = arith.mulf %58, %49 : vector<8x8x32xf32>
    "tpu.trace_start"() <{level = 10 : i32, message = "bne,bnh->beh"}> : () -> ()
    %cst_47 = arith.constant dense<0.000000e+00> : vector<8x12x32xf32>
    %60 = tpu.matmul %5, %0, %cst_47 {dimension_numbers = #tpu.dot_dimension_numbers<[1], [1], [2], [2], [0, 0, 0, 2, 1, 2], [0], [0]>} : vector<8x8x12xf32>, vector<8x8x32xf32>, vector<8x12x32xf32> -> vector<8x12x32xf32>
    "tpu.trace_stop"() : () -> ()
    %61 = arith.addf %60, %43 : vector<8x12x32xf32>
    "tpu.trace_start"() <{level = 10 : i32, message = "ben,beh->bnh"}> : () -> ()
    %cst_48 = arith.constant dense<0.000000e+00> : vector<8x8x32xf32>
    %62 = tpu.matmul %3, %61, %cst_48 {dimension_numbers = #tpu.dot_dimension_numbers<[1], [1], [2], [2], [0, 0, 0, 2, 1, 2], [0], [0]>} : vector<8x12x8xf32>, vector<8x12x32xf32>, vector<8x8x32xf32> -> vector<8x8x32xf32>
    "tpu.trace_stop"() : () -> ()
    %63 = arith.addf %62, %0 : vector<8x8x32xf32>
    %64 = arith.mulf %63, %54 : vector<8x8x32xf32>
    "tpu.trace_start"() <{level = 10 : i32, message = "bnh,bhk->bnk"}> : () -> ()
    %cst_49 = arith.constant dense<0.000000e+00> : vector<8x8x32xf32>
    %65 = tpu.matmul %64, %30, %cst_49 {dimension_numbers = #tpu.dot_dimension_numbers<[2], [1], [1], [2], [0, 0, 0, 1, 1, 2], [0], [0]>} : vector<8x8x32xf32>, vector<8x32x32xf32>, vector<8x8x32xf32> -> vector<8x8x32xf32>
    %cst_50 = arith.constant dense<0.000000e+00> : vector<8x8x32xf32>
    %66 = tpu.matmul %59, %33, %cst_50 {dimension_numbers = #tpu.dot_dimension_numbers<[2], [1], [1], [2], [0, 0, 0, 1, 1, 2], [0], [0]>} : vector<8x8x32xf32>, vector<8x32x32xf32>, vector<8x8x32xf32> -> vector<8x8x32xf32>
    "tpu.trace_stop"() : () -> ()
    %67 = arith.addf %65, %66 : vector<8x8x32xf32>
    %68 = arith.mulf %64, %59 : vector<8x8x32xf32>
    "tpu.trace_start"() <{level = 10 : i32, message = "bnh,bhk->bnk"}> : () -> ()
    %cst_51 = arith.constant dense<0.000000e+00> : vector<8x8x32xf32>
    %69 = tpu.matmul %68, %36, %cst_51 {dimension_numbers = #tpu.dot_dimension_numbers<[2], [1], [1], [2], [0, 0, 0, 1, 1, 2], [0], [0]>} : vector<8x8x32xf32>, vector<8x32x32xf32>, vector<8x8x32xf32> -> vector<8x8x32xf32>
    "tpu.trace_stop"() : () -> ()
    %70 = arith.addf %67, %69 : vector<8x8x32xf32>
    %71 = arith.subf %64, %59 : vector<8x8x32xf32>
    "tpu.trace_start"() <{level = 10 : i32, message = "bnh,bhk->bnk"}> : () -> ()
    %cst_52 = arith.constant dense<0.000000e+00> : vector<8x8x32xf32>
    %72 = tpu.matmul %71, %39, %cst_52 {dimension_numbers = #tpu.dot_dimension_numbers<[2], [1], [1], [2], [0, 0, 0, 1, 1, 2], [0], [0]>} : vector<8x8x32xf32>, vector<8x32x32xf32>, vector<8x8x32xf32> -> vector<8x8x32xf32>
    "tpu.trace_stop"() : () -> ()
    %73 = arith.addf %70, %72 : vector<8x8x32xf32>
    %74 = vector.broadcast %6 : vector<1x1x32xf32> to vector<8x8x32xf32>
    %75 = arith.addf %73, %74 : vector<8x8x32xf32>
    %76 = arith.negf %75 : vector<8x8x32xf32>
    %77 = math.exp %76 : vector<8x8x32xf32>
    %cst_53 = arith.constant 1.000000e+00 : f32
    %78 = vector.broadcast %cst_53 : f32 to vector<8x8x32xf32>
    %79 = arith.addf %78, %77 : vector<8x8x32xf32>
    %80 = arith.divf %78, %79 : vector<8x8x32xf32>
    %cst_54 = arith.constant 1.000000e+00 : f32
    %81 = vector.broadcast %cst_54 : f32 to vector<8x8x32xf32>
    %82 = arith.subf %81, %80 : vector<8x8x32xf32>
    %83 = arith.mulf %82, %64 : vector<8x8x32xf32>
    %84 = arith.mulf %80, %59 : vector<8x8x32xf32>
    %85 = arith.addf %83, %84 : vector<8x8x32xf32>
    "tpu.trace_start"() <{level = 10 : i32, message = "bnh,bhk->bnk"}> : () -> ()
    %cst_55 = arith.constant dense<0.000000e+00> : vector<8x8x32xf32>
    %86 = tpu.matmul %0, %12, %cst_55 {dimension_numbers = #tpu.dot_dimension_numbers<[2], [1], [1], [2], [0, 0, 0, 1, 1, 2], [0], [0]>} : vector<8x8x32xf32>, vector<8x32x32xf32>, vector<8x8x32xf32> -> vector<8x8x32xf32>
    %cst_56 = arith.constant dense<0.000000e+00> : vector<8x8x32xf32>
    %87 = tpu.matmul %85, %15, %cst_56 {dimension_numbers = #tpu.dot_dimension_numbers<[2], [1], [1], [2], [0, 0, 0, 1, 1, 2], [0], [0]>} : vector<8x8x32xf32>, vector<8x32x32xf32>, vector<8x8x32xf32> -> vector<8x8x32xf32>
    "tpu.trace_stop"() : () -> ()
    %88 = arith.addf %86, %87 : vector<8x8x32xf32>
    %89 = arith.negf %88 : vector<8x8x32xf32>
    %90 = math.exp %89 : vector<8x8x32xf32>
    %cst_57 = arith.constant 1.000000e+00 : f32
    %91 = vector.broadcast %cst_57 : f32 to vector<8x8x32xf32>
    %92 = arith.addf %91, %90 : vector<8x8x32xf32>
    %93 = arith.divf %91, %92 : vector<8x8x32xf32>
    "tpu.trace_start"() <{level = 10 : i32, message = "bnh,bhk->bnk"}> : () -> ()
    %cst_58 = arith.constant dense<0.000000e+00> : vector<8x8x32xf32>
    %94 = tpu.matmul %0, %18, %cst_58 {dimension_numbers = #tpu.dot_dimension_numbers<[2], [1], [1], [2], [0, 0, 0, 1, 1, 2], [0], [0]>} : vector<8x8x32xf32>, vector<8x32x32xf32>, vector<8x8x32xf32> -> vector<8x8x32xf32>
    %cst_59 = arith.constant dense<0.000000e+00> : vector<8x8x32xf32>
    %95 = tpu.matmul %85, %21, %cst_59 {dimension_numbers = #tpu.dot_dimension_numbers<[2], [1], [1], [2], [0, 0, 0, 1, 1, 2], [0], [0]>} : vector<8x8x32xf32>, vector<8x32x32xf32>, vector<8x8x32xf32> -> vector<8x8x32xf32>
    "tpu.trace_stop"() : () -> ()
    %96 = arith.addf %94, %95 : vector<8x8x32xf32>
    %97 = arith.negf %96 : vector<8x8x32xf32>
    %98 = math.exp %97 : vector<8x8x32xf32>
    %cst_60 = arith.constant 1.000000e+00 : f32
    %99 = vector.broadcast %cst_60 : f32 to vector<8x8x32xf32>
    %100 = arith.addf %99, %98 : vector<8x8x32xf32>
    %101 = arith.divf %99, %100 : vector<8x8x32xf32>
    %102 = arith.mulf %101, %0 : vector<8x8x32xf32>
    "tpu.trace_start"() <{level = 10 : i32, message = "bnh,bhk->bnk"}> : () -> ()
    %cst_61 = arith.constant dense<0.000000e+00> : vector<8x8x32xf32>
    %103 = tpu.matmul %102, %24, %cst_61 {dimension_numbers = #tpu.dot_dimension_numbers<[2], [1], [1], [2], [0, 0, 0, 1, 1, 2], [0], [0]>} : vector<8x8x32xf32>, vector<8x32x32xf32>, vector<8x8x32xf32> -> vector<8x8x32xf32>
    %cst_62 = arith.constant dense<0.000000e+00> : vector<8x8x32xf32>
    %104 = tpu.matmul %85, %27, %cst_62 {dimension_numbers = #tpu.dot_dimension_numbers<[2], [1], [1], [2], [0, 0, 0, 1, 1, 2], [0], [0]>} : vector<8x8x32xf32>, vector<8x32x32xf32>, vector<8x8x32xf32> -> vector<8x8x32xf32>
    "tpu.trace_stop"() : () -> ()
    %105 = arith.addf %103, %104 : vector<8x8x32xf32>
    %106 = math.tanh %105 : vector<8x8x32xf32>
    %cst_63 = arith.constant 1.000000e+00 : f32
    %107 = vector.broadcast %cst_63 : f32 to vector<8x8x32xf32>
    %108 = arith.subf %107, %93 : vector<8x8x32xf32>
    %109 = arith.mulf %108, %0 : vector<8x8x32xf32>
    %110 = arith.mulf %93, %106 : vector<8x8x32xf32>
    %111 = arith.addf %109, %110 : vector<8x8x32xf32>
    "tpu.trace_start"() <{level = 10 : i32, message = "ben,bnh->beh"}> : () -> ()
    %cst_64 = arith.constant dense<0.000000e+00> : vector<8x12x32xf32>
    %112 = tpu.matmul %3, %111, %cst_64 {dimension_numbers = #tpu.dot_dimension_numbers<[2], [1], [1], [2], [0, 0, 0, 1, 1, 2], [0], [0]>} : vector<8x12x8xf32>, vector<8x8x32xf32>, vector<8x12x32xf32> -> vector<8x12x32xf32>
    "tpu.trace_stop"() : () -> ()
    %113 = arith.addf %112, %43 : vector<8x12x32xf32>
    "tpu.trace_start"() <{level = 10 : i32, message = "bne,beh->bnh"}> : () -> ()
    %cst_65 = arith.constant dense<0.000000e+00> : vector<8x8x32xf32>
    %114 = tpu.matmul %5, %113, %cst_65 {dimension_numbers = #tpu.dot_dimension_numbers<[2], [1], [1], [2], [0, 0, 0, 1, 1, 2], [0], [0]>} : vector<8x8x12xf32>, vector<8x12x32xf32>, vector<8x8x32xf32> -> vector<8x8x32xf32>
    "tpu.trace_stop"() : () -> ()
    %115 = arith.addf %114, %111 : vector<8x8x32xf32>
    %116 = arith.mulf %115, %49 : vector<8x8x32xf32>
    "tpu.trace_start"() <{level = 10 : i32, message = "bne,bnh->beh"}> : () -> ()
    %cst_66 = arith.constant dense<0.000000e+00> : vector<8x12x32xf32>
    %117 = tpu.matmul %5, %111, %cst_66 {dimension_numbers = #tpu.dot_dimension_numbers<[1], [1], [2], [2], [0, 0, 0, 2, 1, 2], [0], [0]>} : vector<8x8x12xf32>, vector<8x8x32xf32>, vector<8x12x32xf32> -> vector<8x12x32xf32>
    "tpu.trace_stop"() : () -> ()
    %118 = arith.addf %117, %43 : vector<8x12x32xf32>
    "tpu.trace_start"() <{level = 10 : i32, message = "ben,beh->bnh"}> : () -> ()
    %cst_67 = arith.constant dense<0.000000e+00> : vector<8x8x32xf32>
    %119 = tpu.matmul %3, %118, %cst_67 {dimension_numbers = #tpu.dot_dimension_numbers<[1], [1], [2], [2], [0, 0, 0, 2, 1, 2], [0], [0]>} : vector<8x12x8xf32>, vector<8x12x32xf32>, vector<8x8x32xf32> -> vector<8x8x32xf32>
    "tpu.trace_stop"() : () -> ()
    %120 = arith.addf %119, %111 : vector<8x8x32xf32>
    %121 = arith.mulf %120, %54 : vector<8x8x32xf32>
    "tpu.trace_start"() <{level = 10 : i32, message = "bnh,bhk->bnk"}> : () -> ()
    %cst_68 = arith.constant dense<0.000000e+00> : vector<8x8x32xf32>
    %122 = tpu.matmul %121, %30, %cst_68 {dimension_numbers = #tpu.dot_dimension_numbers<[2], [1], [1], [2], [0, 0, 0, 1, 1, 2], [0], [0]>} : vector<8x8x32xf32>, vector<8x32x32xf32>, vector<8x8x32xf32> -> vector<8x8x32xf32>
    %cst_69 = arith.constant dense<0.000000e+00> : vector<8x8x32xf32>
    %123 = tpu.matmul %116, %33, %cst_69 {dimension_numbers = #tpu.dot_dimension_numbers<[2], [1], [1], [2], [0, 0, 0, 1, 1, 2], [0], [0]>} : vector<8x8x32xf32>, vector<8x32x32xf32>, vector<8x8x32xf32> -> vector<8x8x32xf32>
    "tpu.trace_stop"() : () -> ()
    %124 = arith.addf %122, %123 : vector<8x8x32xf32>
    %125 = arith.mulf %121, %116 : vector<8x8x32xf32>
    "tpu.trace_start"() <{level = 10 : i32, message = "bnh,bhk->bnk"}> : () -> ()
    %cst_70 = arith.constant dense<0.000000e+00> : vector<8x8x32xf32>
    %126 = tpu.matmul %125, %36, %cst_70 {dimension_numbers = #tpu.dot_dimension_numbers<[2], [1], [1], [2], [0, 0, 0, 1, 1, 2], [0], [0]>} : vector<8x8x32xf32>, vector<8x32x32xf32>, vector<8x8x32xf32> -> vector<8x8x32xf32>
    "tpu.trace_stop"() : () -> ()
    %127 = arith.addf %124, %126 : vector<8x8x32xf32>
    %128 = arith.subf %121, %116 : vector<8x8x32xf32>
    "tpu.trace_start"() <{level = 10 : i32, message = "bnh,bhk->bnk"}> : () -> ()
    %cst_71 = arith.constant dense<0.000000e+00> : vector<8x8x32xf32>
    %129 = tpu.matmul %128, %39, %cst_71 {dimension_numbers = #tpu.dot_dimension_numbers<[2], [1], [1], [2], [0, 0, 0, 1, 1, 2], [0], [0]>} : vector<8x8x32xf32>, vector<8x32x32xf32>, vector<8x8x32xf32> -> vector<8x8x32xf32>
    "tpu.trace_stop"() : () -> ()
    %130 = arith.addf %127, %129 : vector<8x8x32xf32>
    %131 = vector.broadcast %6 : vector<1x1x32xf32> to vector<8x8x32xf32>
    %132 = arith.addf %130, %131 : vector<8x8x32xf32>
    %133 = arith.negf %132 : vector<8x8x32xf32>
    %134 = math.exp %133 : vector<8x8x32xf32>
    %cst_72 = arith.constant 1.000000e+00 : f32
    %135 = vector.broadcast %cst_72 : f32 to vector<8x8x32xf32>
    %136 = arith.addf %135, %134 : vector<8x8x32xf32>
    %137 = arith.divf %135, %136 : vector<8x8x32xf32>
    %cst_73 = arith.constant 1.000000e+00 : f32
    %138 = vector.broadcast %cst_73 : f32 to vector<8x8x32xf32>
    %139 = arith.subf %138, %137 : vector<8x8x32xf32>
    %140 = arith.mulf %139, %121 : vector<8x8x32xf32>
    %141 = arith.mulf %137, %116 : vector<8x8x32xf32>
    %142 = arith.addf %140, %141 : vector<8x8x32xf32>
    "tpu.trace_start"() <{level = 10 : i32, message = "bnh,bhk->bnk"}> : () -> ()
    %cst_74 = arith.constant dense<0.000000e+00> : vector<8x8x32xf32>
    %143 = tpu.matmul %111, %12, %cst_74 {dimension_numbers = #tpu.dot_dimension_numbers<[2], [1], [1], [2], [0, 0, 0, 1, 1, 2], [0], [0]>} : vector<8x8x32xf32>, vector<8x32x32xf32>, vector<8x8x32xf32> -> vector<8x8x32xf32>
    %cst_75 = arith.constant dense<0.000000e+00> : vector<8x8x32xf32>
    %144 = tpu.matmul %142, %15, %cst_75 {dimension_numbers = #tpu.dot_dimension_numbers<[2], [1], [1], [2], [0, 0, 0, 1, 1, 2], [0], [0]>} : vector<8x8x32xf32>, vector<8x32x32xf32>, vector<8x8x32xf32> -> vector<8x8x32xf32>
    "tpu.trace_stop"() : () -> ()
    %145 = arith.addf %143, %144 : vector<8x8x32xf32>
    %146 = arith.negf %145 : vector<8x8x32xf32>
    %147 = math.exp %146 : vector<8x8x32xf32>
    %cst_76 = arith.constant 1.000000e+00 : f32
    %148 = vector.broadcast %cst_76 : f32 to vector<8x8x32xf32>
    %149 = arith.addf %148, %147 : vector<8x8x32xf32>
    %150 = arith.divf %148, %149 : vector<8x8x32xf32>
    "tpu.trace_start"() <{level = 10 : i32, message = "bnh,bhk->bnk"}> : () -> ()
    %cst_77 = arith.constant dense<0.000000e+00> : vector<8x8x32xf32>
    %151 = tpu.matmul %111, %18, %cst_77 {dimension_numbers = #tpu.dot_dimension_numbers<[2], [1], [1], [2], [0, 0, 0, 1, 1, 2], [0], [0]>} : vector<8x8x32xf32>, vector<8x32x32xf32>, vector<8x8x32xf32> -> vector<8x8x32xf32>
    %cst_78 = arith.constant dense<0.000000e+00> : vector<8x8x32xf32>
    %152 = tpu.matmul %142, %21, %cst_78 {dimension_numbers = #tpu.dot_dimension_numbers<[2], [1], [1], [2], [0, 0, 0, 1, 1, 2], [0], [0]>} : vector<8x8x32xf32>, vector<8x32x32xf32>, vector<8x8x32xf32> -> vector<8x8x32xf32>
    "tpu.trace_stop"() : () -> ()
    %153 = arith.addf %151, %152 : vector<8x8x32xf32>
    %154 = arith.negf %153 : vector<8x8x32xf32>
    %155 = math.exp %154 : vector<8x8x32xf32>
    %cst_79 = arith.constant 1.000000e+00 : f32
    %156 = vector.broadcast %cst_79 : f32 to vector<8x8x32xf32>
    %157 = arith.addf %156, %155 : vector<8x8x32xf32>
    %158 = arith.divf %156, %157 : vector<8x8x32xf32>
    %159 = arith.mulf %158, %111 : vector<8x8x32xf32>
    "tpu.trace_start"() <{level = 10 : i32, message = "bnh,bhk->bnk"}> : () -> ()
    %cst_80 = arith.constant dense<0.000000e+00> : vector<8x8x32xf32>
    %160 = tpu.matmul %159, %24, %cst_80 {dimension_numbers = #tpu.dot_dimension_numbers<[2], [1], [1], [2], [0, 0, 0, 1, 1, 2], [0], [0]>} : vector<8x8x32xf32>, vector<8x32x32xf32>, vector<8x8x32xf32> -> vector<8x8x32xf32>
    %cst_81 = arith.constant dense<0.000000e+00> : vector<8x8x32xf32>
    %161 = tpu.matmul %142, %27, %cst_81 {dimension_numbers = #tpu.dot_dimension_numbers<[2], [1], [1], [2], [0, 0, 0, 1, 1, 2], [0], [0]>} : vector<8x8x32xf32>, vector<8x32x32xf32>, vector<8x8x32xf32> -> vector<8x8x32xf32>
    "tpu.trace_stop"() : () -> ()
    %162 = arith.addf %160, %161 : vector<8x8x32xf32>
    %163 = math.tanh %162 : vector<8x8x32xf32>
    %cst_82 = arith.constant 1.000000e+00 : f32
    %164 = vector.broadcast %cst_82 : f32 to vector<8x8x32xf32>
    %165 = arith.subf %164, %150 : vector<8x8x32xf32>
    %166 = arith.mulf %165, %111 : vector<8x8x32xf32>
    %167 = arith.mulf %150, %163 : vector<8x8x32xf32>
    %168 = arith.addf %166, %167 : vector<8x8x32xf32>
    "tpu.trace_start"() <{level = 10 : i32, message = "ben,bnh->beh"}> : () -> ()
    %cst_83 = arith.constant dense<0.000000e+00> : vector<8x12x32xf32>
    %169 = tpu.matmul %3, %168, %cst_83 {dimension_numbers = #tpu.dot_dimension_numbers<[2], [1], [1], [2], [0, 0, 0, 1, 1, 2], [0], [0]>} : vector<8x12x8xf32>, vector<8x8x32xf32>, vector<8x12x32xf32> -> vector<8x12x32xf32>
    "tpu.trace_stop"() : () -> ()
    %170 = arith.addf %169, %43 : vector<8x12x32xf32>
    "tpu.trace_start"() <{level = 10 : i32, message = "bne,beh->bnh"}> : () -> ()
    %cst_84 = arith.constant dense<0.000000e+00> : vector<8x8x32xf32>
    %171 = tpu.matmul %5, %170, %cst_84 {dimension_numbers = #tpu.dot_dimension_numbers<[2], [1], [1], [2], [0, 0, 0, 1, 1, 2], [0], [0]>} : vector<8x8x12xf32>, vector<8x12x32xf32>, vector<8x8x32xf32> -> vector<8x8x32xf32>
    "tpu.trace_stop"() : () -> ()
    %172 = arith.addf %171, %168 : vector<8x8x32xf32>
    %173 = arith.mulf %172, %49 : vector<8x8x32xf32>
    "tpu.trace_start"() <{level = 10 : i32, message = "bne,bnh->beh"}> : () -> ()
    %cst_85 = arith.constant dense<0.000000e+00> : vector<8x12x32xf32>
    %174 = tpu.matmul %5, %168, %cst_85 {dimension_numbers = #tpu.dot_dimension_numbers<[1], [1], [2], [2], [0, 0, 0, 2, 1, 2], [0], [0]>} : vector<8x8x12xf32>, vector<8x8x32xf32>, vector<8x12x32xf32> -> vector<8x12x32xf32>
    "tpu.trace_stop"() : () -> ()
    %175 = arith.addf %174, %43 : vector<8x12x32xf32>
    "tpu.trace_start"() <{level = 10 : i32, message = "ben,beh->bnh"}> : () -> ()
    %cst_86 = arith.constant dense<0.000000e+00> : vector<8x8x32xf32>
    %176 = tpu.matmul %3, %175, %cst_86 {dimension_numbers = #tpu.dot_dimension_numbers<[1], [1], [2], [2], [0, 0, 0, 2, 1, 2], [0], [0]>} : vector<8x12x8xf32>, vector<8x12x32xf32>, vector<8x8x32xf32> -> vector<8x8x32xf32>
    "tpu.trace_stop"() : () -> ()
    %177 = arith.addf %176, %168 : vector<8x8x32xf32>
    %178 = arith.mulf %177, %54 : vector<8x8x32xf32>
    "tpu.trace_start"() <{level = 10 : i32, message = "bnh,bhk->bnk"}> : () -> ()
    %cst_87 = arith.constant dense<0.000000e+00> : vector<8x8x32xf32>
    %179 = tpu.matmul %178, %30, %cst_87 {dimension_numbers = #tpu.dot_dimension_numbers<[2], [1], [1], [2], [0, 0, 0, 1, 1, 2], [0], [0]>} : vector<8x8x32xf32>, vector<8x32x32xf32>, vector<8x8x32xf32> -> vector<8x8x32xf32>
    %cst_88 = arith.constant dense<0.000000e+00> : vector<8x8x32xf32>
    %180 = tpu.matmul %173, %33, %cst_88 {dimension_numbers = #tpu.dot_dimension_numbers<[2], [1], [1], [2], [0, 0, 0, 1, 1, 2], [0], [0]>} : vector<8x8x32xf32>, vector<8x32x32xf32>, vector<8x8x32xf32> -> vector<8x8x32xf32>
    "tpu.trace_stop"() : () -> ()
    %181 = arith.addf %179, %180 : vector<8x8x32xf32>
    %182 = arith.mulf %178, %173 : vector<8x8x32xf32>
    "tpu.trace_start"() <{level = 10 : i32, message = "bnh,bhk->bnk"}> : () -> ()
    %cst_89 = arith.constant dense<0.000000e+00> : vector<8x8x32xf32>
    %183 = tpu.matmul %182, %36, %cst_89 {dimension_numbers = #tpu.dot_dimension_numbers<[2], [1], [1], [2], [0, 0, 0, 1, 1, 2], [0], [0]>} : vector<8x8x32xf32>, vector<8x32x32xf32>, vector<8x8x32xf32> -> vector<8x8x32xf32>
    "tpu.trace_stop"() : () -> ()
    %184 = arith.addf %181, %183 : vector<8x8x32xf32>
    %185 = arith.subf %178, %173 : vector<8x8x32xf32>
    "tpu.trace_start"() <{level = 10 : i32, message = "bnh,bhk->bnk"}> : () -> ()
    %cst_90 = arith.constant dense<0.000000e+00> : vector<8x8x32xf32>
    %186 = tpu.matmul %185, %39, %cst_90 {dimension_numbers = #tpu.dot_dimension_numbers<[2], [1], [1], [2], [0, 0, 0, 1, 1, 2], [0], [0]>} : vector<8x8x32xf32>, vector<8x32x32xf32>, vector<8x8x32xf32> -> vector<8x8x32xf32>
    "tpu.trace_stop"() : () -> ()
    %187 = arith.addf %184, %186 : vector<8x8x32xf32>
    %188 = vector.broadcast %6 : vector<1x1x32xf32> to vector<8x8x32xf32>
    %189 = arith.addf %187, %188 : vector<8x8x32xf32>
    %190 = arith.negf %189 : vector<8x8x32xf32>
    %191 = math.exp %190 : vector<8x8x32xf32>
    %cst_91 = arith.constant 1.000000e+00 : f32
    %192 = vector.broadcast %cst_91 : f32 to vector<8x8x32xf32>
    %193 = arith.addf %192, %191 : vector<8x8x32xf32>
    %194 = arith.divf %192, %193 : vector<8x8x32xf32>
    %cst_92 = arith.constant 1.000000e+00 : f32
    %195 = vector.broadcast %cst_92 : f32 to vector<8x8x32xf32>
    %196 = arith.subf %195, %194 : vector<8x8x32xf32>
    %197 = arith.mulf %196, %178 : vector<8x8x32xf32>
    %198 = arith.mulf %194, %173 : vector<8x8x32xf32>
    %199 = arith.addf %197, %198 : vector<8x8x32xf32>
    "tpu.trace_start"() <{level = 10 : i32, message = "bnh,bhk->bnk"}> : () -> ()
    %cst_93 = arith.constant dense<0.000000e+00> : vector<8x8x32xf32>
    %200 = tpu.matmul %168, %12, %cst_93 {dimension_numbers = #tpu.dot_dimension_numbers<[2], [1], [1], [2], [0, 0, 0, 1, 1, 2], [0], [0]>} : vector<8x8x32xf32>, vector<8x32x32xf32>, vector<8x8x32xf32> -> vector<8x8x32xf32>
    %cst_94 = arith.constant dense<0.000000e+00> : vector<8x8x32xf32>
    %201 = tpu.matmul %199, %15, %cst_94 {dimension_numbers = #tpu.dot_dimension_numbers<[2], [1], [1], [2], [0, 0, 0, 1, 1, 2], [0], [0]>} : vector<8x8x32xf32>, vector<8x32x32xf32>, vector<8x8x32xf32> -> vector<8x8x32xf32>
    "tpu.trace_stop"() : () -> ()
    %202 = arith.addf %200, %201 : vector<8x8x32xf32>
    %203 = arith.negf %202 : vector<8x8x32xf32>
    %204 = math.exp %203 : vector<8x8x32xf32>
    %cst_95 = arith.constant 1.000000e+00 : f32
    %205 = vector.broadcast %cst_95 : f32 to vector<8x8x32xf32>
    %206 = arith.addf %205, %204 : vector<8x8x32xf32>
    %207 = arith.divf %205, %206 : vector<8x8x32xf32>
    "tpu.trace_start"() <{level = 10 : i32, message = "bnh,bhk->bnk"}> : () -> ()
    %cst_96 = arith.constant dense<0.000000e+00> : vector<8x8x32xf32>
    %208 = tpu.matmul %168, %18, %cst_96 {dimension_numbers = #tpu.dot_dimension_numbers<[2], [1], [1], [2], [0, 0, 0, 1, 1, 2], [0], [0]>} : vector<8x8x32xf32>, vector<8x32x32xf32>, vector<8x8x32xf32> -> vector<8x8x32xf32>
    %cst_97 = arith.constant dense<0.000000e+00> : vector<8x8x32xf32>
    %209 = tpu.matmul %199, %21, %cst_97 {dimension_numbers = #tpu.dot_dimension_numbers<[2], [1], [1], [2], [0, 0, 0, 1, 1, 2], [0], [0]>} : vector<8x8x32xf32>, vector<8x32x32xf32>, vector<8x8x32xf32> -> vector<8x8x32xf32>
    "tpu.trace_stop"() : () -> ()
    %210 = arith.addf %208, %209 : vector<8x8x32xf32>
    %211 = arith.negf %210 : vector<8x8x32xf32>
    %212 = math.exp %211 : vector<8x8x32xf32>
    %cst_98 = arith.constant 1.000000e+00 : f32
    %213 = vector.broadcast %cst_98 : f32 to vector<8x8x32xf32>
    %214 = arith.addf %213, %212 : vector<8x8x32xf32>
    %215 = arith.divf %213, %214 : vector<8x8x32xf32>
    %216 = arith.mulf %215, %168 : vector<8x8x32xf32>
    "tpu.trace_start"() <{level = 10 : i32, message = "bnh,bhk->bnk"}> : () -> ()
    %cst_99 = arith.constant dense<0.000000e+00> : vector<8x8x32xf32>
    %217 = tpu.matmul %216, %24, %cst_99 {dimension_numbers = #tpu.dot_dimension_numbers<[2], [1], [1], [2], [0, 0, 0, 1, 1, 2], [0], [0]>} : vector<8x8x32xf32>, vector<8x32x32xf32>, vector<8x8x32xf32> -> vector<8x8x32xf32>
    %cst_100 = arith.constant dense<0.000000e+00> : vector<8x8x32xf32>
    %218 = tpu.matmul %199, %27, %cst_100 {dimension_numbers = #tpu.dot_dimension_numbers<[2], [1], [1], [2], [0, 0, 0, 1, 1, 2], [0], [0]>} : vector<8x8x32xf32>, vector<8x32x32xf32>, vector<8x8x32xf32> -> vector<8x8x32xf32>
    "tpu.trace_stop"() : () -> ()
    %219 = arith.addf %217, %218 : vector<8x8x32xf32>
    %220 = math.tanh %219 : vector<8x8x32xf32>
    %cst_101 = arith.constant 1.000000e+00 : f32
    %221 = vector.broadcast %cst_101 : f32 to vector<8x8x32xf32>
    %222 = arith.subf %221, %207 : vector<8x8x32xf32>
    %223 = arith.mulf %222, %168 : vector<8x8x32xf32>
    %224 = arith.mulf %207, %220 : vector<8x8x32xf32>
    %225 = arith.addf %223, %224 : vector<8x8x32xf32>
    %226 = vector.extract_strided_slice %225 {offsets = [0, 0, 0], sizes = [8, 1, 32], strides = [1, 1, 1]} : vector<8x8x32xf32> to vector<8x1x32xf32>
    %227 = vector.shape_cast %226 : vector<8x1x32xf32> to vector<8x32xf32>
    %228 = vector.extract_strided_slice %225 {offsets = [0, 1, 0], sizes = [8, 1, 32], strides = [1, 1, 1]} : vector<8x8x32xf32> to vector<8x1x32xf32>
    %229 = vector.shape_cast %228 : vector<8x1x32xf32> to vector<8x32xf32>
    %230 = vector.extract_strided_slice %225 {offsets = [0, 2, 0], sizes = [8, 1, 32], strides = [1, 1, 1]} : vector<8x8x32xf32> to vector<8x1x32xf32>
    %231 = vector.shape_cast %230 : vector<8x1x32xf32> to vector<8x32xf32>
    %232 = vector.extract_strided_slice %225 {offsets = [0, 3, 0], sizes = [8, 1, 32], strides = [1, 1, 1]} : vector<8x8x32xf32> to vector<8x1x32xf32>
    %233 = vector.shape_cast %232 : vector<8x1x32xf32> to vector<8x32xf32>
    %234 = vector.extract_strided_slice %225 {offsets = [0, 4, 0], sizes = [8, 1, 32], strides = [1, 1, 1]} : vector<8x8x32xf32> to vector<8x1x32xf32>
    %235 = vector.shape_cast %234 : vector<8x1x32xf32> to vector<8x32xf32>
    %236 = vector.extract_strided_slice %225 {offsets = [0, 5, 0], sizes = [8, 1, 32], strides = [1, 1, 1]} : vector<8x8x32xf32> to vector<8x1x32xf32>
    %237 = vector.shape_cast %236 : vector<8x1x32xf32> to vector<8x32xf32>
    %238 = vector.extract_strided_slice %225 {offsets = [0, 6, 0], sizes = [8, 1, 32], strides = [1, 1, 1]} : vector<8x8x32xf32> to vector<8x1x32xf32>
    %239 = vector.shape_cast %238 : vector<8x1x32xf32> to vector<8x32xf32>
    %240 = vector.extract_strided_slice %225 {offsets = [0, 7, 0], sizes = [8, 1, 32], strides = [1, 1, 1]} : vector<8x8x32xf32> to vector<8x1x32xf32>
    %241 = vector.shape_cast %240 : vector<8x1x32xf32> to vector<8x32xf32>
    %242 = tpu.concatenate %227, %229, %231, %233, %235, %237, %239, %241 in 1 : vector<8x32xf32>, vector<8x32xf32>, vector<8x32xf32>, vector<8x32xf32>, vector<8x32xf32>, vector<8x32xf32>, vector<8x32xf32>, vector<8x32xf32> -> vector<8x256xf32>
    %c0_102 = arith.constant 0 : index
    %c0_103 = arith.constant 0 : index
    %243 = vector.load %arg18[%c0_102, %c0_103] : memref<8x256xf32, #tpu.memory_space<vmem>>, vector<8x256xf32>
    tpu.vector_store %arg18[%c0_102, %c0_103], %242 {strides = array<i32>} : memref<8x256xf32, #tpu.memory_space<vmem>>, vector<8x256xf32>,
    "tpu.trace_start"() <{level = 10 : i32, message = "bnh,bhk->bnk"}> : () -> ()
    %cst_104 = arith.constant dense<0.000000e+00> : vector<8x8x32xf32>
    %244 = tpu.matmul %225, %42, %cst_104 {dimension_numbers = #tpu.dot_dimension_numbers<[2], [1], [1], [2], [0, 0, 0, 1, 1, 2], [0], [0]>} : vector<8x8x32xf32>, vector<8x32x32xf32>, vector<8x8x32xf32> -> vector<8x8x32xf32>
    "tpu.trace_stop"() : () -> ()
    %245 = vector.extract_strided_slice %244 {offsets = [0, 0, 0], sizes = [8, 1, 32], strides = [1, 1, 1]} : vector<8x8x32xf32> to vector<8x1x32xf32>
    %246 = vector.shape_cast %245 : vector<8x1x32xf32> to vector<8x32xf32>
    %247 = vector.extract_strided_slice %244 {offsets = [0, 1, 0], sizes = [8, 1, 32], strides = [1, 1, 1]} : vector<8x8x32xf32> to vector<8x1x32xf32>
    %248 = vector.shape_cast %247 : vector<8x1x32xf32> to vector<8x32xf32>
    %249 = arith.maximumf %246, %248 : vector<8x32xf32>
    %250 = vector.extract_strided_slice %244 {offsets = [0, 2, 0], sizes = [8, 1, 32], strides = [1, 1, 1]} : vector<8x8x32xf32> to vector<8x1x32xf32>
    %251 = vector.shape_cast %250 : vector<8x1x32xf32> to vector<8x32xf32>
    %252 = arith.maximumf %249, %251 : vector<8x32xf32>
    %253 = vector.extract_strided_slice %244 {offsets = [0, 3, 0], sizes = [8, 1, 32], strides = [1, 1, 1]} : vector<8x8x32xf32> to vector<8x1x32xf32>
    %254 = vector.shape_cast %253 : vector<8x1x32xf32> to vector<8x32xf32>
    %255 = arith.maximumf %252, %254 : vector<8x32xf32>
    %256 = vector.extract_strided_slice %244 {offsets = [0, 4, 0], sizes = [8, 1, 32], strides = [1, 1, 1]} : vector<8x8x32xf32> to vector<8x1x32xf32>
    %257 = vector.shape_cast %256 : vector<8x1x32xf32> to vector<8x32xf32>
    %258 = arith.maximumf %255, %257 : vector<8x32xf32>
    %259 = vector.extract_strided_slice %244 {offsets = [0, 5, 0], sizes = [8, 1, 32], strides = [1, 1, 1]} : vector<8x8x32xf32> to vector<8x1x32xf32>
    %260 = vector.shape_cast %259 : vector<8x1x32xf32> to vector<8x32xf32>
    %261 = arith.maximumf %258, %260 : vector<8x32xf32>
    %262 = vector.extract_strided_slice %244 {offsets = [0, 6, 0], sizes = [8, 1, 32], strides = [1, 1, 1]} : vector<8x8x32xf32> to vector<8x1x32xf32>
    %263 = vector.shape_cast %262 : vector<8x1x32xf32> to vector<8x32xf32>
    %264 = arith.maximumf %261, %263 : vector<8x32xf32>
    %265 = vector.extract_strided_slice %244 {offsets = [0, 7, 0], sizes = [8, 1, 32], strides = [1, 1, 1]} : vector<8x8x32xf32> to vector<8x1x32xf32>
    %266 = vector.shape_cast %265 : vector<8x1x32xf32> to vector<8x32xf32>
    %267 = arith.maximumf %264, %266 : vector<8x32xf32>
    %c0_105 = arith.constant 0 : index
    %c0_106 = arith.constant 0 : index
    %268 = vector.load %arg19[%c0_105, %c0_106] : memref<8x32xf32, #tpu.memory_space<vmem>>, vector<8x32xf32>
    tpu.vector_store %arg19[%c0_105, %c0_106], %267 {strides = array<i32>} : memref<8x32xf32, #tpu.memory_space<vmem>>, vector<8x32xf32>,
    return
  }
  func.func @transform_0(%arg0: i32) -> (i32, i32, i32) {
    %c0_i32 = arith.constant 0 : i32
    %c0_i32_0 = arith.constant 0 : i32
    %c0_i32_1 = arith.constant 0 : i32
    return %arg0, %c0_i32, %c0_i32_0 : i32, i32, i32
  }
  func.func @transform_1(%arg0: i32) -> (i32, i32, i32) {
    %c0_i32 = arith.constant 0 : i32
    %c0_i32_0 = arith.constant 0 : i32
    %c0_i32_1 = arith.constant 0 : i32
    return %arg0, %c0_i32, %c0_i32_0 : i32, i32, i32
  }
  func.func @transform_2(%arg0: i32) -> (i32, i32, i32) {
    %c0_i32 = arith.constant 0 : i32
    %c0_i32_0 = arith.constant 0 : i32
    %c0_i32_1 = arith.constant 0 : i32
    return %arg0, %c0_i32, %c0_i32_0 : i32, i32, i32
  }
  func.func @transform_3(%arg0: i32) -> (i32, i32, i32) {
    %c0_i32 = arith.constant 0 : i32
    %c0_i32_0 = arith.constant 0 : i32
    %c0_i32_1 = arith.constant 0 : i32
    return %arg0, %c0_i32, %c0_i32_0 : i32, i32, i32
  }
  func.func @transform_4(%arg0: i32) -> (i32, i32) {
    %c0_i32 = arith.constant 0 : i32
    %c0_i32_0 = arith.constant 0 : i32
    %c0_i32_1 = arith.constant 0 : i32
    return %c0_i32, %c0_i32_0 : i32, i32
  }
  func.func @transform_5(%arg0: i32) -> (i32, i32) {
    %c0_i32 = arith.constant 0 : i32
    %c0_i32_0 = arith.constant 0 : i32
    %c0_i32_1 = arith.constant 0 : i32
    return %c0_i32, %c0_i32_0 : i32, i32
  }
  func.func @transform_6(%arg0: i32) -> (i32, i32) {
    %c0_i32 = arith.constant 0 : i32
    %c0_i32_0 = arith.constant 0 : i32
    %c0_i32_1 = arith.constant 0 : i32
    return %c0_i32, %c0_i32_0 : i32, i32
  }
  func.func @transform_7(%arg0: i32) -> (i32, i32) {
    %c0_i32 = arith.constant 0 : i32
    %c0_i32_0 = arith.constant 0 : i32
    %c0_i32_1 = arith.constant 0 : i32
    return %c0_i32, %c0_i32_0 : i32, i32
  }
  func.func @transform_8(%arg0: i32) -> (i32, i32) {
    %c0_i32 = arith.constant 0 : i32
    %c0_i32_0 = arith.constant 0 : i32
    %c0_i32_1 = arith.constant 0 : i32
    return %c0_i32, %c0_i32_0 : i32, i32
  }
  func.func @transform_9(%arg0: i32) -> (i32, i32) {
    %c0_i32 = arith.constant 0 : i32
    %c0_i32_0 = arith.constant 0 : i32
    %c0_i32_1 = arith.constant 0 : i32
    return %c0_i32, %c0_i32_0 : i32, i32
  }
  func.func @transform_10(%arg0: i32) -> (i32, i32) {
    %c0_i32 = arith.constant 0 : i32
    %c0_i32_0 = arith.constant 0 : i32
    %c0_i32_1 = arith.constant 0 : i32
    return %c0_i32, %c0_i32_0 : i32, i32
  }
  func.func @transform_11(%arg0: i32) -> (i32, i32) {
    %c0_i32 = arith.constant 0 : i32
    %c0_i32_0 = arith.constant 0 : i32
    %c0_i32_1 = arith.constant 0 : i32
    return %c0_i32, %c0_i32_0 : i32, i32
  }
  func.func @transform_12(%arg0: i32) -> (i32, i32) {
    %c0_i32 = arith.constant 0 : i32
    %c0_i32_0 = arith.constant 0 : i32
    %c0_i32_1 = arith.constant 0 : i32
    return %c0_i32, %c0_i32_0 : i32, i32
  }
  func.func @transform_13(%arg0: i32) -> (i32, i32) {
    %c0_i32 = arith.constant 0 : i32
    %c0_i32_0 = arith.constant 0 : i32
    %c0_i32_1 = arith.constant 0 : i32
    return %c0_i32, %c0_i32_0 : i32, i32
  }
  func.func @transform_14(%arg0: i32) -> (i32, i32) {
    %c0_i32 = arith.constant 0 : i32
    %c0_i32_0 = arith.constant 0 : i32
    %c0_i32_1 = arith.constant 0 : i32
    return %c0_i32, %c0_i32_0 : i32, i32
  }
  func.func @transform_15(%arg0: i32) -> (i32, i32, i32) {
    %c0_i32 = arith.constant 0 : i32
    %c0_i32_0 = arith.constant 0 : i32
    %c0_i32_1 = arith.constant 0 : i32
    %c0_i32_2 = arith.constant 0 : i32
    return %c0_i32, %c0_i32_0, %c0_i32_1 : i32, i32, i32
  }
  func.func @transform_16(%arg0: i32) -> (i32, i32) {
    %c0_i32 = arith.constant 0 : i32
    %c0_i32_0 = arith.constant 0 : i32
    %c0_i32_1 = arith.constant 0 : i32
    return %c0_i32, %c0_i32_0 : i32, i32
  }
  func.func @transform_17(%arg0: i32) -> (i32, i32) {
    %c0_i32 = arith.constant 0 : i32
    %c0_i32_0 = arith.constant 0 : i32
    return %arg0, %c0_i32 : i32, i32
  }
  func.func @transform_18(%arg0: i32) -> (i32, i32) {
    %c0_i32 = arith.constant 0 : i32
    %c0_i32_0 = arith.constant 0 : i32
    return %arg0, %c0_i32 : i32, i32
  }
}

</mosaic_0001>

<bundles_post_ra>
// kernel: tpu_custom_call.1
= control target key start
LH: loop header
LB: loop body
LE: loop exit
PB: predicated region body
PF: predicated region fallthrough
CT: control target
= control target key end

     0   :  { %s42043_s0 = inlined_call_operand.vmem [shape: f32[16,8,32], index: 0, kind: input, shape index: {}]   ;;  %s42044_s1 = inlined_call_operand.vmem [shape: f32[16,12,32], index: 1, kind: input, shape index: {}]   ;;  %s42045_s2 = inlined_call_operand.vmem [shape: bf16[16,12,8], index: 2, kind: input, shape index: {}]   ;;  %s42046_s3 = inlined_call_operand.vmem [shape: bf16[16,8,12], index: 3, kind: input, shape index: {}]   ;;  %s42047_s4 = inlined_call_operand.vmem [shape: f32[32,32], index: 4, kind: input, shape index: {}]   ;;  %s42048_s5 = inlined_call_operand.vmem [shape: f32[32,32], index: 5, kind: input, shape index: {}]   ;;  %s42049_s6 = inlined_call_operand.vmem [shape: f32[32,32], index: 6, kind: input, shape index: {}]   ;;  %s42050_s7 = inlined_call_operand.vmem [shape: f32[32,32], index: 7, kind: input, shape index: {}]   ;;  %s42051_s8 = inlined_call_operand.vmem [shape: f32[32,32], index: 8, kind: input, shape index: {}]   ;;  %s42052_s9 = inlined_call_operand.vmem [shape: f32[32,32], index: 9, kind: input, shape index: {}]   ;;  %s42053_s10 = inlined_call_operand.vmem [shape: f32[32,32], index: 10, kind: input, shape index: {}]   ;;  %s42054_s11 = inlined_call_operand.vmem [shape: f32[32,32], index: 11, kind: input, shape index: {}]   ;;  %s42055_s12 = inlined_call_operand.vmem [shape: f32[32,32], index: 12, kind: input, shape index: {}]   ;;  %s42056_s13 = inlined_call_operand.vmem [shape: f32[32,32], index: 13, kind: input, shape index: {}]   ;;  %s42057_s14 = inlined_call_operand.vmem [shape: f32[32,32], index: 14, kind: input, shape index: {}]   ;;  %s42058_s15 = inlined_call_operand.vmem [shape: f32[1,1,32], index: 15, kind: input, shape index: {}]   ;;  %s42059_s16 = inlined_call_operand.vmem [shape: f32[32,32], index: 16, kind: input, shape index: {}]   ;;  %s42060_s17 = inlined_call_operand.hbm [shape: f32[16,256], index: 17, kind: output, shape index: {0}]   ;;  %s42061_s18 = inlined_call_operand.hbm [shape: f32[16,32], index: 18, kind: output, shape index: {1}]  }
   0x1   :  { %42249 = sst [smem:[#allocation94_spill]] %s42043_s0 }
   0x2   :  { %42250 = sst [smem:[#allocation95_spill]] %s42044_s1 }
   0x3   :  { %42251 = sst [smem:[#allocation96_spill]] %s42045_s2 }
   0x4   :  { %42252 = sst [smem:[#allocation97_spill]] %s42046_s3 }
   0x5   :  { %42253 = sst [smem:[#allocation98_spill]] %s42047_s4 }
   0x6   :  { %42254 = sst [smem:[#allocation99_spill]] %s42048_s5 }
   0x7   :  { %42255 = sst [smem:[#allocation100_spill]] %s42049_s6 }
   0x8   :  { %24 = vsyncpa [#allocation3], 0 }
   0x9   :  { %26 = vsyncpa [#allocation3 + $0x1], 0 }
   0xa   :  { %27 = vsyncpa [#allocation5], 0 }
   0xb   :  { %29 = vsyncpa [#allocation5 + $0x1], 0  ;;  %s36123_s27 = smov 0   ;;  %s36125_s28 = smov 0  }
   0xc   :  { %s36127_s29 = smov 0   ;;  %s36129_s30 = smov 0  }
   0xd LB: > { %42256 = sst [smem:[#allocation8_spill]] %s36014_s29  ;;  %s36144_s0 = sadd.s32 4294967295, %s36018_s30   ;;  %s36018_s30 = sphi %s36129_s30, %s42537_s30   ;;  %s36014_s29 = sphi %s36127_s29, %s42539_s29   ;;  %s36010_s28 = sphi %s36125_s28, %s42541_s28   ;;  %s36006_s27 = sphi %s36123_s27, %s42540_s27  }
   0xe   : > { %s29590_s19 = sadd.s32 4294967294, %s36018_s30   ;;  %s36148_s1 = sadd.s32 1, %s36018_s30  }
   0xf   : > { %42257 = sst [smem:[#allocation9_spill]] %s36148_s1  ;;  %s419_s20 = sadd.s32 1, %s36014_s29 }
  0x10   : > { %s416_s21 = ssub.s32 %s36018_s30, %s36148_s1  ;;  %p429_p0 = scmp.ne.s32.totalorder %s36014_s29, %s36010_s28 }
  0x11   : > { %p417_p1 = scmp.eq.s32.totalorder %s416_s21, 0  ;;  %p430_p2 = scmp.eq.s32.totalorder %s36144_s0, 1 }
  0x12   : > { %p435_p3 = scmp.ne.s32.totalorder %s36010_s28, %s36006_s27  ;;  %p436_p4 = scmp.eq.s32.totalorder %s29590_s19, 1 }
  0x13   : > { %s36159_s22 = scalar_select %p417_p1, %s36014_s29, %s419_s20  }
  0x14   : > { %p36161_p5 = por %p430_p2, %p429_p0  ;;  %p36165_p6 = por %p436_p4, %p435_p3 }
  0x15   : > { %42258 = sst [smem:[#allocation10_spill]] %s36159_s22  ;;  %p29593_p7 = scmp.ge.s32.totalorder %s36018_s30, 1 }
  0x16   : > { %p557_p8 = scmp.lt.s32.totalorder %s36018_s30, 3 }
  0x18   : > { %p558_p9 = pnand %p29593_p7, %p557_p8 }
  0x1a   : > { %561 = sbr.rel (%p558_p9) target bundleno = 4951 (0x1357), region = 88 }
  0x1f   : > { %s29596_s24 = sshll.u32 %s36144_s0, 3  ;;  %s42261_s4 = sld [smem:[#allocation98_spill]]  ;;  %vm780_vm0 = vcmask 261120   ;;  %vm1433_vm1 = vcmask 1043456   ;;  %v42065_v57 = vmov 0.0   ;;  %v36021_v58 = vmov 1.0  }
  0x20   : > { %p634_p10 = scmp.lt.s32.totalorder %s29596_s24, 15  ;;  %s42262_s29 = sld [smem:[#allocation96_spill]]  ;;  %vm1429_vm2 = vcmask 97280   ;;  %vm36022_vm3 = vmmov 0   ;;  %vm2890_vm4 = vcmask 64512   ;;  %vm28506_vm5 = vcmask 1041409  }
  0x21   : > { %s42267_s26 = sld [smem:[#allocation95_spill]]  ;;  %vm28509_vm6 = vcmask 1042434   ;;  %vm28512_vm7 = vcmask 1043459   ;;  %vm28515_vm8 = vcmask 1044484   ;;  %vm28518_vm9 = vcmask 1045509   ;;  %s36024_s21 = smov 32  }
  0x22   : > { %s42543_s24 = smov (!%p634_p10, %s29596_s24), 15  ;;  %s42280_s3 = sld [smem:[#allocation97_spill]]  ;;  %vm28521_vm10 = vcmask 1046534   ;;  %vm28524_vm11 = vcmask 1047559   ;;  %vm28645_vm12 = vcmask 523264   ;;  %vm28647_vm13 = vcmask 785408  }
  0x23   : > { %s29597_s22 = sshll.u32 %s42543_s24, 3  ;;  %s30174_s19 = sshll.u32 %s42543_s24, 4 }
  0x24   : > { %s42369_s6 = sld [smem:[#allocation100_spill]]  ;;  %s41906_s25 = sand.u32 1, %s36010_s28  }
  0x25   : > { %v36175_v0 = vld [vmem:[%s42261_s4 + $0x18] sm:$0xff]  ;;  %v36180_v1 = vld [vmem:[%s42261_s4 + $0x10] sm:$0xff]  ;;  %v36189_v2 = vld [vmem:[%s42261_s4 + $0x8] sm:$0xff]  ;;  %s42370_s5 = sld [smem:[#allocation99_spill]] }
  0x26   : > { %31820 = vmatprep.subr.mxu0 %v36175_v0  ;;  %31831 = vmatprep.subr.mxu1 %v36175_v0  ;;  %v36200_v3 = vld [vmem:[%s42261_s4] sm:$0xff]  ;;  %s36211_s1 = scalar_lea.vmem %s42262_s29, %s29597_s22 }
  0x27   : > { %31821 = vmatpush3.msra.mxu0 %v36175_v0  ;;  %31832 = vmatpush3.msra.mxu1 %v36175_v0  ;;  %v683_v4 = vld [vmem:[%s36211_s1] ss:$8 sps:$4 sm:$0xff]   ;;  %v687_v5 = vld [vmem:[%s36211_s1 + $0x10] ss:$8 sps:$4 sm:$0xff]   ;;  %v684_v6 = vld [vmem:[%s36211_s1 + $0x4] sm:$0x3]  ;;  %s36235_s20 = scalar_lea.vmem %s42267_s26, %s30174_s19 }
  0x28   : > { %31822 = vmatprep.subr.mxu0 %v36180_v1  ;;  %31833 = vmatprep.subr.mxu1 %v36180_v1  ;;  %v36220_v7 = vunpack.c.l.bf16 %v683_v4  ;;  %v36222_v8 = vunpack.c.h.bf16 %v683_v4  ;;  %v36224_v9 = vunpack.c.l.bf16 %v687_v5  ;;  %v36226_v10 = vunpack.c.h.bf16 %v687_v5  ;;  %v686_v11 = vld [vmem:[%s36211_s1 + $0xc] sm:$0x3]  ;;  %v688_v12 = vld [vmem:[%s36211_s1 + $0x14] sm:$0x3]  ;;  %v690_v13 = vld [vmem:[%s36211_s1 + $0x1c] sm:$0x3] }
  0x29   : > { %31823 = vmatpush3.msra.mxu0 %v36180_v1  ;;  %31834 = vmatpush3.msra.mxu1 %v36180_v1  ;;  %v36238_v14 = vunpack.c.l.bf16 %v684_v6  ;;  %v36240_v15 = vunpack.c.l.bf16 %v686_v11  ;;  %v36242_v16 = vunpack.c.l.bf16 %v688_v12  ;;  %v36244_v17 = vunpack.c.l.bf16 %v690_v13  ;;  %v691_v18 = vld [vmem:[%s36211_s1 + $0x20] ss:$8 sps:$4 sm:$0xff]   ;;  %v695_v19 = vld [vmem:[%s36211_s1 + $0x30] ss:$8 sps:$4 sm:$0xff]   ;;  %v692_v31 = vld [vmem:[%s36211_s1 + $0x24] sm:$0x3] }
  0x2a   : > { %31824 = vmatprep.subr.mxu0 %v36189_v2  ;;  %31835 = vmatprep.subr.mxu1 %v36189_v2  ;;  %42263 = vst [vmem:[#allocation11_spill] sm:$0xff] %v36220_v7  ;;  %42264 = vst [vmem:[#allocation12_spill] sm:$0xff] %v36222_v8  ;;  %v35374_v20 = vpack.i.bf16 %v36222_v8, %v36220_v7  ;;  %v35383_v21 = vpack.i.bf16 %v36226_v10, %v36224_v9  ;;  %v36254_v22 = vunpack.c.l.bf16 %v691_v18  ;;  %v667_v24 = vld [vmem:[%s36235_s20] sm:$0xff]  ;;  %v668_v25 = vld [vmem:[%s36235_s20 + $0x8] sm:$0xf]  ;;  %s36023_s19 = smov 64  }
  0x2b   : > { %31825 = vmatpush3.msra.mxu0 %v36189_v2  ;;  %31836 = vmatpush3.msra.mxu1 %v36189_v2  ;;  %42265 = vst [vmem:[#allocation13_spill] sm:$0xff] %v36224_v9  ;;  %42266 = vst [vmem:[#allocation14_spill] sm:$0xff] %v36226_v10  ;;  %v36256_v23 = vunpack.c.h.bf16 %v691_v18  ;;  %v669_v26 = vld [vmem:[%s36235_s20 + $0x10] sm:$0xff]  ;;  %v35376_v27 = vpack.i.bf16 %v36240_v15, %v36238_v14  ;;  %v35385_v28 = vpack.i.bf16 %v36244_v17, %v36242_v16  ;;  %v670_v32 = vld [vmem:[%s36235_s20 + $0x18] sm:$0xf]  ;;  %s29594_s26 = sshll.u32 %s41906_s25, 4 }
  0x2c   : > { %31826 = vmatprep.subr.mxu0 %v36200_v3  ;;  %31837 = vmatprep.subr.mxu1 %v36200_v3  ;;  %42268 = vst [vmem:[#allocation15_spill] sm:$0xff] %v36238_v14  ;;  %42269 = vst [vmem:[#allocation16_spill] sm:$0xff] %v36240_v15  ;;  %v36265_v29 = vunpack.c.l.bf16 %v695_v19  ;;  %v36267_v30 = vunpack.c.h.bf16 %v695_v19  ;;  %v694_v33 = vld [vmem:[%s36211_s1 + $0x2c] sm:$0x3]  ;;  %v696_v34 = vld [vmem:[%s36211_s1 + $0x34] sm:$0x3]  ;;  %v36280_v37 = vunpack.c.l.bf16 %v692_v31 }
  0x2d   : > { %31827 = vmatpush3.msra.mxu0 %v36200_v3  ;;  %31838 = vmatpush3.msra.mxu1 %v36200_v3  ;;  %42270 = vst [vmem:[#allocation17_spill] sm:$0xff] %v36242_v16  ;;  %42271 = vst [vmem:[#allocation18_spill] sm:$0xff] %v36244_v17  ;;  %v698_v35 = vld [vmem:[%s36211_s1 + $0x3c] sm:$0x3]  ;;  %v35392_v36 = vpack.i.bf16 %v36256_v23, %v36254_v22  ;;  %v36286_v39 = vunpack.c.l.bf16 %v694_v33  ;;  %v36288_v40 = vunpack.c.l.bf16 %v696_v34  ;;  %v671_v44 = vld [vmem:[%s36235_s20 + $0x20] sm:$0xff]  ;;  %s29605_s1 = sshll.u32 %s42543_s24, 2 }
  0x2e   : > { %31842 = vmatprep.subr.mxu0 %v36175_v0  ;;  %31853 = vmatprep.subr.mxu1 %v36175_v0  ;;  %42272 = vst [vmem:[#allocation19_spill] sm:$0xff] %v36254_v22  ;;  %42273 = vst [vmem:[#allocation20_spill] sm:$0xff] %v36256_v23  ;;  %v35401_v38 = vpack.i.bf16 %v36267_v30, %v36265_v29  ;;  %v36290_v41 = vunpack.c.l.bf16 %v698_v35  ;;  %v672_v45 = vld [vmem:[%s36235_s20 + $0x28] sm:$0xf]  ;;  %v673_v46 = vld [vmem:[%s36235_s20 + $0x30] sm:$0xff]  ;;  %s36355_s29 = scalar_lea.vmem %s42280_s3, %s29605_s1  ;;  %s30176_s24 = sshll.u32 %s36144_s0, 8 }
  0x2f   : > { %35375 = vxpose.xlu0.b32.start [1/2] (short) (narrow) %v35374_v20, 8  ;;  %35384 = vxpose.xlu1.b32.start [1/2] (short) (narrow) %v35383_v21, 8  ;;  %42274 = vst [vmem:[#allocation21_spill] sm:$0xff] %v36265_v29  ;;  %42275 = vst [vmem:[#allocation22_spill] sm:$0xff] %v36267_v30  ;;  %v35394_v42 = vpack.i.bf16 %v36286_v39, %v36280_v37  ;;  %v674_v47 = vld [vmem:[%s36235_s20 + $0x38] sm:$0xf] }
  0x30   : > { %31828 = vmatprep.mubr.msk.f32.mxu0 %vm780_vm0, %v667_v24  ;;  %31839 = vmatprep.mubr.msk.f32.mxu1 %vm780_vm0, %v669_v26  ;;  %42276 = vst [vmem:[#allocation23_spill] sm:$0xff] %v36280_v37  ;;  %42277 = vst [vmem:[#allocation24_spill] sm:$0xff] %v36286_v39  ;;  %v35403_v43 = vpack.i.bf16 %v36290_v41, %v36288_v40  ;;  %v675_v48 = vld [vmem:[%s36235_s20 + $0x40] sm:$0xff]  ;;  %v676_v49 = vld [vmem:[%s36235_s20 + $0x48] sm:$0xf] }
  0x31   : > { %31829 = vmatmul.mubr.msk.f32.vlgmr.msra.gmra.mxu0 %vm780_vm0, %v668_v25  ;;  %31840 = vmatmul.mubr.msk.f32.vlgmr.msra.gmra.mxu1 %vm780_vm0, %v670_v32  ;;  %42278 = vst [vmem:[#allocation25_spill] sm:$0xff] %v36288_v40  ;;  %42279 = vst [vmem:[#allocation26_spill] sm:$0xff] %v36290_v41  ;;  %v677_v50 = vld [vmem:[%s36235_s20 + $0x50] sm:$0xff]  ;;  %v678_v51 = vld [vmem:[%s36235_s20 + $0x58] sm:$0xf] }
  0x32   : > { %31843 = vmatpush3.msra.mxu0 %v36175_v0  ;;  %31854 = vmatpush3.msra.mxu1 %v36175_v0  ;;  %v679_v52 = vld [vmem:[%s36235_s20 + $0x60] sm:$0xff]  ;;  %v680_v53 = vld [vmem:[%s36235_s20 + $0x68] sm:$0xf]  ;;  %v681_v54 = vld [vmem:[%s36235_s20 + $0x70] sm:$0xff] }
  0x33   : > { %35377 = vxpose.xlu0.b32.end [2/2] (short) (narrow) %v35376_v27, 8  ;;  %35386 = vxpose.xlu1.b32.end [2/2] (short) (narrow) %v35385_v28, 8  ;;  %v682_v55 = vld [vmem:[%s36235_s20 + $0x78] sm:$0xf]  ;;  %v30178_v56 = vld [vmem:[%s36355_s29] sm:$0xff]   ;;  %v30193_v61 = vld [vmem:[%s36355_s29 + $0x8] sm:$0xff]  }
  0x34   : > { %31844 = vmatprep.subr.mxu0 %v36180_v1  ;;  %31855 = vmatprep.subr.mxu1 %v36180_v1  ;;  %v36374_v59 = vunpack.c.l.bf16 %v30178_v56  ;;  %v36381_v60 = vunpack.c.h.bf16 %v30178_v56  ;;  %v36397_v62 = vunpack.c.l.bf16 %v30193_v61  ;;  %v36404_v63 = vunpack.c.h.bf16 %v30193_v61  ;;  %s42295_s20 = sld [smem:[#allocation94_spill]] }
  0x35   : > { %31845 = vmatpush3.msra.mxu0 %v36180_v1  ;;  %31856 = vmatpush3.msra.mxu1 %v36180_v1 }
  0x36   : > { %31846 = vmatprep.subr.mxu0 %v36189_v2  ;;  %31857 = vmatprep.subr.mxu1 %v36189_v2  ;;  %42281 = vst [vmem:[#allocation27_spill] sm:$0xff] %v36374_v59  ;;  %42282 = vst [vmem:[#allocation28_spill] sm:$0xff] %v36381_v60  ;;  %v35410_v6 = vpack.i.bf16 %v36381_v60, %v36374_v59  ;;  %v35422_v11 = vpack.i.bf16 %v36404_v63, %v36397_v62 }
  0x37   : > { %35393 = vxpose.xlu0.b32.start [1/2] (short) (narrow) %v35392_v36, 8  ;;  %35402 = vxpose.xlu1.b32.start [1/2] (short) (narrow) %v35401_v38, 8  ;;  %42283 = vst [vmem:[#allocation29_spill] sm:$0xff] %v36397_v62  ;;  %42284 = vst [vmem:[#allocation30_spill] sm:$0xff] %v36404_v63 }
  0x38   : > { %31847 = vmatpush3.msra.mxu0 %v36189_v2  ;;  %31858 = vmatpush3.msra.mxu1 %v36189_v2 }
  0x39   : > { %31848 = vmatprep.subr.mxu0 %v36200_v3  ;;  %31859 = vmatprep.subr.mxu1 %v36200_v3 }
  0x3a   : > { %31849 = vmatpush3.msra.mxu0 %v36200_v3  ;;  %31850 = vmatprep.mubr.msk.f32.mxu0 %vm780_vm0, %v671_v44  ;;  %s36543_s1 = scalar_lea.vmem %s42295_s20, %s29597_s22  ;;  %s625_s20 = scalar_lea.vmem [#allocation2], %s29594_s26 }
  0x3b   : > { %35395 = vxpose.xlu0.b32.end [2/2] (short) (narrow) %v35394_v42, 8  ;;  %35404 = vxpose.xlu1.b32.end [2/2] (short) (narrow) %v35403_v43, 8  ;;  %v36559_v34 = vld [vmem:[%s36543_s1] sm:$0xff]  ;;  %v36562_v35 = vld [vmem:[%s36543_s1 + $0x8] sm:$0xff]  ;;  %v36577_v36 = vld [vmem:[%s36543_s1 + $0x10] sm:$0xff]  ;;  %s29450_s22 = sshll.u32 %s625_s20, 4  ;;  %s29451_s22 = int_to_ptr.vmem [resolvable:$true] %s29450_s22 }
  0x3c   : > { %31860 = vmatpush3.msra.mxu1 %v36200_v3  ;;  %31864 = vmatprep.subr.mxu0 %v36175_v0  ;;  %v36580_v38 = vld [vmem:[%s36543_s1 + $0x18] sm:$0xff]  ;;  %v36595_v42 = vld [vmem:[%s36543_s1 + $0x20] sm:$0xff]  ;;  %v36598_v43 = vld [vmem:[%s36543_s1 + $0x28] sm:$0xff]  ;;  %s35928_s3 = scalar_lea.vmem %s29451_s22, 256  ;;  %s36026_s26 = smov [#allocation2]  }
  0x3d   : > { %31851 = vmatmul.mubr.msk.f32.vlgmr.msra.gmra.mxu0 %vm780_vm0, %v672_v45  ;;  %31861 = vmatprep.mubr.msk.f32.mxu1 %vm780_vm0, %v673_v46  ;;  %v36613_v44 = vld [vmem:[%s36543_s1 + $0x30] sm:$0xff]  ;;  %v36616_v45 = vld [vmem:[%s36543_s1 + $0x38] sm:$0xff]  ;;  %p35929_p11 = scmp.ne.s32.totalorder %s29451_s22, %s35928_s3  ;;  %s35932_s4 = sshll.u32 %s36026_s26, 4  ;;  %s35933_s4 = int_to_ptr.vmem [resolvable:$false] %s35932_s4 }
  0x3e   : > { %31865 = vmatpush3.msra.mxu0 %v36175_v0  ;;  %31875 = vmatprep.subr.mxu1 %v36175_v0  ;;  %p35935_p0 = scmp.lt.s32.totalorder %s29451_s22, %s35933_s4 }
  0x3f   : > { %31862 = vmatmul.mubr.msk.f32.vlgmr.msra.gmra.mxu1 %vm780_vm0, %v674_v47  ;;  %31866 = vmatprep.subr.mxu0 %v36180_v1  ;;  %p35930_p12 = pnand %p35929_p11, %p36161_p5 }
  0x40   : > { %31876 = vmatpush3.msra.mxu1 %v36175_v0  ;;  %31867 = vmatpush3.msra.mxu0 %v36180_v1 }
  0x41   : > { %31877 = vmatprep.subr.mxu1 %v36180_v1  ;;  %31868 = vmatprep.subr.mxu0 %v36189_v2  ;;  %p35931_p13 = pneg %p35930_p12 }
  0x42   : > { %31878 = vmatpush3.msra.mxu1 %v36180_v1  ;;  %31869 = vmatpush3.msra.mxu0 %v36189_v2 }
  0x43   : > { %31879 = vmatprep.subr.mxu1 %v36189_v2  ;;  %31870 = vmatprep.subr.mxu0 %v36200_v3 }
  0x44   : > { %31880 = vmatpush3.msra.mxu1 %v36189_v2  ;;  %31871 = vmatpush3.msra.mxu0 %v36200_v3 }
  0x45   : > { %31881 = vmatprep.subr.mxu1 %v36200_v3  ;;  %31872 = vmatprep.mubr.msk.f32.mxu0 %vm780_vm0, %v675_v48 }
  0x46   : > { %31882 = vmatpush3.msra.mxu1 %v36200_v3  ;;  %31886 = vmatprep.subr.mxu0 %v36175_v0 }
  0x47   : > { %31873 = vmatmul.mubr.msk.f32.vlgmr.msra.gmra.mxu0 %vm780_vm0, %v676_v49  ;;  %31883 = vmatprep.mubr.msk.f32.mxu1 %vm780_vm0, %v677_v50 }
  0x48   : > { %31887 = vmatpush3.msra.mxu0 %v36175_v0  ;;  %31897 = vmatprep.subr.mxu1 %v36175_v0 }
  0x49   : > { %31884 = vmatmul.mubr.msk.f32.vlgmr.msra.gmra.mxu1 %vm780_vm0, %v678_v51  ;;  %31888 = vmatprep.subr.mxu0 %v36180_v1 }
  0x4a   : > { %31898 = vmatpush3.msra.mxu1 %v36175_v0  ;;  %31889 = vmatpush3.msra.mxu0 %v36180_v1  ;;  %v30194_v0 = vld [vmem:[%s36355_s29 + $0x10] sm:$0xff]  }
  0x4b   : > { %31899 = vmatprep.subr.mxu1 %v36180_v1  ;;  %31890 = vmatprep.subr.mxu0 %v36189_v2 }
  0x4c   : > { %31900 = vmatpush3.msra.mxu1 %v36180_v1  ;;  %31891 = vmatpush3.msra.mxu0 %v36189_v2  ;;  %v36420_v1 = vunpack.c.l.bf16 %v30194_v0 }
  0x4d   : > { %31901 = vmatprep.subr.mxu1 %v36189_v2  ;;  %31892 = vmatprep.subr.mxu0 %v36200_v3 }
  0x4e   : > { %31902 = vmatpush3.msra.mxu1 %v36189_v2  ;;  %31893 = vmatpush3.msra.mxu0 %v36200_v3  ;;  %42285 = vst [vmem:[#allocation31_spill] sm:$0xff] %v36420_v1  ;;  %v36427_v2 = vunpack.c.h.bf16 %v30194_v0 }
  0x4f   : > { %31894 = vmatprep.mubr.msk.f32.mxu0 %vm780_vm0, %v679_v52  ;;  %31903 = vmatprep.subr.mxu1 %v36200_v3 }
  0x50   : > { %31895 = vmatmul.mubr.msk.f32.vlgmr.msra.gmra.mxu0 %vm780_vm0, %v680_v53  ;;  %31904 = vmatpush3.msra.mxu1 %v36200_v3  ;;  %42286 = vst [vmem:[#allocation32_spill] sm:$0xff] %v36427_v2  ;;  %v30195_v3 = vld [vmem:[%s36355_s29 + $0x18] sm:$0xff]   ;;  %v35434_v12 = vpack.i.bf16 %v36427_v2, %v36420_v1  ;;  %s36025_s29 = smov 96  }
  0x51   : > { %31905 = vmatprep.mubr.msk.f32.mxu1 %vm780_vm0, %v681_v54  ;;  %31908 = vmatprep.subr.mxu0 %v42065_v57  ;;  %v36443_v4 = vunpack.c.l.bf16 %v30195_v3  ;;  %v36450_v5 = vunpack.c.h.bf16 %v30195_v3 }
  0x52   : > { %31906 = vmatmul.mubr.msk.f32.vlgmr.msra.gmra.mxu1 %vm780_vm0, %v682_v55  ;;  %31909 = vmatpush3.msk.msra.mxu0 %vm1433_vm1, %v36021_v58 }
  0x53   : > { %31915 = vmatprep.subr.mxu1 %v42065_v57  ;;  %31910 = vmatprep.subr.mxu0 %v42065_v57  ;;  %42287 = vst [vmem:[#allocation33_spill] sm:$0xff] %v36443_v4  ;;  %42288 = vst [vmem:[#allocation34_spill] sm:$0xff] %v36450_v5  ;;  %v35446_v13 = vpack.i.bf16 %v36450_v5, %v36443_v4 }
  0x54   : > { %31916 = vmatpush3.msk.msra.mxu1 %vm1433_vm1, %v36021_v58  ;;  %31911 = vmatpush3.msra.mxu0 %v36021_v58 }
  0x55   : > { %31912 = vmatprep.mubr.msk.f32.mxu0 %vm36022_vm3, %v42065_v57  ;;  %31917 = vmatprep.subr.mxu1 %v42065_v57 }
  0x56   : > { %31913 = vmatmul.mubr.msk.f32.vlgmr.msra.gmra.mxu0 %vm1429_vm2, %v36374_v59  ;;  %31918 = vmatpush3.msra.mxu1 %v36021_v58 }
  0x57   : > { %31919 = vmatprep.mubr.msk.f32.mxu1 %vm36022_vm3, %v42065_v57  ;;  %31922 = vmatprep.subr.mxu0 %v42065_v57 }
  0x58   : > { %31920 = vmatmul.mubr.msk.f32.vlgmr.msra.gmra.mxu1 %vm1429_vm2, %v36381_v60  ;;  %31923 = vmatpush3.msk.msra.mxu0 %vm1433_vm1, %v36021_v58 }
  0x59   : > { %31929 = vmatprep.subr.mxu1 %v42065_v57  ;;  %31924 = vmatprep.subr.mxu0 %v42065_v57 }
  0x5a   : > { %31930 = vmatpush3.msk.msra.mxu1 %vm1433_vm1, %v36021_v58  ;;  %31925 = vmatpush3.msra.mxu0 %v36021_v58 }
  0x5b   : > { %31926 = vmatprep.mubr.msk.f32.mxu0 %vm36022_vm3, %v42065_v57  ;;  %31931 = vmatprep.subr.mxu1 %v42065_v57 }
  0x5c   : > { %31927 = vmatmul.mubr.msk.f32.vlgmr.msra.gmra.mxu0 %vm1429_vm2, %v36397_v62  ;;  %31932 = vmatpush3.msra.mxu1 %v36021_v58 }
  0x5d   : > { %31933 = vmatprep.mubr.msk.f32.mxu1 %vm36022_vm3, %v42065_v57  ;;  %31936 = vmatprep.subr.mxu0 %v42065_v57 }
  0x5e   : > { %31934 = vmatmul.mubr.msk.f32.vlgmr.msra.gmra.mxu1 %vm1429_vm2, %v36404_v63  ;;  %31937 = vmatpush3.msk.msra.mxu0 %vm1433_vm1, %v36021_v58 }
  0x5f   : > { %31943 = vmatprep.subr.mxu1 %v42065_v57  ;;  %31938 = vmatprep.subr.mxu0 %v42065_v57 }
  0x60   : > { %31944 = vmatpush3.msk.msra.mxu1 %vm1433_vm1, %v36021_v58  ;;  %31939 = vmatpush3.msra.mxu0 %v36021_v58 }
  0x61   : > { %31940 = vmatprep.mubr.msk.f32.mxu0 %vm36022_vm3, %v42065_v57  ;;  %31945 = vmatprep.subr.mxu1 %v42065_v57 }
  0x62   : > { %31941 = vmatmul.mubr.msk.f32.vlgmr.msra.gmra.mxu0 %vm1429_vm2, %v36420_v1  ;;  %31946 = vmatpush3.msra.mxu1 %v36021_v58 }
  0x63   : > { %31947 = vmatprep.mubr.msk.f32.mxu1 %vm36022_vm3, %v42065_v57  ;;  %31950 = vmatprep.subr.mxu0 %v42065_v57 }
  0x64   : > { %31948 = vmatmul.mubr.msk.f32.vlgmr.msra.gmra.mxu1 %vm1429_vm2, %v36427_v2  ;;  %31951 = vmatpush3.msk.msra.mxu0 %vm1433_vm1, %v36021_v58 }
  0x65   : > { %31957 = vmatprep.subr.mxu1 %v42065_v57  ;;  %31952 = vmatprep.subr.mxu0 %v42065_v57 }
  0x66   : > { %31958 = vmatpush3.msk.msra.mxu1 %vm1433_vm1, %v36021_v58  ;;  %31953 = vmatpush3.msra.mxu0 %v36021_v58 }
  0x67   : > { %31954 = vmatprep.mubr.msk.f32.mxu0 %vm36022_vm3, %v42065_v57  ;;  %31959 = vmatprep.subr.mxu1 %v42065_v57 }
  0x68   : > { %31955 = vmatmul.mubr.msk.f32.vlgmr.msra.gmra.mxu0 %vm1429_vm2, %v36443_v4  ;;  %31960 = vmatpush3.msra.mxu1 %v36021_v58 }
  0x69   : > { %31961 = vmatprep.mubr.msk.f32.mxu1 %vm36022_vm3, %v42065_v57  ;;  %31964 = vmatprep.subr.mxu0 %v42065_v57 }
  0x6a   : > { %31962 = vmatmul.mubr.msk.f32.vlgmr.msra.gmra.mxu1 %vm1429_vm2, %v36450_v5  ;;  %31971 = vmatprep.subr.mxu1 %v42065_v57 }
  0x6b   : > { %31965 = vmatpush3.msk.msra.mxu0 %vm1433_vm1, %v36021_v58  ;;  %31972 = vmatpush3.msk.msra.mxu1 %vm1433_vm1, %v36021_v58 }
  0x6c   : > { %31966 = vmatprep.subr.mxu0 %v42065_v57  ;;  %31973 = vmatprep.subr.mxu1 %v42065_v57 }
  0x6d   : > { %31967 = vmatpush3.msra.mxu0 %v36021_v58  ;;  %31968 = vmatprep.mubr.msk.f32.mxu0 %vm36022_vm3, %v42065_v57 }
  0x6e   : > { %31974 = vmatpush3.msra.mxu1 %v36021_v58  ;;  %31975 = vmatprep.mubr.msk.f32.mxu1 %vm36022_vm3, %v42065_v57 }
  0x6f   : > { %31978 = vmatprep.subr.mxu0 %v42065_v57  ;;  %31985 = vmatprep.subr.mxu1 %v42065_v57 }
  0x70   : > { %35411 = vxpose.xlu0.b32.start.end [1/1] (short) (narrow) %v35410_v6, 16  ;;  %35423 = vxpose.xlu1.b32.start.end [1/1] (short) (narrow) %v35422_v11, 16 }
  0x75   : > { %35435 = vxpose.xlu0.b32.start.end [1/1] (short) (narrow) %v35434_v12, 16  ;;  %35447 = vxpose.xlu1.b32.start.end [1/1] (short) (narrow) %v35446_v13, 16 }
  0xab   : > { %v35378_v18 = vpop.trf.xlu0  ;;  %v35387_v19 = vpop.trf.xlu1 }
  0xac   : > { %v36486_v20 = vunpack.i.h.bf16 %v35378_v18  ;;  %v36488_v21 = vunpack.i.l.bf16 %v35378_v18  ;;  %v36494_v24 = vunpack.i.h.bf16 %v35387_v19  ;;  %v36496_v25 = vunpack.i.l.bf16 %v35387_v19 }
  0xae   : > { %42289 = vst [vmem:[#allocation35_spill] sm:$0xff] %v36486_v20  ;;  %42290 = vst [vmem:[#allocation36_spill] sm:$0xff] %v36488_v21  ;;  %31969 = vmatmul.mubr.msk.f32.vlgmr.msra.gmra.mxu0 %vm1429_vm2, %v36488_v21  ;;  %31976 = vmatmul.mubr.msk.f32.vlgmr.msra.gmra.mxu1 %vm1429_vm2, %v36486_v20 }
  0xaf   : > { %42291 = vst [vmem:[#allocation37_spill] sm:$0xff] %v36494_v24  ;;  %42292 = vst [vmem:[#allocation38_spill] sm:$0xff] %v36496_v25  ;;  %31979 = vmatpush3.msk.msra.mxu0 %vm1433_vm1, %v36021_v58  ;;  %31986 = vmatpush3.msk.msra.mxu1 %vm1433_vm1, %v36021_v58 }
  0xb0   : > { %31980 = vmatprep.subr.mxu0 %v42065_v57  ;;  %31987 = vmatprep.subr.mxu1 %v42065_v57 }
  0xb1   : > { %31981 = vmatpush3.msra.mxu0 %v36021_v58  ;;  %31982 = vmatprep.mubr.msk.f32.mxu0 %vm36022_vm3, %v42065_v57 }
  0xb2   : > { %31988 = vmatpush3.msra.mxu1 %v36021_v58  ;;  %31989 = vmatprep.mubr.msk.f32.mxu1 %vm36022_vm3, %v42065_v57 }
  0xb3   : > { %31983 = vmatmul.mubr.msk.f32.vlgmr.msra.gmra.mxu0 %vm1429_vm2, %v36496_v25  ;;  %31990 = vmatmul.mubr.msk.f32.vlgmr.msra.gmra.mxu1 %vm1429_vm2, %v36494_v24  ;;  %v35396_v26 = vpop.trf.xlu0  ;;  %v35405_v27 = vpop.trf.xlu1 }
  0xb4   : > { %31992 = vmatprep.subr.mxu0 %v42065_v57  ;;  %31999 = vmatprep.subr.mxu1 %v42065_v57  ;;  %v36516_v28 = vunpack.i.h.bf16 %v35396_v26  ;;  %v36518_v31 = vunpack.i.l.bf16 %v35396_v26  ;;  %v36545_v32 = vunpack.i.h.bf16 %v35405_v27  ;;  %v36547_v33 = vunpack.i.l.bf16 %v35405_v27 }
  0xb5   : > { %31993 = vmatpush3.msk.msra.mxu0 %vm1433_vm1, %v36021_v58  ;;  %32000 = vmatpush3.msk.msra.mxu1 %vm1433_vm1, %v36021_v58 }
  0xb6   : > { %42293 = vst [vmem:[#allocation39_spill] sm:$0xff] %v36516_v28  ;;  %42294 = vst [vmem:[#allocation40_spill] sm:$0xff] %v36518_v31  ;;  %31994 = vmatprep.subr.mxu0 %v42065_v57  ;;  %32001 = vmatprep.subr.mxu1 %v42065_v57 }
  0xb7   : > { %31995 = vmatpush3.msra.mxu0 %v36021_v58  ;;  %31996 = vmatprep.mubr.msk.f32.mxu0 %vm36022_vm3, %v42065_v57  ;;  %42296 = vst [vmem:[#allocation41_spill] sm:$0xff] %v36545_v32  ;;  %42297 = vst [vmem:[#allocation42_spill] sm:$0xff] %v36547_v33 }
  0xb8   : > { %32002 = vmatpush3.msra.mxu1 %v36021_v58  ;;  %32003 = vmatprep.mubr.msk.f32.mxu1 %vm36022_vm3, %v42065_v57 }
  0xb9   : > { %31997 = vmatmul.mubr.msk.f32.vlgmr.msra.gmra.mxu0 %vm1429_vm2, %v36518_v31  ;;  %32004 = vmatmul.mubr.msk.f32.vlgmr.msra.gmra.mxu1 %vm1429_vm2, %v36516_v28 }
  0xba   : > { %32006 = vmatprep.subr.mxu0 %v42065_v57  ;;  %32013 = vmatprep.subr.mxu1 %v42065_v57 }
  0xbb   : > { %32007 = vmatpush3.msk.msra.mxu0 %vm1433_vm1, %v36021_v58  ;;  %32014 = vmatpush3.msk.msra.mxu1 %vm1433_vm1, %v36021_v58 }
  0xbc   : > { %32008 = vmatprep.subr.mxu0 %v42065_v57  ;;  %32015 = vmatprep.subr.mxu1 %v42065_v57 }
  0xbd   : > { %32009 = vmatpush3.msra.mxu0 %v36021_v58  ;;  %32010 = vmatprep.mubr.msk.f32.mxu0 %vm36022_vm3, %v42065_v57 }
  0xbe   : > { %32016 = vmatpush3.msra.mxu1 %v36021_v58  ;;  %32017 = vmatprep.mubr.msk.f32.mxu1 %vm36022_vm3, %v42065_v57 }
  0xbf   : > { %32011 = vmatmul.mubr.msk.f32.vlgmr.msra.gmra.mxu0 %vm1429_vm2, %v36547_v33  ;;  %32018 = vmatmul.mubr.msk.f32.vlgmr.msra.gmra.mxu1 %vm1429_vm2, %v36545_v32 }
  0xc0   : > { %32020 = vmatprep.subr.mxu0 %v36559_v34  ;;  %32025 = vmatprep.subr.mxu1 %v36562_v35 }
  0xc1   : > { %32021 = vmatpush3.msra.mxu0 %v36559_v34  ;;  %32022 = vmatprep.mubr.msk.f32.mxu0 %vm2890_vm4, %v36220_v7 }
  0xc2   : > { %32026 = vmatpush3.msra.mxu1 %v36562_v35  ;;  %32027 = vmatprep.mubr.msk.f32.mxu1 %vm2890_vm4, %v36222_v8 }
  0xc3   : > { %32023 = vmatmul.mubr.msk.f32.vlgmr.msra.gmra.mxu0 %vm2890_vm4, %v36238_v14  ;;  %32028 = vmatmul.mubr.msk.f32.vlgmr.msra.gmra.mxu1 %vm2890_vm4, %v36240_v15 }
  0xc4   : > { %32030 = vmatprep.subr.mxu0 %v36577_v36  ;;  %32035 = vmatprep.subr.mxu1 %v36580_v38 }
  0xc5   : > { %32031 = vmatpush3.msra.mxu0 %v36577_v36  ;;  %32032 = vmatprep.mubr.msk.f32.mxu0 %vm2890_vm4, %v36224_v9 }
  0xc6   : > { %32036 = vmatpush3.msra.mxu1 %v36580_v38  ;;  %32037 = vmatprep.mubr.msk.f32.mxu1 %vm2890_vm4, %v36226_v10 }
  0xc7   : > { %32033 = vmatmul.mubr.msk.f32.vlgmr.msra.gmra.mxu0 %vm2890_vm4, %v36242_v16  ;;  %32038 = vmatmul.mubr.msk.f32.vlgmr.msra.gmra.mxu1 %vm2890_vm4, %v36244_v17 }
  0xc8   : > { %32040 = vmatprep.subr.mxu0 %v36595_v42  ;;  %32045 = vmatprep.subr.mxu1 %v36598_v43 }
  0xc9   : > { %32041 = vmatpush3.msra.mxu0 %v36595_v42  ;;  %32042 = vmatprep.mubr.msk.f32.mxu0 %vm2890_vm4, %v36254_v22 }
  0xca   : > { %32046 = vmatpush3.msra.mxu1 %v36598_v43  ;;  %32047 = vmatprep.mubr.msk.f32.mxu1 %vm2890_vm4, %v36256_v23 }
  0xcb   : > { %32043 = vmatmul.mubr.msk.f32.vlgmr.msra.gmra.mxu0 %vm2890_vm4, %v36280_v37  ;;  %32048 = vmatmul.mubr.msk.f32.vlgmr.msra.gmra.mxu1 %vm2890_vm4, %v36286_v39 }
  0xcc   : > { %32050 = vmatprep.subr.mxu0 %v36613_v44  ;;  %32055 = vmatprep.subr.mxu1 %v36616_v45 }
  0xcd   : > { %32051 = vmatpush3.msra.mxu0 %v36613_v44  ;;  %32052 = vmatprep.mubr.msk.f32.mxu0 %vm2890_vm4, %v36265_v29 }
  0xce   : > { %32056 = vmatpush3.msra.mxu1 %v36616_v45  ;;  %32057 = vmatprep.mubr.msk.f32.mxu1 %vm2890_vm4, %v36267_v30 }
  0xcf   : > { %32053 = vmatmul.mubr.msk.f32.vlgmr.msra.gmra.mxu0 %vm2890_vm4, %v36288_v40  ;;  %32058 = vmatmul.mubr.msk.f32.vlgmr.msra.gmra.mxu1 %vm2890_vm4, %v36290_v41 }
  0xd0   : > { %32060 = vmatprep.subr.mxu0 %v42065_v57  ;;  %32067 = vmatprep.subr.mxu1 %v42065_v57 }
  0xd1   : > { %32064 = vmatprep.mubr.msk.f32.mxu0 %vm36022_vm3, %v42065_v57  ;;  %32071 = vmatprep.mubr.msk.f32.mxu1 %vm36022_vm3, %v42065_v57 }
  0xec   : > { %v36677_v12 = vpop.trf.xlu0  ;;  %v36681_v26 = vpop.trf.xlu1 }
  0xf0   : > { %v36683_v27 = vpop.trf.xlu0  ;;  %v36689_v30 = vpop.trf.xlu1 }
  0xf1   : > { %v36643_v46 = vpop.f32.mrf.mxu0  ;;  %v36645_v47 = vpop.f32.mrf.mxu1 }
  0xf2   : > { %42298 = vst [vmem:[#allocation43_spill] sm:$0xff] %v36643_v46  ;;  %42299 = vst [vmem:[#allocation44_spill] sm:$0xff] %v36645_v47 }
  0xf3   : > { %v36647_v48 = vpop.f32.mrf.mxu0  ;;  %v36649_v49 = vpop.f32.mrf.mxu1 }
  0xf4   : > { %42300 = vst [vmem:[#allocation45_spill] sm:$0xff] %v36647_v48  ;;  %42301 = vst [vmem:[#allocation46_spill] sm:$0xff] %v36649_v49  ;;  %v36691_v29 = vpop.trf.xlu0  ;;  %v36695_v23 = vpop.trf.xlu1 }
  0xf8   : > { %v36701_v16 = vpop.trf.xlu1 }
  0xfd   : > { %v36651_v50 = vpop.f32.mrf.mxu0 }
  0xfe   : > { %42302 = vst [vmem:[#allocation47_spill] sm:$0xff] %v36651_v50 }
  0xff   : > { %v36653_v51 = vpop.f32.mrf.mxu1  ;;  %v36655_v52 = vpop.f32.mrf.mxu0 }
 0x100   : > { %42303 = vst [vmem:[#allocation48_spill] sm:$0xff] %v36653_v51  ;;  %42304 = vst [vmem:[#allocation49_spill] sm:$0xff] %v36655_v52 }
 0x101   : > { %v36657_v53 = vpop.f32.mrf.mxu1 }
 0x102   : > { %42305 = vst [vmem:[#allocation50_spill] sm:$0xff] %v36657_v53 }
 0x107   : > { %v36659_v54 = vpop.f32.mrf.mxu0 }
 0x108   : > { %42306 = vst [vmem:[#allocation51_spill] sm:$0xff] %v36659_v54 }
 0x109   : > { %v36661_v55 = vpop.f32.mrf.mxu1  ;;  %v36663_v56 = vpop.f32.mrf.mxu0 }
 0x10a   : > { %42307 = vst [vmem:[#allocation52_spill] sm:$0xff] %v36661_v55  ;;  %42308 = vst [vmem:[#allocation53_spill] sm:$0xff] %v36663_v56 }
 0x10b   : > { %v36665_v58 = vpop.f32.mrf.mxu1 }
 0x10c   : > { %42309 = vst [vmem:[#allocation54_spill] sm:$0xff] %v36665_v58 }
 0x110   : > { %v36667_v61 = vpop.f32.mrf.mxu0 }
 0x111   : > { %42310 = vst [vmem:[#allocation55_spill] sm:$0xff] %v36667_v61 }
 0x112   : > { %v36669_v0 = vpop.f32.mrf.mxu1  ;;  %v36671_v3 = vpop.f32.mrf.mxu0 }
 0x113   : > { %42311 = vst [vmem:[#allocation56_spill] sm:$0xff] %v36669_v0  ;;  %42312 = vst [vmem:[#allocation57_spill] sm:$0xff] %v36671_v3 }
 0x114   : > { %v36673_v6 = vpop.f32.mrf.mxu1 }
 0x115   : > { %42313 = vst [vmem:[#allocation58_spill] sm:$0xff] %v36673_v6 }
 0x116   : > { %v36675_v11 = vpop.f32.mrf.mxu0 }
 0x118   : > { %v36679_v13 = vpop.f32.mrf.mxu1  ;;  %v31914_v18 = vpop.f32.mrf.mxu0 }
 0x119   : > { %v36697_v18 = vpop.trf.xlu0 }
 0x11a   : > { %v31921_v19 = vpop.f32.mrf.mxu1 }
 0x11c   : > { %v36685_v57 = vpop.f32.mrf.mxu0 }
 0x11e   : > { %v36687_v41 = vpop.f32.mrf.mxu1  ;;  %v31928_v40 = vpop.f32.mrf.mxu0 }
 0x120   : > { %v31935_v39 = vpop.f32.mrf.mxu1 }
 0x122   : > { %v36693_v37 = vpop.f32.mrf.mxu0 }
 0x123   : > { %42314 = vst [vmem:[#allocation59_spill] sm:$0xff] %v36693_v37 }
 0x124   : > { %v36699_v19 = vpop.f32.mrf.mxu1  ;;  %v31942_v22 = vpop.f32.mrf.mxu0 }
 0x125   : > { %42315 = vst [vmem:[#allocation60_spill] sm:$0xff] %v36699_v19 }
 0x126   : > { %v31949_v17 = vpop.f32.mrf.mxu1 }
 0x128   : > { %v36703_v10 = vpop.f32.mrf.mxu0 }
 0x129   : > { %42316 = vst [vmem:[#allocation61_spill] sm:$0xff] %v36703_v10 }
 0x12a   : > { %v36705_v40 = vpop.f32.mrf.mxu1  ;;  %v31956_v9 = vpop.f32.mrf.mxu0 }
 0x12b   : > { %42317 = vst [vmem:[#allocation62_spill] sm:$0xff] %v36705_v40 }
 0x12c   : > { %v31963_v15 = vpop.f32.mrf.mxu1 }
 0x16e   : > { %v36707_v14 = vpop.f32.mrf.mxu0  ;;  %v36709_v39 = vpop.f32.mrf.mxu1 }
 0x16f   : > { %42318 = vst [vmem:[#allocation63_spill] sm:$0xff] %v36707_v14  ;;  %42319 = vst [vmem:[#allocation64_spill] sm:$0xff] %v36709_v39 }
 0x170   : > { %v31970_v8 = vpop.f32.mrf.mxu0  ;;  %v31977_v7 = vpop.f32.mrf.mxu1 }
 0x173   : > { %v36711_v37 = vpop.f32.mrf.mxu0  ;;  %v36713_v32 = vpop.f32.mrf.mxu1 }
 0x174   : > { %42320 = vst [vmem:[#allocation65_spill] sm:$0xff] %v36711_v37  ;;  %42321 = vst [vmem:[#allocation66_spill] sm:$0xff] %v36713_v32 }
 0x175   : > { %v31984_v22 = vpop.f32.mrf.mxu0  ;;  %v31991_v17 = vpop.f32.mrf.mxu1 }
 0x179   : > { %v36715_v19 = vpop.f32.mrf.mxu0  ;;  %v36717_v33 = vpop.f32.mrf.mxu1 }
 0x17a   : > { %42322 = vst [vmem:[#allocation67_spill] sm:$0xff] %v36715_v19  ;;  %42323 = vst [vmem:[#allocation68_spill] sm:$0xff] %v36717_v33 }
 0x17b   : > { %v31998_v10 = vpop.f32.mrf.mxu0  ;;  %v32005_v40 = vpop.f32.mrf.mxu1 }
 0x17f   : > { %v36719_v9 = vpop.f32.mrf.mxu0  ;;  %v36721_v15 = vpop.f32.mrf.mxu1 }
 0x181   : > { %v32012_v14 = vpop.f32.mrf.mxu0  ;;  %v32019_v39 = vpop.f32.mrf.mxu1 }
 0x182   : > { %v42324_v14 = vmov 0.0  }
 0x183   : > { %v32024_v8 = vpop.f32.mrf.mxu0  ;;  %v32029_v7 = vpop.f32.mrf.mxu1 }
 0x184   : > { %v2969_v37 = vadd.f32 %v32024_v8, %v36643_v46  ;;  %v3050_v32 = vadd.f32 %v32029_v7, %v36645_v47 }
 0x185   : > { %v2963_v22 = vpop.f32.mrf.mxu0  ;;  %v3044_v17 = vpop.f32.mrf.mxu1 }
 0x186   : > { %v2964_v19 = vadd.f32 %v2963_v22, %v36647_v48  ;;  %v3045_v33 = vadd.f32 %v3044_v17, %v36649_v49  ;;  %32061 = vmatpush3.msk.msra.mxu0 %vm1433_vm1, %v2969_v37  ;;  %32068 = vmatpush3.msk.msra.mxu1 %vm1433_vm1, %v3050_v32 }
 0x187   : > { %v32034_v10 = vpop.f32.mrf.mxu0  ;;  %v32039_v40 = vpop.f32.mrf.mxu1  ;;  %32062 = vmatprep.subr.mxu0 %v42324_v14  ;;  %32069 = vmatprep.subr.mxu1 %v42324_v14 }
 0x188   : > { %v3131_v39 = vadd.f32 %v32034_v10, %v36651_v50  ;;  %v3212_v8 = vadd.f32 %v32039_v40, %v36653_v51  ;;  %32063 = vmatpush3.msra.mxu0 %v2964_v19  ;;  %32070 = vmatpush3.msra.mxu1 %v3045_v33 }
 0x189   : > { %v3125_v7 = vpop.f32.mrf.mxu0  ;;  %v3206_v22 = vpop.f32.mrf.mxu1  ;;  %32065 = vmatmul.mubr.msk.f32.vlgmr.msra.gmra.mxu0 %vm1429_vm2, %v36374_v59  ;;  %32072 = vmatmul.mubr.msk.f32.vlgmr.msra.gmra.mxu1 %vm1429_vm2, %v36381_v60 }
 0x18a   : > { %v3126_v37 = vadd.f32 %v3125_v7, %v36655_v52  ;;  %v3207_v32 = vadd.f32 %v3206_v22, %v36657_v53  ;;  %32074 = vmatprep.subr.mxu0 %v42324_v14  ;;  %32081 = vmatprep.subr.mxu1 %v42324_v14 }
 0x18b   : > { %32075 = vmatpush3.msk.msra.mxu0 %vm1433_vm1, %v3131_v39  ;;  %32082 = vmatpush3.msk.msra.mxu1 %vm1433_vm1, %v3212_v8  ;;  %v32044_v33 = vpop.f32.mrf.mxu0  ;;  %v32049_v19 = vpop.f32.mrf.mxu1 }
 0x18c   : > { %32076 = vmatprep.subr.mxu0 %v42324_v14  ;;  %32083 = vmatprep.subr.mxu1 %v42324_v14  ;;  %v3293_v17 = vadd.f32 %v32044_v33, %v36659_v54  ;;  %v3374_v10 = vadd.f32 %v32049_v19, %v36661_v55 }
 0x18d   : > { %32077 = vmatpush3.msra.mxu0 %v3126_v37  ;;  %32078 = vmatprep.mubr.msk.f32.mxu0 %vm36022_vm3, %v42324_v14  ;;  %v3287_v40 = vpop.f32.mrf.mxu0  ;;  %v3368_v7 = vpop.f32.mrf.mxu1 }
 0x18e   : > { %32084 = vmatpush3.msra.mxu1 %v3207_v32  ;;  %32085 = vmatprep.mubr.msk.f32.mxu1 %vm36022_vm3, %v42324_v14  ;;  %v3288_v39 = vadd.f32 %v3287_v40, %v36663_v56  ;;  %v3369_v37 = vadd.f32 %v3368_v7, %v36665_v58  ;;  %v36780_v7 = vunpack.i.h.bf16 %v36677_v12 }
 0x18f   : > { %32079 = vmatmul.mubr.msk.f32.vlgmr.msra.gmra.mxu0 %vm1429_vm2, %v36397_v62  ;;  %32086 = vmatmul.mubr.msk.f32.vlgmr.msra.gmra.mxu1 %vm1429_vm2, %v36404_v63  ;;  %v32054_v8 = vpop.f32.mrf.mxu0  ;;  %v32059_v22 = vpop.f32.mrf.mxu1 }
 0x190   : > { %32088 = vmatprep.subr.mxu0 %v42324_v14  ;;  %32095 = vmatprep.subr.mxu1 %v42324_v14  ;;  %v3455_v33 = vadd.f32 %v32054_v8, %v36667_v61  ;;  %v3536_v19 = vadd.f32 %v32059_v22, %v36669_v0  ;;  %42325 = vst [vmem:[#allocation69_spill] sm:$0xff] %v36780_v7  ;;  %v36799_v8 = vunpack.i.l.bf16 %v36683_v27  ;;  %v36806_v22 = vunpack.i.l.bf16 %v36681_v26 }
 0x191   : > { %32089 = vmatpush3.msk.msra.mxu0 %vm1433_vm1, %v3293_v17  ;;  %32096 = vmatpush3.msk.msra.mxu1 %vm1433_vm1, %v3374_v10  ;;  %v3449_v32 = vpop.f32.mrf.mxu0  ;;  %v3530_v40 = vpop.f32.mrf.mxu1 }
 0x192   : > { %32090 = vmatprep.subr.mxu0 %v42324_v14  ;;  %32097 = vmatprep.subr.mxu1 %v42324_v14  ;;  %v3450_v17 = vadd.f32 %v3449_v32, %v36671_v3  ;;  %v3531_v10 = vadd.f32 %v3530_v40, %v36673_v6  ;;  %42328 = vst [vmem:[#allocation72_spill] sm:$0xff] %v36799_v8  ;;  %42329 = vst [vmem:[#allocation73_spill] sm:$0xff] %v36806_v22  ;;  %v36823_v32 = vunpack.i.l.bf16 %v36689_v30 }
 0x193   : > { %32091 = vmatpush3.msra.mxu0 %v3288_v39  ;;  %32092 = vmatprep.mubr.msk.f32.mxu0 %vm36022_vm3, %v42324_v14  ;;  %v36783_v39 = vunpack.i.l.bf16 %v36677_v12  ;;  %v36796_v12 = vunpack.i.h.bf16 %v36683_v27  ;;  %v36820_v27 = vunpack.i.h.bf16 %v36689_v30  ;;  %v36844_v30 = vunpack.i.h.bf16 %v36697_v18 }
 0x194   : > { %32098 = vmatpush3.msra.mxu1 %v3369_v37  ;;  %32099 = vmatprep.mubr.msk.f32.mxu1 %vm36022_vm3, %v42324_v14  ;;  %v36811_v37 = vunpack.i.h.bf16 %v36681_v26  ;;  %42332 = vst [vmem:[#allocation76_spill] sm:$0xff] %v36823_v32  ;;  %v36828_v26 = vunpack.i.l.bf16 %v36691_v29  ;;  %v36858_v40 = vunpack.i.h.bf16 %v36695_v23 }
 0x195   : > { %32093 = vmatmul.mubr.msk.f32.vlgmr.msra.gmra.mxu0 %vm1429_vm2, %v36420_v1  ;;  %32100 = vmatmul.mubr.msk.f32.vlgmr.msra.gmra.mxu1 %vm1429_vm2, %v36427_v2  ;;  %42326 = vst [vmem:[#allocation70_spill] sm:$0xff] %v36783_v39  ;;  %42327 = vst [vmem:[#allocation71_spill] sm:$0xff] %v36796_v12 }
 0x196   : > { %32102 = vmatprep.subr.mxu0 %v42324_v14  ;;  %32109 = vmatprep.subr.mxu1 %v42324_v14  ;;  %42330 = vst [vmem:[#allocation74_spill] sm:$0xff] %v36811_v37  ;;  %42331 = vst [vmem:[#allocation75_spill] sm:$0xff] %v36820_v27 }
 0x197   : > { %32103 = vmatpush3.msk.msra.mxu0 %vm1433_vm1, %v3455_v33  ;;  %32110 = vmatpush3.msk.msra.mxu1 %vm1433_vm1, %v3536_v19  ;;  %42333 = vst [vmem:[#allocation77_spill] sm:$0xff] %v36828_v26  ;;  %v36834_v33 = vunpack.i.h.bf16 %v36691_v29  ;;  %42335 = vst [vmem:[#allocation79_spill] sm:$0xff] %v36844_v30  ;;  %v36847_v19 = vunpack.i.l.bf16 %v36697_v18  ;;  %v36852_v29 = vunpack.i.l.bf16 %v36695_v23  ;;  %v36868_v18 = vunpack.i.h.bf16 %v36701_v16 }
 0x198   : > { %32104 = vmatprep.subr.mxu0 %v42324_v14  ;;  %32111 = vmatprep.subr.mxu1 %v42324_v14  ;;  %42338 = vst [vmem:[#allocation82_spill] sm:$0xff] %v36858_v40 }
 0x199   : > { %32105 = vmatpush3.msra.mxu0 %v3450_v17  ;;  %32106 = vmatprep.mubr.msk.f32.mxu0 %vm36022_vm3, %v42324_v14  ;;  %42334 = vst [vmem:[#allocation78_spill] sm:$0xff] %v36834_v33  ;;  %42336 = vst [vmem:[#allocation80_spill] sm:$0xff] %v36847_v19  ;;  %v36871_v17 = vunpack.i.l.bf16 %v36701_v16 }
 0x19a   : > { %32112 = vmatpush3.msra.mxu1 %v3531_v10  ;;  %32113 = vmatprep.mubr.msk.f32.mxu1 %vm36022_vm3, %v42324_v14  ;;  %42337 = vst [vmem:[#allocation81_spill] sm:$0xff] %v36852_v29  ;;  %42339 = vst [vmem:[#allocation83_spill] sm:$0xff] %v36868_v18 }
 0x19b   : > { %32107 = vmatmul.mubr.msk.f32.vlgmr.msra.gmra.mxu0 %vm1429_vm2, %v36443_v4  ;;  %32114 = vmatmul.mubr.msk.f32.vlgmr.msra.gmra.mxu1 %vm1429_vm2, %v36450_v5  ;;  %42340 = vst [vmem:[#allocation84_spill] sm:$0xff] %v36871_v17 }
 0x19c   : > { %32118 = vmatprep.mubr.msk.f32.mxu0 %vm2890_vm4, %v36783_v39  ;;  %32123 = vmatprep.mubr.msk.f32.mxu1 %vm2890_vm4, %v36780_v7 }
 0x19d   : > { %32116 = vmatprep.subr.mxu0 %v36559_v34  ;;  %32121 = vmatprep.subr.mxu1 %v36562_v35 }
 0x19e   : > { %32117 = vmatpush3.msra.mxu0 %v36559_v34  ;;  %32122 = vmatpush3.msra.mxu1 %v36562_v35 }
 0x19f   : > { %32119 = vmatmul.mubr.msk.f32.vlgmr.msra.gmra.mxu0 %vm2890_vm4, %v36799_v8  ;;  %32124 = vmatmul.mubr.msk.f32.vlgmr.msra.gmra.mxu1 %vm2890_vm4, %v36796_v12 }
 0x1a0   : > { %32126 = vmatprep.subr.mxu0 %v36577_v36  ;;  %32131 = vmatprep.subr.mxu1 %v36580_v38 }
 0x1a1   : > { %32127 = vmatpush3.msra.mxu0 %v36577_v36  ;;  %32128 = vmatprep.mubr.msk.f32.mxu0 %vm2890_vm4, %v36806_v22 }
 0x1a2   : > { %32132 = vmatpush3.msra.mxu1 %v36580_v38  ;;  %32133 = vmatprep.mubr.msk.f32.mxu1 %vm2890_vm4, %v36811_v37 }
 0x1a3   : > { %32129 = vmatmul.mubr.msk.f32.vlgmr.msra.gmra.mxu0 %vm2890_vm4, %v36823_v32  ;;  %32134 = vmatmul.mubr.msk.f32.vlgmr.msra.gmra.mxu1 %vm2890_vm4, %v36820_v27 }
 0x1a4   : > { %32136 = vmatprep.subr.mxu0 %v36595_v42  ;;  %32141 = vmatprep.subr.mxu1 %v36598_v43 }
 0x1a5   : > { %32137 = vmatpush3.msra.mxu0 %v36595_v42  ;;  %32138 = vmatprep.mubr.msk.f32.mxu0 %vm2890_vm4, %v36828_v26 }
 0x1a6   : > { %32142 = vmatpush3.msra.mxu1 %v36598_v43  ;;  %32143 = vmatprep.mubr.msk.f32.mxu1 %vm2890_vm4, %v36834_v33 }
 0x1a7   : > { %32139 = vmatmul.mubr.msk.f32.vlgmr.msra.gmra.mxu0 %vm2890_vm4, %v36847_v19  ;;  %32144 = vmatmul.mubr.msk.f32.vlgmr.msra.gmra.mxu1 %vm2890_vm4, %v36844_v30 }
 0x1a8   : > { %32146 = vmatprep.subr.mxu0 %v36613_v44  ;;  %32151 = vmatprep.subr.mxu1 %v36616_v45 }
 0x1a9   : > { %32147 = vmatpush3.msra.mxu0 %v36613_v44  ;;  %32148 = vmatprep.mubr.msk.f32.mxu0 %vm2890_vm4, %v36852_v29 }
 0x1aa   : > { %32152 = vmatpush3.msra.mxu1 %v36616_v45  ;;  %32153 = vmatprep.mubr.msk.f32.mxu1 %vm2890_vm4, %v36858_v40 }
 0x1ab   : > { %32149 = vmatmul.mubr.msk.f32.vlgmr.msra.gmra.mxu0 %vm2890_vm4, %v36871_v17  ;;  %32154 = vmatmul.mubr.msk.f32.vlgmr.msra.gmra.mxu1 %vm2890_vm4, %v36868_v18 }
 0x1ac   : > { %32156 = vmatprep.subr.mxu0 %v42324_v14  ;;  %32163 = vmatprep.subr.mxu1 %v42324_v14 }
 0x1ad   : > { %32160 = vmatprep.mubr.msk.f32.mxu0 %vm36022_vm3, %v42324_v14  ;;  %32167 = vmatprep.mubr.msk.f32.mxu1 %vm36022_vm3, %v42324_v14 }
 0x249   : > { %v36891_v16 = vpop.f32.mrf.mxu0  ;;  %v36893_v23 = vpop.f32.mrf.mxu1 }
 0x24b   : > { %v32066_v10 = vpop.f32.mrf.mxu0  ;;  %v32073_v40 = vpop.f32.mrf.mxu1 }
 0x24f   : > { %v36895_v17 = vpop.f32.mrf.mxu0  ;;  %v36897_v29 = vpop.f32.mrf.mxu1 }
 0x251   : > { %v32080_v18 = vpop.f32.mrf.mxu0  ;;  %v32087_v30 = vpop.f32.mrf.mxu1 }
 0x255   : > { %v36899_v19 = vpop.f32.mrf.mxu0  ;;  %v36901_v33 = vpop.f32.mrf.mxu1 }
 0x257   : > { %v32094_v26 = vpop.f32.mrf.mxu0  ;;  %v32101_v27 = vpop.f32.mrf.mxu1 }
 0x25b   : > { %v36903_v32 = vpop.f32.mrf.mxu0  ;;  %v36905_v37 = vpop.f32.mrf.mxu1 }
 0x25d   : > { %v32108_v22 = vpop.f32.mrf.mxu0  ;;  %v32115_v12 = vpop.f32.mrf.mxu1 }
 0x25f   : > { %v32120_v10 = vpop.f32.mrf.mxu0  ;;  %v32125_v40 = vpop.f32.mrf.mxu1 }
 0x260   : > { %v4241_v8 = vadd.f32 %v32120_v10, %v36643_v46  ;;  %v4354_v7 = vadd.f32 %v32125_v40, %v36645_v47 }
 0x261   : > { %v4235_v18 = vpop.f32.mrf.mxu0  ;;  %v4348_v30 = vpop.f32.mrf.mxu1 }
 0x262   : > { %v4236_v39 = vadd.f32 %v4235_v18, %v36647_v48  ;;  %v4349_v5 = vadd.f32 %v4348_v30, %v36649_v49  ;;  %32157 = vmatpush3.msk.msra.mxu0 %vm1433_vm1, %v4241_v8  ;;  %32164 = vmatpush3.msk.msra.mxu1 %vm1433_vm1, %v4354_v7 }
 0x263   : > { %v32130_v27 = vpop.f32.mrf.mxu0  ;;  %v32135_v26 = vpop.f32.mrf.mxu1  ;;  %32158 = vmatprep.subr.mxu0 %v42324_v14  ;;  %32165 = vmatprep.subr.mxu1 %v42324_v14 }
 0x264   : > { %v4467_v12 = vadd.f32 %v32130_v27, %v36651_v50  ;;  %v4580_v22 = vadd.f32 %v32135_v26, %v36653_v51  ;;  %32159 = vmatpush3.msra.mxu0 %v4236_v39  ;;  %32166 = vmatpush3.msra.mxu1 %v4349_v5 }
 0x265   : > { %v4461_v10 = vpop.f32.mrf.mxu0  ;;  %v4574_v40 = vpop.f32.mrf.mxu1  ;;  %32161 = vmatmul.mubr.msk.f32.vlgmr.msra.gmra.mxu0 %vm1429_vm2, %v36488_v21  ;;  %32168 = vmatmul.mubr.msk.f32.vlgmr.msra.gmra.mxu1 %vm1429_vm2, %v36486_v20 }
 0x266   : > { %v4462_v7 = vadd.f32 %v4461_v10, %v36655_v52  ;;  %v4575_v8 = vadd.f32 %v4574_v40, %v36657_v53  ;;  %32170 = vmatprep.subr.mxu0 %v42324_v14  ;;  %32177 = vmatprep.subr.mxu1 %v42324_v14  ;;  %v1504_v40 = vadd.f32 1.0, %v36675_v11 }
 0x267   : > { %32171 = vmatpush3.msk.msra.mxu0 %vm1433_vm1, %v4467_v12  ;;  %32178 = vmatpush3.msk.msra.mxu1 %vm1433_vm1, %v4580_v22  ;;  %v32140_v5 = vpop.f32.mrf.mxu0  ;;  %v32145_v39 = vpop.f32.mrf.mxu1 }
 0x268   : > { %32172 = vmatprep.subr.mxu0 %v42324_v14  ;;  %32179 = vmatprep.subr.mxu1 %v42324_v14  ;;  %v4693_v18 = vadd.f32 %v32140_v5, %v36659_v54  ;;  %v4806_v30 = vadd.f32 %v32145_v39, %v36661_v55  ;;  %35458 = vrcp.f32 %v1504_v40  ;;  %v3609_v40 = vadd.f32 %v36891_v16, %v36559_v34 }
 0x269   : > { %32173 = vmatpush3.msra.mxu0 %v4462_v7  ;;  %32174 = vmatprep.mubr.msk.f32.mxu0 %vm36022_vm3, %v42324_v14  ;;  %v4687_v27 = vpop.f32.mrf.mxu0  ;;  %v4800_v26 = vpop.f32.mrf.mxu1 }
 0x26a   : > { %32180 = vmatpush3.msra.mxu1 %v4575_v8  ;;  %32181 = vmatprep.mubr.msk.f32.mxu1 %vm36022_vm3, %v42324_v14  ;;  %v4688_v12 = vadd.f32 %v4687_v27, %v36663_v56  ;;  %v4801_v7 = vadd.f32 %v4800_v26, %v36665_v58  ;;  %v1577_v8 = vadd.f32 1.0, %v36679_v13  ;;  %v36975_v26 = vld [vmem:[%s42055_s12 + $0x18] sm:$0xff] }
 0x26b   : > { %32175 = vmatmul.mubr.msk.f32.vlgmr.msra.gmra.mxu0 %vm1429_vm2, %v36496_v25  ;;  %32182 = vmatmul.mubr.msk.f32.vlgmr.msra.gmra.mxu1 %vm1429_vm2, %v36494_v24  ;;  %v32150_v22 = vpop.f32.mrf.mxu0  ;;  %v32155_v10 = vpop.f32.mrf.mxu1 }
 0x26c   : > { %32184 = vmatprep.subr.mxu0 %v42324_v14  ;;  %32191 = vmatprep.subr.mxu1 %v42324_v14  ;;  %v4919_v39 = vadd.f32 %v32150_v22, %v36667_v61  ;;  %v5032_v11 = vadd.f32 %v32155_v10, %v36669_v0  ;;  %35460 = vrcp.f32 %v1577_v8  ;;  %v42341_v22 = vld [vmem:[#allocation42_spill] sm:$0xff]  ;;  %v42342_v10 = vld [vmem:[#allocation41_spill] sm:$0xff] }
 0x26d   : > { %32185 = vmatpush3.msk.msra.mxu0 %vm1433_vm1, %v4693_v18  ;;  %32192 = vmatpush3.msk.msra.mxu1 %vm1433_vm1, %v4806_v30  ;;  %v4913_v5 = vpop.f32.mrf.mxu0  ;;  %v5026_v27 = vpop.f32.mrf.mxu1  ;;  %v1650_v30 = vadd.f32 1.0, %v36685_v57  ;;  %v36987_v57 = vld [vmem:[%s42055_s12 + $0x10] sm:$0xff]  ;;  %v37009_v8 = vld [vmem:[%s42055_s12] sm:$0xff] }
 0x26e   : > { %32186 = vmatprep.subr.mxu0 %v42324_v14  ;;  %32193 = vmatprep.subr.mxu1 %v42324_v14  ;;  %v4914_v13 = vadd.f32 %v4913_v5, %v36671_v3  ;;  %v5027_v18 = vadd.f32 %v5026_v27, %v36673_v6 }
 0x26f   : > { %32187 = vmatpush3.msra.mxu0 %v4688_v12  ;;  %32188 = vmatprep.mubr.msk.f32.mxu0 %vm36022_vm3, %v42324_v14  ;;  %v1723_v12 = vadd.f32 1.0, %v36687_v41  ;;  %35462 = vrcp.f32 %v1650_v30  ;;  %v36996_v41 = vld [vmem:[%s42055_s12 + $0x8] sm:$0xff]  ;;  %v3755_v30 = vadd.f32 %v36895_v17, %v36577_v36 }
 0x270   : > { %32194 = vmatpush3.msra.mxu1 %v4801_v7  ;;  %32195 = vmatprep.mubr.msk.f32.mxu1 %vm36022_vm3, %v42324_v14  ;;  %v3682_v7 = vadd.f32 %v36893_v23, %v36562_v35 }
 0x271   : > { %32189 = vmatmul.mubr.msk.f32.vlgmr.msra.gmra.mxu0 %vm1429_vm2, %v36518_v31  ;;  %32196 = vmatmul.mubr.msk.f32.vlgmr.msra.gmra.mxu1 %vm1429_vm2, %v36516_v28  ;;  %35464 = vrcp.f32 %v1723_v12  ;;  %v3828_v12 = vadd.f32 %v36897_v29, %v36580_v38 }
 0x272   : > { %32198 = vmatprep.subr.mxu0 %v42324_v14  ;;  %32205 = vmatprep.subr.mxu1 %v42324_v14 }
 0x273   : > { %32199 = vmatpush3.msk.msra.mxu0 %vm1433_vm1, %v4919_v39  ;;  %32206 = vmatpush3.msk.msra.mxu1 %vm1433_vm1, %v5032_v11  ;;  %v42345_v11 = vld [vmem:[#allocation59_spill] sm:$0xff] }
 0x274   : > { %32200 = vmatprep.subr.mxu0 %v42324_v14  ;;  %32207 = vmatprep.subr.mxu1 %v42324_v14  ;;  %v1796_v27 = vadd.f32 1.0, %v42345_v11  ;;  %v42349_v11 = vld [vmem:[#allocation61_spill] sm:$0xff] }
 0x275   : > { %32201 = vmatpush3.msra.mxu0 %v4914_v13  ;;  %32202 = vmatprep.mubr.msk.f32.mxu0 %vm36022_vm3, %v42324_v14  ;;  %v37011_v5 = vpop.eup %35458  ;;  %v42346_v13 = vld [vmem:[#allocation60_spill] sm:$0xff] }
 0x276   : > { %32208 = vmatpush3.msra.mxu1 %v5027_v18  ;;  %32209 = vmatprep.mubr.msk.f32.mxu1 %vm36022_vm3, %v42324_v14  ;;  %42343 = vst [vmem:[#allocation85_spill] sm:$0xff] %v37011_v5  ;;  %v37020_v23 = vmul.f32 %v37011_v5, %v3609_v40  ;;  %v1869_v18 = vadd.f32 1.0, %v42346_v13  ;;  %35466 = vrcp.f32 %v1796_v27  ;;  %v1942_v27 = vadd.f32 1.0, %v42349_v11  ;;  %v42350_v13 = vld [vmem:[#allocation62_spill] sm:$0xff] }
 0x277   : > { %32203 = vmatmul.mubr.msk.f32.vlgmr.msra.gmra.mxu0 %vm1429_vm2, %v42341_v22  ;;  %32210 = vmatmul.mubr.msk.f32.vlgmr.msra.gmra.mxu1 %vm1429_vm2, %v42342_v10 }
 0x278   : > { %32212 = vmatprep.subr.mxu0 %v42324_v14  ;;  %32223 = vmatprep.subr.mxu1 %v42324_v14  ;;  %35468 = vrcp.f32 %v1869_v18  ;;  %v2015_v18 = vadd.f32 1.0, %v42350_v13 }
 0x279   : > { %32213 = vmatpush3.msra.mxu0 %v36975_v26  ;;  %32224 = vmatpush3.msra.mxu1 %v36975_v26  ;;  %v37015_v16 = vpop.eup %35460  ;;  %35470 = vrcp.f32 %v1942_v27 }
 0x27a   : > { %32214 = vmatprep.subr.mxu0 %v42324_v14  ;;  %32225 = vmatprep.subr.mxu1 %v42324_v14  ;;  %42344 = vst [vmem:[#allocation86_spill] sm:$0xff] %v37015_v16  ;;  %v37023_v39 = vmul.f32 %v37015_v16, %v3682_v7  ;;  %35472 = vrcp.f32 %v2015_v18 }
 0x27b   : > { %32215 = vmatpush3.msra.mxu0 %v36987_v57  ;;  %32226 = vmatpush3.msra.mxu1 %v36987_v57 }
 0x27c   : > { %32216 = vmatprep.subr.mxu0 %v42324_v14  ;;  %32227 = vmatprep.subr.mxu1 %v42324_v14  ;;  %v37051_v40 = vpop.eup %35462 }
 0x27d   : > { %32217 = vmatpush3.msra.mxu0 %v36996_v41  ;;  %32228 = vmatpush3.msra.mxu1 %v36996_v41  ;;  %42347 = vst [vmem:[#allocation59_spill] sm:$0xff] %v37051_v40  ;;  %v37060_v29 = vmul.f32 %v37051_v40, %v3755_v30  ;;  %v3901_v30 = vadd.f32 %v36899_v19, %v36595_v42 }
 0x27e   : > { %32218 = vmatprep.subr.mxu0 %v42324_v14  ;;  %32229 = vmatprep.subr.mxu1 %v42324_v14  ;;  %v37055_v7 = vpop.eup %35464  ;;  %v4120_v19 = vadd.f32 %v36905_v37, %v36616_v45  ;;  %v37152_v37 = vld [vmem:[%s42054_s11 + $0x18] sm:$0xff] }
 0x27f   : > { %32219 = vmatpush3.msra.mxu0 %v37009_v8  ;;  %32220 = vmatprep.mubr.msk.f32.mxu0 %vm36022_vm3, %v42324_v14  ;;  %42348 = vst [vmem:[#allocation60_spill] sm:$0xff] %v37055_v7  ;;  %v37063_v17 = vmul.f32 %v37055_v7, %v3828_v12  ;;  %v3974_v12 = vadd.f32 %v36901_v33, %v36598_v43 }
 0x280   : > { %32230 = vmatpush3.msra.mxu1 %v37009_v8  ;;  %32231 = vmatprep.mubr.msk.f32.mxu1 %vm36022_vm3, %v42324_v14  ;;  %v4047_v33 = vadd.f32 %v36903_v32, %v36613_v44  ;;  %v37163_v32 = vld [vmem:[%s42054_s11 + $0x10] sm:$0xff] }
 0x281   : > { %32221 = vmatmul.mubr.msk.f32.vlgmr.msra.gmra.mxu0 %vm780_vm0, %v37020_v23  ;;  %32232 = vmatmul.mubr.msk.f32.vlgmr.msra.gmra.mxu1 %vm780_vm0, %v37023_v39 }
 0x282   : > { %32234 = vmatprep.subr.mxu0 %v42324_v14  ;;  %32245 = vmatprep.subr.mxu1 %v42324_v14 }
 0x283   : > { %32235 = vmatpush3.msra.mxu0 %v36975_v26  ;;  %32246 = vmatpush3.msra.mxu1 %v36975_v26  ;;  %v37091_v11 = vpop.eup %35466 }
 0x284   : > { %32236 = vmatprep.subr.mxu0 %v42324_v14  ;;  %32247 = vmatprep.subr.mxu1 %v42324_v14  ;;  %42351 = vst [vmem:[#allocation61_spill] sm:$0xff] %v37091_v11  ;;  %v37100_v42 = vmul.f32 %v37091_v11, %v3901_v30  ;;  %v42356_v30 = vld [vmem:[#allocation64_spill] sm:$0xff] }
 0x285   : > { %32237 = vmatpush3.msra.mxu0 %v36987_v57  ;;  %32248 = vmatpush3.msra.mxu1 %v36987_v57  ;;  %v37095_v27 = vpop.eup %35468 }
 0x286   : > { %32238 = vmatprep.subr.mxu0 %v42324_v14  ;;  %32249 = vmatprep.subr.mxu1 %v42324_v14  ;;  %42352 = vst [vmem:[#allocation62_spill] sm:$0xff] %v37095_v27  ;;  %v37103_v43 = vmul.f32 %v37095_v27, %v3974_v12  ;;  %v37129_v13 = vpop.eup %35470  ;;  %v2241_v12 = vadd.f32 1.0, %v42356_v30 }
 0x287   : > { %32239 = vmatpush3.msra.mxu0 %v36996_v41  ;;  %32250 = vmatpush3.msra.mxu1 %v36996_v41  ;;  %42353 = vst [vmem:[#allocation87_spill] sm:$0xff] %v37129_v13  ;;  %v37138_v44 = vmul.f32 %v37129_v13, %v4047_v33  ;;  %v42357_v33 = vld [vmem:[#allocation65_spill] sm:$0xff] }
 0x288   : > { %32240 = vmatprep.subr.mxu0 %v42324_v14  ;;  %32251 = vmatprep.subr.mxu1 %v42324_v14 }
 0x289   : > { %32241 = vmatpush3.msra.mxu0 %v37009_v8  ;;  %32242 = vmatprep.mubr.msk.f32.mxu0 %vm36022_vm3, %v42324_v14 }
 0x28a   : > { %32252 = vmatpush3.msra.mxu1 %v37009_v8  ;;  %32253 = vmatprep.mubr.msk.f32.mxu1 %vm36022_vm3, %v42324_v14 }
 0x28b   : > { %32243 = vmatmul.mubr.msk.f32.vlgmr.msra.gmra.mxu0 %vm780_vm0, %v37060_v29  ;;  %32254 = vmatmul.mubr.msk.f32.vlgmr.msra.gmra.mxu1 %vm780_vm0, %v37063_v17 }
 0x28c   : > { %32256 = vmatprep.subr.mxu0 %v42324_v14  ;;  %32267 = vmatprep.subr.mxu1 %v42324_v14 }
 0x28d   : > { %32257 = vmatpush3.msra.mxu0 %v36975_v26  ;;  %32268 = vmatpush3.msra.mxu1 %v36975_v26 }
 0x28e   : > { %32258 = vmatprep.subr.mxu0 %v42324_v14  ;;  %32269 = vmatprep.subr.mxu1 %v42324_v14 }
 0x28f   : > { %32259 = vmatpush3.msra.mxu0 %v36987_v57  ;;  %32270 = vmatpush3.msra.mxu1 %v36987_v57 }
 0x290   : > { %32260 = vmatprep.subr.mxu0 %v42324_v14  ;;  %32271 = vmatprep.subr.mxu1 %v42324_v14 }
 0x291   : > { %32261 = vmatpush3.msra.mxu0 %v36996_v41  ;;  %32272 = vmatpush3.msra.mxu1 %v36996_v41 }
 0x292   : > { %32262 = vmatprep.subr.mxu0 %v42324_v14  ;;  %32273 = vmatprep.subr.mxu1 %v42324_v14 }
 0x293   : > { %32263 = vmatpush3.msra.mxu0 %v37009_v8  ;;  %32264 = vmatprep.mubr.msk.f32.mxu0 %vm36022_vm3, %v42324_v14 }
 0x294   : > { %32274 = vmatpush3.msra.mxu1 %v37009_v8  ;;  %32275 = vmatprep.mubr.msk.f32.mxu1 %vm36022_vm3, %v42324_v14 }
 0x295   : > { %32265 = vmatmul.mubr.msk.f32.vlgmr.msra.gmra.mxu0 %vm780_vm0, %v37100_v42  ;;  %32276 = vmatmul.mubr.msk.f32.vlgmr.msra.gmra.mxu1 %vm780_vm0, %v37103_v43 }
 0x296   : > { %32278 = vmatprep.subr.mxu0 %v42324_v14  ;;  %32289 = vmatprep.subr.mxu1 %v42324_v14 }
 0x297   : > { %32279 = vmatpush3.msra.mxu0 %v36975_v26  ;;  %32290 = vmatpush3.msra.mxu1 %v36975_v26  ;;  %v37133_v26 = vpop.eup %35472 }
 0x298   : > { %32280 = vmatprep.subr.mxu0 %v42324_v14  ;;  %32291 = vmatprep.subr.mxu1 %v42324_v14  ;;  %42354 = vst [vmem:[#allocation88_spill] sm:$0xff] %v37133_v26  ;;  %v37141_v45 = vmul.f32 %v37133_v26, %v4120_v19  ;;  %v2346_v19 = vadd.f32 1.0, %v42357_v33  ;;  %v42358_v26 = vld [vmem:[#allocation66_spill] sm:$0xff]  ;;  %v42362_v33 = vld [vmem:[#allocation68_spill] sm:$0xff] }
 0x299   : > { %32281 = vmatpush3.msra.mxu0 %v36987_v57  ;;  %32292 = vmatpush3.msra.mxu1 %v36987_v57  ;;  %v37180_v57 = vld [vmem:[%s42054_s11 + $0x8] sm:$0xff]  ;;  %v2451_v13 = vadd.f32 1.0, %v42358_v26  ;;  %v42361_v26 = vld [vmem:[#allocation67_spill] sm:$0xff] }
 0x29a   : > { %32282 = vmatprep.subr.mxu0 %v42324_v14  ;;  %32293 = vmatprep.subr.mxu1 %v42324_v14 }
 0x29b   : > { %32283 = vmatpush3.msra.mxu0 %v36996_v41  ;;  %32294 = vmatpush3.msra.mxu1 %v36996_v41  ;;  %v37185_v41 = vld [vmem:[%s42054_s11] sm:$0xff] }
 0x29c   : > { %32284 = vmatprep.subr.mxu0 %v42324_v14  ;;  %32295 = vmatprep.subr.mxu1 %v42324_v14 }
 0x29d   : > { %32285 = vmatpush3.msra.mxu0 %v37009_v8  ;;  %32286 = vmatprep.mubr.msk.f32.mxu0 %vm36022_vm3, %v42324_v14 }
 0x29e   : > { %32296 = vmatpush3.msra.mxu1 %v37009_v8  ;;  %32297 = vmatprep.mubr.msk.f32.mxu1 %vm36022_vm3, %v42324_v14  ;;  %v42355_v8 = vld [vmem:[#allocation63_spill] sm:$0xff] }
 0x29f   : > { %32287 = vmatmul.mubr.msk.f32.vlgmr.msra.gmra.mxu0 %vm780_vm0, %v37138_v44  ;;  %32298 = vmatmul.mubr.msk.f32.vlgmr.msra.gmra.mxu1 %vm780_vm0, %v37141_v45  ;;  %v2136_v18 = vadd.f32 1.0, %v42355_v8 }
 0x2a0   : > { %32300 = vmatprep.subr.mxu0 %v42324_v14  ;;  %32311 = vmatprep.subr.mxu1 %v42324_v14 }
 0x2a1   : > { %32301 = vmatpush3.msra.mxu0 %v37152_v37  ;;  %32312 = vmatpush3.msra.mxu1 %v37152_v37  ;;  %35474 = vrcp.f32 %v2136_v18 }
 0x2a2   : > { %32302 = vmatprep.subr.mxu0 %v42324_v14  ;;  %32313 = vmatprep.subr.mxu1 %v42324_v14  ;;  %35476 = vrcp.f32 %v2241_v12 }
 0x2a3   : > { %32303 = vmatpush3.msra.mxu0 %v37163_v32  ;;  %32314 = vmatpush3.msra.mxu1 %v37163_v32  ;;  %35478 = vrcp.f32 %v2346_v19  ;;  %v2661_v19 = vadd.f32 1.0, %v42362_v33 }
 0x2a4   : > { %32304 = vmatprep.subr.mxu0 %v42324_v14  ;;  %32315 = vmatprep.subr.mxu1 %v42324_v14  ;;  %35480 = vrcp.f32 %v2451_v13  ;;  %v2556_v13 = vadd.f32 1.0, %v42361_v26 }
 0x2a5   : > { %32308 = vmatprep.mubr.msk.f32.mxu0 %vm36022_vm3, %v42324_v14  ;;  %32319 = vmatprep.mubr.msk.f32.mxu1 %vm36022_vm3, %v42324_v14 }
 0x2a6   : > { %32305 = vmatpush3.msra.mxu0 %v37180_v57  ;;  %32316 = vmatpush3.msra.mxu1 %v37180_v57  ;;  %35482 = vrcp.f32 %v2556_v13 }
 0x2a7   : > { %32306 = vmatprep.subr.mxu0 %v42324_v14  ;;  %32317 = vmatprep.subr.mxu1 %v42324_v14  ;;  %35484 = vrcp.f32 %v2661_v19 }
 0x2a8   : > { %32307 = vmatpush3.msra.mxu0 %v37185_v41  ;;  %32318 = vmatpush3.msra.mxu1 %v37185_v41 }
 0x2a9   : > { %32322 = vmatprep.subr.mxu0 %v42324_v14  ;;  %32333 = vmatprep.subr.mxu1 %v42324_v14 }
 0x2ae   : > { %v37199_v7 = vpop.eup %35474 }
 0x2af   : > { %42359 = vst [vmem:[#allocation63_spill] sm:$0xff] %v37199_v7  ;;  %v37203_v5 = vpop.eup %35476 }
 0x2b0   : > { %42360 = vst [vmem:[#allocation64_spill] sm:$0xff] %v37203_v5 }
 0x325   : > { %v5104_v27 = vpop.f32.mrf.mxu0  ;;  %v5177_v11 = vpop.f32.mrf.mxu1 }
 0x326   : > { %v5105_v40 = vadd.f32 %v5104_v27, %v36559_v34  ;;  %v5178_v16 = vadd.f32 %v5177_v11, %v36562_v35 }
 0x327   : > { %v32162_v8 = vpop.f32.mrf.mxu0  ;;  %v32169_v30 = vpop.f32.mrf.mxu1 }
 0x328   : > { %v37206_v18 = vmul.f32 %v37199_v7, %v5105_v40  ;;  %v37209_v12 = vmul.f32 %v37203_v5, %v5178_v16  ;;  %v37228_v8 = vpop.eup %35478 }
 0x329   : > { %42363 = vst [vmem:[#allocation65_spill] sm:$0xff] %v37228_v8  ;;  %v37231_v30 = vpop.eup %35480 }
 0x32a   : > { %32309 = vmatmul.mubr.msk.f32.vlgmr.msra.gmra.mxu0 %vm780_vm0, %v37206_v18  ;;  %32320 = vmatmul.mubr.msk.f32.vlgmr.msra.gmra.mxu1 %vm780_vm0, %v37209_v12  ;;  %42364 = vst [vmem:[#allocation66_spill] sm:$0xff] %v37231_v30 }
 0x32b   : > { %v5250_v34 = vpop.f32.mrf.mxu0  ;;  %v5323_v27 = vpop.f32.mrf.mxu1  ;;  %32323 = vmatpush3.msra.mxu0 %v37152_v37  ;;  %32334 = vmatpush3.msra.mxu1 %v37152_v37 }
 0x32c   : > { %32324 = vmatprep.subr.mxu0 %v42324_v14  ;;  %32335 = vmatprep.subr.mxu1 %v42324_v14  ;;  %v5251_v40 = vadd.f32 %v5250_v34, %v36577_v36  ;;  %v5324_v11 = vadd.f32 %v5323_v27, %v36580_v38  ;;  %v2766_v34 = vadd.f32 1.0, %v36719_v9  ;;  %v2871_v27 = vadd.f32 1.0, %v36721_v15  ;;  %v35826_v9 = vld [vmem:[%s36543_s1 + $0x20] sm:$0xff] }
 0x32d   : > { %v32176_v35 = vpop.f32.mrf.mxu0  ;;  %v32183_v16 = vpop.f32.mrf.mxu1  ;;  %32325 = vmatpush3.msra.mxu0 %v37163_v32  ;;  %32336 = vmatpush3.msra.mxu1 %v37163_v32 }
 0x32e   : > { %32326 = vmatprep.subr.mxu0 %v42324_v14  ;;  %32337 = vmatprep.subr.mxu1 %v42324_v14  ;;  %v37236_v36 = vmul.f32 %v37228_v8, %v5251_v40  ;;  %v37239_v38 = vmul.f32 %v37231_v30, %v5324_v11  ;;  %35486 = vrcp.f32 %v2766_v34  ;;  %v35827_v40 = vld [vmem:[%s36543_s1 + $0x28] sm:$0xff]  ;;  %v37266_v34 = vpop.eup %35482 }
 0x32f   : > { %32327 = vmatpush3.msra.mxu0 %v37180_v57  ;;  %32338 = vmatpush3.msra.mxu1 %v37180_v57  ;;  %35488 = vrcp.f32 %v2871_v27  ;;  %42365 = vst [vmem:[#allocation67_spill] sm:$0xff] %v37266_v34  ;;  %v37270_v27 = vpop.eup %35484 }
 0x330   : > { %32328 = vmatprep.subr.mxu0 %v42324_v14  ;;  %32339 = vmatprep.subr.mxu1 %v42324_v14  ;;  %42366 = vst [vmem:[#allocation68_spill] sm:$0xff] %v37270_v27 }
 0x331   : > { %v5396_v26 = vpop.f32.mrf.mxu0  ;;  %v5469_v13 = vpop.f32.mrf.mxu1  ;;  %32329 = vmatpush3.msra.mxu0 %v37185_v41  ;;  %32330 = vmatprep.mubr.msk.f32.mxu0 %vm36022_vm3, %v42324_v14 }
 0x332   : > { %32340 = vmatpush3.msra.mxu1 %v37185_v41  ;;  %32341 = vmatprep.mubr.msk.f32.mxu1 %vm36022_vm3, %v42324_v14  ;;  %v5397_v15 = vadd.f32 %v35826_v9, %v5396_v26  ;;  %v5470_v11 = vadd.f32 %v35827_v40, %v5469_v13  ;;  %v35828_v40 = vld [vmem:[%s36543_s1 + $0x30] sm:$0xff] }
 0x333   : > { %v32190_v33 = vpop.f32.mrf.mxu0  ;;  %v32197_v19 = vpop.f32.mrf.mxu1  ;;  %32331 = vmatmul.mubr.msk.f32.vlgmr.msra.gmra.mxu0 %vm780_vm0, %v37236_v36  ;;  %32342 = vmatmul.mubr.msk.f32.vlgmr.msra.gmra.mxu1 %vm780_vm0, %v37239_v38 }
 0x334   : > { %32344 = vmatprep.subr.mxu0 %v42324_v14  ;;  %32355 = vmatprep.subr.mxu1 %v42324_v14  ;;  %v37274_v26 = vmul.f32 %v37266_v34, %v5397_v15  ;;  %v37277_v13 = vmul.f32 %v37270_v27, %v5470_v11 }
 0x335   : > { %32345 = vmatpush3.msra.mxu0 %v37152_v37  ;;  %32356 = vmatpush3.msra.mxu1 %v37152_v37 }
 0x336   : > { %32346 = vmatprep.subr.mxu0 %v42324_v14  ;;  %32357 = vmatprep.subr.mxu1 %v42324_v14 }
 0x337   : > { %v5542_v35 = vpop.f32.mrf.mxu0  ;;  %v5615_v16 = vpop.f32.mrf.mxu1  ;;  %32347 = vmatpush3.msra.mxu0 %v37163_v32  ;;  %32358 = vmatpush3.msra.mxu1 %v37163_v32 }
 0x338   : > { %32348 = vmatprep.subr.mxu0 %v42324_v14  ;;  %32359 = vmatprep.subr.mxu1 %v42324_v14  ;;  %v5543_v11 = vadd.f32 %v35828_v40, %v5542_v35 }
 0x339   : > { %v32204_v33 = vpop.f32.mrf.mxu0  ;;  %v32211_v19 = vpop.f32.mrf.mxu1  ;;  %32349 = vmatpush3.msra.mxu0 %v37180_v57  ;;  %32360 = vmatpush3.msra.mxu1 %v37180_v57 }
 0x33a   : > { %32350 = vmatprep.subr.mxu0 %v42324_v14  ;;  %32361 = vmatprep.subr.mxu1 %v42324_v14  ;;  %v35829_v33 = vld [vmem:[%s36543_s1 + $0x38] sm:$0xff] }
 0x33b   : > { %32351 = vmatpush3.msra.mxu0 %v37185_v41  ;;  %32352 = vmatprep.mubr.msk.f32.mxu0 %vm36022_vm3, %v42324_v14  ;;  %v5616_v19 = vadd.f32 %v35829_v33, %v5615_v16  ;;  %v37305_v30 = vpop.eup %35486  ;;  %v37361_v33 = vld [vmem:[%s42056_s13] sm:$0xff] }
 0x33c   : > { %32362 = vmatpush3.msra.mxu1 %v37185_v41  ;;  %32363 = vmatprep.mubr.msk.f32.mxu1 %vm36022_vm3, %v42324_v14  ;;  %42367 = vst [vmem:[#allocation89_spill] sm:$0xff] %v37305_v30  ;;  %v37314_v35 = vmul.f32 %v37305_v30, %v5543_v11 }
 0x33d   : > { %32353 = vmatmul.mubr.msk.f32.vlgmr.msra.gmra.mxu0 %vm780_vm0, %v37274_v26  ;;  %32364 = vmatmul.mubr.msk.f32.vlgmr.msra.gmra.mxu1 %vm780_vm0, %v37277_v13 }
 0x33e   : > { %32366 = vmatprep.subr.mxu0 %v42324_v14  ;;  %32377 = vmatprep.subr.mxu1 %v42324_v14 }
 0x33f   : > { %32367 = vmatpush3.msra.mxu0 %v37152_v37  ;;  %32378 = vmatpush3.msra.mxu1 %v37152_v37  ;;  %v37309_v37 = vpop.eup %35488 }
 0x340   : > { %32368 = vmatprep.subr.mxu0 %v42324_v14  ;;  %32379 = vmatprep.subr.mxu1 %v42324_v14  ;;  %42368 = vst [vmem:[#allocation90_spill] sm:$0xff] %v37309_v37 }
 0x341   : > { %v37291_v9 = vpop.f32.mrf.mxu0  ;;  %v37293_v15 = vpop.f32.mrf.mxu1  ;;  %32369 = vmatpush3.msra.mxu0 %v37163_v32  ;;  %32380 = vmatpush3.msra.mxu1 %v37163_v32  ;;  %v37317_v32 = vmul.f32 %v37309_v37, %v5616_v19  ;;  %v6795_v19 = vmul.f32 %v37206_v18, %v37020_v23 }
 0x342   : > { %32370 = vmatprep.subr.mxu0 %v42324_v14  ;;  %32381 = vmatprep.subr.mxu1 %v42324_v14 }
 0x343   : > { %v32222_v27 = vpop.f32.mrf.mxu0  ;;  %v32233_v34 = vpop.f32.mrf.mxu1  ;;  %32371 = vmatpush3.msra.mxu0 %v37180_v57  ;;  %32382 = vmatpush3.msra.mxu1 %v37180_v57  ;;  %v37328_v57 = vld [vmem:[%s42056_s13 + $0x18] sm:$0xff] }
 0x344   : > { %32372 = vmatprep.subr.mxu0 %v42324_v14  ;;  %32383 = vmatprep.subr.mxu1 %v42324_v14  ;;  %v37352_v27 = vld [vmem:[%s42056_s13 + $0x8] sm:$0xff] }
 0x345   : > { %32373 = vmatpush3.msra.mxu0 %v37185_v41  ;;  %32374 = vmatprep.mubr.msk.f32.mxu0 %vm36022_vm3, %v42324_v14 }
 0x346   : > { %32384 = vmatpush3.msra.mxu1 %v37185_v41  ;;  %32385 = vmatprep.mubr.msk.f32.mxu1 %vm36022_vm3, %v42324_v14  ;;  %v37339_v41 = vld [vmem:[%s42056_s13 + $0x10] sm:$0xff] }
 0x347   : > { %32375 = vmatmul.mubr.msk.f32.vlgmr.msra.gmra.mxu0 %vm780_vm0, %v37314_v35  ;;  %32386 = vmatmul.mubr.msk.f32.vlgmr.msra.gmra.mxu1 %vm780_vm0, %v37317_v32 }
 0x348   : > { %32388 = vmatprep.subr.mxu0 %v42324_v14  ;;  %32399 = vmatprep.subr.mxu1 %v42324_v14 }
 0x349   : > { %32389 = vmatpush3.msra.mxu0 %v37328_v57  ;;  %32400 = vmatpush3.msra.mxu1 %v37328_v57 }
 0x34a   : > { %32390 = vmatprep.subr.mxu0 %v42324_v14  ;;  %32401 = vmatprep.subr.mxu1 %v42324_v14 }
 0x34b   : > { %v37341_v16 = vpop.f32.mrf.mxu0  ;;  %v37343_v34 = vpop.f32.mrf.mxu1  ;;  %32391 = vmatpush3.msra.mxu0 %v37339_v41  ;;  %32402 = vmatpush3.msra.mxu1 %v37339_v41 }
 0x34c   : > { %32392 = vmatprep.subr.mxu0 %v42324_v14  ;;  %32403 = vmatprep.subr.mxu1 %v42324_v14 }
 0x34d   : > { %v32244_v40 = vpop.f32.mrf.mxu0  ;;  %v32255_v11 = vpop.f32.mrf.mxu1  ;;  %32393 = vmatpush3.msra.mxu0 %v37352_v27  ;;  %32404 = vmatpush3.msra.mxu1 %v37352_v27 }
 0x34e   : > { %32394 = vmatprep.subr.mxu0 %v42324_v14  ;;  %32405 = vmatprep.subr.mxu1 %v42324_v14  ;;  %v6796_v40 = vmul.f32 %v37209_v12, %v37023_v39 }
 0x34f   : > { %32395 = vmatpush3.msra.mxu0 %v37361_v33  ;;  %32396 = vmatprep.mubr.msk.f32.mxu0 %vm36022_vm3, %v42324_v14 }
 0x350   : > { %32406 = vmatpush3.msra.mxu1 %v37361_v33  ;;  %32407 = vmatprep.mubr.msk.f32.mxu1 %vm36022_vm3, %v42324_v14 }
 0x351   : > { %32397 = vmatmul.mubr.msk.f32.vlgmr.msra.gmra.mxu0 %vm780_vm0, %v6795_v19  ;;  %32408 = vmatmul.mubr.msk.f32.vlgmr.msra.gmra.mxu1 %vm780_vm0, %v6796_v40  ;;  %v6798_v40 = vmul.f32 %v37239_v38, %v37063_v17 }
 0x352   : > { %32410 = vmatprep.subr.mxu0 %v42324_v14  ;;  %32421 = vmatprep.subr.mxu1 %v42324_v14 }
 0x353   : > { %32411 = vmatpush3.msra.mxu0 %v37328_v57  ;;  %32422 = vmatpush3.msra.mxu1 %v37328_v57 }
 0x354   : > { %32412 = vmatprep.subr.mxu0 %v42324_v14  ;;  %32423 = vmatprep.subr.mxu1 %v42324_v14 }
 0x355   : > { %v37381_v11 = vpop.f32.mrf.mxu0  ;;  %v37383_v37 = vpop.f32.mrf.mxu1  ;;  %32413 = vmatpush3.msra.mxu0 %v37339_v41  ;;  %32424 = vmatpush3.msra.mxu1 %v37339_v41 }
 0x356   : > { %32414 = vmatprep.subr.mxu0 %v42324_v14  ;;  %32425 = vmatprep.subr.mxu1 %v42324_v14 }
 0x357   : > { %v32266_v30 = vpop.f32.mrf.mxu0  ;;  %v32277_v19 = vpop.f32.mrf.mxu1  ;;  %32415 = vmatpush3.msra.mxu0 %v37352_v27  ;;  %32426 = vmatpush3.msra.mxu1 %v37352_v27 }
 0x358   : > { %32416 = vmatprep.subr.mxu0 %v42324_v14  ;;  %32427 = vmatprep.subr.mxu1 %v42324_v14  ;;  %v6797_v30 = vmul.f32 %v37236_v36, %v37060_v29 }
 0x359   : > { %32417 = vmatpush3.msra.mxu0 %v37361_v33  ;;  %32418 = vmatprep.mubr.msk.f32.mxu0 %vm36022_vm3, %v42324_v14 }
 0x35a   : > { %32428 = vmatpush3.msra.mxu1 %v37361_v33  ;;  %32429 = vmatprep.mubr.msk.f32.mxu1 %vm36022_vm3, %v42324_v14 }
 0x35b   : > { %32419 = vmatmul.mubr.msk.f32.vlgmr.msra.gmra.mxu0 %vm780_vm0, %v6797_v30  ;;  %32430 = vmatmul.mubr.msk.f32.vlgmr.msra.gmra.mxu1 %vm780_vm0, %v6798_v40  ;;  %v6800_v40 = vmul.f32 %v37277_v13, %v37103_v43 }
 0x35c   : > { %32432 = vmatprep.subr.mxu0 %v42324_v14  ;;  %32443 = vmatprep.subr.mxu1 %v42324_v14 }
 0x35d   : > { %32433 = vmatpush3.msra.mxu0 %v37328_v57  ;;  %32444 = vmatpush3.msra.mxu1 %v37328_v57 }
 0x35e   : > { %32434 = vmatprep.subr.mxu0 %v42324_v14  ;;  %32445 = vmatprep.subr.mxu1 %v42324_v14 }
 0x35f   : > { %v37411_v19 = vpop.f32.mrf.mxu0  ;;  %v37413_v8 = vpop.f32.mrf.mxu1  ;;  %32435 = vmatpush3.msra.mxu0 %v37339_v41  ;;  %32446 = vmatpush3.msra.mxu1 %v37339_v41 }
 0x360   : > { %32436 = vmatprep.subr.mxu0 %v42324_v14  ;;  %32447 = vmatprep.subr.mxu1 %v42324_v14 }
 0x361   : > { %v32288_v5 = vpop.f32.mrf.mxu0  ;;  %v32299_v30 = vpop.f32.mrf.mxu1  ;;  %32437 = vmatpush3.msra.mxu0 %v37352_v27  ;;  %32448 = vmatpush3.msra.mxu1 %v37352_v27 }
 0x362   : > { %32438 = vmatprep.subr.mxu0 %v42324_v14  ;;  %32449 = vmatprep.subr.mxu1 %v42324_v14  ;;  %v6799_v5 = vmul.f32 %v37274_v26, %v37100_v42  ;;  %v6802_v30 = vmul.f32 %v37317_v32, %v37141_v45 }
 0x363   : > { %32439 = vmatpush3.msra.mxu0 %v37361_v33  ;;  %32440 = vmatprep.mubr.msk.f32.mxu0 %vm36022_vm3, %v42324_v14 }
 0x364   : > { %32450 = vmatpush3.msra.mxu1 %v37361_v33  ;;  %32451 = vmatprep.mubr.msk.f32.mxu1 %vm36022_vm3, %v42324_v14 }
 0x365   : > { %32441 = vmatmul.mubr.msk.f32.vlgmr.msra.gmra.mxu0 %vm780_vm0, %v6799_v5  ;;  %32452 = vmatmul.mubr.msk.f32.vlgmr.msra.gmra.mxu1 %vm780_vm0, %v6800_v40  ;;  %v37493_v5 = vld [vmem:[%s42057_s14] sm:$0xff]  ;;  %v7395_v40 = vsub.f32 %v37206_v18, %v37020_v23 }
 0x366   : > { %32454 = vmatprep.subr.mxu0 %v42324_v14  ;;  %32465 = vmatprep.subr.mxu1 %v42324_v14 }
 0x367   : > { %32455 = vmatpush3.msra.mxu0 %v37328_v57  ;;  %32466 = vmatpush3.msra.mxu1 %v37328_v57  ;;  %v6801_v57 = vmul.f32 %v37314_v35, %v37138_v44 }
 0x368   : > { %32456 = vmatprep.subr.mxu0 %v42324_v14  ;;  %32467 = vmatprep.subr.mxu1 %v42324_v14 }
 0x369   : > { %32457 = vmatpush3.msra.mxu0 %v37339_v41  ;;  %32468 = vmatpush3.msra.mxu1 %v37339_v41  ;;  %v37466_v41 = vld [vmem:[%s42057_s14 + $0x18] sm:$0xff] }
 0x36a   : > { %32458 = vmatprep.subr.mxu0 %v42324_v14  ;;  %32469 = vmatprep.subr.mxu1 %v42324_v14 }
 0x36b   : > { %32459 = vmatpush3.msra.mxu0 %v37352_v27  ;;  %32470 = vmatpush3.msra.mxu1 %v37352_v27  ;;  %v37475_v27 = vld [vmem:[%s42057_s14 + $0x10] sm:$0xff] }
 0x36c   : > { %32460 = vmatprep.subr.mxu0 %v42324_v14  ;;  %32471 = vmatprep.subr.mxu1 %v42324_v14 }
 0x36d   : > { %32461 = vmatpush3.msra.mxu0 %v37361_v33  ;;  %32462 = vmatprep.mubr.msk.f32.mxu0 %vm36022_vm3, %v42324_v14 }
 0x36e   : > { %32472 = vmatpush3.msra.mxu1 %v37361_v33  ;;  %32473 = vmatprep.mubr.msk.f32.mxu1 %vm36022_vm3, %v42324_v14  ;;  %v37484_v33 = vld [vmem:[%s42057_s14 + $0x8] sm:$0xff] }
 0x36f   : > { %32463 = vmatmul.mubr.msk.f32.vlgmr.msra.gmra.mxu0 %vm780_vm0, %v6801_v57  ;;  %32474 = vmatmul.mubr.msk.f32.vlgmr.msra.gmra.mxu1 %vm780_vm0, %v6802_v30  ;;  %v7396_v57 = vsub.f32 %v37209_v12, %v37023_v39  ;;  %v7397_v30 = vsub.f32 %v37236_v36, %v37060_v29 }
 0x370   : > { %32476 = vmatprep.subr.mxu0 %v42324_v14  ;;  %32487 = vmatprep.subr.mxu1 %v42324_v14 }
 0x371   : > { %32477 = vmatpush3.msra.mxu0 %v37466_v41  ;;  %32488 = vmatpush3.msra.mxu1 %v37466_v41 }
 0x372   : > { %32478 = vmatprep.subr.mxu0 %v42324_v14  ;;  %32489 = vmatprep.subr.mxu1 %v42324_v14 }
 0x373   : > { %32479 = vmatpush3.msra.mxu0 %v37475_v27  ;;  %32490 = vmatpush3.msra.mxu1 %v37475_v27 }
 0x374   : > { %32480 = vmatprep.subr.mxu0 %v42324_v14  ;;  %32491 = vmatprep.subr.mxu1 %v42324_v14 }
 0x375   : > { %32481 = vmatpush3.msra.mxu0 %v37484_v33  ;;  %32492 = vmatpush3.msra.mxu1 %v37484_v33 }
 0x376   : > { %32482 = vmatprep.subr.mxu0 %v42324_v14  ;;  %32493 = vmatprep.subr.mxu1 %v42324_v14 }
 0x377   : > { %32483 = vmatpush3.msra.mxu0 %v37493_v5  ;;  %32484 = vmatprep.mubr.msk.f32.mxu0 %vm36022_vm3, %v42324_v14 }
 0x378   : > { %32494 = vmatpush3.msra.mxu1 %v37493_v5  ;;  %32495 = vmatprep.mubr.msk.f32.mxu1 %vm36022_vm3, %v42324_v14 }
 0x379   : > { %32485 = vmatmul.mubr.msk.f32.vlgmr.msra.gmra.mxu0 %vm780_vm0, %v7395_v40  ;;  %32496 = vmatmul.mubr.msk.f32.vlgmr.msra.gmra.mxu1 %vm780_vm0, %v7396_v57  ;;  %v7398_v40 = vsub.f32 %v37239_v38, %v37063_v17  ;;  %v7399_v57 = vsub.f32 %v37274_v26, %v37100_v42 }
 0x37a   : > { %32498 = vmatprep.subr.mxu0 %v42324_v14  ;;  %32509 = vmatprep.subr.mxu1 %v42324_v14 }
 0x37b   : > { %32499 = vmatpush3.msra.mxu0 %v37466_v41  ;;  %32510 = vmatpush3.msra.mxu1 %v37466_v41 }
 0x37c   : > { %32500 = vmatprep.subr.mxu0 %v42324_v14  ;;  %32511 = vmatprep.subr.mxu1 %v42324_v14 }
 0x37d   : > { %32501 = vmatpush3.msra.mxu0 %v37475_v27  ;;  %32512 = vmatpush3.msra.mxu1 %v37475_v27 }
 0x37e   : > { %32502 = vmatprep.subr.mxu0 %v42324_v14  ;;  %32513 = vmatprep.subr.mxu1 %v42324_v14 }
 0x37f   : > { %32503 = vmatpush3.msra.mxu0 %v37484_v33  ;;  %32514 = vmatpush3.msra.mxu1 %v37484_v33 }
 0x380   : > { %32504 = vmatprep.subr.mxu0 %v42324_v14  ;;  %32515 = vmatprep.subr.mxu1 %v42324_v14 }
 0x381   : > { %32505 = vmatpush3.msra.mxu0 %v37493_v5  ;;  %32506 = vmatprep.mubr.msk.f32.mxu0 %vm36022_vm3, %v42324_v14 }
 0x382   : > { %32516 = vmatpush3.msra.mxu1 %v37493_v5  ;;  %32517 = vmatprep.mubr.msk.f32.mxu1 %vm36022_vm3, %v42324_v14 }
 0x383   : > { %32507 = vmatmul.mubr.msk.f32.vlgmr.msra.gmra.mxu0 %vm780_vm0, %v7397_v30  ;;  %32518 = vmatmul.mubr.msk.f32.vlgmr.msra.gmra.mxu1 %vm780_vm0, %v7398_v40  ;;  %v7400_v30 = vsub.f32 %v37277_v13, %v37103_v43  ;;  %v7402_v40 = vsub.f32 %v37317_v32, %v37141_v45 }
 0x384   : > { %32520 = vmatprep.subr.mxu0 %v42324_v14  ;;  %32531 = vmatprep.subr.mxu1 %v42324_v14 }
 0x385   : > { %32521 = vmatpush3.msra.mxu0 %v37466_v41  ;;  %32532 = vmatpush3.msra.mxu1 %v37466_v41 }
 0x386   : > { %32522 = vmatprep.subr.mxu0 %v42324_v14  ;;  %32533 = vmatprep.subr.mxu1 %v42324_v14 }
 0x387   : > { %32523 = vmatpush3.msra.mxu0 %v37475_v27  ;;  %32534 = vmatpush3.msra.mxu1 %v37475_v27 }
 0x388   : > { %32524 = vmatprep.subr.mxu0 %v42324_v14  ;;  %32535 = vmatprep.subr.mxu1 %v42324_v14 }
 0x389   : > { %32525 = vmatpush3.msra.mxu0 %v37484_v33  ;;  %32536 = vmatpush3.msra.mxu1 %v37484_v33 }
 0x38a   : > { %32526 = vmatprep.subr.mxu0 %v42324_v14  ;;  %32537 = vmatprep.subr.mxu1 %v42324_v14 }
 0x38b   : > { %32527 = vmatpush3.msra.mxu0 %v37493_v5  ;;  %32528 = vmatprep.mubr.msk.f32.mxu0 %vm36022_vm3, %v42324_v14 }
 0x38c   : > { %32538 = vmatpush3.msra.mxu1 %v37493_v5  ;;  %32539 = vmatprep.mubr.msk.f32.mxu1 %vm36022_vm3, %v42324_v14 }
 0x38d   : > { %32529 = vmatmul.mubr.msk.f32.vlgmr.msra.gmra.mxu0 %vm780_vm0, %v7399_v57  ;;  %32540 = vmatmul.mubr.msk.f32.vlgmr.msra.gmra.mxu1 %vm780_vm0, %v7400_v30  ;;  %v37625_v30 = vld [vmem:[%s42369_s6] sm:$0xff] }
 0x38e   : > { %32542 = vmatprep.subr.mxu0 %v42324_v14  ;;  %32553 = vmatprep.subr.mxu1 %v42324_v14 }
 0x38f   : > { %32543 = vmatpush3.msra.mxu0 %v37466_v41  ;;  %32554 = vmatpush3.msra.mxu1 %v37466_v41  ;;  %v7401_v41 = vsub.f32 %v37314_v35, %v37138_v44 }
 0x390   : > { %32544 = vmatprep.subr.mxu0 %v42324_v14  ;;  %32555 = vmatprep.subr.mxu1 %v42324_v14 }
 0x391   : > { %32545 = vmatpush3.msra.mxu0 %v37475_v27  ;;  %32556 = vmatpush3.msra.mxu1 %v37475_v27  ;;  %v37598_v27 = vld [vmem:[%s42369_s6 + $0x18] sm:$0xff] }
 0x392   : > { %32546 = vmatprep.subr.mxu0 %v42324_v14  ;;  %32557 = vmatprep.subr.mxu1 %v42324_v14 }
 0x393   : > { %32547 = vmatpush3.msra.mxu0 %v37484_v33  ;;  %32558 = vmatpush3.msra.mxu1 %v37484_v33  ;;  %v37607_v33 = vld [vmem:[%s42369_s6 + $0x10] sm:$0xff] }
 0x394   : > { %32548 = vmatprep.subr.mxu0 %v42324_v14  ;;  %32559 = vmatprep.subr.mxu1 %v42324_v14 }
 0x395   : > { %32549 = vmatpush3.msra.mxu0 %v37493_v5  ;;  %32550 = vmatprep.mubr.msk.f32.mxu0 %vm36022_vm3, %v42324_v14 }
 0x396   : > { %32560 = vmatpush3.msra.mxu1 %v37493_v5  ;;  %32561 = vmatprep.mubr.msk.f32.mxu1 %vm36022_vm3, %v42324_v14  ;;  %v37616_v5 = vld [vmem:[%s42369_s6 + $0x8] sm:$0xff] }
 0x397   : > { %32551 = vmatmul.mubr.msk.f32.vlgmr.msra.gmra.mxu0 %vm780_vm0, %v7401_v41  ;;  %32562 = vmatmul.mubr.msk.f32.vlgmr.msra.gmra.mxu1 %vm780_vm0, %v7402_v40 }
 0x398   : > { %32564 = vmatprep.subr.mxu0 %v42324_v14  ;;  %32575 = vmatprep.subr.mxu1 %v42324_v14 }
 0x399   : > { %32572 = vmatprep.mubr.msk.f32.mxu0 %vm36022_vm3, %v42324_v14  ;;  %32583 = vmatprep.mubr.msk.f32.mxu1 %vm36022_vm3, %v42324_v14 }
 0x39a   : > { %32565 = vmatpush3.msra.mxu0 %v37598_v27  ;;  %32576 = vmatpush3.msra.mxu1 %v37598_v27 }
 0x39b   : > { %32566 = vmatprep.subr.mxu0 %v42324_v14  ;;  %32577 = vmatprep.subr.mxu1 %v42324_v14 }
 0x39c   : > { %32567 = vmatpush3.msra.mxu0 %v37607_v33  ;;  %32578 = vmatpush3.msra.mxu1 %v37607_v33 }
 0x39d   : > { %32568 = vmatprep.subr.mxu0 %v42324_v14  ;;  %32579 = vmatprep.subr.mxu1 %v42324_v14 }
 0x39e   : > { %32569 = vmatpush3.msra.mxu0 %v37616_v5  ;;  %32580 = vmatpush3.msra.mxu1 %v37616_v5 }
 0x39f   : > { %32570 = vmatprep.subr.mxu0 %v42324_v14  ;;  %32581 = vmatprep.subr.mxu1 %v42324_v14 }
 0x3a0   : > { %32571 = vmatpush3.msra.mxu0 %v37625_v30  ;;  %32582 = vmatpush3.msra.mxu1 %v37625_v30 }
 0x3a1   : > { %32586 = vmatprep.subr.mxu0 %v42324_v14  ;;  %32597 = vmatprep.subr.mxu1 %v42324_v14 }
 0x3ea   : > { %v6280_v57 = vpop.f32.mrf.mxu0  ;;  %v6353_v41 = vpop.f32.mrf.mxu1 }
 0x3eb   : > { %v6281_v52 = vadd.f32 %v6280_v57, %v37291_v9 }
 0x3ec   : > { %v32310_v40 = vpop.f32.mrf.mxu0  ;;  %v32321_v7 = vpop.f32.mrf.mxu1 }
 0x3f3   : > { %v6426_v10 = vpop.f32.mrf.mxu0  ;;  %v6499_v22 = vpop.f32.mrf.mxu1 }
 0x3f5   : > { %v32332_v28 = vpop.f32.mrf.mxu0  ;;  %v32343_v31 = vpop.f32.mrf.mxu1 }
 0x3fd   : > { %v6572_v24 = vpop.f32.mrf.mxu0  ;;  %v6645_v25 = vpop.f32.mrf.mxu1 }
 0x3ff   : > { %v32354_v20 = vpop.f32.mrf.mxu0  ;;  %v32365_v21 = vpop.f32.mrf.mxu1 }
 0x407   : > { %v37631_v4 = vpop.f32.mrf.mxu0  ;;  %v37633_v6 = vpop.f32.mrf.mxu1 }
 0x409   : > { %v32376_v3 = vpop.f32.mrf.mxu0  ;;  %v32387_v0 = vpop.f32.mrf.mxu1 }
 0x40a   : > { %v6354_v0 = vadd.f32 %v6353_v41, %v37293_v15 }
 0x411   : > { %v6872_v40 = vpop.f32.mrf.mxu0  ;;  %v6945_v61 = vpop.f32.mrf.mxu1 }
 0x412   : > { %v7387_v3 = vadd.f32 %v6872_v40, %v6281_v52  ;;  %v7388_v51 = vadd.f32 %v6945_v61, %v6354_v0  ;;  %v6427_v52 = vadd.f32 %v6426_v10, %v37341_v16  ;;  %v6500_v61 = vadd.f32 %v6499_v22, %v37343_v34 }
 0x413   : > { %v32398_v2 = vpop.f32.mrf.mxu0  ;;  %v32409_v1 = vpop.f32.mrf.mxu1  ;;  %v6573_v10 = vadd.f32 %v6572_v24, %v37381_v11  ;;  %v6646_v22 = vadd.f32 %v6645_v25, %v37383_v37  ;;  %v6719_v11 = vadd.f32 %v37631_v4, %v37411_v19 }
 0x414   : > { %v37640_v1 = vld [vmem:[%s42058_s15] ss:$0 sm:$0xff] }
 0x41b   : > { %v7018_v58 = vpop.f32.mrf.mxu0  ;;  %v7091_v7 = vpop.f32.mrf.mxu1 }
 0x41c   : > { %v7389_v15 = vadd.f32 %v7018_v58, %v6427_v52  ;;  %v7390_v41 = vadd.f32 %v7091_v7, %v6500_v61 }
 0x41d   : > { %v32420_v56 = vpop.f32.mrf.mxu0  ;;  %v32431_v55 = vpop.f32.mrf.mxu1 }
 0x425   : > { %v7164_v28 = vpop.f32.mrf.mxu0  ;;  %v7237_v31 = vpop.f32.mrf.mxu1 }
 0x426   : > { %v7391_v58 = vadd.f32 %v7164_v28, %v6573_v10  ;;  %v7392_v16 = vadd.f32 %v7237_v31, %v6646_v22  ;;  %v6792_v28 = vadd.f32 %v37633_v6, %v37413_v8 }
 0x427   : > { %v32442_v54 = vpop.f32.mrf.mxu0  ;;  %v32453_v63 = vpop.f32.mrf.mxu1 }
 0x42f   : > { %v7310_v20 = vpop.f32.mrf.mxu0  ;;  %v7383_v21 = vpop.f32.mrf.mxu1 }
 0x430   : > { %v7393_v31 = vadd.f32 %v7310_v20, %v6719_v11 }
 0x431   : > { %v32464_v62 = vpop.f32.mrf.mxu0  ;;  %v32475_v53 = vpop.f32.mrf.mxu1 }
 0x439   : > { %v7472_v2 = vpop.f32.mrf.mxu0  ;;  %v7545_v55 = vpop.f32.mrf.mxu1 }
 0x43a   : > { %v7987_v56 = vadd.f32 %v7472_v2, %v7387_v3  ;;  %v7988_v54 = vadd.f32 %v7545_v55, %v7388_v51 }
 0x43b   : > { %v32486_v63 = vpop.f32.mrf.mxu0  ;;  %v32497_v50 = vpop.f32.mrf.mxu1 }
 0x43c   : > { %v8001_v62 = vadd.f32 %v37640_v1, %v7987_v56  ;;  %v8002_v53 = vadd.f32 %v37640_v1, %v7988_v54 }
 0x43e   : > { %v29751_v9 = vmul.f32 -1.442695, %v8001_v62  ;;  %v29752_v57 = vmul.f32 -1.442695, %v8002_v53 }
 0x440   : > { %35490 = vpow2.f32 %v29751_v9 }
 0x441   : > { %35492 = vpow2.f32 %v29752_v57 }
 0x443   : > { %v7618_v40 = vpop.f32.mrf.mxu0  ;;  %v7691_v0 = vpop.f32.mrf.mxu1 }
 0x444   : > { %v7989_v3 = vadd.f32 %v7618_v40, %v7389_v15  ;;  %v7990_v51 = vadd.f32 %v7691_v0, %v7390_v41  ;;  %v7394_v0 = vadd.f32 %v7383_v21, %v6792_v28 }
 0x445   : > { %v32508_v2 = vpop.f32.mrf.mxu0  ;;  %v32519_v50 = vpop.f32.mrf.mxu1 }
 0x446   : > { %v8003_v55 = vadd.f32 %v37640_v1, %v7989_v3  ;;  %v8004_v56 = vadd.f32 %v37640_v1, %v7990_v51 }
 0x448   : > { %v29753_v54 = vmul.f32 -1.442695, %v8003_v55  ;;  %v29754_v63 = vmul.f32 -1.442695, %v8004_v56 }
 0x44a   : > { %35494 = vpow2.f32 %v29753_v54 }
 0x44b   : > { %35496 = vpow2.f32 %v29754_v63 }
 0x44d   : > { %v35491_v34 = vpop.eup %35490  ;;  %v7764_v7 = vpop.f32.mrf.mxu0 }
 0x44e   : > { %v7837_v62 = vpop.f32.mrf.mxu1  ;;  %v35493_v53 = vpop.eup %35492  ;;  %v8033_v9 = vadd.f32 1.0, %v35491_v34  ;;  %v7991_v57 = vadd.f32 %v7764_v7, %v7391_v58 }
 0x44f   : > { %v7992_v52 = vadd.f32 %v7837_v62, %v7392_v16  ;;  %v8034_v61 = vadd.f32 1.0, %v35493_v53  ;;  %v32530_v15 = vpop.f32.mrf.mxu0 }
 0x450   : > { %v32541_v41 = vpop.f32.mrf.mxu1  ;;  %35498 = vrcp.f32 %v8033_v9  ;;  %v8005_v40 = vadd.f32 %v37640_v1, %v7991_v57 }
 0x451   : > { %v8006_v24 = vadd.f32 %v37640_v1, %v7992_v52  ;;  %35500 = vrcp.f32 %v8034_v61 }
 0x452   : > { %v29755_v25 = vmul.f32 -1.442695, %v8005_v40 }
 0x453   : > { %v29756_v37 = vmul.f32 -1.442695, %v8006_v24 }
 0x454   : > { %35502 = vpow2.f32 %v29755_v25 }
 0x455   : > { %35504 = vpow2.f32 %v29756_v37 }
 0x457   : > { %v35495_v3 = vpop.eup %35494  ;;  %v7910_v51 = vpop.f32.mrf.mxu0 }
 0x458   : > { %v7983_v2 = vpop.f32.mrf.mxu1  ;;  %v35497_v50 = vpop.eup %35496  ;;  %v8035_v55 = vadd.f32 1.0, %v35495_v3  ;;  %v7993_v56 = vadd.f32 %v7910_v51, %v7393_v31 }
 0x459   : > { %v7994_v54 = vadd.f32 %v7983_v2, %v7394_v0  ;;  %v8036_v63 = vadd.f32 1.0, %v35497_v50  ;;  %v32552_v10 = vpop.f32.mrf.mxu0 }
 0x45a   : > { %v32563_v22 = vpop.f32.mrf.mxu1  ;;  %35506 = vrcp.f32 %v8035_v55  ;;  %v8007_v4 = vadd.f32 %v37640_v1, %v7993_v56 }
 0x45b   : > { %v8008_v19 = vadd.f32 %v37640_v1, %v7994_v54  ;;  %35508 = vrcp.f32 %v8036_v63  ;;  %v37805_v22 = vld [vmem:[%s36543_s1] sm:$0xff] }
 0x45c   : > { %v29757_v6 = vmul.f32 -1.442695, %v8007_v4  ;;  %v37810_v4 = vld [vmem:[%s36543_s1 + $0x8] sm:$0xff] }
 0x45d   : > { %v29758_v8 = vmul.f32 -1.442695, %v8008_v19  ;;  %v35499_v20 = vpop.eup %35498  ;;  %v37835_v19 = vld [vmem:[%s36543_s1 + $0x10] sm:$0xff] }
 0x45e   : > { %v35501_v21 = vpop.eup %35500  ;;  %35510 = vpow2.f32 %v29757_v6  ;;  %v8057_v58 = vsub.f32 1.0, %v35499_v20  ;;  %v8073_v7 = vmul.f32 %v35499_v20, %v37020_v23  ;;  %v37840_v6 = vld [vmem:[%s36543_s1 + $0x18] sm:$0xff]  ;;  %v37870_v20 = vld [vmem:[%s36543_s1 + $0x28] sm:$0xff] }
 0x45f   : > { %35512 = vpow2.f32 %v29758_v8  ;;  %v8058_v16 = vsub.f32 1.0, %v35501_v21  ;;  %v8074_v9 = vmul.f32 %v35501_v21, %v37023_v39  ;;  %v37865_v8 = vld [vmem:[%s36543_s1 + $0x20] sm:$0xff]  ;;  %v37895_v21 = vld [vmem:[%s42051_s8 + $0x18] sm:$0xff] }
 0x460   : > { %v8065_v34 = vmul.f32 %v8057_v58, %v37206_v18  ;;  %v37900_v58 = vld [vmem:[%s36543_s1 + $0x30] sm:$0xff] }
 0x461   : > { %v35503_v62 = vpop.eup %35502  ;;  %v8066_v53 = vmul.f32 %v8058_v16, %v37209_v12  ;;  %v37905_v16 = vld [vmem:[%s36543_s1 + $0x38] sm:$0xff] }
 0x462   : > { %v35505_v57 = vpop.eup %35504  ;;  %v8037_v1 = vadd.f32 1.0, %v35503_v62  ;;  %v37662_v52 = vadd.f32 %v8073_v7, %v8065_v34  ;;  %v37913_v34 = vld [vmem:[%s42051_s8 + $0x10] sm:$0xff]  ;;  %v37922_v7 = vld [vmem:[%s42051_s8 + $0x8] sm:$0xff]  ;;  %v37931_v62 = vld [vmem:[%s42051_s8] sm:$0xff] }
 0x463   : > { %v8038_v61 = vadd.f32 1.0, %v35505_v57  ;;  %v37664_v15 = vadd.f32 %v8074_v9, %v8066_v53  ;;  %v38017_v53 = vld [vmem:[%s42050_s7 + $0x18] sm:$0xff]  ;;  %v38029_v9 = vld [vmem:[%s42050_s7 + $0x10] sm:$0xff]  ;;  %v38038_v57 = vld [vmem:[%s42050_s7 + $0x8] sm:$0xff] }
 0x464   : > { %35514 = vrcp.f32 %v8037_v1  ;;  %32573 = vmatmul.mubr.msk.f32.vlgmr.msra.gmra.mxu0 %vm780_vm0, %v37662_v52  ;;  %v38047_v1 = vld [vmem:[%s42050_s7] sm:$0xff] }
 0x465   : > { %35516 = vrcp.f32 %v8038_v61  ;;  %32584 = vmatmul.mubr.msk.f32.vlgmr.msra.gmra.mxu1 %vm780_vm0, %v37664_v15  ;;  %32587 = vmatpush3.msra.mxu0 %v37598_v27  ;;  %v38133_v61 = vld [vmem:[%s42053_s10 + $0x18] sm:$0xff] }
 0x466   : > { %32598 = vmatpush3.msra.mxu1 %v37598_v27  ;;  %32588 = vmatprep.subr.mxu0 %v42324_v14 }
 0x467   : > { %v35507_v23 = vpop.eup %35506  ;;  %32599 = vmatprep.subr.mxu1 %v42324_v14  ;;  %32589 = vmatpush3.msra.mxu0 %v37607_v33 }
 0x468   : > { %v35509_v39 = vpop.eup %35508  ;;  %32600 = vmatpush3.msra.mxu1 %v37607_v33  ;;  %32590 = vmatprep.subr.mxu0 %v42324_v14  ;;  %v8059_v18 = vsub.f32 1.0, %v35507_v23  ;;  %v8075_v40 = vmul.f32 %v35507_v23, %v37060_v29  ;;  %v38145_v23 = vld [vmem:[%s42053_s10 + $0x10] sm:$0xff] }
 0x469   : > { %32601 = vmatprep.subr.mxu1 %v42324_v14  ;;  %32591 = vmatpush3.msra.mxu0 %v37616_v5  ;;  %v8060_v12 = vsub.f32 1.0, %v35509_v39  ;;  %v8076_v37 = vmul.f32 %v35509_v39, %v37063_v17  ;;  %v38154_v39 = vld [vmem:[%s42053_s10 + $0x8] sm:$0xff] }
 0x46a   : > { %32602 = vmatpush3.msra.mxu1 %v37616_v5  ;;  %32592 = vmatprep.subr.mxu0 %v42324_v14  ;;  %v8067_v41 = vmul.f32 %v8059_v18, %v37236_v36  ;;  %v38163_v18 = vld [vmem:[%s42053_s10] sm:$0xff] }
 0x46b   : > { %v35511_v24 = vpop.eup %35510  ;;  %32603 = vmatprep.subr.mxu1 %v42324_v14  ;;  %32593 = vmatpush3.msra.mxu0 %v37625_v30  ;;  %v8068_v25 = vmul.f32 %v8060_v12, %v37239_v38 }
 0x46c   : > { %v35513_v11 = vpop.eup %35512  ;;  %v8039_v28 = vadd.f32 1.0, %v35511_v24  ;;  %32604 = vmatpush3.msra.mxu1 %v37625_v30  ;;  %32594 = vmatprep.mubr.msk.f32.mxu0 %vm36022_vm3, %v42324_v14  ;;  %v37690_v31 = vadd.f32 %v8075_v40, %v8067_v41 }
 0x46d   : > { %v8040_v36 = vadd.f32 1.0, %v35513_v11  ;;  %32605 = vmatprep.mubr.msk.f32.mxu1 %vm36022_vm3, %v42324_v14  ;;  %32608 = vmatprep.subr.mxu0 %v42324_v14  ;;  %v37695_v29 = vadd.f32 %v8076_v37, %v8068_v25 }
 0x46e   : > { %35518 = vrcp.f32 %v8039_v28  ;;  %32619 = vmatprep.subr.mxu1 %v42324_v14  ;;  %32595 = vmatmul.mubr.msk.f32.vlgmr.msra.gmra.mxu0 %vm780_vm0, %v37690_v31 }
 0x46f   : > { %35520 = vrcp.f32 %v8040_v36  ;;  %32606 = vmatmul.mubr.msk.f32.vlgmr.msra.gmra.mxu1 %vm780_vm0, %v37695_v29  ;;  %32609 = vmatpush3.msra.mxu0 %v37598_v27 }
 0x470   : > { %32620 = vmatpush3.msra.mxu1 %v37598_v27  ;;  %32610 = vmatprep.subr.mxu0 %v42324_v14 }
 0x471   : > { %v35515_v17 = vpop.eup %35514  ;;  %32621 = vmatprep.subr.mxu1 %v42324_v14  ;;  %32611 = vmatpush3.msra.mxu0 %v37607_v33 }
 0x472   : > { %v35517_v38 = vpop.eup %35516  ;;  %32622 = vmatpush3.msra.mxu1 %v37607_v33  ;;  %32612 = vmatprep.subr.mxu0 %v42324_v14  ;;  %v8061_v0 = vsub.f32 1.0, %v35515_v17  ;;  %v8077_v2 = vmul.f32 %v35515_v17, %v37100_v42 }
 0x473   : > { %32623 = vmatprep.subr.mxu1 %v42324_v14  ;;  %32613 = vmatpush3.msra.mxu0 %v37616_v5  ;;  %v8062_v3 = vsub.f32 1.0, %v35517_v38  ;;  %v8078_v55 = vmul.f32 %v35517_v38, %v37103_v43 }
 0x474   : > { %32624 = vmatpush3.msra.mxu1 %v37616_v5  ;;  %32614 = vmatprep.subr.mxu0 %v42324_v14  ;;  %v8069_v51 = vmul.f32 %v8061_v0, %v37274_v26 }
 0x475   : > { %32625 = vmatprep.subr.mxu1 %v42324_v14  ;;  %32615 = vmatpush3.msra.mxu0 %v37625_v30  ;;  %v8070_v50 = vmul.f32 %v8062_v3, %v37277_v13  ;;  %v38261_v3 = vld [vmem:[%s42052_s9 + $0x18] sm:$0xff] }
 0x476   : > { %32626 = vmatpush3.msra.mxu1 %v37625_v30  ;;  %32616 = vmatprep.mubr.msk.f32.mxu0 %vm36022_vm3, %v42324_v14  ;;  %v37722_v56 = vadd.f32 %v8077_v2, %v8069_v51  ;;  %v38270_v51 = vld [vmem:[%s42052_s9 + $0x10] sm:$0xff] }
 0x477   : > { %32627 = vmatprep.mubr.msk.f32.mxu1 %vm36022_vm3, %v42324_v14  ;;  %32630 = vmatprep.subr.mxu0 %v42324_v14  ;;  %v37727_v42 = vadd.f32 %v8078_v55, %v8070_v50  ;;  %v38279_v50 = vld [vmem:[%s42052_s9 + $0x8] sm:$0xff] }
 0x478   : > { %32641 = vmatprep.subr.mxu1 %v42324_v14  ;;  %32617 = vmatmul.mubr.msk.f32.vlgmr.msra.gmra.mxu0 %vm780_vm0, %v37722_v56 }
 0x479   : > { %32628 = vmatmul.mubr.msk.f32.vlgmr.msra.gmra.mxu1 %vm780_vm0, %v37727_v42  ;;  %32631 = vmatpush3.msra.mxu0 %v37598_v27 }
 0x47a   : > { %32642 = vmatpush3.msra.mxu1 %v37598_v27  ;;  %32632 = vmatprep.subr.mxu0 %v42324_v14 }
 0x47b   : > { %v35519_v43 = vpop.eup %35518  ;;  %32643 = vmatprep.subr.mxu1 %v42324_v14  ;;  %32633 = vmatpush3.msra.mxu0 %v37607_v33 }
 0x47c   : > { %v35521_v26 = vpop.eup %35520  ;;  %32644 = vmatpush3.msra.mxu1 %v37607_v33  ;;  %32634 = vmatprep.subr.mxu0 %v42324_v14  ;;  %v8063_v13 = vsub.f32 1.0, %v35519_v43  ;;  %v8079_v63 = vmul.f32 %v35519_v43, %v37138_v44 }
 0x47d   : > { %32645 = vmatprep.subr.mxu1 %v42324_v14  ;;  %32635 = vmatpush3.msra.mxu0 %v37616_v5  ;;  %v8064_v54 = vsub.f32 1.0, %v35521_v26  ;;  %v8080_v10 = vmul.f32 %v35521_v26, %v37141_v45  ;;  %v37772_v45 = vld [vmem:[%s42370_s5 + $0x10] sm:$0xff]  ;;  %v38292_v26 = vld [vmem:[%s42052_s9] sm:$0xff] }
 0x47e   : > { %32646 = vmatpush3.msra.mxu1 %v37616_v5  ;;  %32636 = vmatprep.subr.mxu0 %v42324_v14  ;;  %v8071_v27 = vmul.f32 %v8063_v13, %v37314_v35  ;;  %v37759_v35 = vld [vmem:[%s42370_s5 + $0x18] sm:$0xff] }
 0x47f   : > { %32647 = vmatprep.subr.mxu1 %v42324_v14  ;;  %32637 = vmatpush3.msra.mxu0 %v37625_v30  ;;  %v8072_v33 = vmul.f32 %v8064_v54, %v37317_v32  ;;  %v37782_v32 = vld [vmem:[%s42370_s5 + $0x8] sm:$0xff] }
 0x480   : > { %32648 = vmatpush3.msra.mxu1 %v37625_v30  ;;  %32638 = vmatprep.mubr.msk.f32.mxu0 %vm36022_vm3, %v42324_v14  ;;  %v37754_v5 = vadd.f32 %v8079_v63, %v8071_v27  ;;  %v37791_v30 = vld [vmem:[%s42370_s5] sm:$0xff] }
 0x481   : > { %32649 = vmatprep.mubr.msk.f32.mxu1 %vm36022_vm3, %v42324_v14  ;;  %32652 = vmatprep.subr.mxu0 %v42324_v14  ;;  %v37764_v44 = vadd.f32 %v8080_v10, %v8072_v33 }
 0x482   : > { %32663 = vmatprep.subr.mxu1 %v42324_v14  ;;  %32639 = vmatmul.mubr.msk.f32.vlgmr.msra.gmra.mxu0 %vm780_vm0, %v37754_v5 }
 0x483   : > { %32650 = vmatmul.mubr.msk.f32.vlgmr.msra.gmra.mxu1 %vm780_vm0, %v37764_v44  ;;  %32653 = vmatpush3.msra.mxu0 %v37759_v35 }
 0x484   : > { %32664 = vmatpush3.msra.mxu1 %v37759_v35  ;;  %32654 = vmatprep.subr.mxu0 %v42324_v14 }
 0x485   : > { %32665 = vmatprep.subr.mxu1 %v42324_v14  ;;  %32655 = vmatpush3.msra.mxu0 %v37772_v45 }
 0x486   : > { %32666 = vmatpush3.msra.mxu1 %v37772_v45  ;;  %32656 = vmatprep.subr.mxu0 %v42324_v14 }
 0x487   : > { %32667 = vmatprep.subr.mxu1 %v42324_v14  ;;  %32657 = vmatpush3.msra.mxu0 %v37782_v32 }
 0x488   : > { %32668 = vmatpush3.msra.mxu1 %v37782_v32  ;;  %32658 = vmatprep.subr.mxu0 %v42324_v14 }
 0x489   : > { %32669 = vmatprep.subr.mxu1 %v42324_v14  ;;  %32659 = vmatpush3.msra.mxu0 %v37791_v30 }
 0x48a   : > { %32660 = vmatprep.mubr.msk.f32.mxu0 %vm36022_vm3, %v42324_v14  ;;  %32670 = vmatpush3.msra.mxu1 %v37791_v30 }
 0x48b   : > { %32671 = vmatprep.mubr.msk.f32.mxu1 %vm36022_vm3, %v42324_v14  ;;  %32661 = vmatmul.mubr.msk.f32.vlgmr.msra.gmra.mxu0 %vm780_vm0, %v37805_v22 }
 0x48c   : > { %32672 = vmatmul.mubr.msk.f32.vlgmr.msra.gmra.mxu1 %vm780_vm0, %v37810_v4  ;;  %32674 = vmatprep.subr.mxu0 %v42324_v14 }
 0x48d   : > { %32685 = vmatprep.subr.mxu1 %v42324_v14  ;;  %32675 = vmatpush3.msra.mxu0 %v37759_v35 }
 0x48e   : > { %32686 = vmatpush3.msra.mxu1 %v37759_v35  ;;  %32676 = vmatprep.subr.mxu0 %v42324_v14 }
 0x48f   : > { %32687 = vmatprep.subr.mxu1 %v42324_v14  ;;  %32677 = vmatpush3.msra.mxu0 %v37772_v45 }
 0x490   : > { %32688 = vmatpush3.msra.mxu1 %v37772_v45  ;;  %32678 = vmatprep.subr.mxu0 %v42324_v14 }
 0x491   : > { %32689 = vmatprep.subr.mxu1 %v42324_v14  ;;  %32679 = vmatpush3.msra.mxu0 %v37782_v32 }
 0x492   : > { %32690 = vmatpush3.msra.mxu1 %v37782_v32  ;;  %32680 = vmatprep.subr.mxu0 %v42324_v14 }
 0x493   : > { %32691 = vmatprep.subr.mxu1 %v42324_v14  ;;  %32681 = vmatpush3.msra.mxu0 %v37791_v30 }
 0x494   : > { %32682 = vmatprep.mubr.msk.f32.mxu0 %vm36022_vm3, %v42324_v14  ;;  %32692 = vmatpush3.msra.mxu1 %v37791_v30 }
 0x495   : > { %32693 = vmatprep.mubr.msk.f32.mxu1 %vm36022_vm3, %v42324_v14  ;;  %32683 = vmatmul.mubr.msk.f32.vlgmr.msra.gmra.mxu0 %vm780_vm0, %v37835_v19 }
 0x496   : > { %32694 = vmatmul.mubr.msk.f32.vlgmr.msra.gmra.mxu1 %vm780_vm0, %v37840_v6  ;;  %32696 = vmatprep.subr.mxu0 %v42324_v14 }
 0x497   : > { %32707 = vmatprep.subr.mxu1 %v42324_v14  ;;  %32697 = vmatpush3.msra.mxu0 %v37759_v35 }
 0x498   : > { %32708 = vmatpush3.msra.mxu1 %v37759_v35  ;;  %32698 = vmatprep.subr.mxu0 %v42324_v14 }
 0x499   : > { %32709 = vmatprep.subr.mxu1 %v42324_v14  ;;  %32699 = vmatpush3.msra.mxu0 %v37772_v45 }
 0x49a   : > { %32710 = vmatpush3.msra.mxu1 %v37772_v45  ;;  %32700 = vmatprep.subr.mxu0 %v42324_v14 }
 0x49b   : > { %32711 = vmatprep.subr.mxu1 %v42324_v14  ;;  %32701 = vmatpush3.msra.mxu0 %v37782_v32 }
 0x49c   : > { %32712 = vmatpush3.msra.mxu1 %v37782_v32  ;;  %32702 = vmatprep.subr.mxu0 %v42324_v14 }
 0x49d   : > { %32713 = vmatprep.subr.mxu1 %v42324_v14  ;;  %32703 = vmatpush3.msra.mxu0 %v37791_v30 }
 0x49e   : > { %32704 = vmatprep.mubr.msk.f32.mxu0 %vm36022_vm3, %v42324_v14  ;;  %32714 = vmatpush3.msra.mxu1 %v37791_v30 }
 0x49f   : > { %32715 = vmatprep.mubr.msk.f32.mxu1 %vm36022_vm3, %v42324_v14  ;;  %32705 = vmatmul.mubr.msk.f32.vlgmr.msra.gmra.mxu0 %vm780_vm0, %v37865_v8 }
 0x4a0   : > { %32716 = vmatmul.mubr.msk.f32.vlgmr.msra.gmra.mxu1 %vm780_vm0, %v37870_v20  ;;  %32718 = vmatprep.subr.mxu0 %v42324_v14 }
 0x4a1   : > { %32729 = vmatprep.subr.mxu1 %v42324_v14  ;;  %32719 = vmatpush3.msra.mxu0 %v37759_v35 }
 0x4a2   : > { %32730 = vmatpush3.msra.mxu1 %v37759_v35  ;;  %32720 = vmatprep.subr.mxu0 %v42324_v14 }
 0x4a3   : > { %32731 = vmatprep.subr.mxu1 %v42324_v14  ;;  %32721 = vmatpush3.msra.mxu0 %v37772_v45 }
 0x4a4   : > { %32732 = vmatpush3.msra.mxu1 %v37772_v45  ;;  %32722 = vmatprep.subr.mxu0 %v42324_v14 }
 0x4a5   : > { %32733 = vmatprep.subr.mxu1 %v42324_v14  ;;  %32723 = vmatpush3.msra.mxu0 %v37782_v32 }
 0x4a6   : > { %32734 = vmatpush3.msra.mxu1 %v37782_v32  ;;  %32724 = vmatprep.subr.mxu0 %v42324_v14 }
 0x4a7   : > { %32735 = vmatprep.subr.mxu1 %v42324_v14  ;;  %32725 = vmatpush3.msra.mxu0 %v37791_v30 }
 0x4a8   : > { %32726 = vmatprep.mubr.msk.f32.mxu0 %vm36022_vm3, %v42324_v14  ;;  %32736 = vmatpush3.msra.mxu1 %v37791_v30 }
 0x4a9   : > { %32737 = vmatprep.mubr.msk.f32.mxu1 %vm36022_vm3, %v42324_v14  ;;  %32727 = vmatmul.mubr.msk.f32.vlgmr.msra.gmra.mxu0 %vm780_vm0, %v37900_v58 }
 0x4aa   : > { %32738 = vmatmul.mubr.msk.f32.vlgmr.msra.gmra.mxu1 %vm780_vm0, %v37905_v16  ;;  %32740 = vmatprep.subr.mxu0 %v42324_v14 }
 0x4ab   : > { %32751 = vmatprep.subr.mxu1 %v42324_v14  ;;  %32741 = vmatpush3.msra.mxu0 %v37895_v21 }
 0x4ac   : > { %32752 = vmatpush3.msra.mxu1 %v37895_v21  ;;  %32742 = vmatprep.subr.mxu0 %v42324_v14 }
 0x4ad   : > { %32753 = vmatprep.subr.mxu1 %v42324_v14  ;;  %32743 = vmatpush3.msra.mxu0 %v37913_v34 }
 0x4ae   : > { %32754 = vmatpush3.msra.mxu1 %v37913_v34  ;;  %32744 = vmatprep.subr.mxu0 %v42324_v14 }
 0x4af   : > { %32755 = vmatprep.subr.mxu1 %v42324_v14  ;;  %32745 = vmatpush3.msra.mxu0 %v37922_v7 }
 0x4b0   : > { %32756 = vmatpush3.msra.mxu1 %v37922_v7  ;;  %32746 = vmatprep.subr.mxu0 %v42324_v14 }
 0x4b1   : > { %32757 = vmatprep.subr.mxu1 %v42324_v14  ;;  %32747 = vmatpush3.msra.mxu0 %v37931_v62 }
 0x4b2   : > { %32748 = vmatprep.mubr.msk.f32.mxu0 %vm36022_vm3, %v42324_v14  ;;  %32758 = vmatpush3.msra.mxu1 %v37931_v62 }
 0x4b3   : > { %32759 = vmatprep.mubr.msk.f32.mxu1 %vm36022_vm3, %v42324_v14  ;;  %32749 = vmatmul.mubr.msk.f32.vlgmr.msra.gmra.mxu0 %vm780_vm0, %v37662_v52 }
 0x4b4   : > { %32760 = vmatmul.mubr.msk.f32.vlgmr.msra.gmra.mxu1 %vm780_vm0, %v37664_v15  ;;  %32762 = vmatprep.subr.mxu0 %v42324_v14 }
 0x4b5   : > { %32773 = vmatprep.subr.mxu1 %v42324_v14  ;;  %32763 = vmatpush3.msra.mxu0 %v37895_v21 }
 0x4b6   : > { %32774 = vmatpush3.msra.mxu1 %v37895_v21  ;;  %32764 = vmatprep.subr.mxu0 %v42324_v14 }
 0x4b7   : > { %32775 = vmatprep.subr.mxu1 %v42324_v14  ;;  %32765 = vmatpush3.msra.mxu0 %v37913_v34 }
 0x4b8   : > { %32776 = vmatpush3.msra.mxu1 %v37913_v34  ;;  %32766 = vmatprep.subr.mxu0 %v42324_v14 }
 0x4b9   : > { %32777 = vmatprep.subr.mxu1 %v42324_v14  ;;  %32767 = vmatpush3.msra.mxu0 %v37922_v7 }
 0x4ba   : > { %32778 = vmatpush3.msra.mxu1 %v37922_v7  ;;  %32768 = vmatprep.subr.mxu0 %v42324_v14 }
 0x4bb   : > { %32779 = vmatprep.subr.mxu1 %v42324_v14  ;;  %32769 = vmatpush3.msra.mxu0 %v37931_v62 }
 0x4bc   : > { %32770 = vmatprep.mubr.msk.f32.mxu0 %vm36022_vm3, %v42324_v14  ;;  %32780 = vmatpush3.msra.mxu1 %v37931_v62 }
 0x4bd   : > { %32781 = vmatprep.mubr.msk.f32.mxu1 %vm36022_vm3, %v42324_v14  ;;  %32771 = vmatmul.mubr.msk.f32.vlgmr.msra.gmra.mxu0 %vm780_vm0, %v37690_v31 }
 0x4be   : > { %32782 = vmatmul.mubr.msk.f32.vlgmr.msra.gmra.mxu1 %vm780_vm0, %v37695_v29  ;;  %32784 = vmatprep.subr.mxu0 %v42324_v14 }
 0x4bf   : > { %32795 = vmatprep.subr.mxu1 %v42324_v14  ;;  %32785 = vmatpush3.msra.mxu0 %v37895_v21 }
 0x4c0   : > { %32796 = vmatpush3.msra.mxu1 %v37895_v21  ;;  %32786 = vmatprep.subr.mxu0 %v42324_v14 }
 0x4c1   : > { %32797 = vmatprep.subr.mxu1 %v42324_v14  ;;  %32787 = vmatpush3.msra.mxu0 %v37913_v34 }
 0x4c2   : > { %32798 = vmatpush3.msra.mxu1 %v37913_v34  ;;  %32788 = vmatprep.subr.mxu0 %v42324_v14 }
 0x4c3   : > { %32799 = vmatprep.subr.mxu1 %v42324_v14  ;;  %32789 = vmatpush3.msra.mxu0 %v37922_v7 }
 0x4c4   : > { %32800 = vmatpush3.msra.mxu1 %v37922_v7  ;;  %32790 = vmatprep.subr.mxu0 %v42324_v14 }
 0x4c5   : > { %32801 = vmatprep.subr.mxu1 %v42324_v14  ;;  %32791 = vmatpush3.msra.mxu0 %v37931_v62 }
 0x4c6   : > { %32792 = vmatprep.mubr.msk.f32.mxu0 %vm36022_vm3, %v42324_v14  ;;  %32802 = vmatpush3.msra.mxu1 %v37931_v62 }
 0x4c7   : > { %32803 = vmatprep.mubr.msk.f32.mxu1 %vm36022_vm3, %v42324_v14  ;;  %32793 = vmatmul.mubr.msk.f32.vlgmr.msra.gmra.mxu0 %vm780_vm0, %v37722_v56 }
 0x4c8   : > { %32804 = vmatmul.mubr.msk.f32.vlgmr.msra.gmra.mxu1 %vm780_vm0, %v37727_v42  ;;  %32806 = vmatprep.subr.mxu0 %v42324_v14 }
 0x4c9   : > { %32817 = vmatprep.subr.mxu1 %v42324_v14  ;;  %32807 = vmatpush3.msra.mxu0 %v37895_v21 }
 0x4ca   : > { %32818 = vmatpush3.msra.mxu1 %v37895_v21  ;;  %32808 = vmatprep.subr.mxu0 %v42324_v14 }
 0x4cb   : > { %32819 = vmatprep.subr.mxu1 %v42324_v14  ;;  %32809 = vmatpush3.msra.mxu0 %v37913_v34 }
 0x4cc   : > { %32820 = vmatpush3.msra.mxu1 %v37913_v34  ;;  %32810 = vmatprep.subr.mxu0 %v42324_v14 }
 0x4cd   : > { %32821 = vmatprep.subr.mxu1 %v42324_v14  ;;  %32811 = vmatpush3.msra.mxu0 %v37922_v7 }
 0x4ce   : > { %32822 = vmatpush3.msra.mxu1 %v37922_v7  ;;  %32812 = vmatprep.subr.mxu0 %v42324_v14 }
 0x4cf   : > { %32823 = vmatprep.subr.mxu1 %v42324_v14  ;;  %32813 = vmatpush3.msra.mxu0 %v37931_v62 }
 0x4d0   : > { %32814 = vmatprep.mubr.msk.f32.mxu0 %vm36022_vm3, %v42324_v14  ;;  %32824 = vmatpush3.msra.mxu1 %v37931_v62 }
 0x4d1   : > { %32825 = vmatprep.mubr.msk.f32.mxu1 %vm36022_vm3, %v42324_v14  ;;  %32815 = vmatmul.mubr.msk.f32.vlgmr.msra.gmra.mxu0 %vm780_vm0, %v37754_v5 }
 0x4d2   : > { %32826 = vmatmul.mubr.msk.f32.vlgmr.msra.gmra.mxu1 %vm780_vm0, %v37764_v44  ;;  %32828 = vmatprep.subr.mxu0 %v42324_v14 }
 0x4d3   : > { %32839 = vmatprep.subr.mxu1 %v42324_v14  ;;  %32829 = vmatpush3.msra.mxu0 %v38017_v53 }
 0x4d4   : > { %32840 = vmatpush3.msra.mxu1 %v38017_v53  ;;  %32830 = vmatprep.subr.mxu0 %v42324_v14 }
 0x4d5   : > { %32841 = vmatprep.subr.mxu1 %v42324_v14  ;;  %32831 = vmatpush3.msra.mxu0 %v38029_v9 }
 0x4d6   : > { %32842 = vmatpush3.msra.mxu1 %v38029_v9  ;;  %32832 = vmatprep.subr.mxu0 %v42324_v14 }
 0x4d7   : > { %32843 = vmatprep.subr.mxu1 %v42324_v14  ;;  %32833 = vmatpush3.msra.mxu0 %v38038_v57 }
 0x4d8   : > { %32844 = vmatpush3.msra.mxu1 %v38038_v57  ;;  %32834 = vmatprep.subr.mxu0 %v42324_v14 }
 0x4d9   : > { %32845 = vmatprep.subr.mxu1 %v42324_v14  ;;  %32835 = vmatpush3.msra.mxu0 %v38047_v1 }
 0x4da   : > { %32836 = vmatprep.mubr.msk.f32.mxu0 %vm36022_vm3, %v42324_v14  ;;  %32846 = vmatpush3.msra.mxu1 %v38047_v1 }
 0x4db   : > { %32847 = vmatprep.mubr.msk.f32.mxu1 %vm36022_vm3, %v42324_v14  ;;  %32837 = vmatmul.mubr.msk.f32.vlgmr.msra.gmra.mxu0 %vm780_vm0, %v37805_v22 }
 0x4dc   : > { %32848 = vmatmul.mubr.msk.f32.vlgmr.msra.gmra.mxu1 %vm780_vm0, %v37810_v4  ;;  %32850 = vmatprep.subr.mxu0 %v42324_v14 }
 0x4dd   : > { %32861 = vmatprep.subr.mxu1 %v42324_v14  ;;  %32851 = vmatpush3.msra.mxu0 %v38017_v53 }
 0x4de   : > { %32862 = vmatpush3.msra.mxu1 %v38017_v53  ;;  %32852 = vmatprep.subr.mxu0 %v42324_v14 }
 0x4df   : > { %32863 = vmatprep.subr.mxu1 %v42324_v14  ;;  %32853 = vmatpush3.msra.mxu0 %v38029_v9 }
 0x4e0   : > { %32864 = vmatpush3.msra.mxu1 %v38029_v9  ;;  %32854 = vmatprep.subr.mxu0 %v42324_v14 }
 0x4e1   : > { %32865 = vmatprep.subr.mxu1 %v42324_v14  ;;  %32855 = vmatpush3.msra.mxu0 %v38038_v57 }
 0x4e2   : > { %32866 = vmatpush3.msra.mxu1 %v38038_v57  ;;  %32856 = vmatprep.subr.mxu0 %v42324_v14 }
 0x4e3   : > { %32867 = vmatprep.subr.mxu1 %v42324_v14  ;;  %32857 = vmatpush3.msra.mxu0 %v38047_v1 }
 0x4e4   : > { %32858 = vmatprep.mubr.msk.f32.mxu0 %vm36022_vm3, %v42324_v14  ;;  %32868 = vmatpush3.msra.mxu1 %v38047_v1 }
 0x4e5   : > { %32869 = vmatprep.mubr.msk.f32.mxu1 %vm36022_vm3, %v42324_v14  ;;  %32859 = vmatmul.mubr.msk.f32.vlgmr.msra.gmra.mxu0 %vm780_vm0, %v37835_v19 }
 0x4e6   : > { %32870 = vmatmul.mubr.msk.f32.vlgmr.msra.gmra.mxu1 %vm780_vm0, %v37840_v6  ;;  %32872 = vmatprep.subr.mxu0 %v42324_v14 }
 0x4e7   : > { %32883 = vmatprep.subr.mxu1 %v42324_v14  ;;  %32873 = vmatpush3.msra.mxu0 %v38017_v53 }
 0x4e8   : > { %32884 = vmatpush3.msra.mxu1 %v38017_v53  ;;  %32874 = vmatprep.subr.mxu0 %v42324_v14 }
 0x4e9   : > { %32885 = vmatprep.subr.mxu1 %v42324_v14  ;;  %32875 = vmatpush3.msra.mxu0 %v38029_v9 }
 0x4ea   : > { %32886 = vmatpush3.msra.mxu1 %v38029_v9  ;;  %32876 = vmatprep.subr.mxu0 %v42324_v14 }
 0x4eb   : > { %32887 = vmatprep.subr.mxu1 %v42324_v14  ;;  %32877 = vmatpush3.msra.mxu0 %v38038_v57 }
 0x4ec   : > { %32888 = vmatpush3.msra.mxu1 %v38038_v57  ;;  %32878 = vmatprep.subr.mxu0 %v42324_v14 }
 0x4ed   : > { %32889 = vmatprep.subr.mxu1 %v42324_v14  ;;  %32879 = vmatpush3.msra.mxu0 %v38047_v1 }
 0x4ee   : > { %32880 = vmatprep.mubr.msk.f32.mxu0 %vm36022_vm3, %v42324_v14  ;;  %32890 = vmatpush3.msra.mxu1 %v38047_v1 }
 0x4ef   : > { %32891 = vmatprep.mubr.msk.f32.mxu1 %vm36022_vm3, %v42324_v14  ;;  %32881 = vmatmul.mubr.msk.f32.vlgmr.msra.gmra.mxu0 %vm780_vm0, %v37865_v8 }
 0x4f0   : > { %32892 = vmatmul.mubr.msk.f32.vlgmr.msra.gmra.mxu1 %vm780_vm0, %v37870_v20  ;;  %32894 = vmatprep.subr.mxu0 %v42324_v14 }
 0x4f1   : > { %32905 = vmatprep.subr.mxu1 %v42324_v14  ;;  %32895 = vmatpush3.msra.mxu0 %v38017_v53 }
 0x4f2   : > { %32906 = vmatpush3.msra.mxu1 %v38017_v53  ;;  %32896 = vmatprep.subr.mxu0 %v42324_v14 }
 0x4f3   : > { %32907 = vmatprep.subr.mxu1 %v42324_v14  ;;  %32897 = vmatpush3.msra.mxu0 %v38029_v9 }
 0x4f4   : > { %32908 = vmatpush3.msra.mxu1 %v38029_v9  ;;  %32898 = vmatprep.subr.mxu0 %v42324_v14 }
 0x4f5   : > { %32909 = vmatprep.subr.mxu1 %v42324_v14  ;;  %32899 = vmatpush3.msra.mxu0 %v38038_v57 }
 0x4f6   : > { %32910 = vmatpush3.msra.mxu1 %v38038_v57  ;;  %32900 = vmatprep.subr.mxu0 %v42324_v14 }
 0x4f7   : > { %32911 = vmatprep.subr.mxu1 %v42324_v14  ;;  %32901 = vmatpush3.msra.mxu0 %v38047_v1 }
 0x4f8   : > { %32902 = vmatprep.mubr.msk.f32.mxu0 %vm36022_vm3, %v42324_v14  ;;  %32912 = vmatpush3.msra.mxu1 %v38047_v1 }
 0x4f9   : > { %32913 = vmatprep.mubr.msk.f32.mxu1 %vm36022_vm3, %v42324_v14  ;;  %32903 = vmatmul.mubr.msk.f32.vlgmr.msra.gmra.mxu0 %vm780_vm0, %v37900_v58 }
 0x4fa   : > { %32914 = vmatmul.mubr.msk.f32.vlgmr.msra.gmra.mxu1 %vm780_vm0, %v37905_v16  ;;  %32916 = vmatprep.subr.mxu0 %v42324_v14 }
 0x4fb   : > { %32927 = vmatprep.subr.mxu1 %v42324_v14  ;;  %32917 = vmatpush3.msra.mxu0 %v38133_v61 }
 0x4fc   : > { %32928 = vmatpush3.msra.mxu1 %v38133_v61  ;;  %32918 = vmatprep.subr.mxu0 %v42324_v14 }
 0x4fd   : > { %32929 = vmatprep.subr.mxu1 %v42324_v14  ;;  %32919 = vmatpush3.msra.mxu0 %v38145_v23 }
 0x4fe   : > { %32930 = vmatpush3.msra.mxu1 %v38145_v23  ;;  %32920 = vmatprep.subr.mxu0 %v42324_v14 }
 0x4ff   : > { %32931 = vmatprep.subr.mxu1 %v42324_v14  ;;  %32921 = vmatpush3.msra.mxu0 %v38154_v39 }
 0x500   : > { %32932 = vmatpush3.msra.mxu1 %v38154_v39  ;;  %32922 = vmatprep.subr.mxu0 %v42324_v14 }
 0x501   : > { %32933 = vmatprep.subr.mxu1 %v42324_v14  ;;  %32923 = vmatpush3.msra.mxu0 %v38163_v18 }
 0x502   : > { %32924 = vmatprep.mubr.msk.f32.mxu0 %vm36022_vm3, %v42324_v14  ;;  %32934 = vmatpush3.msra.mxu1 %v38163_v18 }
 0x503   : > { %32935 = vmatprep.mubr.msk.f32.mxu1 %vm36022_vm3, %v42324_v14  ;;  %32925 = vmatmul.mubr.msk.f32.vlgmr.msra.gmra.mxu0 %vm780_vm0, %v37662_v52 }
 0x504   : > { %32936 = vmatmul.mubr.msk.f32.vlgmr.msra.gmra.mxu1 %vm780_vm0, %v37664_v15  ;;  %32938 = vmatprep.subr.mxu0 %v42324_v14 }
 0x505   : > { %32949 = vmatprep.subr.mxu1 %v42324_v14  ;;  %32939 = vmatpush3.msra.mxu0 %v38133_v61 }
 0x506   : > { %32950 = vmatpush3.msra.mxu1 %v38133_v61  ;;  %32940 = vmatprep.subr.mxu0 %v42324_v14 }
 0x507   : > { %32951 = vmatprep.subr.mxu1 %v42324_v14  ;;  %32941 = vmatpush3.msra.mxu0 %v38145_v23 }
 0x508   : > { %32952 = vmatpush3.msra.mxu1 %v38145_v23  ;;  %32942 = vmatprep.subr.mxu0 %v42324_v14 }
 0x509   : > { %32953 = vmatprep.subr.mxu1 %v42324_v14  ;;  %32943 = vmatpush3.msra.mxu0 %v38154_v39 }
 0x50a   : > { %32954 = vmatpush3.msra.mxu1 %v38154_v39  ;;  %32944 = vmatprep.subr.mxu0 %v42324_v14 }
 0x50b   : > { %32955 = vmatprep.subr.mxu1 %v42324_v14  ;;  %32945 = vmatpush3.msra.mxu0 %v38163_v18 }
 0x50c   : > { %32946 = vmatprep.mubr.msk.f32.mxu0 %vm36022_vm3, %v42324_v14  ;;  %32956 = vmatpush3.msra.mxu1 %v38163_v18 }
 0x50d   : > { %32957 = vmatprep.mubr.msk.f32.mxu1 %vm36022_vm3, %v42324_v14  ;;  %32947 = vmatmul.mubr.msk.f32.vlgmr.msra.gmra.mxu0 %vm780_vm0, %v37690_v31 }
 0x50e   : > { %32958 = vmatmul.mubr.msk.f32.vlgmr.msra.gmra.mxu1 %vm780_vm0, %v37695_v29  ;;  %32960 = vmatprep.subr.mxu0 %v42324_v14 }
 0x50f   : > { %32971 = vmatprep.subr.mxu1 %v42324_v14  ;;  %32961 = vmatpush3.msra.mxu0 %v38133_v61 }
 0x510   : > { %32972 = vmatpush3.msra.mxu1 %v38133_v61  ;;  %32962 = vmatprep.subr.mxu0 %v42324_v14 }
 0x511   : > { %32973 = vmatprep.subr.mxu1 %v42324_v14  ;;  %32963 = vmatpush3.msra.mxu0 %v38145_v23 }
 0x512   : > { %32974 = vmatpush3.msra.mxu1 %v38145_v23  ;;  %32964 = vmatprep.subr.mxu0 %v42324_v14 }
 0x513   : > { %32975 = vmatprep.subr.mxu1 %v42324_v14  ;;  %32965 = vmatpush3.msra.mxu0 %v38154_v39 }
 0x514   : > { %32976 = vmatpush3.msra.mxu1 %v38154_v39  ;;  %32966 = vmatprep.subr.mxu0 %v42324_v14 }
 0x515   : > { %32977 = vmatprep.subr.mxu1 %v42324_v14  ;;  %32967 = vmatpush3.msra.mxu0 %v38163_v18 }
 0x516   : > { %32968 = vmatprep.mubr.msk.f32.mxu0 %vm36022_vm3, %v42324_v14  ;;  %32978 = vmatpush3.msra.mxu1 %v38163_v18 }
 0x517   : > { %32979 = vmatprep.mubr.msk.f32.mxu1 %vm36022_vm3, %v42324_v14  ;;  %32969 = vmatmul.mubr.msk.f32.vlgmr.msra.gmra.mxu0 %vm780_vm0, %v37722_v56 }
 0x518   : > { %32980 = vmatmul.mubr.msk.f32.vlgmr.msra.gmra.mxu1 %vm780_vm0, %v37727_v42  ;;  %32982 = vmatprep.subr.mxu0 %v42324_v14 }
 0x519   : > { %32993 = vmatprep.subr.mxu1 %v42324_v14  ;;  %32983 = vmatpush3.msra.mxu0 %v38133_v61 }
 0x51a   : > { %32994 = vmatpush3.msra.mxu1 %v38133_v61  ;;  %32984 = vmatprep.subr.mxu0 %v42324_v14 }
 0x51b   : > { %32995 = vmatprep.subr.mxu1 %v42324_v14  ;;  %32985 = vmatpush3.msra.mxu0 %v38145_v23 }
 0x51c   : > { %32996 = vmatpush3.msra.mxu1 %v38145_v23  ;;  %32986 = vmatprep.subr.mxu0 %v42324_v14 }
 0x51d   : > { %32997 = vmatprep.subr.mxu1 %v42324_v14  ;;  %32987 = vmatpush3.msra.mxu0 %v38154_v39 }
 0x51e   : > { %32998 = vmatpush3.msra.mxu1 %v38154_v39  ;;  %32988 = vmatprep.subr.mxu0 %v42324_v14 }
 0x51f   : > { %32999 = vmatprep.subr.mxu1 %v42324_v14  ;;  %32989 = vmatpush3.msra.mxu0 %v38163_v18 }
 0x520   : > { %32990 = vmatprep.mubr.msk.f32.mxu0 %vm36022_vm3, %v42324_v14  ;;  %33000 = vmatpush3.msra.mxu1 %v38163_v18 }
 0x521   : > { %33001 = vmatprep.mubr.msk.f32.mxu1 %vm36022_vm3, %v42324_v14  ;;  %32991 = vmatmul.mubr.msk.f32.vlgmr.msra.gmra.mxu0 %vm780_vm0, %v37754_v5 }
 0x522   : > { %33002 = vmatmul.mubr.msk.f32.vlgmr.msra.gmra.mxu1 %vm780_vm0, %v37764_v44  ;;  %33004 = vmatprep.subr.mxu0 %v42324_v14 }
 0x523   : > { %33015 = vmatprep.subr.mxu1 %v42324_v14  ;;  %33012 = vmatprep.mubr.msk.f32.mxu0 %vm36022_vm3, %v42324_v14 }
 0x524   : > { %v8158_v52 = vpop.f32.mrf.mxu0  ;;  %33023 = vmatprep.mubr.msk.f32.mxu1 %vm36022_vm3, %v42324_v14  ;;  %33005 = vmatpush3.msra.mxu0 %v38261_v3 }
 0x525   : > { %v8231_v15 = vpop.f32.mrf.mxu1  ;;  %33016 = vmatpush3.msra.mxu1 %v38261_v3  ;;  %33006 = vmatprep.subr.mxu0 %v42324_v14 }
 0x526   : > { %v32574_v12 = vpop.f32.mrf.mxu0  ;;  %33017 = vmatprep.subr.mxu1 %v42324_v14  ;;  %33007 = vmatpush3.msra.mxu0 %v38270_v51 }
 0x527   : > { %v32585_v41 = vpop.f32.mrf.mxu1  ;;  %33018 = vmatpush3.msra.mxu1 %v38270_v51  ;;  %33008 = vmatprep.subr.mxu0 %v42324_v14 }
 0x528   : > { %33019 = vmatprep.subr.mxu1 %v42324_v14  ;;  %33009 = vmatpush3.msra.mxu0 %v38279_v50 }
 0x529   : > { %33020 = vmatpush3.msra.mxu1 %v38279_v50  ;;  %33010 = vmatprep.subr.mxu0 %v42324_v14 }
 0x52a   : > { %33021 = vmatprep.subr.mxu1 %v42324_v14  ;;  %33011 = vmatpush3.msra.mxu0 %v38292_v26 }
 0x52b   : > { %33022 = vmatpush3.msra.mxu1 %v38292_v26  ;;  %33026 = vmatprep.subr.mxu0 %v42324_v14 }
 0x52c   : > { %33037 = vmatprep.subr.mxu1 %v42324_v14 }
 0x52e   : > { %v8304_v40 = vpop.f32.mrf.mxu0 }
 0x52f   : > { %v8377_v24 = vpop.f32.mrf.mxu1 }
 0x530   : > { %v32596_v25 = vpop.f32.mrf.mxu0 }
 0x531   : > { %v32607_v37 = vpop.f32.mrf.mxu1 }
 0x538   : > { %v8450_v11 = vpop.f32.mrf.mxu0 }
 0x539   : > { %v8523_v28 = vpop.f32.mrf.mxu1 }
 0x53a   : > { %v32618_v31 = vpop.f32.mrf.mxu0 }
 0x53b   : > { %v32629_v36 = vpop.f32.mrf.mxu1 }
 0x542   : > { %v8596_v29 = vpop.f32.mrf.mxu0 }
 0x543   : > { %v8669_v17 = vpop.f32.mrf.mxu1 }
 0x544   : > { %v32640_v38 = vpop.f32.mrf.mxu0 }
 0x545   : > { %v32651_v0 = vpop.f32.mrf.mxu1 }
 0x54b   : > { %v8742_v2 = vpop.f32.mrf.mxu0 }
 0x54c   : > { %v38281_v55 = vadd.f32 %v8742_v2, %v8158_v52  ;;  %v8815_v56 = vpop.f32.mrf.mxu1 }
 0x54d   : > { %v38285_v42 = vadd.f32 %v8815_v56, %v8231_v15  ;;  %v32662_v43 = vpop.f32.mrf.mxu0 }
 0x54e   : > { %v32673_v13 = vpop.f32.mrf.mxu1 }
 0x555   : > { %v8888_v54 = vpop.f32.mrf.mxu0 }
 0x556   : > { %v38298_v27 = vadd.f32 %v8888_v54, %v8304_v40  ;;  %v8961_v63 = vpop.f32.mrf.mxu1 }
 0x557   : > { %v38300_v33 = vadd.f32 %v8961_v63, %v8377_v24  ;;  %v32684_v10 = vpop.f32.mrf.mxu0 }
 0x558   : > { %v32695_v5 = vpop.f32.mrf.mxu1 }
 0x55f   : > { %v9034_v35 = vpop.f32.mrf.mxu0 }
 0x560   : > { %v38302_v44 = vadd.f32 %v9034_v35, %v8450_v11  ;;  %v9107_v45 = vpop.f32.mrf.mxu1 }
 0x561   : > { %v38304_v32 = vadd.f32 %v9107_v45, %v8523_v28  ;;  %v32706_v30 = vpop.f32.mrf.mxu0 }
 0x562   : > { %v32717_v21 = vpop.f32.mrf.mxu1 }
 0x569   : > { %v9180_v34 = vpop.f32.mrf.mxu0 }
 0x56a   : > { %v38306_v7 = vadd.f32 %v9180_v34, %v8596_v29  ;;  %v9253_v62 = vpop.f32.mrf.mxu1 }
 0x56b   : > { %v38308_v53 = vadd.f32 %v9253_v62, %v8669_v17  ;;  %v32728_v9 = vpop.f32.mrf.mxu0 }
 0x56c   : > { %v32739_v57 = vpop.f32.mrf.mxu1 }
 0x573   : > { %v9371_v1 = vpop.f32.mrf.mxu0 }
 0x574   : > { %v9441_v61 = vpop.f32.mrf.mxu1 }
 0x575   : > { %v32750_v23 = vpop.f32.mrf.mxu0 }
 0x576   : > { %v32761_v39 = vpop.f32.mrf.mxu1 }
 0x57d   : > { %v9511_v18 = vpop.f32.mrf.mxu0 }
 0x57e   : > { %v9581_v52 = vpop.f32.mrf.mxu1 }
 0x57f   : > { %v32772_v15 = vpop.f32.mrf.mxu0 }
 0x580   : > { %v32783_v12 = vpop.f32.mrf.mxu1 }
 0x587   : > { %v9651_v41 = vpop.f32.mrf.mxu0 }
 0x588   : > { %v9721_v40 = vpop.f32.mrf.mxu1 }
 0x589   : > { %v32794_v24 = vpop.f32.mrf.mxu0 }
 0x58a   : > { %v32805_v25 = vpop.f32.mrf.mxu1 }
 0x591   : > { %v9791_v37 = vpop.f32.mrf.mxu0 }
 0x592   : > { %v9861_v11 = vpop.f32.mrf.mxu1 }
 0x593   : > { %v32816_v28 = vpop.f32.mrf.mxu0 }
 0x594   : > { %v32827_v31 = vpop.f32.mrf.mxu1 }
 0x59b   : > { %v9931_v36 = vpop.f32.mrf.mxu0 }
 0x59c   : > { %v9932_v29 = vadd.f32 %v9931_v36, %v9371_v1  ;;  %v10001_v17 = vpop.f32.mrf.mxu1 }
 0x59d   : > { %v10002_v38 = vadd.f32 %v10001_v17, %v9441_v61  ;;  %v32838_v0 = vpop.f32.mrf.mxu0 }
 0x59e   : > { %v29799_v2 = vmul.f32 -1.442695, %v9932_v29  ;;  %v32849_v56 = vpop.f32.mrf.mxu1 }
 0x59f   : > { %v29800_v43 = vmul.f32 -1.442695, %v10002_v38 }
 0x5a0   : > { %35522 = vpow2.f32 %v29799_v2 }
 0x5a1   : > { %35524 = vpow2.f32 %v29800_v43 }
 0x5a5   : > { %v10071_v13 = vpop.f32.mrf.mxu0 }
 0x5a6   : > { %v10072_v54 = vadd.f32 %v10071_v13, %v9511_v18  ;;  %v10141_v63 = vpop.f32.mrf.mxu1 }
 0x5a7   : > { %v10142_v10 = vadd.f32 %v10141_v63, %v9581_v52  ;;  %v32860_v5 = vpop.f32.mrf.mxu0 }
 0x5a8   : > { %v29801_v35 = vmul.f32 -1.442695, %v10072_v54  ;;  %v32871_v45 = vpop.f32.mrf.mxu1 }
 0x5a9   : > { %v29802_v30 = vmul.f32 -1.442695, %v10142_v10 }
 0x5aa   : > { %35526 = vpow2.f32 %v29801_v35 }
 0x5ab   : > { %35528 = vpow2.f32 %v29802_v30 }
 0x5ad   : > { %v35523_v21 = vpop.eup %35522 }
 0x5ae   : > { %v35525_v34 = vpop.eup %35524  ;;  %v10449_v62 = vadd.f32 1.0, %v35523_v21 }
 0x5af   : > { %v10450_v9 = vadd.f32 1.0, %v35525_v34  ;;  %v10211_v57 = vpop.f32.mrf.mxu0 }
 0x5b0   : > { %35530 = vrcp.f32 %v10449_v62  ;;  %v10212_v1 = vadd.f32 %v10211_v57, %v9651_v41  ;;  %v10281_v61 = vpop.f32.mrf.mxu1 }
 0x5b1   : > { %35532 = vrcp.f32 %v10450_v9  ;;  %v10282_v23 = vadd.f32 %v10281_v61, %v9721_v40  ;;  %v32882_v39 = vpop.f32.mrf.mxu0 }
 0x5b2   : > { %v29803_v18 = vmul.f32 -1.442695, %v10212_v1  ;;  %v32893_v15 = vpop.f32.mrf.mxu1 }
 0x5b3   : > { %v29804_v52 = vmul.f32 -1.442695, %v10282_v23 }
 0x5b4   : > { %35534 = vpow2.f32 %v29803_v18 }
 0x5b5   : > { %35536 = vpow2.f32 %v29804_v52 }
 0x5b7   : > { %v35527_v12 = vpop.eup %35526 }
 0x5b8   : > { %v35529_v24 = vpop.eup %35528  ;;  %v10451_v25 = vadd.f32 1.0, %v35527_v12 }
 0x5b9   : > { %v10452_v28 = vadd.f32 1.0, %v35529_v24  ;;  %v10351_v31 = vpop.f32.mrf.mxu0 }
 0x5ba   : > { %35538 = vrcp.f32 %v10451_v25  ;;  %v10352_v36 = vadd.f32 %v10351_v31, %v9791_v37  ;;  %v10421_v29 = vpop.f32.mrf.mxu1  ;;  %v42371_v25 = vld [vmem:[#allocation11_spill] sm:$0xff] }
 0x5bb   : > { %35540 = vrcp.f32 %v10452_v28  ;;  %v10422_v17 = vadd.f32 %v10421_v29, %v9861_v11  ;;  %v32904_v41 = vpop.f32.mrf.mxu0  ;;  %v42372_v28 = vld [vmem:[#allocation12_spill] sm:$0xff]  ;;  %v29775_v29 = vmul.f32 -1.442695, %v38281_v55 }
 0x5bc   : > { %v29805_v38 = vmul.f32 -1.442695, %v10352_v36  ;;  %v32915_v0 = vpop.f32.mrf.mxu1  ;;  %v29778_v41 = vmul.f32 -1.442695, %v38300_v33 }
 0x5bd   : > { %v35531_v40 = vpop.eup %35530  ;;  %v29806_v2 = vmul.f32 -1.442695, %v10422_v17  ;;  %v29777_v17 = vmul.f32 -1.442695, %v38298_v27 }
 0x5be   : > { %v35533_v56 = vpop.eup %35532  ;;  %35542 = vpow2.f32 %v29805_v38  ;;  %v10473_v43 = vmul.f32 %v37805_v22, %v35531_v40 }
 0x5bf   : > { %35544 = vpow2.f32 %v29806_v2  ;;  %v10474_v13 = vmul.f32 %v37810_v4, %v35533_v56  ;;  %v29779_v56 = vmul.f32 -1.442695, %v38302_v44 }
 0x5c0   : > { %33013 = vmatmul.mubr.msk.f32.vlgmr.msra.gmra.mxu0 %vm780_vm0, %v10473_v43  ;;  %v29780_v43 = vmul.f32 -1.442695, %v38304_v32  ;;  %v29782_v32 = vmul.f32 -1.442695, %v38308_v53 }
 0x5c1   : > { %v35535_v54 = vpop.eup %35534  ;;  %33024 = vmatmul.mubr.msk.f32.vlgmr.msra.gmra.mxu1 %vm780_vm0, %v10474_v13  ;;  %33027 = vmatpush3.msra.mxu0 %v38261_v3 }
 0x5c2   : > { %v35537_v37 = vpop.eup %35536  ;;  %v10453_v11 = vadd.f32 1.0, %v35535_v54  ;;  %33038 = vmatpush3.msra.mxu1 %v38261_v3  ;;  %33028 = vmatprep.subr.mxu0 %v42324_v14 }
 0x5c3   : > { %v10454_v63 = vadd.f32 1.0, %v35537_v37  ;;  %v38317_v10 = vpop.f32.mrf.mxu0  ;;  %33039 = vmatprep.subr.mxu1 %v42324_v14  ;;  %33029 = vmatpush3.msra.mxu0 %v38270_v51 }
 0x5c4   : > { %35546 = vrcp.f32 %v10453_v11  ;;  %v38321_v22 = vpop.f32.mrf.mxu1  ;;  %33040 = vmatpush3.msra.mxu1 %v38270_v51  ;;  %33030 = vmatprep.subr.mxu0 %v42324_v14 }
 0x5c5   : > { %35548 = vrcp.f32 %v10454_v63  ;;  %v32926_v4 = vpop.f32.mrf.mxu0  ;;  %33041 = vmatprep.subr.mxu1 %v42324_v14  ;;  %33031 = vmatpush3.msra.mxu0 %v38279_v50 }
 0x5c6   : > { %v32937_v5 = vpop.f32.mrf.mxu1  ;;  %33042 = vmatpush3.msra.mxu1 %v38279_v50  ;;  %33032 = vmatprep.subr.mxu0 %v42324_v14  ;;  %v29781_v4 = vmul.f32 -1.442695, %v38306_v7 }
 0x5c7   : > { %v35539_v35 = vpop.eup %35538  ;;  %33043 = vmatprep.subr.mxu1 %v42324_v14  ;;  %33033 = vmatpush3.msra.mxu0 %v38292_v26 }
 0x5c8   : > { %v35541_v45 = vpop.eup %35540  ;;  %33034 = vmatprep.mubr.msk.f32.mxu0 %vm36022_vm3, %v42324_v14  ;;  %33044 = vmatpush3.msra.mxu1 %v38292_v26  ;;  %v10475_v30 = vmul.f32 %v37835_v19, %v35539_v35 }
 0x5c9   : > { %33045 = vmatprep.mubr.msk.f32.mxu1 %vm36022_vm3, %v42324_v14  ;;  %v10476_v21 = vmul.f32 %v37840_v6, %v35541_v45  ;;  %33048 = vmatprep.subr.mxu0 %v42324_v14 }
 0x5ca   : > { %33035 = vmatmul.mubr.msk.f32.vlgmr.msra.gmra.mxu0 %vm780_vm0, %v10475_v30  ;;  %33059 = vmatprep.subr.mxu1 %v42324_v14 }
 0x5cb   : > { %v35543_v34 = vpop.eup %35542  ;;  %33046 = vmatmul.mubr.msk.f32.vlgmr.msra.gmra.mxu1 %vm780_vm0, %v10476_v21  ;;  %33049 = vmatpush3.msra.mxu0 %v38261_v3 }
 0x5cc   : > { %v35545_v62 = vpop.eup %35544  ;;  %v10455_v9 = vadd.f32 1.0, %v35543_v34  ;;  %33060 = vmatpush3.msra.mxu1 %v38261_v3  ;;  %33050 = vmatprep.subr.mxu0 %v42324_v14 }
 0x5cd   : > { %v10456_v19 = vadd.f32 1.0, %v35545_v62  ;;  %v38345_v57 = vpop.f32.mrf.mxu0  ;;  %33061 = vmatprep.subr.mxu1 %v42324_v14  ;;  %33051 = vmatpush3.msra.mxu0 %v38270_v51 }
 0x5ce   : > { %35550 = vrcp.f32 %v10455_v9  ;;  %v38349_v6 = vpop.f32.mrf.mxu1  ;;  %33062 = vmatpush3.msra.mxu1 %v38270_v51  ;;  %33052 = vmatprep.subr.mxu0 %v42324_v14 }
 0x5cf   : > { %35552 = vrcp.f32 %v10456_v19  ;;  %v32948_v1 = vpop.f32.mrf.mxu0  ;;  %33063 = vmatprep.subr.mxu1 %v42324_v14  ;;  %33053 = vmatpush3.msra.mxu0 %v38279_v50 }
 0x5d0   : > { %v32959_v61 = vpop.f32.mrf.mxu1  ;;  %33064 = vmatpush3.msra.mxu1 %v38279_v50  ;;  %33054 = vmatprep.subr.mxu0 %v42324_v14  ;;  %35554 = vpow2.f32 %v29775_v29 }
 0x5d1   : > { %v35547_v23 = vpop.eup %35546  ;;  %33065 = vmatprep.subr.mxu1 %v42324_v14  ;;  %33055 = vmatpush3.msra.mxu0 %v38292_v26 }
 0x5d2   : > { %v35549_v39 = vpop.eup %35548  ;;  %33056 = vmatprep.mubr.msk.f32.mxu0 %vm36022_vm3, %v42324_v14  ;;  %33066 = vmatpush3.msra.mxu1 %v38292_v26  ;;  %v10477_v18 = vmul.f32 %v37865_v8, %v35547_v23 }
 0x5d3   : > { %33067 = vmatprep.mubr.msk.f32.mxu1 %vm36022_vm3, %v42324_v14  ;;  %v10478_v15 = vmul.f32 %v37870_v20, %v35549_v39  ;;  %33070 = vmatprep.subr.mxu0 %v42324_v14  ;;  %v35838_v39 = vld [vmem:[%s36543_s1] sm:$0xff] }
 0x5d4   : > { %33057 = vmatmul.mubr.msk.f32.vlgmr.msra.gmra.mxu0 %vm780_vm0, %v10477_v18  ;;  %33081 = vmatprep.subr.mxu1 %v42324_v14 }
 0x5d5   : > { %33068 = vmatmul.mubr.msk.f32.vlgmr.msra.gmra.mxu1 %vm780_vm0, %v10478_v15  ;;  %33071 = vmatpush3.msra.mxu0 %v38261_v3 }
 0x5d6   : > { %33082 = vmatpush3.msra.mxu1 %v38261_v3  ;;  %33072 = vmatprep.subr.mxu0 %v42324_v14 }
 0x5d7   : > { %v38373_v8 = vpop.f32.mrf.mxu0  ;;  %33083 = vmatprep.subr.mxu1 %v42324_v14  ;;  %33073 = vmatpush3.msra.mxu0 %v38270_v51 }
 0x5d8   : > { %v38377_v20 = vpop.f32.mrf.mxu1  ;;  %33084 = vmatpush3.msra.mxu1 %v38270_v51  ;;  %33074 = vmatprep.subr.mxu0 %v42324_v14 }
 0x5d9   : > { %v32970_v52 = vpop.f32.mrf.mxu0  ;;  %33085 = vmatprep.subr.mxu1 %v42324_v14  ;;  %33075 = vmatpush3.msra.mxu0 %v38279_v50 }
 0x5da   : > { %v32981_v3 = vpop.f32.mrf.mxu1  ;;  %33086 = vmatpush3.msra.mxu1 %v38279_v50  ;;  %33076 = vmatprep.subr.mxu0 %v42324_v14 }
 0x5db   : > { %v35551_v12 = vpop.eup %35550  ;;  %33087 = vmatprep.subr.mxu1 %v42324_v14  ;;  %33077 = vmatpush3.msra.mxu0 %v38292_v26 }
 0x5dc   : > { %v35553_v24 = vpop.eup %35552  ;;  %33078 = vmatprep.mubr.msk.f32.mxu0 %vm36022_vm3, %v42324_v14  ;;  %33088 = vmatpush3.msra.mxu1 %v38292_v26  ;;  %v10479_v51 = vmul.f32 %v37900_v58, %v35551_v12 }
 0x5dd   : > { %33089 = vmatprep.mubr.msk.f32.mxu1 %vm36022_vm3, %v42324_v14  ;;  %v10480_v50 = vmul.f32 %v37905_v16, %v35553_v24  ;;  %v29776_v16 = vmul.f32 -1.442695, %v38285_v42  ;;  %v35555_v38 = vpop.eup %35554 }
 0x5de   : > { %33079 = vmatmul.mubr.msk.f32.vlgmr.msra.gmra.mxu0 %vm780_vm0, %v10479_v51  ;;  %v9281_v40 = vadd.f32 1.0, %v35555_v38 }
 0x5df   : > { %33090 = vmatmul.mubr.msk.f32.vlgmr.msra.gmra.mxu1 %vm780_vm0, %v10480_v50  ;;  %33094 = vmatprep.mubr.msk.f32.mxu0 %vm2890_vm4, %v42371_v25  ;;  %35556 = vpow2.f32 %v29776_v16 }
 0x5e0   : > { %33099 = vmatprep.mubr.msk.f32.mxu1 %vm2890_vm4, %v42372_v28  ;;  %35558 = vpow2.f32 %v29777_v17 }
 0x5e1   : > { %v38400_v31 = vpop.f32.mrf.mxu0  ;;  %35560 = vpow2.f32 %v29778_v41 }
 0x5e2   : > { %v38402_v26 = vpop.f32.mrf.mxu1  ;;  %35562 = vrcp.f32 %v9281_v40 }
 0x5e3   : > { %v32992_v58 = vpop.f32.mrf.mxu0 }
 0x5e4   : > { %v33003_v36 = vpop.f32.mrf.mxu1 }
 0x5ec   : > { %v35557_v0 = vpop.eup %35556 }
 0x5ed   : > { %v9282_v2 = vadd.f32 1.0, %v35557_v0  ;;  %v35559_v55 = vpop.eup %35558 }
 0x5ee   : > { %v35561_v42 = vpop.eup %35560  ;;  %v9283_v27 = vadd.f32 1.0, %v35559_v55  ;;  %v42376_v55 = vld [vmem:[#allocation14_spill] sm:$0xff] }
 0x5ef   : > { %35564 = vrcp.f32 %v9282_v2  ;;  %v9284_v37 = vadd.f32 1.0, %v35561_v42  ;;  %v35563_v5 = vpop.eup %35562  ;;  %v42373_v2 = vld [vmem:[#allocation15_spill] sm:$0xff] }
 0x5f0   : > { %35566 = vpow2.f32 %v29779_v56  ;;  %v11633_v62 = vsub.f32 1.0, %v35563_v5 }
 0x5f1   : > { %35568 = vpow2.f32 %v29780_v43  ;;  %v42375_v43 = vld [vmem:[#allocation13_spill] sm:$0xff] }
 0x5f2   : > { %v11641_v18 = vmul.f32 %v35838_v39, %v11633_v62  ;;  %v42378_v62 = vld [vmem:[#allocation18_spill] sm:$0xff] }
 0x5f3   : > { %v35843_v39 = vld [vmem:[%s36543_s1 + $0x28] sm:$0xff] }
 0x5fc   : > { %v35565_v35 = vpop.eup %35564 }
 0x5fd   : > { %v35567_v45 = vpop.eup %35566  ;;  %v11634_v19 = vsub.f32 1.0, %v35565_v35 }
 0x5fe   : > { %v35569_v30 = vpop.eup %35568  ;;  %v9285_v53 = vadd.f32 1.0, %v35567_v45 }
 0x5ff   : > { %v9286_v1 = vadd.f32 1.0, %v35569_v30 }
 0x680   : > { %v11110_v13 = vpop.f32.mrf.mxu0 }
 0x681   : > { %v11111_v33 = vadd.f32 %v11110_v13, %v38317_v10  ;;  %v11183_v54 = vpop.f32.mrf.mxu1 }
 0x682   : > { %v11184_v11 = vadd.f32 %v11183_v54, %v38321_v22  ;;  %v33014_v63 = vpop.f32.mrf.mxu0 }
 0x683   : > { %35570 = vtanh.f32 %v11111_v33  ;;  %v33025_v44 = vpop.f32.mrf.mxu1 }
 0x684   : > { %35572 = vtanh.f32 %v11184_v11 }
 0x685   : > { %35574 = vrcp.f32 %v9283_v27  ;;  %v35840_v27 = vld [vmem:[%s36543_s1 + $0x10] sm:$0xff] }
 0x686   : > { %35576 = vrcp.f32 %v9284_v37  ;;  %v35841_v37 = vld [vmem:[%s36543_s1 + $0x18] sm:$0xff] }
 0x687   : > { %35578 = vpow2.f32 %v29781_v4 }
 0x688   : > { %35580 = vpow2.f32 %v29782_v32 }
 0x68a   : > { %v11256_v10 = vpop.f32.mrf.mxu0 }
 0x68b   : > { %v11257_v22 = vadd.f32 %v11256_v10, %v38345_v57  ;;  %v11329_v21 = vpop.f32.mrf.mxu1  ;;  %v35839_v57 = vld [vmem:[%s36543_s1 + $0x8] sm:$0xff] }
 0x68c   : > { %v11330_v7 = vadd.f32 %v11329_v21, %v38349_v6  ;;  %v33036_v34 = vpop.f32.mrf.mxu0  ;;  %v11642_v3 = vmul.f32 %v35839_v57, %v11634_v19 }
 0x68d   : > { %35582 = vtanh.f32 %v11257_v22  ;;  %v33047_v9 = vpop.f32.mrf.mxu1  ;;  %v42377_v34 = vld [vmem:[#allocation17_spill] sm:$0xff] }
 0x68e   : > { %35584 = vtanh.f32 %v11330_v7 }
 0x68f   : > { %35586 = vrcp.f32 %v9285_v53  ;;  %v42380_v53 = vld [vmem:[#allocation20_spill] sm:$0xff] }
 0x690   : > { %v35571_v61 = vpop.eup %35570  ;;  %35588 = vrcp.f32 %v9286_v1  ;;  %v35842_v1 = vld [vmem:[%s36543_s1 + $0x20] sm:$0xff] }
 0x691   : > { %v35573_v23 = vpop.eup %35572  ;;  %v11649_v15 = vmul.f32 %v35571_v61, %v35563_v5 }
 0x692   : > { %v35575_v52 = vpop.eup %35574  ;;  %v11650_v6 = vmul.f32 %v35573_v23, %v35565_v35 }
 0x693   : > { %v35577_v12 = vpop.eup %35576  ;;  %v38418_v24 = vadd.f32 %v11649_v15, %v11641_v18  ;;  %v11635_v38 = vsub.f32 1.0, %v35575_v52 }
 0x694   : > { %v35579_v51 = vpop.eup %35578  ;;  %v38420_v50 = vadd.f32 %v11650_v6, %v11642_v3  ;;  %v11402_v58 = vpop.f32.mrf.mxu0 }
 0x695   : > { %v35581_v36 = vpop.eup %35580  ;;  %v11403_v29 = vadd.f32 %v11402_v58, %v38373_v8  ;;  %v11475_v16 = vpop.f32.mrf.mxu1  ;;  %33092 = vmatprep.subr.mxu0 %v38418_v24  ;;  %v9287_v0 = vadd.f32 1.0, %v35579_v51  ;;  %v11636_v8 = vsub.f32 1.0, %v35577_v12  ;;  %v11643_v33 = vmul.f32 %v35840_v27, %v11635_v38  ;;  %v42382_v51 = vld [vmem:[#allocation23_spill] sm:$0xff] }
 0x696   : > { %v11476_v17 = vadd.f32 %v11475_v16, %v38377_v20  ;;  %v33058_v41 = vpop.f32.mrf.mxu0  ;;  %33097 = vmatprep.subr.mxu1 %v38420_v50  ;;  %33093 = vmatpush3.msra.mxu0 %v38418_v24  ;;  %v9288_v56 = vadd.f32 1.0, %v35581_v36  ;;  %v42374_v20 = vld [vmem:[#allocation16_spill] sm:$0xff]  ;;  %v42385_v16 = vld [vmem:[#allocation22_spill] sm:$0xff]  ;;  %v35844_v38 = vld [vmem:[%s36543_s1 + $0x30] sm:$0xff] }
 0x697   : > { %35590 = vtanh.f32 %v11403_v29  ;;  %v33069_v40 = vpop.f32.mrf.mxu1  ;;  %33098 = vmatpush3.msra.mxu1 %v38420_v50  ;;  %33095 = vmatmul.mubr.msk.f32.vlgmr.msra.gmra.mxu0 %vm2890_vm4, %v42373_v2  ;;  %v11644_v11 = vmul.f32 %v35841_v37, %v11636_v8  ;;  %v42383_v36 = vld [vmem:[#allocation24_spill] sm:$0xff]  ;;  %v42384_v29 = vld [vmem:[#allocation21_spill] sm:$0xff] }
 0x698   : > { %35592 = vtanh.f32 %v11476_v17  ;;  %33100 = vmatmul.mubr.msk.f32.vlgmr.msra.gmra.mxu1 %vm2890_vm4, %v42374_v20  ;;  %33104 = vmatprep.mubr.msk.f32.mxu0 %vm2890_vm4, %v42375_v43  ;;  %v35845_v8 = vld [vmem:[%s36543_s1 + $0x38] sm:$0xff] }
 0x699   : > { %33109 = vmatprep.mubr.msk.f32.mxu1 %vm2890_vm4, %v42376_v55  ;;  %35594 = vrcp.f32 %v9287_v0 }
 0x69a   : > { %v35583_v42 = vpop.eup %35582  ;;  %35596 = vrcp.f32 %v9288_v56 }
 0x69b   : > { %v35585_v13 = vpop.eup %35584  ;;  %v11651_v54 = vmul.f32 %v35583_v42, %v35575_v52 }
 0x69c   : > { %v11652_v63 = vmul.f32 %v35585_v13, %v35577_v12  ;;  %v35587_v44 = vpop.eup %35586 }
 0x69d   : > { %v38438_v4 = vadd.f32 %v11651_v54, %v11643_v33  ;;  %v35589_v35 = vpop.eup %35588  ;;  %v11637_v21 = vsub.f32 1.0, %v35587_v44  ;;  %v42388_v33 = vld [vmem:[#allocation25_spill] sm:$0xff]  ;;  %v42389_v54 = vld [vmem:[#allocation26_spill] sm:$0xff] }
 0x69e   : > { %v38440_v32 = vadd.f32 %v11652_v63, %v11644_v11  ;;  %v11548_v5 = vpop.f32.mrf.mxu0 }
 0x69f   : > { %v11549_v45 = vadd.f32 %v11548_v5, %v38400_v31  ;;  %v11621_v10 = vpop.f32.mrf.mxu1  ;;  %33102 = vmatprep.subr.mxu0 %v38438_v4  ;;  %v11638_v31 = vsub.f32 1.0, %v35589_v35  ;;  %v11645_v61 = vmul.f32 %v35842_v1, %v11637_v21  ;;  %v42392_v1 = vld [vmem:[#allocation49_spill] sm:$0xff] }
 0x6a0   : > { %v11622_v30 = vadd.f32 %v11621_v10, %v38402_v26  ;;  %v33080_v22 = vpop.f32.mrf.mxu0  ;;  %33107 = vmatprep.subr.mxu1 %v38440_v32  ;;  %33103 = vmatpush3.msra.mxu0 %v38438_v4  ;;  %v42379_v26 = vld [vmem:[#allocation19_spill] sm:$0xff] }
 0x6a1   : > { %35598 = vtanh.f32 %v11549_v45  ;;  %v33091_v7 = vpop.f32.mrf.mxu1  ;;  %33108 = vmatpush3.msra.mxu1 %v38440_v32  ;;  %33105 = vmatmul.mubr.msk.f32.vlgmr.msra.gmra.mxu0 %vm2890_vm4, %v42377_v34  ;;  %v11646_v18 = vmul.f32 %v35843_v39, %v11638_v31  ;;  %v42390_v22 = vld [vmem:[#allocation47_spill] sm:$0xff]  ;;  %v42391_v31 = vld [vmem:[#allocation48_spill] sm:$0xff]  ;;  %v42393_v39 = vld [vmem:[#allocation50_spill] sm:$0xff] }
 0x6a2   : > { %35600 = vtanh.f32 %v11622_v30  ;;  %33110 = vmatmul.mubr.msk.f32.vlgmr.msra.gmra.mxu1 %vm2890_vm4, %v42378_v62  ;;  %33114 = vmatprep.mubr.msk.f32.mxu0 %vm2890_vm4, %v42379_v26 }
 0x6a3   : > { %33119 = vmatprep.mubr.msk.f32.mxu1 %vm2890_vm4, %v42380_v53 }
 0x6a4   : > { %v35591_v9 = vpop.eup %35590 }
 0x6a5   : > { %v35593_v19 = vpop.eup %35592  ;;  %v11653_v23 = vmul.f32 %v35591_v9, %v35587_v44 }
 0x6a6   : > { %v11654_v15 = vmul.f32 %v35593_v19, %v35589_v35  ;;  %v35595_v57 = vpop.eup %35594 }
 0x6a7   : > { %v38458_v52 = vadd.f32 %v11653_v23, %v11645_v61  ;;  %v35597_v6 = vpop.eup %35596  ;;  %v11639_v12 = vsub.f32 1.0, %v35595_v57 }
 0x6a8   : > { %v38460_v3 = vadd.f32 %v11654_v15, %v11646_v18  ;;  %v11640_v58 = vsub.f32 1.0, %v35597_v6  ;;  %v42394_v15 = vld [vmem:[#allocation29_spill] sm:$0xff] }
 0x6a9   : > { %33112 = vmatprep.subr.mxu0 %v38458_v52  ;;  %v11647_v0 = vmul.f32 %v35844_v38, %v11639_v12  ;;  %v42396_v12 = vld [vmem:[#allocation51_spill] sm:$0xff] }
 0x6aa   : > { %42381 = vst [vmem:[#allocation91_spill] sm:$0xff] %v38460_v3  ;;  %33117 = vmatprep.subr.mxu1 %v38460_v3  ;;  %33113 = vmatpush3.msra.mxu0 %v38458_v52  ;;  %v11648_v56 = vmul.f32 %v35845_v8, %v11640_v58 }
 0x6ab   : > { %33118 = vmatpush3.msra.mxu1 %v38460_v3  ;;  %33115 = vmatmul.mubr.msk.f32.vlgmr.msra.gmra.mxu0 %vm2890_vm4, %v42382_v51 }
 0x6ac   : > { %33120 = vmatmul.mubr.msk.f32.vlgmr.msra.gmra.mxu1 %vm2890_vm4, %v42383_v36  ;;  %33124 = vmatprep.mubr.msk.f32.mxu0 %vm2890_vm4, %v42384_v29 }
 0x6ad   : > { %33129 = vmatprep.mubr.msk.f32.mxu1 %vm2890_vm4, %v42385_v16 }
 0x6ae   : > { %v35599_v17 = vpop.eup %35598 }
 0x6af   : > { %v35601_v41 = vpop.eup %35600  ;;  %v11655_v40 = vmul.f32 %v35599_v17, %v35595_v57  ;;  %v42395_v57 = vld [vmem:[#allocation30_spill] sm:$0xff] }
 0x6b0   : > { %v11656_v42 = vmul.f32 %v35601_v41, %v35597_v6  ;;  %v42397_v41 = vld [vmem:[#allocation52_spill] sm:$0xff] }
 0x6b1   : > { %v38476_v13 = vadd.f32 %v11655_v40, %v11647_v0  ;;  %v42398_v40 = vld [vmem:[#allocation53_spill] sm:$0xff] }
 0x6b2   : > { %v38478_v27 = vadd.f32 %v11656_v42, %v11648_v56  ;;  %v42399_v42 = vld [vmem:[#allocation54_spill] sm:$0xff] }
 0x6b3   : > { %42386 = vst [vmem:[#allocation92_spill] sm:$0xff] %v38476_v13  ;;  %33122 = vmatprep.subr.mxu0 %v38476_v13 }
 0x6b4   : > { %42387 = vst [vmem:[#allocation93_spill] sm:$0xff] %v38478_v27  ;;  %33127 = vmatprep.subr.mxu1 %v38478_v27  ;;  %33123 = vmatpush3.msra.mxu0 %v38476_v13 }
 0x6b5   : > { %33128 = vmatpush3.msra.mxu1 %v38478_v27  ;;  %33125 = vmatmul.mubr.msk.f32.vlgmr.msra.gmra.mxu0 %vm2890_vm4, %v42388_v33 }
 0x6b6   : > { %33130 = vmatmul.mubr.msk.f32.vlgmr.msra.gmra.mxu1 %vm2890_vm4, %v42389_v54  ;;  %33132 = vmatprep.subr.mxu0 %v42324_v14 }
 0x6b7   : > { %33139 = vmatprep.subr.mxu1 %v42324_v14  ;;  %33136 = vmatprep.mubr.msk.f32.mxu0 %vm36022_vm3, %v42324_v14 }
 0x6b8   : > { %33143 = vmatprep.mubr.msk.f32.mxu1 %vm36022_vm3, %v42324_v14 }
 0x757   : > { %v33096_v37 = vpop.f32.mrf.mxu0 }
 0x758   : > { %v11737_v11 = vadd.f32 %v33096_v37, %v36643_v46  ;;  %v33101_v63 = vpop.f32.mrf.mxu1 }
 0x759   : > { %v11812_v44 = vadd.f32 %v33101_v63, %v36645_v47  ;;  %v11731_v5 = vpop.f32.mrf.mxu0  ;;  %v42401_v63 = vld [vmem:[#allocation32_spill] sm:$0xff] }
 0x75a   : > { %v11732_v35 = vadd.f32 %v11731_v5, %v36647_v48  ;;  %v11806_v45 = vpop.f32.mrf.mxu1  ;;  %33133 = vmatpush3.msk.msra.mxu0 %vm1433_vm1, %v11737_v11  ;;  %v42400_v11 = vld [vmem:[#allocation31_spill] sm:$0xff] }
 0x75b   : > { %v11807_v10 = vadd.f32 %v11806_v45, %v36649_v49  ;;  %33140 = vmatpush3.msk.msra.mxu1 %vm1433_vm1, %v11812_v44  ;;  %33134 = vmatprep.subr.mxu0 %v42324_v14  ;;  %v42402_v5 = vld [vmem:[#allocation55_spill] sm:$0xff] }
 0x75c   : > { %33141 = vmatprep.subr.mxu1 %v42324_v14  ;;  %33135 = vmatpush3.msra.mxu0 %v11732_v35 }
 0x75d   : > { %33142 = vmatpush3.msra.mxu1 %v11807_v10  ;;  %33137 = vmatmul.mubr.msk.f32.vlgmr.msra.gmra.mxu0 %vm1429_vm2, %v36374_v59  ;;  %v42403_v10 = vld [vmem:[#allocation56_spill] sm:$0xff] }
 0x75e   : > { %33144 = vmatmul.mubr.msk.f32.vlgmr.msra.gmra.mxu1 %vm1429_vm2, %v36381_v60  ;;  %33146 = vmatprep.subr.mxu0 %v42324_v14 }
 0x75f   : > { %33153 = vmatprep.subr.mxu1 %v42324_v14  ;;  %33150 = vmatprep.mubr.msk.f32.mxu0 %vm36022_vm3, %v42324_v14 }
 0x760   : > { %33157 = vmatprep.mubr.msk.f32.mxu1 %vm36022_vm3, %v42324_v14 }
 0x761   : > { %v33106_v30 = vpop.f32.mrf.mxu0 }
 0x762   : > { %v11887_v21 = vadd.f32 %v33106_v30, %v42390_v22  ;;  %v33111_v7 = vpop.f32.mrf.mxu1 }
 0x763   : > { %v11962_v9 = vadd.f32 %v33111_v7, %v42391_v31  ;;  %v11881_v19 = vpop.f32.mrf.mxu0  ;;  %v42404_v7 = vld [vmem:[#allocation57_spill] sm:$0xff] }
 0x764   : > { %v11882_v61 = vadd.f32 %v11881_v19, %v42392_v1  ;;  %v11956_v23 = vpop.f32.mrf.mxu1  ;;  %33147 = vmatpush3.msk.msra.mxu0 %vm1433_vm1, %v11887_v21 }
 0x765   : > { %v11957_v18 = vadd.f32 %v11956_v23, %v42393_v39  ;;  %33154 = vmatpush3.msk.msra.mxu1 %vm1433_vm1, %v11962_v9  ;;  %33148 = vmatprep.subr.mxu0 %v42324_v14 }
 0x766   : > { %33155 = vmatprep.subr.mxu1 %v42324_v14  ;;  %33149 = vmatpush3.msra.mxu0 %v11882_v61  ;;  %v42405_v61 = vld [vmem:[#allocation58_spill] sm:$0xff] }
 0x767   : > { %33156 = vmatpush3.msra.mxu1 %v11957_v18  ;;  %33151 = vmatmul.mubr.msk.f32.vlgmr.msra.gmra.mxu0 %vm1429_vm2, %v42394_v15  ;;  %v42406_v18 = vld [vmem:[#allocation33_spill] sm:$0xff] }
 0x768   : > { %33158 = vmatmul.mubr.msk.f32.vlgmr.msra.gmra.mxu1 %vm1429_vm2, %v42395_v57  ;;  %33160 = vmatprep.subr.mxu0 %v42324_v14 }
 0x769   : > { %33167 = vmatprep.subr.mxu1 %v42324_v14  ;;  %33164 = vmatprep.mubr.msk.f32.mxu0 %vm36022_vm3, %v42324_v14 }
 0x76a   : > { %33171 = vmatprep.mubr.msk.f32.mxu1 %vm36022_vm3, %v42324_v14 }
 0x76b   : > { %v33116_v6 = vpop.f32.mrf.mxu0 }
 0x76c   : > { %v12037_v58 = vadd.f32 %v33116_v6, %v42396_v12  ;;  %v33121_v17 = vpop.f32.mrf.mxu1  ;;  %v42407_v6 = vld [vmem:[#allocation34_spill] sm:$0xff] }
 0x76d   : > { %v12112_v38 = vadd.f32 %v33121_v17, %v42397_v41  ;;  %v12031_v0 = vpop.f32.mrf.mxu0  ;;  %v42409_v17 = vld [vmem:[#allocation69_spill] sm:$0xff] }
 0x76e   : > { %v12032_v8 = vadd.f32 %v12031_v0, %v42398_v40  ;;  %v12106_v56 = vpop.f32.mrf.mxu1  ;;  %33161 = vmatpush3.msk.msra.mxu0 %vm1433_vm1, %v12037_v58  ;;  %v42408_v58 = vld [vmem:[#allocation70_spill] sm:$0xff]  ;;  %v42411_v0 = vld [vmem:[#allocation71_spill] sm:$0xff] }
 0x76f   : > { %v12107_v37 = vadd.f32 %v12106_v56, %v42399_v42  ;;  %33168 = vmatpush3.msk.msra.mxu1 %vm1433_vm1, %v12112_v38  ;;  %33162 = vmatprep.subr.mxu0 %v42324_v14  ;;  %v42410_v38 = vld [vmem:[#allocation72_spill] sm:$0xff]  ;;  %v42413_v56 = vld [vmem:[#allocation74_spill] sm:$0xff] }
 0x770   : > { %33169 = vmatprep.subr.mxu1 %v42324_v14  ;;  %33163 = vmatpush3.msra.mxu0 %v12032_v8  ;;  %v42412_v8 = vld [vmem:[#allocation73_spill] sm:$0xff] }
 0x771   : > { %33170 = vmatpush3.msra.mxu1 %v12107_v37  ;;  %33165 = vmatmul.mubr.msk.f32.vlgmr.msra.gmra.mxu0 %vm1429_vm2, %v42400_v11  ;;  %v42414_v37 = vld [vmem:[#allocation76_spill] sm:$0xff] }
 0x772   : > { %33172 = vmatmul.mubr.msk.f32.vlgmr.msra.gmra.mxu1 %vm1429_vm2, %v42401_v63  ;;  %33174 = vmatprep.subr.mxu0 %v42324_v14 }
 0x773   : > { %33181 = vmatprep.subr.mxu1 %v42324_v14  ;;  %33178 = vmatprep.mubr.msk.f32.mxu0 %vm36022_vm3, %v42324_v14 }
 0x774   : > { %33185 = vmatprep.mubr.msk.f32.mxu1 %vm36022_vm3, %v42324_v14 }
 0x775   : > { %v33126_v44 = vpop.f32.mrf.mxu0 }
 0x776   : > { %v12187_v35 = vadd.f32 %v33126_v44, %v42402_v5  ;;  %v33131_v45 = vpop.f32.mrf.mxu1  ;;  %v42415_v44 = vld [vmem:[#allocation75_spill] sm:$0xff] }
 0x777   : > { %v12262_v30 = vadd.f32 %v33131_v45, %v42403_v10  ;;  %v12181_v21 = vpop.f32.mrf.mxu0  ;;  %v42417_v45 = vld [vmem:[#allocation78_spill] sm:$0xff] }
 0x778   : > { %v12182_v9 = vadd.f32 %v12181_v21, %v42404_v7  ;;  %v12256_v19 = vpop.f32.mrf.mxu1  ;;  %33175 = vmatpush3.msk.msra.mxu0 %vm1433_vm1, %v12187_v35  ;;  %v42416_v35 = vld [vmem:[#allocation77_spill] sm:$0xff]  ;;  %v42419_v21 = vld [vmem:[#allocation79_spill] sm:$0xff] }
 0x779   : > { %v12257_v23 = vadd.f32 %v12256_v19, %v42405_v61  ;;  %33182 = vmatpush3.msk.msra.mxu1 %vm1433_vm1, %v12262_v30  ;;  %33176 = vmatprep.subr.mxu0 %v42324_v14  ;;  %v42418_v30 = vld [vmem:[#allocation80_spill] sm:$0xff]  ;;  %v42421_v19 = vld [vmem:[#allocation82_spill] sm:$0xff] }
 0x77a   : > { %33183 = vmatprep.subr.mxu1 %v42324_v14  ;;  %33177 = vmatpush3.msra.mxu0 %v12182_v9  ;;  %v42420_v9 = vld [vmem:[#allocation81_spill] sm:$0xff] }
 0x77b   : > { %33184 = vmatpush3.msra.mxu1 %v12257_v23  ;;  %33179 = vmatmul.mubr.msk.f32.vlgmr.msra.gmra.mxu0 %vm1429_vm2, %v42406_v18  ;;  %v42422_v23 = vld [vmem:[#allocation84_spill] sm:$0xff] }
 0x77c   : > { %33186 = vmatmul.mubr.msk.f32.vlgmr.msra.gmra.mxu1 %vm1429_vm2, %v42407_v6  ;;  %33188 = vmatprep.subr.mxu0 %v38418_v24 }
 0x77d   : > { %33193 = vmatprep.subr.mxu1 %v38420_v50  ;;  %33189 = vmatpush3.msra.mxu0 %v38418_v24 }
 0x77e   : > { %33190 = vmatprep.mubr.msk.f32.mxu0 %vm2890_vm4, %v42408_v58  ;;  %33194 = vmatpush3.msra.mxu1 %v38420_v50 }
 0x77f   : > { %33195 = vmatprep.mubr.msk.f32.mxu1 %vm2890_vm4, %v42409_v17  ;;  %33198 = vmatprep.subr.mxu0 %v38438_v4 }
 0x780   : > { %33203 = vmatprep.subr.mxu1 %v38440_v32  ;;  %33191 = vmatmul.mubr.msk.f32.vlgmr.msra.gmra.mxu0 %vm2890_vm4, %v42410_v38 }
 0x781   : > { %33196 = vmatmul.mubr.msk.f32.vlgmr.msra.gmra.mxu1 %vm2890_vm4, %v42411_v0  ;;  %33199 = vmatpush3.msra.mxu0 %v38438_v4 }
 0x782   : > { %33204 = vmatpush3.msra.mxu1 %v38440_v32  ;;  %33200 = vmatprep.mubr.msk.f32.mxu0 %vm2890_vm4, %v42412_v8 }
 0x783   : > { %33205 = vmatprep.mubr.msk.f32.mxu1 %vm2890_vm4, %v42413_v56  ;;  %33208 = vmatprep.subr.mxu0 %v38458_v52 }
 0x784   : > { %33213 = vmatprep.subr.mxu1 %v38460_v3  ;;  %33201 = vmatmul.mubr.msk.f32.vlgmr.msra.gmra.mxu0 %vm2890_vm4, %v42414_v37 }
 0x785   : > { %33206 = vmatmul.mubr.msk.f32.vlgmr.msra.gmra.mxu1 %vm2890_vm4, %v42415_v44  ;;  %33209 = vmatpush3.msra.mxu0 %v38458_v52 }
 0x786   : > { %33214 = vmatpush3.msra.mxu1 %v38460_v3  ;;  %33210 = vmatprep.mubr.msk.f32.mxu0 %vm2890_vm4, %v42416_v35 }
 0x787   : > { %33215 = vmatprep.mubr.msk.f32.mxu1 %vm2890_vm4, %v42417_v45  ;;  %33218 = vmatprep.subr.mxu0 %v38476_v13 }
 0x788   : > { %33223 = vmatprep.subr.mxu1 %v38478_v27  ;;  %33211 = vmatmul.mubr.msk.f32.vlgmr.msra.gmra.mxu0 %vm2890_vm4, %v42418_v30  ;;  %v42423_v30 = vld [vmem:[#allocation83_spill] sm:$0xff] }
 0x789   : > { %33216 = vmatmul.mubr.msk.f32.vlgmr.msra.gmra.mxu1 %vm2890_vm4, %v42419_v21  ;;  %33219 = vmatpush3.msra.mxu0 %v38476_v13 }
 0x78a   : > { %33224 = vmatpush3.msra.mxu1 %v38478_v27  ;;  %33220 = vmatprep.mubr.msk.f32.mxu0 %vm2890_vm4, %v42420_v9 }
 0x78b   : > { %33225 = vmatprep.mubr.msk.f32.mxu1 %vm2890_vm4, %v42421_v19  ;;  %33228 = vmatprep.subr.mxu0 %v42324_v14 }
 0x78c   : > { %33221 = vmatmul.mubr.msk.f32.vlgmr.msra.gmra.mxu0 %vm2890_vm4, %v42422_v23  ;;  %33235 = vmatprep.subr.mxu1 %v42324_v14 }
 0x78d   : > { %33226 = vmatmul.mubr.msk.f32.vlgmr.msra.gmra.mxu1 %vm2890_vm4, %v42423_v30  ;;  %33232 = vmatprep.mubr.msk.f32.mxu0 %vm36022_vm3, %v42324_v14 }
 0x78e   : > { %33239 = vmatprep.mubr.msk.f32.mxu1 %vm36022_vm3, %v42324_v14 }
 0x81d   : > { %v38614_v9 = vpop.f32.mrf.mxu0 }
 0x81e   : > { %v38616_v21 = vpop.f32.mrf.mxu1 }
 0x81f   : > { %v33138_v19 = vpop.f32.mrf.mxu0 }
 0x820   : > { %v33145_v45 = vpop.f32.mrf.mxu1 }
 0x827   : > { %v38618_v35 = vpop.f32.mrf.mxu0 }
 0x828   : > { %v38620_v23 = vpop.f32.mrf.mxu1 }
 0x829   : > { %v33152_v44 = vpop.f32.mrf.mxu0 }
 0x82a   : > { %v33159_v37 = vpop.f32.mrf.mxu1 }
 0x831   : > { %v38622_v56 = vpop.f32.mrf.mxu0 }
 0x832   : > { %v38624_v30 = vpop.f32.mrf.mxu1 }
 0x833   : > { %v33166_v8 = vpop.f32.mrf.mxu0 }
 0x834   : > { %v33173_v0 = vpop.f32.mrf.mxu1 }
 0x83b   : > { %v38626_v38 = vpop.f32.mrf.mxu0 }
 0x83c   : > { %v38628_v17 = vpop.f32.mrf.mxu1 }
 0x83d   : > { %v33180_v58 = vpop.f32.mrf.mxu0 }
 0x83e   : > { %v33187_v6 = vpop.f32.mrf.mxu1 }
 0x840   : > { %v33192_v19 = vpop.f32.mrf.mxu0 }
 0x841   : > { %v12929_v45 = vadd.f32 %v33192_v19, %v36643_v46  ;;  %v33197_v18 = vpop.f32.mrf.mxu1 }
 0x842   : > { %v13004_v63 = vadd.f32 %v33197_v18, %v36645_v47  ;;  %v12923_v44 = vpop.f32.mrf.mxu0 }
 0x843   : > { %v12924_v37 = vadd.f32 %v12923_v44, %v36647_v48  ;;  %v12998_v11 = vpop.f32.mrf.mxu1  ;;  %33229 = vmatpush3.msk.msra.mxu0 %vm1433_vm1, %v12929_v45  ;;  %v42424_v44 = vld [vmem:[#allocation36_spill] sm:$0xff] }
 0x844   : > { %v12999_v0 = vadd.f32 %v12998_v11, %v36649_v49  ;;  %33236 = vmatpush3.msk.msra.mxu1 %vm1433_vm1, %v13004_v63  ;;  %v33202_v8 = vpop.f32.mrf.mxu0  ;;  %33230 = vmatprep.subr.mxu0 %v42324_v14  ;;  %v42425_v63 = vld [vmem:[#allocation35_spill] sm:$0xff] }
 0x845   : > { %v13079_v6 = vadd.f32 %v33202_v8, %v42390_v22  ;;  %v33207_v58 = vpop.f32.mrf.mxu1  ;;  %33237 = vmatprep.subr.mxu1 %v42324_v14  ;;  %33231 = vmatpush3.msra.mxu0 %v12924_v37 }
 0x846   : > { %v13154_v18 = vadd.f32 %v33207_v58, %v42391_v31  ;;  %33238 = vmatpush3.msra.mxu1 %v12999_v0  ;;  %v13073_v19 = vpop.f32.mrf.mxu0  ;;  %33233 = vmatmul.mubr.msk.f32.vlgmr.msra.gmra.mxu0 %vm1429_vm2, %v42424_v44 }
 0x847   : > { %v13074_v11 = vadd.f32 %v13073_v19, %v42392_v1  ;;  %v13148_v45 = vpop.f32.mrf.mxu1  ;;  %33240 = vmatmul.mubr.msk.f32.vlgmr.msra.gmra.mxu1 %vm1429_vm2, %v42425_v63  ;;  %33242 = vmatprep.subr.mxu0 %v42324_v14 }
 0x848   : > { %v13149_v8 = vadd.f32 %v13148_v45, %v42393_v39  ;;  %33249 = vmatprep.subr.mxu1 %v42324_v14  ;;  %33243 = vmatpush3.msk.msra.mxu0 %vm1433_vm1, %v13079_v6  ;;  %v33212_v37 = vpop.f32.mrf.mxu0 }
 0x849   : > { %33250 = vmatpush3.msk.msra.mxu1 %vm1433_vm1, %v13154_v18  ;;  %v33217_v0 = vpop.f32.mrf.mxu1  ;;  %33244 = vmatprep.subr.mxu0 %v42324_v14  ;;  %v13229_v58 = vadd.f32 %v33212_v37, %v42396_v12  ;;  %v42426_v18 = vld [vmem:[#allocation38_spill] sm:$0xff] }
 0x84a   : > { %33251 = vmatprep.subr.mxu1 %v42324_v14  ;;  %33245 = vmatpush3.msra.mxu0 %v13074_v11  ;;  %v13223_v19 = vpop.f32.mrf.mxu0  ;;  %v13304_v63 = vadd.f32 %v33217_v0, %v42397_v41  ;;  %v42427_v11 = vld [vmem:[#allocation37_spill] sm:$0xff] }
 0x84b   : > { %33246 = vmatprep.mubr.msk.f32.mxu0 %vm36022_vm3, %v42324_v14  ;;  %33252 = vmatpush3.msra.mxu1 %v13149_v8  ;;  %v13298_v45 = vpop.f32.mrf.mxu1  ;;  %v13224_v6 = vadd.f32 %v13223_v19, %v42398_v40 }
 0x84c   : > { %33253 = vmatprep.mubr.msk.f32.mxu1 %vm36022_vm3, %v42324_v14  ;;  %33247 = vmatmul.mubr.msk.f32.vlgmr.msra.gmra.mxu0 %vm1429_vm2, %v42426_v18  ;;  %v33222_v37 = vpop.f32.mrf.mxu0  ;;  %v13299_v44 = vadd.f32 %v13298_v45, %v42399_v42  ;;  %v42429_v18 = vld [vmem:[#allocation39_spill] sm:$0xff] }
 0x84d   : > { %33254 = vmatmul.mubr.msk.f32.vlgmr.msra.gmra.mxu1 %vm1429_vm2, %v42427_v11  ;;  %33256 = vmatprep.subr.mxu0 %v42324_v14  ;;  %v33227_v0 = vpop.f32.mrf.mxu1  ;;  %v13379_v19 = vadd.f32 %v33222_v37, %v42402_v5 }
 0x84e   : > { %33263 = vmatprep.subr.mxu1 %v42324_v14  ;;  %33257 = vmatpush3.msk.msra.mxu0 %vm1433_vm1, %v13229_v58  ;;  %v13373_v8 = vpop.f32.mrf.mxu0  ;;  %v13454_v11 = vadd.f32 %v33227_v0, %v42403_v10  ;;  %v42428_v58 = vld [vmem:[#allocation40_spill] sm:$0xff]  ;;  %v12335_v0 = vadd.f32 %v38614_v9, %v38418_v24  ;;  %v38723_v9 = vld [vmem:[%s42055_s12 + $0x8] sm:$0xff] }
 0x84f   : > { %33264 = vmatpush3.msk.msra.mxu1 %vm1433_vm1, %v13304_v63  ;;  %33258 = vmatprep.subr.mxu0 %v42324_v14  ;;  %v13448_v45 = vpop.f32.mrf.mxu1  ;;  %v13374_v63 = vadd.f32 %v13373_v8, %v42404_v7  ;;  %v38712_v8 = vld [vmem:[%s42055_s12 + $0x10] sm:$0xff]  ;;  %v42441_v7 = vld [vmem:[#allocation64_spill] sm:$0xff] }
 0x850   : > { %33265 = vmatprep.subr.mxu1 %v42324_v14  ;;  %33259 = vmatpush3.msra.mxu0 %v13224_v6  ;;  %v13449_v37 = vadd.f32 %v13448_v45, %v42405_v61  ;;  %v42431_v6 = vld [vmem:[#allocation41_spill] sm:$0xff] }
 0x851   : > { %33260 = vmatprep.mubr.msk.f32.mxu0 %vm36022_vm3, %v42324_v14  ;;  %33266 = vmatpush3.msra.mxu1 %v13299_v44  ;;  %v42430_v44 = vld [vmem:[#allocation42_spill] sm:$0xff]  ;;  %v42432_v45 = vld [vmem:[#allocation85_spill] sm:$0xff] }
 0x852   : > { %33267 = vmatprep.mubr.msk.f32.mxu1 %vm36022_vm3, %v42324_v14  ;;  %33261 = vmatmul.mubr.msk.f32.vlgmr.msra.gmra.mxu0 %vm1429_vm2, %v42428_v58 }
 0x853   : > { %33268 = vmatmul.mubr.msk.f32.vlgmr.msra.gmra.mxu1 %vm1429_vm2, %v42429_v18  ;;  %33270 = vmatprep.subr.mxu0 %v42324_v14  ;;  %v42440_v18 = vld [vmem:[#allocation63_spill] sm:$0xff] }
 0x854   : > { %33277 = vmatprep.subr.mxu1 %v42324_v14  ;;  %33271 = vmatpush3.msk.msra.mxu0 %vm1433_vm1, %v13379_v19  ;;  %v12408_v19 = vadd.f32 %v38616_v21, %v38420_v50  ;;  %v38735_v21 = vld [vmem:[%s42055_s12] sm:$0xff] }
 0x855   : > { %33278 = vmatpush3.msk.msra.mxu1 %vm1433_vm1, %v13454_v11  ;;  %33272 = vmatprep.subr.mxu0 %v42324_v14  ;;  %v38701_v11 = vld [vmem:[%s42055_s12 + $0x18] sm:$0xff] }
 0x856   : > { %33279 = vmatprep.subr.mxu1 %v42324_v14  ;;  %33273 = vmatpush3.msra.mxu0 %v13374_v63  ;;  %v38729_v63 = vmul.f32 %v42432_v45, %v12335_v0  ;;  %v12481_v0 = vadd.f32 %v38618_v35, %v38438_v4  ;;  %v42434_v35 = vld [vmem:[#allocation59_spill] sm:$0xff] }
 0x857   : > { %33274 = vmatprep.mubr.msk.f32.mxu0 %vm36022_vm3, %v42324_v14  ;;  %33280 = vmatpush3.msra.mxu1 %v13449_v37  ;;  %v42433_v37 = vld [vmem:[#allocation86_spill] sm:$0xff] }
 0x858   : > { %33281 = vmatprep.mubr.msk.f32.mxu1 %vm36022_vm3, %v42324_v14  ;;  %33275 = vmatmul.mubr.msk.f32.vlgmr.msra.gmra.mxu0 %vm1429_vm2, %v42430_v44 }
 0x859   : > { %33282 = vmatmul.mubr.msk.f32.vlgmr.msra.gmra.mxu1 %vm1429_vm2, %v42431_v6  ;;  %33284 = vmatprep.subr.mxu0 %v42324_v14  ;;  %v38739_v6 = vmul.f32 %v42433_v37, %v12408_v19  ;;  %v12554_v19 = vadd.f32 %v38620_v23, %v38440_v32  ;;  %v38768_v37 = vmul.f32 %v42434_v35, %v12481_v0  ;;  %v42435_v23 = vld [vmem:[#allocation60_spill] sm:$0xff] }
 0x85a   : > { %33295 = vmatprep.subr.mxu1 %v42324_v14  ;;  %33285 = vmatpush3.msra.mxu0 %v38701_v11  ;;  %v12627_v0 = vadd.f32 %v38622_v56, %v38458_v52  ;;  %v42436_v56 = vld [vmem:[#allocation61_spill] sm:$0xff] }
 0x85b   : > { %33296 = vmatpush3.msra.mxu1 %v38701_v11  ;;  %33286 = vmatprep.subr.mxu0 %v42324_v14  ;;  %v38773_v45 = vmul.f32 %v42435_v23, %v12554_v19  ;;  %v12700_v19 = vadd.f32 %v38624_v30, %v38460_v3  ;;  %v42437_v30 = vld [vmem:[#allocation62_spill] sm:$0xff] }
 0x85c   : > { %33297 = vmatprep.subr.mxu1 %v42324_v14  ;;  %33287 = vmatpush3.msra.mxu0 %v38712_v8  ;;  %v38802_v23 = vmul.f32 %v42436_v56, %v12627_v0  ;;  %v12773_v0 = vadd.f32 %v38626_v38, %v38476_v13  ;;  %v42438_v38 = vld [vmem:[#allocation87_spill] sm:$0xff] }
 0x85d   : > { %33298 = vmatpush3.msra.mxu1 %v38712_v8  ;;  %33288 = vmatprep.subr.mxu0 %v42324_v14  ;;  %v38807_v35 = vmul.f32 %v42437_v30, %v12700_v19  ;;  %v12846_v19 = vadd.f32 %v38628_v17, %v38478_v27  ;;  %v42439_v17 = vld [vmem:[#allocation88_spill] sm:$0xff] }
 0x85e   : > { %33299 = vmatprep.subr.mxu1 %v42324_v14  ;;  %33289 = vmatpush3.msra.mxu0 %v38723_v9 }
 0x85f   : > { %33300 = vmatpush3.msra.mxu1 %v38723_v9  ;;  %33290 = vmatprep.subr.mxu0 %v42324_v14  ;;  %v38841_v30 = vmul.f32 %v42439_v17, %v12846_v19 }
 0x860   : > { %33301 = vmatprep.subr.mxu1 %v42324_v14  ;;  %33291 = vmatpush3.msra.mxu0 %v38735_v21 }
 0x861   : > { %33292 = vmatprep.mubr.msk.f32.mxu0 %vm36022_vm3, %v42324_v14  ;;  %33302 = vmatpush3.msra.mxu1 %v38735_v21 }
 0x862   : > { %33303 = vmatprep.mubr.msk.f32.mxu1 %vm36022_vm3, %v42324_v14  ;;  %33293 = vmatmul.mubr.msk.f32.vlgmr.msra.gmra.mxu0 %vm780_vm0, %v38729_v63 }
 0x863   : > { %33304 = vmatmul.mubr.msk.f32.vlgmr.msra.gmra.mxu1 %vm780_vm0, %v38739_v6  ;;  %33306 = vmatprep.subr.mxu0 %v42324_v14 }
 0x864   : > { %33317 = vmatprep.subr.mxu1 %v42324_v14  ;;  %33307 = vmatpush3.msra.mxu0 %v38701_v11 }
 0x865   : > { %33318 = vmatpush3.msra.mxu1 %v38701_v11  ;;  %33308 = vmatprep.subr.mxu0 %v42324_v14 }
 0x866   : > { %33319 = vmatprep.subr.mxu1 %v42324_v14  ;;  %33309 = vmatpush3.msra.mxu0 %v38712_v8 }
 0x867   : > { %33320 = vmatpush3.msra.mxu1 %v38712_v8  ;;  %33310 = vmatprep.subr.mxu0 %v42324_v14 }
 0x868   : > { %33321 = vmatprep.subr.mxu1 %v42324_v14  ;;  %33311 = vmatpush3.msra.mxu0 %v38723_v9 }
 0x869   : > { %33322 = vmatpush3.msra.mxu1 %v38723_v9  ;;  %33312 = vmatprep.subr.mxu0 %v42324_v14 }
 0x86a   : > { %33323 = vmatprep.subr.mxu1 %v42324_v14  ;;  %33313 = vmatpush3.msra.mxu0 %v38735_v21 }
 0x86b   : > { %33314 = vmatprep.mubr.msk.f32.mxu0 %vm36022_vm3, %v42324_v14  ;;  %33324 = vmatpush3.msra.mxu1 %v38735_v21 }
 0x86c   : > { %33325 = vmatprep.mubr.msk.f32.mxu1 %vm36022_vm3, %v42324_v14  ;;  %33315 = vmatmul.mubr.msk.f32.vlgmr.msra.gmra.mxu0 %vm780_vm0, %v38768_v37 }
 0x86d   : > { %33326 = vmatmul.mubr.msk.f32.vlgmr.msra.gmra.mxu1 %vm780_vm0, %v38773_v45  ;;  %33328 = vmatprep.subr.mxu0 %v42324_v14 }
 0x86e   : > { %33339 = vmatprep.subr.mxu1 %v42324_v14  ;;  %33329 = vmatpush3.msra.mxu0 %v38701_v11 }
 0x86f   : > { %33340 = vmatpush3.msra.mxu1 %v38701_v11  ;;  %33330 = vmatprep.subr.mxu0 %v42324_v14 }
 0x870   : > { %33341 = vmatprep.subr.mxu1 %v42324_v14  ;;  %33331 = vmatpush3.msra.mxu0 %v38712_v8 }
 0x871   : > { %33342 = vmatpush3.msra.mxu1 %v38712_v8  ;;  %33332 = vmatprep.subr.mxu0 %v42324_v14 }
 0x872   : > { %33343 = vmatprep.subr.mxu1 %v42324_v14  ;;  %33333 = vmatpush3.msra.mxu0 %v38723_v9 }
 0x873   : > { %33344 = vmatpush3.msra.mxu1 %v38723_v9  ;;  %33334 = vmatprep.subr.mxu0 %v42324_v14 }
 0x874   : > { %33345 = vmatprep.subr.mxu1 %v42324_v14  ;;  %33335 = vmatpush3.msra.mxu0 %v38735_v21 }
 0x875   : > { %33336 = vmatprep.mubr.msk.f32.mxu0 %vm36022_vm3, %v42324_v14  ;;  %33346 = vmatpush3.msra.mxu1 %v38735_v21 }
 0x876   : > { %33347 = vmatprep.mubr.msk.f32.mxu1 %vm36022_vm3, %v42324_v14  ;;  %33337 = vmatmul.mubr.msk.f32.vlgmr.msra.gmra.mxu0 %vm780_vm0, %v38802_v23 }
 0x877   : > { %33348 = vmatmul.mubr.msk.f32.vlgmr.msra.gmra.mxu1 %vm780_vm0, %v38807_v35  ;;  %33350 = vmatprep.subr.mxu0 %v42324_v14 }
 0x878   : > { %33361 = vmatprep.subr.mxu1 %v42324_v14  ;;  %33351 = vmatpush3.msra.mxu0 %v38701_v11 }
 0x879   : > { %33362 = vmatpush3.msra.mxu1 %v38701_v11  ;;  %33352 = vmatprep.subr.mxu0 %v42324_v14  ;;  %v38836_v11 = vmul.f32 %v42438_v38, %v12773_v0  ;;  %v38884_v0 = vld [vmem:[%s42054_s11] sm:$0xff] }
 0x87a   : > { %33363 = vmatprep.subr.mxu1 %v42324_v14  ;;  %33353 = vmatpush3.msra.mxu0 %v38712_v8 }
 0x87b   : > { %33364 = vmatpush3.msra.mxu1 %v38712_v8  ;;  %33354 = vmatprep.subr.mxu0 %v42324_v14  ;;  %v38857_v8 = vld [vmem:[%s42054_s11 + $0x18] sm:$0xff] }
 0x87c   : > { %33365 = vmatprep.subr.mxu1 %v42324_v14  ;;  %33355 = vmatpush3.msra.mxu0 %v38723_v9 }
 0x87d   : > { %33366 = vmatpush3.msra.mxu1 %v38723_v9  ;;  %33356 = vmatprep.subr.mxu0 %v42324_v14  ;;  %v38866_v9 = vld [vmem:[%s42054_s11 + $0x10] sm:$0xff] }
 0x87e   : > { %33367 = vmatprep.subr.mxu1 %v42324_v14  ;;  %33357 = vmatpush3.msra.mxu0 %v38735_v21 }
 0x87f   : > { %33358 = vmatprep.mubr.msk.f32.mxu0 %vm36022_vm3, %v42324_v14  ;;  %33368 = vmatpush3.msra.mxu1 %v38735_v21  ;;  %v38875_v21 = vld [vmem:[%s42054_s11 + $0x8] sm:$0xff] }
 0x880   : > { %33369 = vmatprep.mubr.msk.f32.mxu1 %vm36022_vm3, %v42324_v14  ;;  %33359 = vmatmul.mubr.msk.f32.vlgmr.msra.gmra.mxu0 %vm780_vm0, %v38836_v11 }
 0x881   : > { %33370 = vmatmul.mubr.msk.f32.vlgmr.msra.gmra.mxu1 %vm780_vm0, %v38841_v30  ;;  %33372 = vmatprep.subr.mxu0 %v42324_v14 }
 0x882   : > { %33383 = vmatprep.subr.mxu1 %v42324_v14  ;;  %33373 = vmatpush3.msra.mxu0 %v38857_v8 }
 0x883   : > { %33384 = vmatpush3.msra.mxu1 %v38857_v8  ;;  %33374 = vmatprep.subr.mxu0 %v42324_v14 }
 0x884   : > { %33385 = vmatprep.subr.mxu1 %v42324_v14  ;;  %33375 = vmatpush3.msra.mxu0 %v38866_v9 }
 0x885   : > { %33386 = vmatpush3.msra.mxu1 %v38866_v9  ;;  %33376 = vmatprep.subr.mxu0 %v42324_v14 }
 0x886   : > { %33387 = vmatprep.subr.mxu1 %v42324_v14  ;;  %33377 = vmatpush3.msra.mxu0 %v38875_v21 }
 0x887   : > { %33388 = vmatpush3.msra.mxu1 %v38875_v21  ;;  %33378 = vmatprep.subr.mxu0 %v42324_v14 }
 0x888   : > { %33389 = vmatprep.subr.mxu1 %v42324_v14  ;;  %33379 = vmatpush3.msra.mxu0 %v38884_v0 }
 0x889   : > { %33390 = vmatpush3.msra.mxu1 %v38884_v0  ;;  %33380 = vmatprep.mubr.msk.f32.mxu0 %vm36022_vm3, %v42324_v14 }
 0x88a   : > { %33391 = vmatprep.mubr.msk.f32.mxu1 %vm36022_vm3, %v42324_v14  ;;  %33394 = vmatprep.subr.mxu0 %v42324_v14 }
 0x88b   : > { %33405 = vmatprep.subr.mxu1 %v42324_v14 }
 0x906   : > { %v13526_v19 = vpop.f32.mrf.mxu0 }
 0x907   : > { %v13527_v17 = vadd.f32 %v13526_v19, %v38418_v24  ;;  %v13599_v38 = vpop.f32.mrf.mxu1 }
 0x908   : > { %v13600_v56 = vadd.f32 %v13599_v38, %v38420_v50  ;;  %v33234_v44 = vpop.f32.mrf.mxu0 }
 0x909   : > { %v38897_v58 = vmul.f32 %v42440_v18, %v13527_v17  ;;  %v33241_v61 = vpop.f32.mrf.mxu1 }
 0x90a   : > { %v38900_v10 = vmul.f32 %v42441_v7, %v13600_v56 }
 0x90b   : > { %33381 = vmatmul.mubr.msk.f32.vlgmr.msra.gmra.mxu0 %vm780_vm0, %v38897_v58 }
 0x90c   : > { %v13672_v5 = vpop.f32.mrf.mxu0  ;;  %33392 = vmatmul.mubr.msk.f32.vlgmr.msra.gmra.mxu1 %vm780_vm0, %v38900_v10  ;;  %33395 = vmatpush3.msra.mxu0 %v38857_v8  ;;  %v15218_v12 = vmul.f32 %v38900_v10, %v38739_v6 }
 0x90d   : > { %v13745_v19 = vpop.f32.mrf.mxu1  ;;  %33406 = vmatpush3.msra.mxu1 %v38857_v8  ;;  %33396 = vmatprep.subr.mxu0 %v42324_v14  ;;  %v13673_v44 = vadd.f32 %v13672_v5, %v38438_v4  ;;  %v42442_v5 = vld [vmem:[#allocation65_spill] sm:$0xff] }
 0x90e   : > { %v33248_v61 = vpop.f32.mrf.mxu0  ;;  %33407 = vmatprep.subr.mxu1 %v42324_v14  ;;  %33397 = vmatpush3.msra.mxu0 %v38866_v9  ;;  %v13746_v56 = vadd.f32 %v13745_v19, %v38440_v32  ;;  %v42443_v19 = vld [vmem:[#allocation66_spill] sm:$0xff] }
 0x90f   : > { %v33255_v38 = vpop.f32.mrf.mxu1  ;;  %33408 = vmatpush3.msra.mxu1 %v38866_v9  ;;  %33398 = vmatprep.subr.mxu0 %v42324_v14  ;;  %v38920_v17 = vmul.f32 %v42442_v5, %v13673_v44 }
 0x910   : > { %33409 = vmatprep.subr.mxu1 %v42324_v14  ;;  %33399 = vmatpush3.msra.mxu0 %v38875_v21  ;;  %v38925_v38 = vmul.f32 %v42443_v19, %v13746_v56 }
 0x911   : > { %33410 = vmatpush3.msra.mxu1 %v38875_v21  ;;  %33400 = vmatprep.subr.mxu0 %v42324_v14  ;;  %v15219_v15 = vmul.f32 %v38920_v17, %v38768_v37 }
 0x912   : > { %v13818_v61 = vpop.f32.mrf.mxu0  ;;  %33411 = vmatprep.subr.mxu1 %v42324_v14  ;;  %33401 = vmatpush3.msra.mxu0 %v38884_v0  ;;  %v15220_v39 = vmul.f32 %v38925_v38, %v38773_v45 }
 0x913   : > { %v13891_v7 = vpop.f32.mrf.mxu1  ;;  %33402 = vmatprep.mubr.msk.f32.mxu0 %vm36022_vm3, %v42324_v14  ;;  %33412 = vmatpush3.msra.mxu1 %v38884_v0 }
 0x914   : > { %v33262_v18 = vpop.f32.mrf.mxu0  ;;  %33413 = vmatprep.mubr.msk.f32.mxu1 %vm36022_vm3, %v42324_v14  ;;  %33403 = vmatmul.mubr.msk.f32.vlgmr.msra.gmra.mxu0 %vm780_vm0, %v38920_v17 }
 0x915   : > { %v33269_v44 = vpop.f32.mrf.mxu1  ;;  %33414 = vmatmul.mubr.msk.f32.vlgmr.msra.gmra.mxu1 %vm780_vm0, %v38925_v38  ;;  %33416 = vmatprep.subr.mxu0 %v42324_v14  ;;  %v13819_v18 = vadd.f32 %v13818_v61, %v38458_v52  ;;  %v42444_v61 = vld [vmem:[#allocation67_spill] sm:$0xff] }
 0x916   : > { %33427 = vmatprep.subr.mxu1 %v42324_v14  ;;  %33417 = vmatpush3.msra.mxu0 %v38857_v8  ;;  %v13892_v44 = vadd.f32 %v13891_v7, %v38460_v3  ;;  %v42445_v7 = vld [vmem:[#allocation68_spill] sm:$0xff] }
 0x917   : > { %33428 = vmatpush3.msra.mxu1 %v38857_v8  ;;  %33418 = vmatprep.subr.mxu0 %v42324_v14  ;;  %v38952_v40 = vmul.f32 %v42444_v61, %v13819_v18 }
 0x918   : > { %v13964_v56 = vpop.f32.mrf.mxu0  ;;  %33429 = vmatprep.subr.mxu1 %v42324_v14  ;;  %33419 = vmatpush3.msra.mxu0 %v38866_v9  ;;  %v38957_v41 = vmul.f32 %v42445_v7, %v13892_v44 }
 0x919   : > { %v14037_v19 = vpop.f32.mrf.mxu1  ;;  %33430 = vmatpush3.msra.mxu1 %v38866_v9  ;;  %33420 = vmatprep.subr.mxu0 %v42324_v14  ;;  %v15221_v1 = vmul.f32 %v38952_v40, %v38802_v23 }
 0x91a   : > { %v33276_v5 = vpop.f32.mrf.mxu0  ;;  %33431 = vmatprep.subr.mxu1 %v42324_v14  ;;  %33421 = vmatpush3.msra.mxu0 %v38875_v21  ;;  %v14038_v18 = vadd.f32 %v14037_v19, %v38478_v27  ;;  %v15222_v31 = vmul.f32 %v38957_v41, %v38807_v35 }
 0x91b   : > { %v33283_v42 = vpop.f32.mrf.mxu1  ;;  %33432 = vmatpush3.msra.mxu1 %v38875_v21  ;;  %33422 = vmatprep.subr.mxu0 %v42324_v14 }
 0x91c   : > { %33433 = vmatprep.subr.mxu1 %v42324_v14  ;;  %33423 = vmatpush3.msra.mxu0 %v38884_v0  ;;  %v13965_v42 = vadd.f32 %v13964_v56, %v38476_v13  ;;  %v42446_v56 = vld [vmem:[#allocation89_spill] sm:$0xff] }
 0x91d   : > { %33424 = vmatprep.mubr.msk.f32.mxu0 %vm36022_vm3, %v42324_v14  ;;  %33434 = vmatpush3.msra.mxu1 %v38884_v0 }
 0x91e   : > { %33435 = vmatprep.mubr.msk.f32.mxu1 %vm36022_vm3, %v42324_v14  ;;  %33425 = vmatmul.mubr.msk.f32.vlgmr.msra.gmra.mxu0 %vm780_vm0, %v38952_v40  ;;  %v38988_v61 = vmul.f32 %v42446_v56, %v13965_v42  ;;  %v15217_v56 = vmul.f32 %v38897_v58, %v38729_v63 }
 0x91f   : > { %33436 = vmatmul.mubr.msk.f32.vlgmr.msra.gmra.mxu1 %vm780_vm0, %v38957_v41  ;;  %33438 = vmatprep.subr.mxu0 %v42324_v14 }
 0x920   : > { %33449 = vmatprep.subr.mxu1 %v42324_v14  ;;  %33439 = vmatpush3.msra.mxu0 %v38857_v8 }
 0x921   : > { %33450 = vmatpush3.msra.mxu1 %v38857_v8  ;;  %33440 = vmatprep.subr.mxu0 %v42324_v14 }
 0x922   : > { %v38974_v5 = vpop.f32.mrf.mxu0  ;;  %33451 = vmatprep.subr.mxu1 %v42324_v14  ;;  %33441 = vmatpush3.msra.mxu0 %v38866_v9 }
 0x923   : > { %v38979_v44 = vpop.f32.mrf.mxu1  ;;  %33452 = vmatpush3.msra.mxu1 %v38866_v9  ;;  %33442 = vmatprep.subr.mxu0 %v42324_v14  ;;  %v42447_v9 = vld [vmem:[#allocation90_spill] sm:$0xff] }
 0x924   : > { %v33294_v7 = vpop.f32.mrf.mxu0  ;;  %33453 = vmatprep.subr.mxu1 %v42324_v14  ;;  %33443 = vmatpush3.msra.mxu0 %v38875_v21  ;;  %v38993_v19 = vmul.f32 %v42447_v9, %v14038_v18 }
 0x925   : > { %v33305_v8 = vpop.f32.mrf.mxu1  ;;  %33454 = vmatpush3.msra.mxu1 %v38875_v21  ;;  %33444 = vmatprep.subr.mxu0 %v42324_v14  ;;  %v39009_v21 = vld [vmem:[%s42056_s13 + $0x18] sm:$0xff]  ;;  %v39020_v7 = vld [vmem:[%s42056_s13 + $0x10] sm:$0xff] }
 0x926   : > { %33455 = vmatprep.subr.mxu1 %v42324_v14  ;;  %33445 = vmatpush3.msra.mxu0 %v38884_v0  ;;  %v39031_v8 = vld [vmem:[%s42056_s13 + $0x8] sm:$0xff] }
 0x927   : > { %33446 = vmatprep.mubr.msk.f32.mxu0 %vm36022_vm3, %v42324_v14  ;;  %33456 = vmatpush3.msra.mxu1 %v38884_v0 }
 0x928   : > { %33457 = vmatprep.mubr.msk.f32.mxu1 %vm36022_vm3, %v42324_v14  ;;  %33447 = vmatmul.mubr.msk.f32.vlgmr.msra.gmra.mxu0 %vm780_vm0, %v38988_v61 }
 0x929   : > { %33458 = vmatmul.mubr.msk.f32.vlgmr.msra.gmra.mxu1 %vm780_vm0, %v38993_v19  ;;  %33460 = vmatprep.subr.mxu0 %v42324_v14 }
 0x92a   : > { %33471 = vmatprep.subr.mxu1 %v42324_v14  ;;  %33461 = vmatpush3.msra.mxu0 %v39009_v21 }
 0x92b   : > { %33472 = vmatpush3.msra.mxu1 %v39009_v21  ;;  %33462 = vmatprep.subr.mxu0 %v42324_v14 }
 0x92c   : > { %v39014_v0 = vpop.f32.mrf.mxu0  ;;  %33473 = vmatprep.subr.mxu1 %v42324_v14  ;;  %33463 = vmatpush3.msra.mxu0 %v39020_v7 }
 0x92d   : > { %v39023_v42 = vpop.f32.mrf.mxu1  ;;  %33474 = vmatpush3.msra.mxu1 %v39020_v7  ;;  %33464 = vmatprep.subr.mxu0 %v42324_v14 }
 0x92e   : > { %v33316_v18 = vpop.f32.mrf.mxu0  ;;  %33475 = vmatprep.subr.mxu1 %v42324_v14  ;;  %33465 = vmatpush3.msra.mxu0 %v39031_v8 }
 0x92f   : > { %v33327_v9 = vpop.f32.mrf.mxu1  ;;  %33476 = vmatpush3.msra.mxu1 %v39031_v8  ;;  %33466 = vmatprep.subr.mxu0 %v42324_v14  ;;  %v39042_v18 = vld [vmem:[%s42056_s13] sm:$0xff] }
 0x930   : > { %33477 = vmatprep.subr.mxu1 %v42324_v14  ;;  %33467 = vmatpush3.msra.mxu0 %v39042_v18 }
 0x931   : > { %33468 = vmatprep.mubr.msk.f32.mxu0 %vm36022_vm3, %v42324_v14  ;;  %33478 = vmatpush3.msra.mxu1 %v39042_v18 }
 0x932   : > { %33479 = vmatprep.mubr.msk.f32.mxu1 %vm36022_vm3, %v42324_v14  ;;  %33469 = vmatmul.mubr.msk.f32.vlgmr.msra.gmra.mxu0 %vm780_vm0, %v15217_v56 }
 0x933   : > { %33480 = vmatmul.mubr.msk.f32.vlgmr.msra.gmra.mxu1 %vm780_vm0, %v15218_v12  ;;  %33482 = vmatprep.subr.mxu0 %v42324_v14 }
 0x934   : > { %33493 = vmatprep.subr.mxu1 %v42324_v14  ;;  %33483 = vmatpush3.msra.mxu0 %v39009_v21 }
 0x935   : > { %33494 = vmatpush3.msra.mxu1 %v39009_v21  ;;  %33484 = vmatprep.subr.mxu0 %v42324_v14 }
 0x936   : > { %v39059_v9 = vpop.f32.mrf.mxu0  ;;  %33495 = vmatprep.subr.mxu1 %v42324_v14  ;;  %33485 = vmatpush3.msra.mxu0 %v39020_v7 }
 0x937   : > { %v39063_v57 = vpop.f32.mrf.mxu1  ;;  %33496 = vmatpush3.msra.mxu1 %v39020_v7  ;;  %33486 = vmatprep.subr.mxu0 %v42324_v14 }
 0x938   : > { %v33338_v12 = vpop.f32.mrf.mxu0  ;;  %33497 = vmatprep.subr.mxu1 %v42324_v14  ;;  %33487 = vmatpush3.msra.mxu0 %v39031_v8 }
 0x939   : > { %v33349_v56 = vpop.f32.mrf.mxu1  ;;  %33498 = vmatpush3.msra.mxu1 %v39031_v8  ;;  %33488 = vmatprep.subr.mxu0 %v42324_v14 }
 0x93a   : > { %33499 = vmatprep.subr.mxu1 %v42324_v14  ;;  %33489 = vmatpush3.msra.mxu0 %v39042_v18 }
 0x93b   : > { %33490 = vmatprep.mubr.msk.f32.mxu0 %vm36022_vm3, %v42324_v14  ;;  %33500 = vmatpush3.msra.mxu1 %v39042_v18 }
 0x93c   : > { %33501 = vmatprep.mubr.msk.f32.mxu1 %vm36022_vm3, %v42324_v14  ;;  %33491 = vmatmul.mubr.msk.f32.vlgmr.msra.gmra.mxu0 %vm780_vm0, %v15219_v15 }
 0x93d   : > { %33502 = vmatmul.mubr.msk.f32.vlgmr.msra.gmra.mxu1 %vm780_vm0, %v15220_v39  ;;  %33504 = vmatprep.subr.mxu0 %v42324_v14 }
 0x93e   : > { %33515 = vmatprep.subr.mxu1 %v42324_v14  ;;  %33505 = vmatpush3.msra.mxu0 %v39009_v21 }
 0x93f   : > { %33516 = vmatpush3.msra.mxu1 %v39009_v21  ;;  %33506 = vmatprep.subr.mxu0 %v42324_v14 }
 0x940   : > { %v39089_v12 = vpop.f32.mrf.mxu0  ;;  %33517 = vmatprep.subr.mxu1 %v42324_v14  ;;  %33507 = vmatpush3.msra.mxu0 %v39020_v7 }
 0x941   : > { %v39093_v56 = vpop.f32.mrf.mxu1  ;;  %33518 = vmatpush3.msra.mxu1 %v39020_v7  ;;  %33508 = vmatprep.subr.mxu0 %v42324_v14 }
 0x942   : > { %v33360_v39 = vpop.f32.mrf.mxu0  ;;  %33519 = vmatprep.subr.mxu1 %v42324_v14  ;;  %33509 = vmatpush3.msra.mxu0 %v39031_v8 }
 0x943   : > { %v33371_v15 = vpop.f32.mrf.mxu1  ;;  %33520 = vmatpush3.msra.mxu1 %v39031_v8  ;;  %33510 = vmatprep.subr.mxu0 %v42324_v14  ;;  %v39174_v39 = vld [vmem:[%s42057_s14] sm:$0xff] }
 0x944   : > { %33521 = vmatprep.subr.mxu1 %v42324_v14  ;;  %33511 = vmatpush3.msra.mxu0 %v39042_v18  ;;  %v15818_v15 = vsub.f32 %v38900_v10, %v38739_v6 }
 0x945   : > { %33512 = vmatprep.mubr.msk.f32.mxu0 %vm36022_vm3, %v42324_v14  ;;  %33522 = vmatpush3.msra.mxu1 %v39042_v18 }
 0x946   : > { %33523 = vmatprep.mubr.msk.f32.mxu1 %vm36022_vm3, %v42324_v14  ;;  %33513 = vmatmul.mubr.msk.f32.vlgmr.msra.gmra.mxu0 %vm780_vm0, %v15221_v1  ;;  %v15224_v1 = vmul.f32 %v38993_v19, %v38841_v30 }
 0x947   : > { %33524 = vmatmul.mubr.msk.f32.vlgmr.msra.gmra.mxu1 %vm780_vm0, %v15222_v31  ;;  %33526 = vmatprep.subr.mxu0 %v42324_v14  ;;  %v15223_v31 = vmul.f32 %v38988_v61, %v38836_v11 }
 0x948   : > { %33537 = vmatprep.subr.mxu1 %v42324_v14  ;;  %33527 = vmatpush3.msra.mxu0 %v39009_v21 }
 0x949   : > { %33538 = vmatpush3.msra.mxu1 %v39009_v21  ;;  %33528 = vmatprep.subr.mxu0 %v42324_v14  ;;  %v39145_v21 = vld [vmem:[%s42057_s14 + $0x18] sm:$0xff] }
 0x94a   : > { %33539 = vmatprep.subr.mxu1 %v42324_v14  ;;  %33529 = vmatpush3.msra.mxu0 %v39020_v7 }
 0x94b   : > { %33540 = vmatpush3.msra.mxu1 %v39020_v7  ;;  %33530 = vmatprep.subr.mxu0 %v42324_v14  ;;  %v39154_v7 = vld [vmem:[%s42057_s14 + $0x10] sm:$0xff] }
 0x94c   : > { %33541 = vmatprep.subr.mxu1 %v42324_v14  ;;  %33531 = vmatpush3.msra.mxu0 %v39031_v8 }
 0x94d   : > { %33542 = vmatpush3.msra.mxu1 %v39031_v8  ;;  %33532 = vmatprep.subr.mxu0 %v42324_v14  ;;  %v39163_v8 = vld [vmem:[%s42057_s14 + $0x8] sm:$0xff] }
 0x94e   : > { %33543 = vmatprep.subr.mxu1 %v42324_v14  ;;  %33533 = vmatpush3.msra.mxu0 %v39042_v18 }
 0x94f   : > { %33534 = vmatprep.mubr.msk.f32.mxu0 %vm36022_vm3, %v42324_v14  ;;  %33544 = vmatpush3.msra.mxu1 %v39042_v18  ;;  %v15817_v18 = vsub.f32 %v38897_v58, %v38729_v63 }
 0x950   : > { %33545 = vmatprep.mubr.msk.f32.mxu1 %vm36022_vm3, %v42324_v14  ;;  %33535 = vmatmul.mubr.msk.f32.vlgmr.msra.gmra.mxu0 %vm780_vm0, %v15223_v31  ;;  %v15819_v31 = vsub.f32 %v38920_v17, %v38768_v37 }
 0x951   : > { %33546 = vmatmul.mubr.msk.f32.vlgmr.msra.gmra.mxu1 %vm780_vm0, %v15224_v1  ;;  %33548 = vmatprep.subr.mxu0 %v42324_v14  ;;  %v15820_v1 = vsub.f32 %v38925_v38, %v38773_v45 }
 0x952   : > { %33559 = vmatprep.subr.mxu1 %v42324_v14  ;;  %33549 = vmatpush3.msra.mxu0 %v39145_v21 }
 0x953   : > { %33560 = vmatpush3.msra.mxu1 %v39145_v21  ;;  %33550 = vmatprep.subr.mxu0 %v42324_v14 }
 0x954   : > { %33561 = vmatprep.subr.mxu1 %v42324_v14  ;;  %33551 = vmatpush3.msra.mxu0 %v39154_v7 }
 0x955   : > { %33562 = vmatpush3.msra.mxu1 %v39154_v7  ;;  %33552 = vmatprep.subr.mxu0 %v42324_v14 }
 0x956   : > { %33563 = vmatprep.subr.mxu1 %v42324_v14  ;;  %33553 = vmatpush3.msra.mxu0 %v39163_v8 }
 0x957   : > { %33564 = vmatpush3.msra.mxu1 %v39163_v8  ;;  %33554 = vmatprep.subr.mxu0 %v42324_v14 }
 0x958   : > { %33565 = vmatprep.subr.mxu1 %v42324_v14  ;;  %33555 = vmatpush3.msra.mxu0 %v39174_v39 }
 0x959   : > { %33556 = vmatprep.mubr.msk.f32.mxu0 %vm36022_vm3, %v42324_v14  ;;  %33566 = vmatpush3.msra.mxu1 %v39174_v39 }
 0x95a   : > { %33567 = vmatprep.mubr.msk.f32.mxu1 %vm36022_vm3, %v42324_v14  ;;  %33557 = vmatmul.mubr.msk.f32.vlgmr.msra.gmra.mxu0 %vm780_vm0, %v15817_v18  ;;  %v15821_v18 = vsub.f32 %v38952_v40, %v38802_v23 }
 0x95b   : > { %33568 = vmatmul.mubr.msk.f32.vlgmr.msra.gmra.mxu1 %vm780_vm0, %v15818_v15  ;;  %33570 = vmatprep.subr.mxu0 %v42324_v14  ;;  %v15822_v15 = vsub.f32 %v38957_v41, %v38807_v35 }
 0x95c   : > { %33581 = vmatprep.subr.mxu1 %v42324_v14  ;;  %33571 = vmatpush3.msra.mxu0 %v39145_v21 }
 0x95d   : > { %33582 = vmatpush3.msra.mxu1 %v39145_v21  ;;  %33572 = vmatprep.subr.mxu0 %v42324_v14 }
 0x95e   : > { %33583 = vmatprep.subr.mxu1 %v42324_v14  ;;  %33573 = vmatpush3.msra.mxu0 %v39154_v7 }
 0x95f   : > { %33584 = vmatpush3.msra.mxu1 %v39154_v7  ;;  %33574 = vmatprep.subr.mxu0 %v42324_v14 }
 0x960   : > { %33585 = vmatprep.subr.mxu1 %v42324_v14  ;;  %33575 = vmatpush3.msra.mxu0 %v39163_v8 }
 0x961   : > { %33586 = vmatpush3.msra.mxu1 %v39163_v8  ;;  %33576 = vmatprep.subr.mxu0 %v42324_v14 }
 0x962   : > { %33587 = vmatprep.subr.mxu1 %v42324_v14  ;;  %33577 = vmatpush3.msra.mxu0 %v39174_v39 }
 0x963   : > { %33578 = vmatprep.mubr.msk.f32.mxu0 %vm36022_vm3, %v42324_v14  ;;  %33588 = vmatpush3.msra.mxu1 %v39174_v39 }
 0x964   : > { %33589 = vmatprep.mubr.msk.f32.mxu1 %vm36022_vm3, %v42324_v14  ;;  %33579 = vmatmul.mubr.msk.f32.vlgmr.msra.gmra.mxu0 %vm780_vm0, %v15819_v31  ;;  %v39287_v31 = vld [vmem:[%s42369_s6 + $0x8] sm:$0xff] }
 0x965   : > { %33590 = vmatmul.mubr.msk.f32.vlgmr.msra.gmra.mxu1 %vm780_vm0, %v15820_v1  ;;  %33592 = vmatprep.subr.mxu0 %v42324_v14  ;;  %v39296_v1 = vld [vmem:[%s42369_s6] sm:$0xff] }
 0x966   : > { %33603 = vmatprep.subr.mxu1 %v42324_v14  ;;  %33593 = vmatpush3.msra.mxu0 %v39145_v21 }
 0x967   : > { %33604 = vmatpush3.msra.mxu1 %v39145_v21  ;;  %33594 = vmatprep.subr.mxu0 %v42324_v14 }
 0x968   : > { %33605 = vmatprep.subr.mxu1 %v42324_v14  ;;  %33595 = vmatpush3.msra.mxu0 %v39154_v7 }
 0x969   : > { %33606 = vmatpush3.msra.mxu1 %v39154_v7  ;;  %33596 = vmatprep.subr.mxu0 %v42324_v14 }
 0x96a   : > { %33607 = vmatprep.subr.mxu1 %v42324_v14  ;;  %33597 = vmatpush3.msra.mxu0 %v39163_v8 }
 0x96b   : > { %33608 = vmatpush3.msra.mxu1 %v39163_v8  ;;  %33598 = vmatprep.subr.mxu0 %v42324_v14 }
 0x96c   : > { %33609 = vmatprep.subr.mxu1 %v42324_v14  ;;  %33599 = vmatpush3.msra.mxu0 %v39174_v39 }
 0x96d   : > { %33600 = vmatprep.mubr.msk.f32.mxu0 %vm36022_vm3, %v42324_v14  ;;  %33610 = vmatpush3.msra.mxu1 %v39174_v39 }
 0x96e   : > { %33611 = vmatprep.mubr.msk.f32.mxu1 %vm36022_vm3, %v42324_v14  ;;  %33601 = vmatmul.mubr.msk.f32.vlgmr.msra.gmra.mxu0 %vm780_vm0, %v15821_v18 }
 0x96f   : > { %33612 = vmatmul.mubr.msk.f32.vlgmr.msra.gmra.mxu1 %vm780_vm0, %v15822_v15  ;;  %33614 = vmatprep.subr.mxu0 %v42324_v14 }
 0x970   : > { %33625 = vmatprep.subr.mxu1 %v42324_v14  ;;  %33615 = vmatpush3.msra.mxu0 %v39145_v21 }
 0x971   : > { %33626 = vmatpush3.msra.mxu1 %v39145_v21  ;;  %33616 = vmatprep.subr.mxu0 %v42324_v14  ;;  %v15823_v21 = vsub.f32 %v38988_v61, %v38836_v11 }
 0x972   : > { %33627 = vmatprep.subr.mxu1 %v42324_v14  ;;  %33617 = vmatpush3.msra.mxu0 %v39154_v7 }
 0x973   : > { %33628 = vmatpush3.msra.mxu1 %v39154_v7  ;;  %33618 = vmatprep.subr.mxu0 %v42324_v14  ;;  %v15824_v7 = vsub.f32 %v38993_v19, %v38841_v30 }
 0x974   : > { %33629 = vmatprep.subr.mxu1 %v42324_v14  ;;  %33619 = vmatpush3.msra.mxu0 %v39163_v8 }
 0x975   : > { %33630 = vmatpush3.msra.mxu1 %v39163_v8  ;;  %33620 = vmatprep.subr.mxu0 %v42324_v14  ;;  %v39269_v8 = vld [vmem:[%s42369_s6 + $0x18] sm:$0xff] }
 0x976   : > { %33631 = vmatprep.subr.mxu1 %v42324_v14  ;;  %33621 = vmatpush3.msra.mxu0 %v39174_v39 }
 0x977   : > { %33622 = vmatprep.mubr.msk.f32.mxu0 %vm36022_vm3, %v42324_v14  ;;  %33632 = vmatpush3.msra.mxu1 %v39174_v39  ;;  %v39278_v39 = vld [vmem:[%s42369_s6 + $0x10] sm:$0xff] }
 0x978   : > { %33633 = vmatprep.mubr.msk.f32.mxu1 %vm36022_vm3, %v42324_v14  ;;  %33623 = vmatmul.mubr.msk.f32.vlgmr.msra.gmra.mxu0 %vm780_vm0, %v15823_v21 }
 0x979   : > { %33634 = vmatmul.mubr.msk.f32.vlgmr.msra.gmra.mxu1 %vm780_vm0, %v15824_v7  ;;  %33636 = vmatprep.subr.mxu0 %v42324_v14 }
 0x97a   : > { %33647 = vmatprep.subr.mxu1 %v42324_v14  ;;  %33637 = vmatpush3.msra.mxu0 %v39269_v8 }
 0x97b   : > { %33648 = vmatpush3.msra.mxu1 %v39269_v8  ;;  %33638 = vmatprep.subr.mxu0 %v42324_v14 }
 0x97c   : > { %33649 = vmatprep.subr.mxu1 %v42324_v14  ;;  %33639 = vmatpush3.msra.mxu0 %v39278_v39 }
 0x97d   : > { %33650 = vmatpush3.msra.mxu1 %v39278_v39  ;;  %33640 = vmatprep.subr.mxu0 %v42324_v14 }
 0x97e   : > { %33651 = vmatprep.subr.mxu1 %v42324_v14  ;;  %33641 = vmatpush3.msra.mxu0 %v39287_v31 }
 0x97f   : > { %33652 = vmatpush3.msra.mxu1 %v39287_v31  ;;  %33642 = vmatprep.subr.mxu0 %v42324_v14 }
 0x980   : > { %33653 = vmatprep.subr.mxu1 %v42324_v14  ;;  %33643 = vmatpush3.msra.mxu0 %v39296_v1 }
 0x981   : > { %33654 = vmatpush3.msra.mxu1 %v39296_v1  ;;  %33644 = vmatprep.mubr.msk.f32.mxu0 %vm36022_vm3, %v42324_v14 }
 0x982   : > { %33655 = vmatprep.mubr.msk.f32.mxu1 %vm36022_vm3, %v42324_v14  ;;  %33658 = vmatprep.subr.mxu0 %v42324_v14 }
 0x983   : > { %33669 = vmatprep.subr.mxu1 %v42324_v14 }
 0x9cb   : > { %v14702_v18 = vpop.f32.mrf.mxu0 }
 0x9cc   : > { %v14775_v15 = vpop.f32.mrf.mxu1  ;;  %v14703_v25 = vadd.f32 %v14702_v18, %v38974_v5 }
 0x9cd   : > { %v33382_v21 = vpop.f32.mrf.mxu0 }
 0x9ce   : > { %v33393_v7 = vpop.f32.mrf.mxu1 }
 0x9d4   : > { %v14848_v22 = vpop.f32.mrf.mxu0 }
 0x9d5   : > { %v14921_v60 = vpop.f32.mrf.mxu1 }
 0x9d6   : > { %v33404_v59 = vpop.f32.mrf.mxu0 }
 0x9d7   : > { %v33415_v49 = vpop.f32.mrf.mxu1 }
 0x9de   : > { %v14994_v48 = vpop.f32.mrf.mxu0 }
 0x9df   : > { %v15067_v47 = vpop.f32.mrf.mxu1 }
 0x9e0   : > { %v33426_v46 = vpop.f32.mrf.mxu0 }
 0x9e1   : > { %v33437_v54 = vpop.f32.mrf.mxu1 }
 0x9e8   : > { %v39306_v33 = vpop.f32.mrf.mxu0 }
 0x9e9   : > { %v39308_v16 = vpop.f32.mrf.mxu1 }
 0x9ea   : > { %v33448_v29 = vpop.f32.mrf.mxu0 }
 0x9eb   : > { %v33459_v36 = vpop.f32.mrf.mxu1 }
 0x9ec   : > { %v14776_v36 = vadd.f32 %v14775_v15, %v38979_v44 }
 0x9f2   : > { %v15294_v51 = vpop.f32.mrf.mxu0 }
 0x9f3   : > { %v15367_v53 = vpop.f32.mrf.mxu1  ;;  %v15809_v29 = vadd.f32 %v15294_v51, %v14703_v25  ;;  %v14849_v25 = vadd.f32 %v14848_v22, %v39014_v0  ;;  %v14995_v22 = vadd.f32 %v14994_v48, %v39059_v9  ;;  %v15141_v9 = vadd.f32 %v39306_v33, %v39089_v12 }
 0x9f4   : > { %v33470_v26 = vpop.f32.mrf.mxu0  ;;  %v15810_v27 = vadd.f32 %v15367_v53, %v14776_v36  ;;  %v14922_v53 = vadd.f32 %v14921_v60, %v39023_v42  ;;  %v15068_v60 = vadd.f32 %v15067_v47, %v39063_v57 }
 0x9f5   : > { %v33481_v62 = vpop.f32.mrf.mxu1 }
 0x9fc   : > { %v15440_v21 = vpop.f32.mrf.mxu0 }
 0x9fd   : > { %v15513_v7 = vpop.f32.mrf.mxu1  ;;  %v15811_v51 = vadd.f32 %v15440_v21, %v14849_v25 }
 0x9fe   : > { %v33492_v34 = vpop.f32.mrf.mxu0 }
 0x9ff   : > { %v33503_v55 = vpop.f32.mrf.mxu1 }
 0xa06   : > { %v15586_v59 = vpop.f32.mrf.mxu0 }
 0xa07   : > { %v15659_v49 = vpop.f32.mrf.mxu1  ;;  %v15813_v0 = vadd.f32 %v15586_v59, %v14995_v22  ;;  %v15214_v59 = vadd.f32 %v39308_v16, %v39093_v56 }
 0xa08   : > { %v33514_v43 = vpop.f32.mrf.mxu0  ;;  %v15814_v21 = vadd.f32 %v15659_v49, %v15068_v60 }
 0xa09   : > { %v33525_v20 = vpop.f32.mrf.mxu1  ;;  %v39315_v43 = vld [vmem:[%s42058_s15] ss:$0 sm:$0xff] }
 0xa10   : > { %v15732_v46 = vpop.f32.mrf.mxu0 }
 0xa11   : > { %v15805_v54 = vpop.f32.mrf.mxu1  ;;  %v15815_v49 = vadd.f32 %v15732_v46, %v15141_v9 }
 0xa12   : > { %v33536_v2 = vpop.f32.mrf.mxu0 }
 0xa13   : > { %v33547_v28 = vpop.f32.mrf.mxu1 }
 0xa1a   : > { %v15894_v26 = vpop.f32.mrf.mxu0 }
 0xa1b   : > { %v16409_v62 = vadd.f32 %v15894_v26, %v15809_v29  ;;  %v15967_v13 = vpop.f32.mrf.mxu1 }
 0xa1c   : > { %v16410_v3 = vadd.f32 %v15967_v13, %v15810_v27  ;;  %v33558_v34 = vpop.f32.mrf.mxu0  ;;  %v15812_v13 = vadd.f32 %v15513_v7, %v14922_v53 }
 0xa1d   : > { %v16417_v20 = vadd.f32 %v39315_v43, %v16409_v62  ;;  %v33569_v2 = vpop.f32.mrf.mxu1 }
 0xa1e   : > { %v16418_v28 = vadd.f32 %v39315_v43, %v16410_v3 }
 0xa1f   : > { %v29919_v55 = vmul.f32 -1.442695, %v16417_v20 }
 0xa20   : > { %v29920_v5 = vmul.f32 -1.442695, %v16418_v28 }
 0xa21   : > { %35602 = vpow2.f32 %v29919_v55 }
 0xa22   : > { %35604 = vpow2.f32 %v29920_v5 }
 0xa24   : > { %v16040_v27 = vpop.f32.mrf.mxu0 }
 0xa25   : > { %v16411_v44 = vadd.f32 %v16040_v27, %v15811_v51  ;;  %v16113_v18 = vpop.f32.mrf.mxu1 }
 0xa26   : > { %v16412_v15 = vadd.f32 %v16113_v18, %v15812_v13  ;;  %v33580_v36 = vpop.f32.mrf.mxu0 }
 0xa27   : > { %v16419_v29 = vadd.f32 %v39315_v43, %v16411_v44  ;;  %v33591_v26 = vpop.f32.mrf.mxu1  ;;  %v15816_v44 = vadd.f32 %v15805_v54, %v15214_v59 }
 0xa28   : > { %v16420_v3 = vadd.f32 %v39315_v43, %v16412_v15 }
 0xa29   : > { %v29921_v62 = vmul.f32 -1.442695, %v16419_v29 }
 0xa2a   : > { %v29922_v34 = vmul.f32 -1.442695, %v16420_v3 }
 0xa2b   : > { %35606 = vpow2.f32 %v29921_v62 }
 0xa2c   : > { %35608 = vpow2.f32 %v29922_v34 }
 0xa2e   : > { %v35603_v42 = vpop.eup %35602  ;;  %v16186_v7 = vpop.f32.mrf.mxu0 }
 0xa2f   : > { %v35605_v20 = vpop.eup %35604  ;;  %v16449_v2 = vadd.f32 1.0, %v35603_v42  ;;  %v16413_v28 = vadd.f32 %v16186_v7, %v15813_v0  ;;  %v16259_v55 = vpop.f32.mrf.mxu1 }
 0xa30   : > { %v16450_v5 = vadd.f32 1.0, %v35605_v20  ;;  %v16414_v25 = vadd.f32 %v16259_v55, %v15814_v21  ;;  %v33602_v53 = vpop.f32.mrf.mxu0 }
 0xa31   : > { %35610 = vrcp.f32 %v16449_v2  ;;  %v16421_v51 = vadd.f32 %v39315_v43, %v16413_v28  ;;  %v33613_v13 = vpop.f32.mrf.mxu1 }
 0xa32   : > { %35612 = vrcp.f32 %v16450_v5  ;;  %v16422_v48 = vadd.f32 %v39315_v43, %v16414_v25 }
 0xa33   : > { %v29923_v47 = vmul.f32 -1.442695, %v16421_v51 }
 0xa34   : > { %v29924_v57 = vmul.f32 -1.442695, %v16422_v48 }
 0xa35   : > { %35614 = vpow2.f32 %v29923_v47 }
 0xa36   : > { %35616 = vpow2.f32 %v29924_v57 }
 0xa38   : > { %v35607_v27 = vpop.eup %35606  ;;  %v16332_v18 = vpop.f32.mrf.mxu0 }
 0xa39   : > { %v35609_v15 = vpop.eup %35608  ;;  %v16451_v36 = vadd.f32 1.0, %v35607_v27  ;;  %v16415_v29 = vadd.f32 %v16332_v18, %v15815_v49  ;;  %v16405_v26 = vpop.f32.mrf.mxu1 }
 0xa3a   : > { %v16452_v3 = vadd.f32 1.0, %v35609_v15  ;;  %v16416_v62 = vadd.f32 %v16405_v26, %v15816_v44  ;;  %v33624_v34 = vpop.f32.mrf.mxu0 }
 0xa3b   : > { %35618 = vrcp.f32 %v16451_v36  ;;  %v16423_v22 = vadd.f32 %v39315_v43, %v16415_v29  ;;  %v33635_v33 = vpop.f32.mrf.mxu1  ;;  %v42448_v34 = vld [vmem:[#allocation91_spill] sm:$0xff] }
 0xa3c   : > { %35620 = vrcp.f32 %v16452_v3  ;;  %v16424_v12 = vadd.f32 %v39315_v43, %v16416_v62  ;;  %v42450_v33 = vld [vmem:[#allocation93_spill] sm:$0xff] }
 0xa3d   : > { %v29925_v16 = vmul.f32 -1.442695, %v16423_v22  ;;  %v42449_v22 = vld [vmem:[#allocation92_spill] sm:$0xff] }
 0xa3e   : > { %v35611_v56 = vpop.eup %35610  ;;  %v29926_v46 = vmul.f32 -1.442695, %v16424_v12  ;;  %v39550_v12 = vld [vmem:[%s42051_s8 + $0x18] sm:$0xff] }
 0xa3f   : > { %v35613_v60 = vpop.eup %35612  ;;  %35622 = vpow2.f32 %v29925_v16  ;;  %v16473_v54 = vsub.f32 1.0, %v35611_v56  ;;  %v16489_v21 = vmul.f32 %v35611_v56, %v38729_v63  ;;  %v39559_v16 = vld [vmem:[%s42051_s8 + $0x10] sm:$0xff]  ;;  %v35873_v56 = vld [vmem:[%s42051_s8 + $0x8] sm:$0xff] }
 0xa40   : > { %35624 = vpow2.f32 %v29926_v46  ;;  %v16474_v0 = vsub.f32 1.0, %v35613_v60  ;;  %v16490_v2 = vmul.f32 %v35613_v60, %v38739_v6  ;;  %v39573_v46 = vld [vmem:[%s42051_s8] sm:$0xff]  ;;  %v39656_v60 = vld [vmem:[%s42050_s7 + $0x18] sm:$0xff] }
 0xa41   : > { %v16481_v42 = vmul.f32 %v16473_v54, %v38897_v58  ;;  %v39665_v54 = vld [vmem:[%s42050_s7 + $0x10] sm:$0xff] }
 0xa42   : > { %v35615_v7 = vpop.eup %35614  ;;  %v16482_v20 = vmul.f32 %v16474_v0, %v38900_v10  ;;  %v35877_v0 = vld [vmem:[%s42050_s7 + $0x8] sm:$0xff] }
 0xa43   : > { %v35617_v28 = vpop.eup %35616  ;;  %v16453_v55 = vadd.f32 1.0, %v35615_v7  ;;  %v39337_v43 = vadd.f32 %v16489_v21, %v16481_v42  ;;  %v39679_v42 = vld [vmem:[%s42050_s7] sm:$0xff]  ;;  %v39762_v21 = vld [vmem:[%s42053_s10 + $0x18] sm:$0xff]  ;;  %v39771_v7 = vld [vmem:[%s42053_s10 + $0x10] sm:$0xff] }
 0xa44   : > { %v16454_v5 = vadd.f32 1.0, %v35617_v28  ;;  %v39339_v25 = vadd.f32 %v16490_v2, %v16482_v20  ;;  %v35881_v20 = vld [vmem:[%s42053_s10 + $0x8] sm:$0xff]  ;;  %v39785_v2 = vld [vmem:[%s42053_s10] sm:$0xff]  ;;  %v39868_v28 = vld [vmem:[%s42052_s9 + $0x18] sm:$0xff] }
 0xa45   : > { %35626 = vrcp.f32 %v16453_v55  ;;  %33645 = vmatmul.mubr.msk.f32.vlgmr.msra.gmra.mxu0 %vm780_vm0, %v39337_v43 }
 0xa46   : > { %35628 = vrcp.f32 %v16454_v5  ;;  %33656 = vmatmul.mubr.msk.f32.vlgmr.msra.gmra.mxu1 %vm780_vm0, %v39339_v25  ;;  %33659 = vmatpush3.msra.mxu0 %v39269_v8  ;;  %v39877_v5 = vld [vmem:[%s42052_s9 + $0x10] sm:$0xff] }
 0xa47   : > { %33670 = vmatpush3.msra.mxu1 %v39269_v8  ;;  %33660 = vmatprep.subr.mxu0 %v42324_v14 }
 0xa48   : > { %v35619_v10 = vpop.eup %35618  ;;  %33671 = vmatprep.subr.mxu1 %v42324_v14  ;;  %33661 = vmatpush3.msra.mxu0 %v39278_v39 }
 0xa49   : > { %v35621_v58 = vpop.eup %35620  ;;  %33672 = vmatpush3.msra.mxu1 %v39278_v39  ;;  %33662 = vmatprep.subr.mxu0 %v42324_v14  ;;  %v16475_v6 = vsub.f32 1.0, %v35619_v10  ;;  %v16491_v51 = vmul.f32 %v35619_v10, %v38768_v37 }
 0xa4a   : > { %33673 = vmatprep.subr.mxu1 %v42324_v14  ;;  %33663 = vmatpush3.msra.mxu0 %v39287_v31  ;;  %v16476_v63 = vsub.f32 1.0, %v35621_v58  ;;  %v16492_v47 = vmul.f32 %v35621_v58, %v38773_v45  ;;  %v39886_v58 = vld [vmem:[%s42052_s9 + $0x8] sm:$0xff] }
 0xa4b   : > { %33674 = vmatpush3.msra.mxu1 %v39287_v31  ;;  %33664 = vmatprep.subr.mxu0 %v42324_v14  ;;  %v16483_v53 = vmul.f32 %v16475_v6, %v38920_v17  ;;  %v39895_v6 = vld [vmem:[%s42052_s9] sm:$0xff] }
 0xa4c   : > { %v35623_v13 = vpop.eup %35622  ;;  %33675 = vmatprep.subr.mxu1 %v42324_v14  ;;  %33665 = vmatpush3.msra.mxu0 %v39296_v1  ;;  %v16484_v48 = vmul.f32 %v16476_v63, %v38925_v38 }
 0xa4d   : > { %v35625_v57 = vpop.eup %35624  ;;  %v16455_v9 = vadd.f32 1.0, %v35623_v13  ;;  %33676 = vmatpush3.msra.mxu1 %v39296_v1  ;;  %33666 = vmatprep.mubr.msk.f32.mxu0 %vm36022_vm3, %v42324_v14  ;;  %v39365_v59 = vadd.f32 %v16491_v51, %v16483_v53 }
 0xa4e   : > { %v16456_v17 = vadd.f32 1.0, %v35625_v57  ;;  %33677 = vmatprep.mubr.msk.f32.mxu1 %vm36022_vm3, %v42324_v14  ;;  %33680 = vmatprep.subr.mxu0 %v42324_v14  ;;  %v39370_v37 = vadd.f32 %v16492_v47, %v16484_v48 }
 0xa4f   : > { %35630 = vrcp.f32 %v16455_v9  ;;  %33691 = vmatprep.subr.mxu1 %v42324_v14  ;;  %33667 = vmatmul.mubr.msk.f32.vlgmr.msra.gmra.mxu0 %vm780_vm0, %v39365_v59 }
 0xa50   : > { %35632 = vrcp.f32 %v16456_v17  ;;  %33678 = vmatmul.mubr.msk.f32.vlgmr.msra.gmra.mxu1 %vm780_vm0, %v39370_v37  ;;  %33681 = vmatpush3.msra.mxu0 %v39269_v8 }
 0xa51   : > { %33692 = vmatpush3.msra.mxu1 %v39269_v8  ;;  %33682 = vmatprep.subr.mxu0 %v42324_v14 }
 0xa52   : > { %v35627_v45 = vpop.eup %35626  ;;  %33693 = vmatprep.subr.mxu1 %v42324_v14  ;;  %33683 = vmatpush3.msra.mxu0 %v39278_v39 }
 0xa53   : > { %v35629_v38 = vpop.eup %35628  ;;  %33694 = vmatpush3.msra.mxu1 %v39278_v39  ;;  %33684 = vmatprep.subr.mxu0 %v42324_v14  ;;  %v16477_v49 = vsub.f32 1.0, %v35627_v45  ;;  %v16493_v18 = vmul.f32 %v35627_v45, %v38802_v23 }
 0xa54   : > { %33695 = vmatprep.subr.mxu1 %v42324_v14  ;;  %33685 = vmatpush3.msra.mxu0 %v39287_v31  ;;  %v16478_v27 = vsub.f32 1.0, %v35629_v38  ;;  %v16494_v36 = vmul.f32 %v35629_v38, %v38807_v35 }
 0xa55   : > { %33696 = vmatpush3.msra.mxu1 %v39287_v31  ;;  %33686 = vmatprep.subr.mxu0 %v42324_v14  ;;  %v16485_v44 = vmul.f32 %v16477_v49, %v38952_v40 }
 0xa56   : > { %33697 = vmatprep.subr.mxu1 %v42324_v14  ;;  %33687 = vmatpush3.msra.mxu0 %v39296_v1  ;;  %v16486_v15 = vmul.f32 %v16478_v27, %v38957_v41 }
 0xa57   : > { %33698 = vmatpush3.msra.mxu1 %v39296_v1  ;;  %33688 = vmatprep.mubr.msk.f32.mxu0 %vm36022_vm3, %v42324_v14  ;;  %v39397_v29 = vadd.f32 %v16493_v18, %v16485_v44 }
 0xa58   : > { %33699 = vmatprep.mubr.msk.f32.mxu1 %vm36022_vm3, %v42324_v14  ;;  %33702 = vmatprep.subr.mxu0 %v42324_v14  ;;  %v39402_v40 = vadd.f32 %v16494_v36, %v16486_v15 }
 0xa59   : > { %33713 = vmatprep.subr.mxu1 %v42324_v14  ;;  %33689 = vmatmul.mubr.msk.f32.vlgmr.msra.gmra.mxu0 %vm780_vm0, %v39397_v29 }
 0xa5a   : > { %33700 = vmatmul.mubr.msk.f32.vlgmr.msra.gmra.mxu1 %vm780_vm0, %v39402_v40  ;;  %33703 = vmatpush3.msra.mxu0 %v39269_v8 }
 0xa5b   : > { %33714 = vmatpush3.msra.mxu1 %v39269_v8  ;;  %33704 = vmatprep.subr.mxu0 %v42324_v14 }
 0xa5c   : > { %v35631_v41 = vpop.eup %35630  ;;  %33715 = vmatprep.subr.mxu1 %v42324_v14  ;;  %33705 = vmatpush3.msra.mxu0 %v39278_v39 }
 0xa5d   : > { %v35633_v35 = vpop.eup %35632  ;;  %33716 = vmatpush3.msra.mxu1 %v39278_v39  ;;  %33706 = vmatprep.subr.mxu0 %v42324_v14  ;;  %v16479_v23 = vsub.f32 1.0, %v35631_v41  ;;  %v16495_v3 = vmul.f32 %v35631_v41, %v38836_v11 }
 0xa5e   : > { %33717 = vmatprep.subr.mxu1 %v42324_v14  ;;  %33707 = vmatpush3.msra.mxu0 %v39287_v31  ;;  %v16480_v26 = vsub.f32 1.0, %v35633_v35  ;;  %v16496_v62 = vmul.f32 %v35633_v35, %v38841_v30  ;;  %v39444_v30 = vld [vmem:[%s42370_s5 + $0x18] sm:$0xff] }
 0xa5f   : > { %33718 = vmatpush3.msra.mxu1 %v39287_v31  ;;  %33708 = vmatprep.subr.mxu0 %v42324_v14  ;;  %v16487_v8 = vmul.f32 %v16479_v23, %v38988_v61  ;;  %v39453_v61 = vld [vmem:[%s42370_s5 + $0x10] sm:$0xff] }
 0xa60   : > { %33719 = vmatprep.subr.mxu1 %v42324_v14  ;;  %33709 = vmatpush3.msra.mxu0 %v39296_v1  ;;  %v16488_v39 = vmul.f32 %v16480_v26, %v38993_v19  ;;  %v35869_v19 = vld [vmem:[%s42370_s5 + $0x8] sm:$0xff] }
 0xa61   : > { %33720 = vmatpush3.msra.mxu1 %v39296_v1  ;;  %33710 = vmatprep.mubr.msk.f32.mxu0 %vm36022_vm3, %v42324_v14  ;;  %v39429_v31 = vadd.f32 %v16495_v3, %v16487_v8  ;;  %v39467_v1 = vld [vmem:[%s42370_s5] sm:$0xff] }
 0xa62   : > { %33721 = vmatprep.mubr.msk.f32.mxu1 %vm36022_vm3, %v42324_v14  ;;  %33724 = vmatprep.subr.mxu0 %v42324_v14  ;;  %v39434_v11 = vadd.f32 %v16496_v62, %v16488_v39 }
 0xa63   : > { %33735 = vmatprep.subr.mxu1 %v42324_v14  ;;  %33711 = vmatmul.mubr.msk.f32.vlgmr.msra.gmra.mxu0 %vm780_vm0, %v39429_v31 }
 0xa64   : > { %33722 = vmatmul.mubr.msk.f32.vlgmr.msra.gmra.mxu1 %vm780_vm0, %v39434_v11  ;;  %33725 = vmatpush3.msra.mxu0 %v39444_v30 }
 0xa65   : > { %33736 = vmatpush3.msra.mxu1 %v39444_v30  ;;  %33726 = vmatprep.subr.mxu0 %v42324_v14 }
 0xa66   : > { %33737 = vmatprep.subr.mxu1 %v42324_v14  ;;  %33727 = vmatpush3.msra.mxu0 %v39453_v61 }
 0xa67   : > { %33738 = vmatpush3.msra.mxu1 %v39453_v61  ;;  %33728 = vmatprep.subr.mxu0 %v42324_v14 }
 0xa68   : > { %33739 = vmatprep.subr.mxu1 %v42324_v14  ;;  %33729 = vmatpush3.msra.mxu0 %v35869_v19 }
 0xa69   : > { %33740 = vmatpush3.msra.mxu1 %v35869_v19  ;;  %33730 = vmatprep.subr.mxu0 %v42324_v14 }
 0xa6a   : > { %33741 = vmatprep.subr.mxu1 %v42324_v14  ;;  %33731 = vmatpush3.msra.mxu0 %v39467_v1 }
 0xa6b   : > { %33732 = vmatprep.mubr.msk.f32.mxu0 %vm36022_vm3, %v42324_v14  ;;  %33742 = vmatpush3.msra.mxu1 %v39467_v1 }
 0xa6c   : > { %33743 = vmatprep.mubr.msk.f32.mxu1 %vm36022_vm3, %v42324_v14  ;;  %33733 = vmatmul.mubr.msk.f32.vlgmr.msra.gmra.mxu0 %vm780_vm0, %v38418_v24 }
 0xa6d   : > { %33744 = vmatmul.mubr.msk.f32.vlgmr.msra.gmra.mxu1 %vm780_vm0, %v38420_v50  ;;  %33746 = vmatprep.subr.mxu0 %v42324_v14 }
 0xa6e   : > { %33757 = vmatprep.subr.mxu1 %v42324_v14  ;;  %33747 = vmatpush3.msra.mxu0 %v39444_v30 }
 0xa6f   : > { %33758 = vmatpush3.msra.mxu1 %v39444_v30  ;;  %33748 = vmatprep.subr.mxu0 %v42324_v14 }
 0xa70   : > { %33759 = vmatprep.subr.mxu1 %v42324_v14  ;;  %33749 = vmatpush3.msra.mxu0 %v39453_v61 }
 0xa71   : > { %33760 = vmatpush3.msra.mxu1 %v39453_v61  ;;  %33750 = vmatprep.subr.mxu0 %v42324_v14 }
 0xa72   : > { %33761 = vmatprep.subr.mxu1 %v42324_v14  ;;  %33751 = vmatpush3.msra.mxu0 %v35869_v19 }
 0xa73   : > { %33762 = vmatpush3.msra.mxu1 %v35869_v19  ;;  %33752 = vmatprep.subr.mxu0 %v42324_v14 }
 0xa74   : > { %33763 = vmatprep.subr.mxu1 %v42324_v14  ;;  %33753 = vmatpush3.msra.mxu0 %v39467_v1 }
 0xa75   : > { %33754 = vmatprep.mubr.msk.f32.mxu0 %vm36022_vm3, %v42324_v14  ;;  %33764 = vmatpush3.msra.mxu1 %v39467_v1 }
 0xa76   : > { %33765 = vmatprep.mubr.msk.f32.mxu1 %vm36022_vm3, %v42324_v14  ;;  %33755 = vmatmul.mubr.msk.f32.vlgmr.msra.gmra.mxu0 %vm780_vm0, %v38438_v4 }
 0xa77   : > { %33766 = vmatmul.mubr.msk.f32.vlgmr.msra.gmra.mxu1 %vm780_vm0, %v38440_v32  ;;  %33768 = vmatprep.subr.mxu0 %v42324_v14 }
 0xa78   : > { %33779 = vmatprep.subr.mxu1 %v42324_v14  ;;  %33769 = vmatpush3.msra.mxu0 %v39444_v30 }
 0xa79   : > { %33780 = vmatpush3.msra.mxu1 %v39444_v30  ;;  %33770 = vmatprep.subr.mxu0 %v42324_v14 }
 0xa7a   : > { %33781 = vmatprep.subr.mxu1 %v42324_v14  ;;  %33771 = vmatpush3.msra.mxu0 %v39453_v61 }
 0xa7b   : > { %33782 = vmatpush3.msra.mxu1 %v39453_v61  ;;  %33772 = vmatprep.subr.mxu0 %v42324_v14 }
 0xa7c   : > { %33783 = vmatprep.subr.mxu1 %v42324_v14  ;;  %33773 = vmatpush3.msra.mxu0 %v35869_v19 }
 0xa7d   : > { %33784 = vmatpush3.msra.mxu1 %v35869_v19  ;;  %33774 = vmatprep.subr.mxu0 %v42324_v14 }
 0xa7e   : > { %33785 = vmatprep.subr.mxu1 %v42324_v14  ;;  %33775 = vmatpush3.msra.mxu0 %v39467_v1 }
 0xa7f   : > { %33776 = vmatprep.mubr.msk.f32.mxu0 %vm36022_vm3, %v42324_v14  ;;  %33786 = vmatpush3.msra.mxu1 %v39467_v1 }
 0xa80   : > { %33787 = vmatprep.mubr.msk.f32.mxu1 %vm36022_vm3, %v42324_v14  ;;  %33777 = vmatmul.mubr.msk.f32.vlgmr.msra.gmra.mxu0 %vm780_vm0, %v38458_v52 }
 0xa81   : > { %33788 = vmatmul.mubr.msk.f32.vlgmr.msra.gmra.mxu1 %vm780_vm0, %v42448_v34  ;;  %33790 = vmatprep.subr.mxu0 %v42324_v14 }
 0xa82   : > { %33801 = vmatprep.subr.mxu1 %v42324_v14  ;;  %33791 = vmatpush3.msra.mxu0 %v39444_v30 }
 0xa83   : > { %33802 = vmatpush3.msra.mxu1 %v39444_v30  ;;  %33792 = vmatprep.subr.mxu0 %v42324_v14 }
 0xa84   : > { %33803 = vmatprep.subr.mxu1 %v42324_v14  ;;  %33793 = vmatpush3.msra.mxu0 %v39453_v61 }
 0xa85   : > { %33804 = vmatpush3.msra.mxu1 %v39453_v61  ;;  %33794 = vmatprep.subr.mxu0 %v42324_v14 }
 0xa86   : > { %33805 = vmatprep.subr.mxu1 %v42324_v14  ;;  %33795 = vmatpush3.msra.mxu0 %v35869_v19 }
 0xa87   : > { %33806 = vmatpush3.msra.mxu1 %v35869_v19  ;;  %33796 = vmatprep.subr.mxu0 %v42324_v14 }
 0xa88   : > { %33807 = vmatprep.subr.mxu1 %v42324_v14  ;;  %33797 = vmatpush3.msra.mxu0 %v39467_v1 }
 0xa89   : > { %33798 = vmatprep.mubr.msk.f32.mxu0 %vm36022_vm3, %v42324_v14  ;;  %33808 = vmatpush3.msra.mxu1 %v39467_v1 }
 0xa8a   : > { %33809 = vmatprep.mubr.msk.f32.mxu1 %vm36022_vm3, %v42324_v14  ;;  %33799 = vmatmul.mubr.msk.f32.vlgmr.msra.gmra.mxu0 %vm780_vm0, %v42449_v22 }
 0xa8b   : > { %33810 = vmatmul.mubr.msk.f32.vlgmr.msra.gmra.mxu1 %vm780_vm0, %v42450_v33  ;;  %33812 = vmatprep.subr.mxu0 %v42324_v14 }
 0xa8c   : > { %33823 = vmatprep.subr.mxu1 %v42324_v14  ;;  %33813 = vmatpush3.msra.mxu0 %v39550_v12 }
 0xa8d   : > { %33824 = vmatpush3.msra.mxu1 %v39550_v12  ;;  %33814 = vmatprep.subr.mxu0 %v42324_v14 }
 0xa8e   : > { %33825 = vmatprep.subr.mxu1 %v42324_v14  ;;  %33815 = vmatpush3.msra.mxu0 %v39559_v16 }
 0xa8f   : > { %33826 = vmatpush3.msra.mxu1 %v39559_v16  ;;  %33816 = vmatprep.subr.mxu0 %v42324_v14 }
 0xa90   : > { %33827 = vmatprep.subr.mxu1 %v42324_v14  ;;  %33817 = vmatpush3.msra.mxu0 %v35873_v56 }
 0xa91   : > { %33828 = vmatpush3.msra.mxu1 %v35873_v56  ;;  %33818 = vmatprep.subr.mxu0 %v42324_v14 }
 0xa92   : > { %33829 = vmatprep.subr.mxu1 %v42324_v14  ;;  %33819 = vmatpush3.msra.mxu0 %v39573_v46 }
 0xa93   : > { %33820 = vmatprep.mubr.msk.f32.mxu0 %vm36022_vm3, %v42324_v14  ;;  %33830 = vmatpush3.msra.mxu1 %v39573_v46 }
 0xa94   : > { %33831 = vmatprep.mubr.msk.f32.mxu1 %vm36022_vm3, %v42324_v14  ;;  %33821 = vmatmul.mubr.msk.f32.vlgmr.msra.gmra.mxu0 %vm780_vm0, %v39337_v43 }
 0xa95   : > { %33832 = vmatmul.mubr.msk.f32.vlgmr.msra.gmra.mxu1 %vm780_vm0, %v39339_v25  ;;  %33834 = vmatprep.subr.mxu0 %v42324_v14 }
 0xa96   : > { %33845 = vmatprep.subr.mxu1 %v42324_v14  ;;  %33835 = vmatpush3.msra.mxu0 %v39550_v12 }
 0xa97   : > { %33846 = vmatpush3.msra.mxu1 %v39550_v12  ;;  %33836 = vmatprep.subr.mxu0 %v42324_v14 }
 0xa98   : > { %33847 = vmatprep.subr.mxu1 %v42324_v14  ;;  %33837 = vmatpush3.msra.mxu0 %v39559_v16 }
 0xa99   : > { %33848 = vmatpush3.msra.mxu1 %v39559_v16  ;;  %33838 = vmatprep.subr.mxu0 %v42324_v14 }
 0xa9a   : > { %33849 = vmatprep.subr.mxu1 %v42324_v14  ;;  %33839 = vmatpush3.msra.mxu0 %v35873_v56 }
 0xa9b   : > { %33850 = vmatpush3.msra.mxu1 %v35873_v56  ;;  %33840 = vmatprep.subr.mxu0 %v42324_v14 }
 0xa9c   : > { %33851 = vmatprep.subr.mxu1 %v42324_v14  ;;  %33841 = vmatpush3.msra.mxu0 %v39573_v46 }
 0xa9d   : > { %33842 = vmatprep.mubr.msk.f32.mxu0 %vm36022_vm3, %v42324_v14  ;;  %33852 = vmatpush3.msra.mxu1 %v39573_v46 }
 0xa9e   : > { %33853 = vmatprep.mubr.msk.f32.mxu1 %vm36022_vm3, %v42324_v14  ;;  %33843 = vmatmul.mubr.msk.f32.vlgmr.msra.gmra.mxu0 %vm780_vm0, %v39365_v59 }
 0xa9f   : > { %33854 = vmatmul.mubr.msk.f32.vlgmr.msra.gmra.mxu1 %vm780_vm0, %v39370_v37  ;;  %33856 = vmatprep.subr.mxu0 %v42324_v14 }
 0xaa0   : > { %33867 = vmatprep.subr.mxu1 %v42324_v14  ;;  %33857 = vmatpush3.msra.mxu0 %v39550_v12 }
 0xaa1   : > { %33868 = vmatpush3.msra.mxu1 %v39550_v12  ;;  %33858 = vmatprep.subr.mxu0 %v42324_v14 }
 0xaa2   : > { %33869 = vmatprep.subr.mxu1 %v42324_v14  ;;  %33859 = vmatpush3.msra.mxu0 %v39559_v16 }
 0xaa3   : > { %33870 = vmatpush3.msra.mxu1 %v39559_v16  ;;  %33860 = vmatprep.subr.mxu0 %v42324_v14 }
 0xaa4   : > { %33871 = vmatprep.subr.mxu1 %v42324_v14  ;;  %33861 = vmatpush3.msra.mxu0 %v35873_v56 }
 0xaa5   : > { %33872 = vmatpush3.msra.mxu1 %v35873_v56  ;;  %33862 = vmatprep.subr.mxu0 %v42324_v14 }
 0xaa6   : > { %33873 = vmatprep.subr.mxu1 %v42324_v14  ;;  %33863 = vmatpush3.msra.mxu0 %v39573_v46 }
 0xaa7   : > { %33864 = vmatprep.mubr.msk.f32.mxu0 %vm36022_vm3, %v42324_v14  ;;  %33874 = vmatpush3.msra.mxu1 %v39573_v46 }
 0xaa8   : > { %33875 = vmatprep.mubr.msk.f32.mxu1 %vm36022_vm3, %v42324_v14  ;;  %33865 = vmatmul.mubr.msk.f32.vlgmr.msra.gmra.mxu0 %vm780_vm0, %v39397_v29 }
 0xaa9   : > { %33876 = vmatmul.mubr.msk.f32.vlgmr.msra.gmra.mxu1 %vm780_vm0, %v39402_v40  ;;  %33878 = vmatprep.subr.mxu0 %v42324_v14 }
 0xaaa   : > { %33889 = vmatprep.subr.mxu1 %v42324_v14  ;;  %33879 = vmatpush3.msra.mxu0 %v39550_v12 }
 0xaab   : > { %33890 = vmatpush3.msra.mxu1 %v39550_v12  ;;  %33880 = vmatprep.subr.mxu0 %v42324_v14 }
 0xaac   : > { %33891 = vmatprep.subr.mxu1 %v42324_v14  ;;  %33881 = vmatpush3.msra.mxu0 %v39559_v16 }
 0xaad   : > { %33892 = vmatpush3.msra.mxu1 %v39559_v16  ;;  %33882 = vmatprep.subr.mxu0 %v42324_v14 }
 0xaae   : > { %33893 = vmatprep.subr.mxu1 %v42324_v14  ;;  %33883 = vmatpush3.msra.mxu0 %v35873_v56 }
 0xaaf   : > { %33894 = vmatpush3.msra.mxu1 %v35873_v56  ;;  %33884 = vmatprep.subr.mxu0 %v42324_v14 }
 0xab0   : > { %33895 = vmatprep.subr.mxu1 %v42324_v14  ;;  %33885 = vmatpush3.msra.mxu0 %v39573_v46 }
 0xab1   : > { %33886 = vmatprep.mubr.msk.f32.mxu0 %vm36022_vm3, %v42324_v14  ;;  %33896 = vmatpush3.msra.mxu1 %v39573_v46 }
 0xab2   : > { %33897 = vmatprep.mubr.msk.f32.mxu1 %vm36022_vm3, %v42324_v14  ;;  %33887 = vmatmul.mubr.msk.f32.vlgmr.msra.gmra.mxu0 %vm780_vm0, %v39429_v31 }
 0xab3   : > { %33898 = vmatmul.mubr.msk.f32.vlgmr.msra.gmra.mxu1 %vm780_vm0, %v39434_v11  ;;  %33900 = vmatprep.subr.mxu0 %v42324_v14 }
 0xab4   : > { %33911 = vmatprep.subr.mxu1 %v42324_v14  ;;  %33901 = vmatpush3.msra.mxu0 %v39656_v60 }
 0xab5   : > { %33912 = vmatpush3.msra.mxu1 %v39656_v60  ;;  %33902 = vmatprep.subr.mxu0 %v42324_v14 }
 0xab6   : > { %33913 = vmatprep.subr.mxu1 %v42324_v14  ;;  %33903 = vmatpush3.msra.mxu0 %v39665_v54 }
 0xab7   : > { %33914 = vmatpush3.msra.mxu1 %v39665_v54  ;;  %33904 = vmatprep.subr.mxu0 %v42324_v14 }
 0xab8   : > { %33915 = vmatprep.subr.mxu1 %v42324_v14  ;;  %33905 = vmatpush3.msra.mxu0 %v35877_v0 }
 0xab9   : > { %33916 = vmatpush3.msra.mxu1 %v35877_v0  ;;  %33906 = vmatprep.subr.mxu0 %v42324_v14 }
 0xaba   : > { %33917 = vmatprep.subr.mxu1 %v42324_v14  ;;  %33907 = vmatpush3.msra.mxu0 %v39679_v42 }
 0xabb   : > { %33908 = vmatprep.mubr.msk.f32.mxu0 %vm36022_vm3, %v42324_v14  ;;  %33918 = vmatpush3.msra.mxu1 %v39679_v42 }
 0xabc   : > { %33919 = vmatprep.mubr.msk.f32.mxu1 %vm36022_vm3, %v42324_v14  ;;  %33909 = vmatmul.mubr.msk.f32.vlgmr.msra.gmra.mxu0 %vm780_vm0, %v38418_v24 }
 0xabd   : > { %33920 = vmatmul.mubr.msk.f32.vlgmr.msra.gmra.mxu1 %vm780_vm0, %v38420_v50  ;;  %33922 = vmatprep.subr.mxu0 %v42324_v14 }
 0xabe   : > { %33933 = vmatprep.subr.mxu1 %v42324_v14  ;;  %33923 = vmatpush3.msra.mxu0 %v39656_v60 }
 0xabf   : > { %33934 = vmatpush3.msra.mxu1 %v39656_v60  ;;  %33924 = vmatprep.subr.mxu0 %v42324_v14 }
 0xac0   : > { %33935 = vmatprep.subr.mxu1 %v42324_v14  ;;  %33925 = vmatpush3.msra.mxu0 %v39665_v54 }
 0xac1   : > { %33936 = vmatpush3.msra.mxu1 %v39665_v54  ;;  %33926 = vmatprep.subr.mxu0 %v42324_v14 }
 0xac2   : > { %33937 = vmatprep.subr.mxu1 %v42324_v14  ;;  %33927 = vmatpush3.msra.mxu0 %v35877_v0 }
 0xac3   : > { %33938 = vmatpush3.msra.mxu1 %v35877_v0  ;;  %33928 = vmatprep.subr.mxu0 %v42324_v14 }
 0xac4   : > { %33939 = vmatprep.subr.mxu1 %v42324_v14  ;;  %33929 = vmatpush3.msra.mxu0 %v39679_v42 }
 0xac5   : > { %33930 = vmatprep.mubr.msk.f32.mxu0 %vm36022_vm3, %v42324_v14  ;;  %33940 = vmatpush3.msra.mxu1 %v39679_v42 }
 0xac6   : > { %33941 = vmatprep.mubr.msk.f32.mxu1 %vm36022_vm3, %v42324_v14  ;;  %33931 = vmatmul.mubr.msk.f32.vlgmr.msra.gmra.mxu0 %vm780_vm0, %v38438_v4 }
 0xac7   : > { %33942 = vmatmul.mubr.msk.f32.vlgmr.msra.gmra.mxu1 %vm780_vm0, %v38440_v32  ;;  %33944 = vmatprep.subr.mxu0 %v42324_v14 }
 0xac8   : > { %33955 = vmatprep.subr.mxu1 %v42324_v14  ;;  %33945 = vmatpush3.msra.mxu0 %v39656_v60 }
 0xac9   : > { %33956 = vmatpush3.msra.mxu1 %v39656_v60  ;;  %33946 = vmatprep.subr.mxu0 %v42324_v14 }
 0xaca   : > { %33957 = vmatprep.subr.mxu1 %v42324_v14  ;;  %33947 = vmatpush3.msra.mxu0 %v39665_v54 }
 0xacb   : > { %33958 = vmatpush3.msra.mxu1 %v39665_v54  ;;  %33948 = vmatprep.subr.mxu0 %v42324_v14 }
 0xacc   : > { %33959 = vmatprep.subr.mxu1 %v42324_v14  ;;  %33949 = vmatpush3.msra.mxu0 %v35877_v0 }
 0xacd   : > { %33960 = vmatpush3.msra.mxu1 %v35877_v0  ;;  %33950 = vmatprep.subr.mxu0 %v42324_v14 }
 0xace   : > { %33961 = vmatprep.subr.mxu1 %v42324_v14  ;;  %33951 = vmatpush3.msra.mxu0 %v39679_v42 }
 0xacf   : > { %33952 = vmatprep.mubr.msk.f32.mxu0 %vm36022_vm3, %v42324_v14  ;;  %33962 = vmatpush3.msra.mxu1 %v39679_v42 }
 0xad0   : > { %33963 = vmatprep.mubr.msk.f32.mxu1 %vm36022_vm3, %v42324_v14  ;;  %33953 = vmatmul.mubr.msk.f32.vlgmr.msra.gmra.mxu0 %vm780_vm0, %v38458_v52 }
 0xad1   : > { %33964 = vmatmul.mubr.msk.f32.vlgmr.msra.gmra.mxu1 %vm780_vm0, %v42448_v34  ;;  %33966 = vmatprep.subr.mxu0 %v42324_v14 }
 0xad2   : > { %33977 = vmatprep.subr.mxu1 %v42324_v14  ;;  %33967 = vmatpush3.msra.mxu0 %v39656_v60 }
 0xad3   : > { %33978 = vmatpush3.msra.mxu1 %v39656_v60  ;;  %33968 = vmatprep.subr.mxu0 %v42324_v14 }
 0xad4   : > { %33979 = vmatprep.subr.mxu1 %v42324_v14  ;;  %33969 = vmatpush3.msra.mxu0 %v39665_v54 }
 0xad5   : > { %33980 = vmatpush3.msra.mxu1 %v39665_v54  ;;  %33970 = vmatprep.subr.mxu0 %v42324_v14 }
 0xad6   : > { %33981 = vmatprep.subr.mxu1 %v42324_v14  ;;  %33971 = vmatpush3.msra.mxu0 %v35877_v0 }
 0xad7   : > { %33982 = vmatpush3.msra.mxu1 %v35877_v0  ;;  %33972 = vmatprep.subr.mxu0 %v42324_v14 }
 0xad8   : > { %33983 = vmatprep.subr.mxu1 %v42324_v14  ;;  %33973 = vmatpush3.msra.mxu0 %v39679_v42 }
 0xad9   : > { %33974 = vmatprep.mubr.msk.f32.mxu0 %vm36022_vm3, %v42324_v14  ;;  %33984 = vmatpush3.msra.mxu1 %v39679_v42 }
 0xada   : > { %33985 = vmatprep.mubr.msk.f32.mxu1 %vm36022_vm3, %v42324_v14  ;;  %33975 = vmatmul.mubr.msk.f32.vlgmr.msra.gmra.mxu0 %vm780_vm0, %v42449_v22 }
 0xadb   : > { %33986 = vmatmul.mubr.msk.f32.vlgmr.msra.gmra.mxu1 %vm780_vm0, %v42450_v33  ;;  %33988 = vmatprep.subr.mxu0 %v42324_v14 }
 0xadc   : > { %33999 = vmatprep.subr.mxu1 %v42324_v14  ;;  %33989 = vmatpush3.msra.mxu0 %v39762_v21 }
 0xadd   : > { %34000 = vmatpush3.msra.mxu1 %v39762_v21  ;;  %33990 = vmatprep.subr.mxu0 %v42324_v14 }
 0xade   : > { %34001 = vmatprep.subr.mxu1 %v42324_v14  ;;  %33991 = vmatpush3.msra.mxu0 %v39771_v7 }
 0xadf   : > { %34002 = vmatpush3.msra.mxu1 %v39771_v7  ;;  %33992 = vmatprep.subr.mxu0 %v42324_v14 }
 0xae0   : > { %34003 = vmatprep.subr.mxu1 %v42324_v14  ;;  %33993 = vmatpush3.msra.mxu0 %v35881_v20 }
 0xae1   : > { %34004 = vmatpush3.msra.mxu1 %v35881_v20  ;;  %33994 = vmatprep.subr.mxu0 %v42324_v14 }
 0xae2   : > { %34005 = vmatprep.subr.mxu1 %v42324_v14  ;;  %33995 = vmatpush3.msra.mxu0 %v39785_v2 }
 0xae3   : > { %33996 = vmatprep.mubr.msk.f32.mxu0 %vm36022_vm3, %v42324_v14  ;;  %34006 = vmatpush3.msra.mxu1 %v39785_v2 }
 0xae4   : > { %34007 = vmatprep.mubr.msk.f32.mxu1 %vm36022_vm3, %v42324_v14  ;;  %33997 = vmatmul.mubr.msk.f32.vlgmr.msra.gmra.mxu0 %vm780_vm0, %v39337_v43 }
 0xae5   : > { %34008 = vmatmul.mubr.msk.f32.vlgmr.msra.gmra.mxu1 %vm780_vm0, %v39339_v25  ;;  %34010 = vmatprep.subr.mxu0 %v42324_v14 }
 0xae6   : > { %34021 = vmatprep.subr.mxu1 %v42324_v14  ;;  %34011 = vmatpush3.msra.mxu0 %v39762_v21 }
 0xae7   : > { %34022 = vmatpush3.msra.mxu1 %v39762_v21  ;;  %34012 = vmatprep.subr.mxu0 %v42324_v14 }
 0xae8   : > { %34023 = vmatprep.subr.mxu1 %v42324_v14  ;;  %34013 = vmatpush3.msra.mxu0 %v39771_v7 }
 0xae9   : > { %34024 = vmatpush3.msra.mxu1 %v39771_v7  ;;  %34014 = vmatprep.subr.mxu0 %v42324_v14 }
 0xaea   : > { %34025 = vmatprep.subr.mxu1 %v42324_v14  ;;  %34015 = vmatpush3.msra.mxu0 %v35881_v20 }
 0xaeb   : > { %34026 = vmatpush3.msra.mxu1 %v35881_v20  ;;  %34016 = vmatprep.subr.mxu0 %v42324_v14 }
 0xaec   : > { %34027 = vmatprep.subr.mxu1 %v42324_v14  ;;  %34017 = vmatpush3.msra.mxu0 %v39785_v2 }
 0xaed   : > { %34018 = vmatprep.mubr.msk.f32.mxu0 %vm36022_vm3, %v42324_v14  ;;  %34028 = vmatpush3.msra.mxu1 %v39785_v2 }
 0xaee   : > { %34029 = vmatprep.mubr.msk.f32.mxu1 %vm36022_vm3, %v42324_v14  ;;  %34019 = vmatmul.mubr.msk.f32.vlgmr.msra.gmra.mxu0 %vm780_vm0, %v39365_v59 }
 0xaef   : > { %34030 = vmatmul.mubr.msk.f32.vlgmr.msra.gmra.mxu1 %vm780_vm0, %v39370_v37  ;;  %34032 = vmatprep.subr.mxu0 %v42324_v14 }
 0xaf0   : > { %34043 = vmatprep.subr.mxu1 %v42324_v14  ;;  %34033 = vmatpush3.msra.mxu0 %v39762_v21 }
 0xaf1   : > { %34044 = vmatpush3.msra.mxu1 %v39762_v21  ;;  %34034 = vmatprep.subr.mxu0 %v42324_v14 }
 0xaf2   : > { %34045 = vmatprep.subr.mxu1 %v42324_v14  ;;  %34035 = vmatpush3.msra.mxu0 %v39771_v7 }
 0xaf3   : > { %34046 = vmatpush3.msra.mxu1 %v39771_v7  ;;  %34036 = vmatprep.subr.mxu0 %v42324_v14 }
 0xaf4   : > { %34047 = vmatprep.subr.mxu1 %v42324_v14  ;;  %34037 = vmatpush3.msra.mxu0 %v35881_v20 }
 0xaf5   : > { %34048 = vmatpush3.msra.mxu1 %v35881_v20  ;;  %34038 = vmatprep.subr.mxu0 %v42324_v14 }
 0xaf6   : > { %34049 = vmatprep.subr.mxu1 %v42324_v14  ;;  %34039 = vmatpush3.msra.mxu0 %v39785_v2 }
 0xaf7   : > { %34040 = vmatprep.mubr.msk.f32.mxu0 %vm36022_vm3, %v42324_v14  ;;  %34050 = vmatpush3.msra.mxu1 %v39785_v2 }
 0xaf8   : > { %34051 = vmatprep.mubr.msk.f32.mxu1 %vm36022_vm3, %v42324_v14  ;;  %34041 = vmatmul.mubr.msk.f32.vlgmr.msra.gmra.mxu0 %vm780_vm0, %v39397_v29 }
 0xaf9   : > { %34052 = vmatmul.mubr.msk.f32.vlgmr.msra.gmra.mxu1 %vm780_vm0, %v39402_v40  ;;  %34054 = vmatprep.subr.mxu0 %v42324_v14 }
 0xafa   : > { %34065 = vmatprep.subr.mxu1 %v42324_v14  ;;  %34055 = vmatpush3.msra.mxu0 %v39762_v21 }
 0xafb   : > { %34066 = vmatpush3.msra.mxu1 %v39762_v21  ;;  %34056 = vmatprep.subr.mxu0 %v42324_v14 }
 0xafc   : > { %34067 = vmatprep.subr.mxu1 %v42324_v14  ;;  %34057 = vmatpush3.msra.mxu0 %v39771_v7 }
 0xafd   : > { %34068 = vmatpush3.msra.mxu1 %v39771_v7  ;;  %34058 = vmatprep.subr.mxu0 %v42324_v14 }
 0xafe   : > { %34069 = vmatprep.subr.mxu1 %v42324_v14  ;;  %34059 = vmatpush3.msra.mxu0 %v35881_v20 }
 0xaff   : > { %34070 = vmatpush3.msra.mxu1 %v35881_v20  ;;  %34060 = vmatprep.subr.mxu0 %v42324_v14 }
 0xb00   : > { %34071 = vmatprep.subr.mxu1 %v42324_v14  ;;  %34061 = vmatpush3.msra.mxu0 %v39785_v2 }
 0xb01   : > { %34062 = vmatprep.mubr.msk.f32.mxu0 %vm36022_vm3, %v42324_v14  ;;  %34072 = vmatpush3.msra.mxu1 %v39785_v2 }
 0xb02   : > { %34073 = vmatprep.mubr.msk.f32.mxu1 %vm36022_vm3, %v42324_v14  ;;  %34063 = vmatmul.mubr.msk.f32.vlgmr.msra.gmra.mxu0 %vm780_vm0, %v39429_v31 }
 0xb03   : > { %34074 = vmatmul.mubr.msk.f32.vlgmr.msra.gmra.mxu1 %vm780_vm0, %v39434_v11  ;;  %34076 = vmatprep.subr.mxu0 %v42324_v14 }
 0xb04   : > { %34087 = vmatprep.subr.mxu1 %v42324_v14  ;;  %34077 = vmatpush3.msra.mxu0 %v39868_v28 }
 0xb05   : > { %v16574_v55 = vpop.f32.mrf.mxu0  ;;  %34088 = vmatpush3.msra.mxu1 %v39868_v28  ;;  %34078 = vmatprep.subr.mxu0 %v42324_v14 }
 0xb06   : > { %v16647_v43 = vpop.f32.mrf.mxu1  ;;  %34089 = vmatprep.subr.mxu1 %v42324_v14  ;;  %34079 = vmatpush3.msra.mxu0 %v39877_v5 }
 0xb07   : > { %v33646_v25 = vpop.f32.mrf.mxu0  ;;  %34090 = vmatpush3.msra.mxu1 %v39877_v5  ;;  %34080 = vmatprep.subr.mxu0 %v42324_v14 }
 0xb08   : > { %v33657_v10 = vpop.f32.mrf.mxu1  ;;  %34091 = vmatprep.subr.mxu1 %v42324_v14  ;;  %34081 = vmatpush3.msra.mxu0 %v39886_v58 }
 0xb09   : > { %34092 = vmatpush3.msra.mxu1 %v39886_v58  ;;  %34082 = vmatprep.subr.mxu0 %v42324_v14 }
 0xb0a   : > { %34093 = vmatprep.subr.mxu1 %v42324_v14  ;;  %34083 = vmatpush3.msra.mxu0 %v39895_v6 }
 0xb0b   : > { %34084 = vmatprep.mubr.msk.f32.mxu0 %vm36022_vm3, %v42324_v14  ;;  %34094 = vmatpush3.msra.mxu1 %v39895_v6 }
 0xb0c   : > { %34095 = vmatprep.mubr.msk.f32.mxu1 %vm36022_vm3, %v42324_v14  ;;  %34098 = vmatprep.subr.mxu0 %v42324_v14 }
 0xb0d   : > { %34109 = vmatprep.subr.mxu1 %v42324_v14 }
 0xb0f   : > { %v16720_v63 = vpop.f32.mrf.mxu0 }
 0xb10   : > { %v16793_v53 = vpop.f32.mrf.mxu1 }
 0xb11   : > { %v33668_v51 = vpop.f32.mrf.mxu0 }
 0xb12   : > { %v33679_v13 = vpop.f32.mrf.mxu1 }
 0xb19   : > { %v16866_v48 = vpop.f32.mrf.mxu0 }
 0xb1a   : > { %v16939_v47 = vpop.f32.mrf.mxu1 }
 0xb1b   : > { %v33690_v57 = vpop.f32.mrf.mxu0 }
 0xb1c   : > { %v33701_v9 = vpop.f32.mrf.mxu1 }
 0xb23   : > { %v17012_v59 = vpop.f32.mrf.mxu0 }
 0xb24   : > { %v17085_v17 = vpop.f32.mrf.mxu1 }
 0xb25   : > { %v33712_v37 = vpop.f32.mrf.mxu0 }
 0xb26   : > { %v33723_v45 = vpop.f32.mrf.mxu1 }
 0xb2c   : > { %v17158_v38 = vpop.f32.mrf.mxu0 }
 0xb2d   : > { %v39905_v49 = vadd.f32 %v17158_v38, %v16574_v55  ;;  %v17231_v27 = vpop.f32.mrf.mxu1 }
 0xb2e   : > { %v39907_v44 = vadd.f32 %v17231_v27, %v16647_v43  ;;  %v33734_v18 = vpop.f32.mrf.mxu0 }
 0xb2f   : > { %v33745_v15 = vpop.f32.mrf.mxu1 }
 0xb36   : > { %v17304_v36 = vpop.f32.mrf.mxu0 }
 0xb37   : > { %v39909_v29 = vadd.f32 %v17304_v36, %v16720_v63  ;;  %v17377_v40 = vpop.f32.mrf.mxu1 }
 0xb38   : > { %v39911_v41 = vadd.f32 %v17377_v40, %v16793_v53  ;;  %v33756_v35 = vpop.f32.mrf.mxu0 }
 0xb39   : > { %v33767_v23 = vpop.f32.mrf.mxu1 }
 0xb40   : > { %v17450_v26 = vpop.f32.mrf.mxu0 }
 0xb41   : > { %v39913_v8 = vadd.f32 %v17450_v26, %v16866_v48  ;;  %v17523_v3 = vpop.f32.mrf.mxu1 }
 0xb42   : > { %v39915_v39 = vadd.f32 %v17523_v3, %v16939_v47  ;;  %v33778_v62 = vpop.f32.mrf.mxu0 }
 0xb43   : > { %v33789_v31 = vpop.f32.mrf.mxu1 }
 0xb4a   : > { %v17596_v11 = vpop.f32.mrf.mxu0 }
 0xb4b   : > { %v39917_v30 = vadd.f32 %v17596_v11, %v17012_v59  ;;  %v17669_v61 = vpop.f32.mrf.mxu1 }
 0xb4c   : > { %v39919_v19 = vadd.f32 %v17669_v61, %v17085_v17  ;;  %v33800_v1 = vpop.f32.mrf.mxu0 }
 0xb4d   : > { %v33811_v12 = vpop.f32.mrf.mxu1 }
 0xb54   : > { %v17787_v16 = vpop.f32.mrf.mxu0 }
 0xb55   : > { %v17857_v56 = vpop.f32.mrf.mxu1 }
 0xb56   : > { %v33822_v46 = vpop.f32.mrf.mxu0 }
 0xb57   : > { %v33833_v60 = vpop.f32.mrf.mxu1 }
 0xb5e   : > { %v17927_v54 = vpop.f32.mrf.mxu0 }
 0xb5f   : > { %v17997_v0 = vpop.f32.mrf.mxu1 }
 0xb60   : > { %v33844_v42 = vpop.f32.mrf.mxu0 }
 0xb61   : > { %v33855_v21 = vpop.f32.mrf.mxu1 }
 0xb68   : > { %v18067_v7 = vpop.f32.mrf.mxu0 }
 0xb69   : > { %v18137_v20 = vpop.f32.mrf.mxu1 }
 0xb6a   : > { %v33866_v2 = vpop.f32.mrf.mxu0 }
 0xb6b   : > { %v33877_v55 = vpop.f32.mrf.mxu1 }
 0xb72   : > { %v18207_v43 = vpop.f32.mrf.mxu0 }
 0xb73   : > { %v18277_v25 = vpop.f32.mrf.mxu1 }
 0xb74   : > { %v33888_v10 = vpop.f32.mrf.mxu0 }
 0xb75   : > { %v33899_v63 = vpop.f32.mrf.mxu1 }
 0xb7c   : > { %v18347_v53 = vpop.f32.mrf.mxu0 }
 0xb7d   : > { %v18348_v51 = vadd.f32 %v18347_v53, %v17787_v16  ;;  %v18417_v13 = vpop.f32.mrf.mxu1 }
 0xb7e   : > { %v18418_v48 = vadd.f32 %v18417_v13, %v17857_v56  ;;  %v33910_v47 = vpop.f32.mrf.mxu0 }
 0xb7f   : > { %v29967_v57 = vmul.f32 -1.442695, %v18348_v51  ;;  %v33921_v9 = vpop.f32.mrf.mxu1 }
 0xb80   : > { %v29968_v59 = vmul.f32 -1.442695, %v18418_v48 }
 0xb81   : > { %35634 = vpow2.f32 %v29967_v57 }
 0xb82   : > { %35636 = vpow2.f32 %v29968_v59 }
 0xb86   : > { %v18487_v17 = vpop.f32.mrf.mxu0 }
 0xb87   : > { %v18488_v37 = vadd.f32 %v18487_v17, %v17927_v54  ;;  %v18557_v45 = vpop.f32.mrf.mxu1 }
 0xb88   : > { %v18558_v38 = vadd.f32 %v18557_v45, %v17997_v0  ;;  %v33932_v27 = vpop.f32.mrf.mxu0 }
 0xb89   : > { %v29969_v18 = vmul.f32 -1.442695, %v18488_v37  ;;  %v33943_v15 = vpop.f32.mrf.mxu1 }
 0xb8a   : > { %v29970_v36 = vmul.f32 -1.442695, %v18558_v38 }
 0xb8b   : > { %35638 = vpow2.f32 %v29969_v18 }
 0xb8c   : > { %35640 = vpow2.f32 %v29970_v36 }
 0xb8e   : > { %v35635_v40 = vpop.eup %35634 }
 0xb8f   : > { %v35637_v35 = vpop.eup %35636  ;;  %v18865_v23 = vadd.f32 1.0, %v35635_v40 }
 0xb90   : > { %v18866_v26 = vadd.f32 1.0, %v35637_v35  ;;  %v18627_v3 = vpop.f32.mrf.mxu0 }
 0xb91   : > { %35642 = vrcp.f32 %v18865_v23  ;;  %v18628_v62 = vadd.f32 %v18627_v3, %v18067_v7  ;;  %v18697_v31 = vpop.f32.mrf.mxu1 }
 0xb92   : > { %35644 = vrcp.f32 %v18866_v26  ;;  %v18698_v11 = vadd.f32 %v18697_v31, %v18137_v20  ;;  %v33954_v61 = vpop.f32.mrf.mxu0 }
 0xb93   : > { %v29971_v1 = vmul.f32 -1.442695, %v18628_v62  ;;  %v33965_v12 = vpop.f32.mrf.mxu1 }
 0xb94   : > { %v29972_v16 = vmul.f32 -1.442695, %v18698_v11 }
 0xb95   : > { %35646 = vpow2.f32 %v29971_v1 }
 0xb96   : > { %35648 = vpow2.f32 %v29972_v16 }
 0xb98   : > { %v35639_v56 = vpop.eup %35638 }
 0xb99   : > { %v35641_v46 = vpop.eup %35640  ;;  %v18867_v60 = vadd.f32 1.0, %v35639_v56 }
 0xb9a   : > { %v18868_v54 = vadd.f32 1.0, %v35641_v46  ;;  %v18767_v0 = vpop.f32.mrf.mxu0 }
 0xb9b   : > { %35650 = vrcp.f32 %v18867_v60  ;;  %v18768_v42 = vadd.f32 %v18767_v0, %v18207_v43  ;;  %v18837_v21 = vpop.f32.mrf.mxu1  ;;  %v42451_v60 = vld [vmem:[#allocation11_spill] sm:$0xff] }
 0xb9c   : > { %35652 = vrcp.f32 %v18868_v54  ;;  %v18838_v2 = vadd.f32 %v18837_v21, %v18277_v25  ;;  %v33976_v7 = vpop.f32.mrf.mxu0  ;;  %v42452_v54 = vld [vmem:[#allocation12_spill] sm:$0xff] }
 0xb9d   : > { %v29973_v55 = vmul.f32 -1.442695, %v18768_v42  ;;  %v33987_v10 = vpop.f32.mrf.mxu1  ;;  %v29944_v7 = vmul.f32 -1.442695, %v39907_v44 }
 0xb9e   : > { %v35643_v20 = vpop.eup %35642  ;;  %v29974_v63 = vmul.f32 -1.442695, %v18838_v2  ;;  %v29943_v2 = vmul.f32 -1.442695, %v39905_v49  ;;  %v29946_v10 = vmul.f32 -1.442695, %v39911_v41 }
 0xb9f   : > { %v35645_v53 = vpop.eup %35644  ;;  %35654 = vpow2.f32 %v29973_v55  ;;  %v18889_v51 = vmul.f32 %v35643_v20, %v38418_v24  ;;  %v29945_v55 = vmul.f32 -1.442695, %v39909_v29 }
 0xba0   : > { %35656 = vpow2.f32 %v29974_v63  ;;  %v18890_v13 = vmul.f32 %v35645_v53, %v38420_v50 }
 0xba1   : > { %34085 = vmatmul.mubr.msk.f32.vlgmr.msra.gmra.mxu0 %vm780_vm0, %v18889_v51 }
 0xba2   : > { %v35647_v48 = vpop.eup %35646  ;;  %34096 = vmatmul.mubr.msk.f32.vlgmr.msra.gmra.mxu1 %vm780_vm0, %v18890_v13  ;;  %34099 = vmatpush3.msra.mxu0 %v39868_v28  ;;  %v29947_v13 = vmul.f32 -1.442695, %v39913_v8 }
 0xba3   : > { %v35649_v43 = vpop.eup %35648  ;;  %v18869_v25 = vadd.f32 1.0, %v35647_v48  ;;  %34110 = vmatpush3.msra.mxu1 %v39868_v28  ;;  %34100 = vmatprep.subr.mxu0 %v42324_v14  ;;  %v29948_v48 = vmul.f32 -1.442695, %v39915_v39  ;;  %v29950_v39 = vmul.f32 -1.442695, %v39919_v19 }
 0xba4   : > { %v18870_v47 = vadd.f32 1.0, %v35649_v43  ;;  %v39928_v57 = vpop.f32.mrf.mxu0  ;;  %34111 = vmatprep.subr.mxu1 %v42324_v14  ;;  %34101 = vmatpush3.msra.mxu0 %v39877_v5 }
 0xba5   : > { %35658 = vrcp.f32 %v18869_v25  ;;  %v39932_v9 = vpop.f32.mrf.mxu1  ;;  %34112 = vmatpush3.msra.mxu1 %v39877_v5  ;;  %34102 = vmatprep.subr.mxu0 %v42324_v14 }
 0xba6   : > { %35660 = vrcp.f32 %v18870_v47  ;;  %v33998_v59 = vpop.f32.mrf.mxu0  ;;  %34113 = vmatprep.subr.mxu1 %v42324_v14  ;;  %34103 = vmatpush3.msra.mxu0 %v39886_v58 }
 0xba7   : > { %v34009_v17 = vpop.f32.mrf.mxu1  ;;  %34114 = vmatpush3.msra.mxu1 %v39886_v58  ;;  %34104 = vmatprep.subr.mxu0 %v42324_v14 }
 0xba8   : > { %v35651_v37 = vpop.eup %35650  ;;  %34115 = vmatprep.subr.mxu1 %v42324_v14  ;;  %34105 = vmatpush3.msra.mxu0 %v39895_v6 }
 0xba9   : > { %v35653_v45 = vpop.eup %35652  ;;  %34106 = vmatprep.mubr.msk.f32.mxu0 %vm36022_vm3, %v42324_v14  ;;  %34116 = vmatpush3.msra.mxu1 %v39895_v6  ;;  %v18891_v38 = vmul.f32 %v35651_v37, %v38438_v4  ;;  %v29949_v37 = vmul.f32 -1.442695, %v39917_v30 }
 0xbaa   : > { %34117 = vmatprep.mubr.msk.f32.mxu1 %vm36022_vm3, %v42324_v14  ;;  %v18892_v27 = vmul.f32 %v35653_v45, %v38440_v32  ;;  %34120 = vmatprep.subr.mxu0 %v42324_v14 }
 0xbab   : > { %34107 = vmatmul.mubr.msk.f32.vlgmr.msra.gmra.mxu0 %vm780_vm0, %v18891_v38  ;;  %34131 = vmatprep.subr.mxu1 %v42324_v14 }
 0xbac   : > { %v35655_v18 = vpop.eup %35654  ;;  %34118 = vmatmul.mubr.msk.f32.vlgmr.msra.gmra.mxu1 %vm780_vm0, %v18892_v27  ;;  %34121 = vmatpush3.msra.mxu0 %v39868_v28 }
 0xbad   : > { %v35657_v15 = vpop.eup %35656  ;;  %v18871_v36 = vadd.f32 1.0, %v35655_v18  ;;  %34132 = vmatpush3.msra.mxu1 %v39868_v28  ;;  %34122 = vmatprep.subr.mxu0 %v42324_v14 }
 0xbae   : > { %v18872_v40 = vadd.f32 1.0, %v35657_v15  ;;  %v39956_v35 = vpop.f32.mrf.mxu0  ;;  %34133 = vmatprep.subr.mxu1 %v42324_v14  ;;  %34123 = vmatpush3.msra.mxu0 %v39877_v5 }
 0xbaf   : > { %35662 = vrcp.f32 %v18871_v36  ;;  %v39960_v23 = vpop.f32.mrf.mxu1  ;;  %34134 = vmatpush3.msra.mxu1 %v39877_v5  ;;  %34124 = vmatprep.subr.mxu0 %v42324_v14 }
 0xbb0   : > { %35664 = vrcp.f32 %v18872_v40  ;;  %v34020_v26 = vpop.f32.mrf.mxu0  ;;  %34135 = vmatprep.subr.mxu1 %v42324_v14  ;;  %34125 = vmatpush3.msra.mxu0 %v39886_v58 }
 0xbb1   : > { %v34031_v3 = vpop.f32.mrf.mxu1  ;;  %34136 = vmatpush3.msra.mxu1 %v39886_v58  ;;  %34126 = vmatprep.subr.mxu0 %v42324_v14  ;;  %35666 = vpow2.f32 %v29943_v2 }
 0xbb2   : > { %v35659_v62 = vpop.eup %35658  ;;  %34137 = vmatprep.subr.mxu1 %v42324_v14  ;;  %34127 = vmatpush3.msra.mxu0 %v39895_v6  ;;  %35668 = vpow2.f32 %v29944_v7 }
 0xbb3   : > { %v35661_v31 = vpop.eup %35660  ;;  %34128 = vmatprep.mubr.msk.f32.mxu0 %vm36022_vm3, %v42324_v14  ;;  %34138 = vmatpush3.msra.mxu1 %v39895_v6  ;;  %v18893_v11 = vmul.f32 %v35659_v62, %v38458_v52  ;;  %35670 = vpow2.f32 %v29945_v55 }
 0xbb4   : > { %34139 = vmatprep.mubr.msk.f32.mxu1 %vm36022_vm3, %v42324_v14  ;;  %v18894_v61 = vmul.f32 %v35661_v31, %v42448_v34  ;;  %34142 = vmatprep.subr.mxu0 %v42324_v14  ;;  %35672 = vpow2.f32 %v29946_v10  ;;  %v42453_v10 = vld [vmem:[#allocation15_spill] sm:$0xff] }
 0xbb5   : > { %34129 = vmatmul.mubr.msk.f32.vlgmr.msra.gmra.mxu0 %vm780_vm0, %v18893_v11  ;;  %34153 = vmatprep.subr.mxu1 %v42324_v14 }
 0xbb6   : > { %34140 = vmatmul.mubr.msk.f32.vlgmr.msra.gmra.mxu1 %vm780_vm0, %v18894_v61  ;;  %34143 = vmatpush3.msra.mxu0 %v39868_v28 }
 0xbb7   : > { %34154 = vmatpush3.msra.mxu1 %v39868_v28  ;;  %34144 = vmatprep.subr.mxu0 %v42324_v14 }
 0xbb8   : > { %v39984_v1 = vpop.f32.mrf.mxu0  ;;  %34155 = vmatprep.subr.mxu1 %v42324_v14  ;;  %34145 = vmatpush3.msra.mxu0 %v39877_v5 }
 0xbb9   : > { %v39988_v12 = vpop.f32.mrf.mxu1  ;;  %34156 = vmatpush3.msra.mxu1 %v39877_v5  ;;  %34146 = vmatprep.subr.mxu0 %v42324_v14 }
 0xbba   : > { %v34042_v16 = vpop.f32.mrf.mxu0  ;;  %34157 = vmatprep.subr.mxu1 %v42324_v14  ;;  %34147 = vmatpush3.msra.mxu0 %v39886_v58 }
 0xbbb   : > { %v34053_v28 = vpop.f32.mrf.mxu1  ;;  %34158 = vmatpush3.msra.mxu1 %v39886_v58  ;;  %34148 = vmatprep.subr.mxu0 %v42324_v14 }
 0xbbc   : > { %v35663_v56 = vpop.eup %35662  ;;  %34159 = vmatprep.subr.mxu1 %v42324_v14  ;;  %34149 = vmatpush3.msra.mxu0 %v39895_v6 }
 0xbbd   : > { %v35665_v46 = vpop.eup %35664  ;;  %34150 = vmatprep.mubr.msk.f32.mxu0 %vm36022_vm3, %v42324_v14  ;;  %34160 = vmatpush3.msra.mxu1 %v39895_v6  ;;  %v18895_v5 = vmul.f32 %v35663_v56, %v42449_v22 }
 0xbbe   : > { %34161 = vmatprep.mubr.msk.f32.mxu1 %vm36022_vm3, %v42324_v14  ;;  %v18896_v58 = vmul.f32 %v35665_v46, %v42450_v33  ;;  %v35667_v20 = vpop.eup %35666 }
 0xbbf   : > { %34151 = vmatmul.mubr.msk.f32.vlgmr.msra.gmra.mxu0 %vm780_vm0, %v18895_v5  ;;  %v35669_v63 = vpop.eup %35668  ;;  %v17697_v53 = vadd.f32 1.0, %v35667_v20 }
 0xbc0   : > { %34162 = vmatmul.mubr.msk.f32.vlgmr.msra.gmra.mxu1 %vm780_vm0, %v18896_v58  ;;  %34166 = vmatprep.mubr.msk.f32.mxu0 %vm2890_vm4, %v42451_v60  ;;  %v17698_v51 = vadd.f32 1.0, %v35669_v63  ;;  %v35671_v49 = vpop.eup %35670  ;;  %v42454_v63 = vld [vmem:[#allocation16_spill] sm:$0xff] }
 0xbc1   : > { %34171 = vmatprep.mubr.msk.f32.mxu1 %vm2890_vm4, %v42452_v54  ;;  %35674 = vrcp.f32 %v17697_v53  ;;  %v35673_v44 = vpop.eup %35672  ;;  %v17699_v29 = vadd.f32 1.0, %v35671_v49  ;;  %v42456_v53 = vld [vmem:[#allocation14_spill] sm:$0xff] }
 0xbc2   : > { %v40011_v0 = vpop.f32.mrf.mxu0  ;;  %35676 = vrcp.f32 %v17698_v51  ;;  %v17700_v47 = vadd.f32 1.0, %v35673_v44 }
 0xbc3   : > { %v40013_v6 = vpop.f32.mrf.mxu1  ;;  %35678 = vpow2.f32 %v29947_v13 }
 0xbc4   : > { %v34064_v42 = vpop.f32.mrf.mxu0  ;;  %35680 = vpow2.f32 %v29948_v48 }
 0xbc5   : > { %v34075_v21 = vpop.f32.mrf.mxu1 }
 0xbce   : > { %v35675_v45 = vpop.eup %35674 }
 0xbcf   : > { %v35677_v38 = vpop.eup %35676  ;;  %v20049_v40 = vsub.f32 1.0, %v35675_v45 }
 0xbd0   : > { %v35679_v27 = vpop.eup %35678  ;;  %v20050_v3 = vsub.f32 1.0, %v35677_v38 }
 0xbd1   : > { %v35681_v18 = vpop.eup %35680  ;;  %v17701_v26 = vadd.f32 1.0, %v35679_v27  ;;  %v20057_v61 = vmul.f32 %v20049_v40, %v38418_v24  ;;  %v42459_v27 = vld [vmem:[#allocation19_spill] sm:$0xff] }
 0xbd2   : > { %v17702_v62 = vadd.f32 1.0, %v35681_v18 }
 0xc61   : > { %v19526_v43 = vpop.f32.mrf.mxu0 }
 0xc62   : > { %v19527_v41 = vadd.f32 %v19526_v43, %v39928_v57  ;;  %v19599_v25 = vpop.f32.mrf.mxu1 }
 0xc63   : > { %v19600_v59 = vadd.f32 %v19599_v25, %v39932_v9  ;;  %v34086_v17 = vpop.f32.mrf.mxu0 }
 0xc64   : > { %35682 = vtanh.f32 %v19527_v41  ;;  %v34097_v8 = vpop.f32.mrf.mxu1 }
 0xc65   : > { %35684 = vtanh.f32 %v19600_v59 }
 0xc66   : > { %35686 = vrcp.f32 %v17699_v29 }
 0xc67   : > { %35688 = vrcp.f32 %v17700_v47 }
 0xc68   : > { %35690 = vpow2.f32 %v29949_v37 }
 0xc69   : > { %35692 = vpow2.f32 %v29950_v39 }
 0xc6b   : > { %v19672_v57 = vpop.f32.mrf.mxu0 }
 0xc6c   : > { %v19673_v15 = vadd.f32 %v19672_v57, %v39956_v35  ;;  %v19745_v9 = vpop.f32.mrf.mxu1  ;;  %v20058_v35 = vmul.f32 %v20050_v3, %v38420_v50 }
 0xc6d   : > { %v19746_v36 = vadd.f32 %v19745_v9, %v39960_v23  ;;  %v34108_v30 = vpop.f32.mrf.mxu0 }
 0xc6e   : > { %35694 = vtanh.f32 %v19673_v15  ;;  %v34119_v19 = vpop.f32.mrf.mxu1 }
 0xc6f   : > { %35696 = vtanh.f32 %v19746_v36 }
 0xc70   : > { %35698 = vrcp.f32 %v17701_v26 }
 0xc71   : > { %v35683_v31 = vpop.eup %35682  ;;  %35700 = vrcp.f32 %v17702_v62 }
 0xc72   : > { %v35685_v11 = vpop.eup %35684  ;;  %v20065_v16 = vmul.f32 %v35683_v31, %v35675_v45  ;;  %v42457_v45 = vld [vmem:[#allocation17_spill] sm:$0xff]  ;;  %v42463_v31 = vld [vmem:[#allocation24_spill] sm:$0xff] }
 0xc73   : > { %v35687_v28 = vpop.eup %35686  ;;  %v20066_v56 = vmul.f32 %v35685_v11, %v35677_v38  ;;  %v42464_v11 = vld [vmem:[#allocation21_spill] sm:$0xff] }
 0xc74   : > { %v35689_v23 = vpop.eup %35688  ;;  %v40029_v46 = vadd.f32 %v20065_v16, %v20057_v61  ;;  %v20051_v50 = vsub.f32 1.0, %v35687_v28  ;;  %v42465_v61 = vld [vmem:[#allocation22_spill] sm:$0xff] }
 0xc75   : > { %v35691_v5 = vpop.eup %35690  ;;  %v40031_v58 = vadd.f32 %v20066_v56, %v20058_v35  ;;  %v19818_v60 = vpop.f32.mrf.mxu0 }
 0xc76   : > { %v35693_v54 = vpop.eup %35692  ;;  %v19819_v42 = vadd.f32 %v19818_v60, %v39984_v1  ;;  %v19891_v21 = vpop.f32.mrf.mxu1  ;;  %34164 = vmatprep.subr.mxu0 %v40029_v46  ;;  %v17703_v7 = vadd.f32 1.0, %v35691_v5  ;;  %v20052_v1 = vsub.f32 1.0, %v35689_v23  ;;  %v20059_v48 = vmul.f32 %v20051_v50, %v38438_v4  ;;  %v42471_v50 = vld [vmem:[#allocation44_spill] sm:$0xff] }
 0xc77   : > { %v19892_v24 = vadd.f32 %v19891_v21, %v39988_v12  ;;  %v34130_v2 = vpop.f32.mrf.mxu0  ;;  %34169 = vmatprep.subr.mxu1 %v40031_v58  ;;  %34165 = vmatpush3.msra.mxu0 %v40029_v46  ;;  %v17704_v20 = vadd.f32 1.0, %v35693_v54  ;;  %v42455_v12 = vld [vmem:[#allocation13_spill] sm:$0xff]  ;;  %v42470_v21 = vld [vmem:[#allocation43_spill] sm:$0xff] }
 0xc78   : > { %35702 = vtanh.f32 %v19819_v42  ;;  %v34141_v55 = vpop.f32.mrf.mxu1  ;;  %34170 = vmatpush3.msra.mxu1 %v40031_v58  ;;  %34167 = vmatmul.mubr.msk.f32.vlgmr.msra.gmra.mxu0 %vm2890_vm4, %v42453_v10  ;;  %v20060_v44 = vmul.f32 %v20052_v1, %v38440_v32  ;;  %v42468_v42 = vld [vmem:[#allocation25_spill] sm:$0xff] }
 0xc79   : > { %35704 = vtanh.f32 %v19892_v24  ;;  %34172 = vmatmul.mubr.msk.f32.vlgmr.msra.gmra.mxu1 %vm2890_vm4, %v42454_v63  ;;  %34176 = vmatprep.mubr.msk.f32.mxu0 %vm2890_vm4, %v42455_v12  ;;  %v42472_v10 = vld [vmem:[#allocation45_spill] sm:$0xff]  ;;  %v42473_v63 = vld [vmem:[#allocation46_spill] sm:$0xff] }
 0xc7a   : > { %34181 = vmatprep.mubr.msk.f32.mxu1 %vm2890_vm4, %v42456_v53  ;;  %35706 = vrcp.f32 %v17703_v7  ;;  %v42474_v53 = vld [vmem:[#allocation27_spill] sm:$0xff] }
 0xc7b   : > { %v35695_v51 = vpop.eup %35694  ;;  %35708 = vrcp.f32 %v17704_v20 }
 0xc7c   : > { %v35697_v13 = vpop.eup %35696  ;;  %v20067_v49 = vmul.f32 %v35695_v51, %v35687_v28  ;;  %v42475_v51 = vld [vmem:[#allocation28_spill] sm:$0xff] }
 0xc7d   : > { %v20068_v43 = vmul.f32 %v35697_v13, %v35689_v23  ;;  %v35699_v41 = vpop.eup %35698 }
 0xc7e   : > { %v40049_v29 = vadd.f32 %v20067_v49, %v20059_v48  ;;  %v35701_v59 = vpop.eup %35700  ;;  %v20053_v32 = vsub.f32 1.0, %v35699_v41  ;;  %v42476_v48 = vld [vmem:[#allocation47_spill] sm:$0xff] }
 0xc7f   : > { %v40051_v25 = vadd.f32 %v20068_v43, %v20060_v44  ;;  %v19964_v47 = vpop.f32.mrf.mxu0  ;;  %v20054_v38 = vsub.f32 1.0, %v35701_v59  ;;  %v42477_v43 = vld [vmem:[#allocation48_spill] sm:$0xff] }
 0xc80   : > { %v19965_v17 = vadd.f32 %v19964_v47, %v40011_v0  ;;  %v20037_v37 = vpop.f32.mrf.mxu1  ;;  %34174 = vmatprep.subr.mxu0 %v40049_v29  ;;  %v42458_v0 = vld [vmem:[#allocation18_spill] sm:$0xff]  ;;  %v20061_v15 = vmul.f32 %v20053_v32, %v38458_v52  ;;  %v42462_v52 = vld [vmem:[#allocation23_spill] sm:$0xff]  ;;  %v42480_v32 = vld [vmem:[#allocation29_spill] sm:$0xff] }
 0xc81   : > { %v20038_v8 = vadd.f32 %v20037_v37, %v40013_v6  ;;  %v34152_v4 = vpop.f32.mrf.mxu0  ;;  %34179 = vmatprep.subr.mxu1 %v40051_v25  ;;  %34175 = vmatpush3.msra.mxu0 %v40049_v29  ;;  %v42460_v6 = vld [vmem:[#allocation20_spill] sm:$0xff]  ;;  %v20062_v36 = vmul.f32 %v20054_v38, %v42448_v34  ;;  %v42482_v38 = vld [vmem:[#allocation51_spill] sm:$0xff] }
 0xc82   : > { %35710 = vtanh.f32 %v19965_v17  ;;  %v34163_v39 = vpop.f32.mrf.mxu1  ;;  %34180 = vmatpush3.msra.mxu1 %v40051_v25  ;;  %34177 = vmatmul.mubr.msk.f32.vlgmr.msra.gmra.mxu0 %vm2890_vm4, %v42457_v45 }
 0xc83   : > { %35712 = vtanh.f32 %v20038_v8  ;;  %34182 = vmatmul.mubr.msk.f32.vlgmr.msra.gmra.mxu1 %vm2890_vm4, %v42458_v0  ;;  %34186 = vmatprep.mubr.msk.f32.mxu0 %vm2890_vm4, %v42459_v27  ;;  %v42479_v8 = vld [vmem:[#allocation50_spill] sm:$0xff] }
 0xc84   : > { %34191 = vmatprep.mubr.msk.f32.mxu1 %vm2890_vm4, %v42460_v6  ;;  %v42481_v39 = vld [vmem:[#allocation30_spill] sm:$0xff]  ;;  %v42483_v6 = vld [vmem:[#allocation52_spill] sm:$0xff] }
 0xc85   : > { %v35703_v57 = vpop.eup %35702 }
 0xc86   : > { %v35705_v18 = vpop.eup %35704  ;;  %v20069_v9 = vmul.f32 %v35703_v57, %v35699_v41 }
 0xc87   : > { %v20070_v30 = vmul.f32 %v35705_v18, %v35701_v59  ;;  %v35707_v26 = vpop.eup %35706  ;;  %v42478_v59 = vld [vmem:[#allocation49_spill] sm:$0xff] }
 0xc88   : > { %v40069_v40 = vadd.f32 %v20069_v9, %v20061_v15  ;;  %v35709_v3 = vpop.eup %35708  ;;  %v20055_v62 = vsub.f32 1.0, %v35707_v26  ;;  %v42484_v15 = vld [vmem:[#allocation53_spill] sm:$0xff] }
 0xc89   : > { %v40071_v19 = vadd.f32 %v20070_v30, %v20062_v36  ;;  %v20056_v34 = vsub.f32 1.0, %v35709_v3  ;;  %v42485_v30 = vld [vmem:[#allocation54_spill] sm:$0xff] }
 0xc8a   : > { %34184 = vmatprep.subr.mxu0 %v40069_v40  ;;  %v20063_v35 = vmul.f32 %v20055_v62, %v42449_v22  ;;  %v42469_v22 = vld [vmem:[#allocation26_spill] sm:$0xff]  ;;  %v42487_v62 = vld [vmem:[#allocation32_spill] sm:$0xff] }
 0xc8b   : > { %42461 = vst [vmem:[#allocation91_spill] sm:$0xff] %v40071_v19  ;;  %34189 = vmatprep.subr.mxu1 %v40071_v19  ;;  %34185 = vmatpush3.msra.mxu0 %v40069_v40  ;;  %v20064_v23 = vmul.f32 %v20056_v34, %v42450_v33  ;;  %v42488_v34 = vld [vmem:[#allocation55_spill] sm:$0xff] }
 0xc8c   : > { %34190 = vmatpush3.msra.mxu1 %v40071_v19  ;;  %34187 = vmatmul.mubr.msk.f32.vlgmr.msra.gmra.mxu0 %vm2890_vm4, %v42462_v52 }
 0xc8d   : > { %34192 = vmatmul.mubr.msk.f32.vlgmr.msra.gmra.mxu1 %vm2890_vm4, %v42463_v31  ;;  %34196 = vmatprep.mubr.msk.f32.mxu0 %vm2890_vm4, %v42464_v11 }
 0xc8e   : > { %34201 = vmatprep.mubr.msk.f32.mxu1 %vm2890_vm4, %v42465_v61  ;;  %v42489_v61 = vld [vmem:[#allocation56_spill] sm:$0xff] }
 0xc8f   : > { %v35711_v16 = vpop.eup %35710 }
 0xc90   : > { %v35713_v28 = vpop.eup %35712  ;;  %v20071_v56 = vmul.f32 %v35711_v16, %v35707_v26 }
 0xc91   : > { %v20072_v5 = vmul.f32 %v35713_v28, %v35709_v3  ;;  %v42486_v3 = vld [vmem:[#allocation31_spill] sm:$0xff] }
 0xc92   : > { %v40087_v60 = vadd.f32 %v20071_v56, %v20063_v35  ;;  %v42490_v35 = vld [vmem:[#allocation57_spill] sm:$0xff] }
 0xc93   : > { %v40089_v54 = vadd.f32 %v20072_v5, %v20064_v23  ;;  %v42491_v5 = vld [vmem:[#allocation58_spill] sm:$0xff] }
 0xc94   : > { %42466 = vst [vmem:[#allocation92_spill] sm:$0xff] %v40087_v60  ;;  %34194 = vmatprep.subr.mxu0 %v40087_v60 }
 0xc95   : > { %42467 = vst [vmem:[#allocation93_spill] sm:$0xff] %v40089_v54  ;;  %34199 = vmatprep.subr.mxu1 %v40089_v54  ;;  %34195 = vmatpush3.msra.mxu0 %v40087_v60 }
 0xc96   : > { %34200 = vmatpush3.msra.mxu1 %v40089_v54  ;;  %34197 = vmatmul.mubr.msk.f32.vlgmr.msra.gmra.mxu0 %vm2890_vm4, %v42468_v42 }
 0xc97   : > { %34202 = vmatmul.mubr.msk.f32.vlgmr.msra.gmra.mxu1 %vm2890_vm4, %v42469_v22  ;;  %34204 = vmatprep.subr.mxu0 %v42324_v14  ;;  %v42492_v22 = vld [vmem:[#allocation33_spill] sm:$0xff] }
 0xc98   : > { %34211 = vmatprep.subr.mxu1 %v42324_v14  ;;  %34208 = vmatprep.mubr.msk.f32.mxu0 %vm36022_vm3, %v42324_v14 }
 0xc99   : > { %34215 = vmatprep.mubr.msk.f32.mxu1 %vm36022_vm3, %v42324_v14 }
 0xd38   : > { %v34168_v33 = vpop.f32.mrf.mxu0 }
 0xd39   : > { %v20153_v24 = vadd.f32 %v34168_v33, %v42470_v21  ;;  %v34173_v2 = vpop.f32.mrf.mxu1  ;;  %v42493_v33 = vld [vmem:[#allocation34_spill] sm:$0xff] }
 0xd3a   : > { %v20228_v7 = vadd.f32 %v34173_v2, %v42471_v50  ;;  %v20147_v55 = vpop.f32.mrf.mxu0  ;;  %v42495_v2 = vld [vmem:[#allocation69_spill] sm:$0xff] }
 0xd3b   : > { %v20148_v1 = vadd.f32 %v20147_v55, %v42472_v10  ;;  %v20222_v20 = vpop.f32.mrf.mxu1  ;;  %34205 = vmatpush3.msk.msra.mxu0 %vm1433_vm1, %v20153_v24  ;;  %v42494_v24 = vld [vmem:[#allocation70_spill] sm:$0xff]  ;;  %v42497_v55 = vld [vmem:[#allocation71_spill] sm:$0xff] }
 0xd3c   : > { %v20223_v12 = vadd.f32 %v20222_v20, %v42473_v63  ;;  %34212 = vmatpush3.msk.msra.mxu1 %vm1433_vm1, %v20228_v7  ;;  %34206 = vmatprep.subr.mxu0 %v42324_v14  ;;  %v42496_v7 = vld [vmem:[#allocation72_spill] sm:$0xff]  ;;  %v42499_v20 = vld [vmem:[#allocation74_spill] sm:$0xff] }
 0xd3d   : > { %34213 = vmatprep.subr.mxu1 %v42324_v14  ;;  %34207 = vmatpush3.msra.mxu0 %v20148_v1  ;;  %v42498_v1 = vld [vmem:[#allocation73_spill] sm:$0xff] }
 0xd3e   : > { %34214 = vmatpush3.msra.mxu1 %v20223_v12  ;;  %34209 = vmatmul.mubr.msk.f32.vlgmr.msra.gmra.mxu0 %vm1429_vm2, %v42474_v53  ;;  %v42500_v12 = vld [vmem:[#allocation76_spill] sm:$0xff]  ;;  %v42501_v53 = vld [vmem:[#allocation75_spill] sm:$0xff] }
 0xd3f   : > { %34216 = vmatmul.mubr.msk.f32.vlgmr.msra.gmra.mxu1 %vm1429_vm2, %v42475_v51  ;;  %34218 = vmatprep.subr.mxu0 %v42324_v14  ;;  %v42502_v51 = vld [vmem:[#allocation77_spill] sm:$0xff] }
 0xd40   : > { %34225 = vmatprep.subr.mxu1 %v42324_v14  ;;  %34222 = vmatprep.mubr.msk.f32.mxu0 %vm36022_vm3, %v42324_v14 }
 0xd41   : > { %34229 = vmatprep.mubr.msk.f32.mxu1 %vm36022_vm3, %v42324_v14 }
 0xd42   : > { %v34178_v13 = vpop.f32.mrf.mxu0 }
 0xd43   : > { %v20303_v49 = vadd.f32 %v34178_v13, %v42476_v48  ;;  %v34183_v44 = vpop.f32.mrf.mxu1  ;;  %v42503_v13 = vld [vmem:[#allocation78_spill] sm:$0xff] }
 0xd44   : > { %v20378_v41 = vadd.f32 %v34183_v44, %v42477_v43  ;;  %v20297_v47 = vpop.f32.mrf.mxu0  ;;  %v42505_v44 = vld [vmem:[#allocation79_spill] sm:$0xff] }
 0xd45   : > { %v20298_v17 = vadd.f32 %v20297_v47, %v42478_v59  ;;  %v20372_v37 = vpop.f32.mrf.mxu1  ;;  %34219 = vmatpush3.msk.msra.mxu0 %vm1433_vm1, %v20303_v49  ;;  %v42504_v49 = vld [vmem:[#allocation80_spill] sm:$0xff]  ;;  %v42507_v47 = vld [vmem:[#allocation82_spill] sm:$0xff] }
 0xd46   : > { %v20373_v4 = vadd.f32 %v20372_v37, %v42479_v8  ;;  %34226 = vmatpush3.msk.msra.mxu1 %vm1433_vm1, %v20378_v41  ;;  %34220 = vmatprep.subr.mxu0 %v42324_v14  ;;  %v42506_v41 = vld [vmem:[#allocation81_spill] sm:$0xff]  ;;  %v42509_v37 = vld [vmem:[#allocation83_spill] sm:$0xff] }
 0xd47   : > { %34227 = vmatprep.subr.mxu1 %v42324_v14  ;;  %34221 = vmatpush3.msra.mxu0 %v20298_v17  ;;  %v42508_v17 = vld [vmem:[#allocation84_spill] sm:$0xff] }
 0xd48   : > { %34228 = vmatpush3.msra.mxu1 %v20373_v4  ;;  %34223 = vmatmul.mubr.msk.f32.vlgmr.msra.gmra.mxu0 %vm1429_vm2, %v42480_v32 }
 0xd49   : > { %34230 = vmatmul.mubr.msk.f32.vlgmr.msra.gmra.mxu1 %vm1429_vm2, %v42481_v39  ;;  %34232 = vmatprep.subr.mxu0 %v42324_v14 }
 0xd4a   : > { %34239 = vmatprep.subr.mxu1 %v42324_v14  ;;  %34236 = vmatprep.mubr.msk.f32.mxu0 %vm36022_vm3, %v42324_v14 }
 0xd4b   : > { %34243 = vmatprep.mubr.msk.f32.mxu1 %vm36022_vm3, %v42324_v14 }
 0xd4c   : > { %v34188_v45 = vpop.f32.mrf.mxu0 }
 0xd4d   : > { %v20453_v0 = vadd.f32 %v34188_v45, %v42482_v38  ;;  %v34193_v27 = vpop.f32.mrf.mxu1 }
 0xd4e   : > { %v20528_v57 = vadd.f32 %v34193_v27, %v42483_v6  ;;  %v20447_v18 = vpop.f32.mrf.mxu0 }
 0xd4f   : > { %v20448_v9 = vadd.f32 %v20447_v18, %v42484_v15  ;;  %v20522_v36 = vpop.f32.mrf.mxu1  ;;  %34233 = vmatpush3.msk.msra.mxu0 %vm1433_vm1, %v20453_v0 }
 0xd50   : > { %v20523_v26 = vadd.f32 %v20522_v36, %v42485_v30  ;;  %34240 = vmatpush3.msk.msra.mxu1 %vm1433_vm1, %v20528_v57  ;;  %34234 = vmatprep.subr.mxu0 %v42324_v14 }
 0xd51   : > { %34241 = vmatprep.subr.mxu1 %v42324_v14  ;;  %34235 = vmatpush3.msra.mxu0 %v20448_v9 }
 0xd52   : > { %34242 = vmatpush3.msra.mxu1 %v20523_v26  ;;  %34237 = vmatmul.mubr.msk.f32.vlgmr.msra.gmra.mxu0 %vm1429_vm2, %v42486_v3 }
 0xd53   : > { %34244 = vmatmul.mubr.msk.f32.vlgmr.msra.gmra.mxu1 %vm1429_vm2, %v42487_v62  ;;  %34246 = vmatprep.subr.mxu0 %v42324_v14 }
 0xd54   : > { %34253 = vmatprep.subr.mxu1 %v42324_v14  ;;  %34250 = vmatprep.mubr.msk.f32.mxu0 %vm36022_vm3, %v42324_v14 }
 0xd55   : > { %34257 = vmatprep.mubr.msk.f32.mxu1 %vm36022_vm3, %v42324_v14 }
 0xd56   : > { %v34198_v52 = vpop.f32.mrf.mxu0 }
 0xd57   : > { %v20603_v31 = vadd.f32 %v34198_v52, %v42488_v34  ;;  %v34203_v11 = vpop.f32.mrf.mxu1 }
 0xd58   : > { %v20678_v16 = vadd.f32 %v34203_v11, %v42489_v61  ;;  %v20597_v28 = vpop.f32.mrf.mxu0 }
 0xd59   : > { %v20598_v56 = vadd.f32 %v20597_v28, %v42490_v35  ;;  %v20672_v23 = vpop.f32.mrf.mxu1  ;;  %34247 = vmatpush3.msk.msra.mxu0 %vm1433_vm1, %v20603_v31 }
 0xd5a   : > { %v20673_v42 = vadd.f32 %v20672_v23, %v42491_v5  ;;  %34254 = vmatpush3.msk.msra.mxu1 %vm1433_vm1, %v20678_v16  ;;  %34248 = vmatprep.subr.mxu0 %v42324_v14 }
 0xd5b   : > { %34255 = vmatprep.subr.mxu1 %v42324_v14  ;;  %34249 = vmatpush3.msra.mxu0 %v20598_v56 }
 0xd5c   : > { %34256 = vmatpush3.msra.mxu1 %v20673_v42  ;;  %34251 = vmatmul.mubr.msk.f32.vlgmr.msra.gmra.mxu0 %vm1429_vm2, %v42492_v22 }
 0xd5d   : > { %34258 = vmatmul.mubr.msk.f32.vlgmr.msra.gmra.mxu1 %vm1429_vm2, %v42493_v33  ;;  %34260 = vmatprep.subr.mxu0 %v40029_v46 }
 0xd5e   : > { %34265 = vmatprep.subr.mxu1 %v40031_v58  ;;  %34261 = vmatpush3.msra.mxu0 %v40029_v46 }
 0xd5f   : > { %34262 = vmatprep.mubr.msk.f32.mxu0 %vm2890_vm4, %v42494_v24  ;;  %34266 = vmatpush3.msra.mxu1 %v40031_v58 }
 0xd60   : > { %34267 = vmatprep.mubr.msk.f32.mxu1 %vm2890_vm4, %v42495_v2  ;;  %34270 = vmatprep.subr.mxu0 %v40049_v29 }
 0xd61   : > { %34275 = vmatprep.subr.mxu1 %v40051_v25  ;;  %34263 = vmatmul.mubr.msk.f32.vlgmr.msra.gmra.mxu0 %vm2890_vm4, %v42496_v7 }
 0xd62   : > { %34268 = vmatmul.mubr.msk.f32.vlgmr.msra.gmra.mxu1 %vm2890_vm4, %v42497_v55  ;;  %34271 = vmatpush3.msra.mxu0 %v40049_v29 }
 0xd63   : > { %34276 = vmatpush3.msra.mxu1 %v40051_v25  ;;  %34272 = vmatprep.mubr.msk.f32.mxu0 %vm2890_vm4, %v42498_v1 }
 0xd64   : > { %34277 = vmatprep.mubr.msk.f32.mxu1 %vm2890_vm4, %v42499_v20  ;;  %34280 = vmatprep.subr.mxu0 %v40069_v40  ;;  %v42511_v20 = vld [vmem:[#allocation35_spill] sm:$0xff] }
 0xd65   : > { %34285 = vmatprep.subr.mxu1 %v40071_v19  ;;  %34273 = vmatmul.mubr.msk.f32.vlgmr.msra.gmra.mxu0 %vm2890_vm4, %v42500_v12 }
 0xd66   : > { %34278 = vmatmul.mubr.msk.f32.vlgmr.msra.gmra.mxu1 %vm2890_vm4, %v42501_v53  ;;  %34281 = vmatpush3.msra.mxu0 %v40069_v40 }
 0xd67   : > { %34286 = vmatpush3.msra.mxu1 %v40071_v19  ;;  %34282 = vmatprep.mubr.msk.f32.mxu0 %vm2890_vm4, %v42502_v51 }
 0xd68   : > { %34287 = vmatprep.mubr.msk.f32.mxu1 %vm2890_vm4, %v42503_v13  ;;  %34290 = vmatprep.subr.mxu0 %v40087_v60 }
 0xd69   : > { %34295 = vmatprep.subr.mxu1 %v40089_v54  ;;  %34283 = vmatmul.mubr.msk.f32.vlgmr.msra.gmra.mxu0 %vm2890_vm4, %v42504_v49  ;;  %v42512_v49 = vld [vmem:[#allocation38_spill] sm:$0xff] }
 0xd6a   : > { %34288 = vmatmul.mubr.msk.f32.vlgmr.msra.gmra.mxu1 %vm2890_vm4, %v42505_v44  ;;  %34291 = vmatpush3.msra.mxu0 %v40087_v60 }
 0xd6b   : > { %34296 = vmatpush3.msra.mxu1 %v40089_v54  ;;  %34292 = vmatprep.mubr.msk.f32.mxu0 %vm2890_vm4, %v42506_v41  ;;  %v42513_v41 = vld [vmem:[#allocation37_spill] sm:$0xff] }
 0xd6c   : > { %34297 = vmatprep.mubr.msk.f32.mxu1 %vm2890_vm4, %v42507_v47  ;;  %34300 = vmatprep.subr.mxu0 %v42324_v14 }
 0xd6d   : > { %34293 = vmatmul.mubr.msk.f32.vlgmr.msra.gmra.mxu0 %vm2890_vm4, %v42508_v17  ;;  %34307 = vmatprep.subr.mxu1 %v42324_v14 }
 0xd6e   : > { %34298 = vmatmul.mubr.msk.f32.vlgmr.msra.gmra.mxu1 %vm2890_vm4, %v42509_v37  ;;  %34304 = vmatprep.mubr.msk.f32.mxu0 %vm36022_vm3, %v42324_v14 }
 0xd6f   : > { %34311 = vmatprep.mubr.msk.f32.mxu1 %vm36022_vm3, %v42324_v14 }
 0xdfe   : > { %v40225_v4 = vpop.f32.mrf.mxu0 }
 0xdff   : > { %v40227_v32 = vpop.f32.mrf.mxu1 }
 0xe00   : > { %v34210_v39 = vpop.f32.mrf.mxu0 }
 0xe01   : > { %v34217_v45 = vpop.f32.mrf.mxu1  ;;  %v42514_v39 = vld [vmem:[#allocation40_spill] sm:$0xff] }
 0xe02   : > { %v42515_v45 = vld [vmem:[#allocation39_spill] sm:$0xff] }
 0xe08   : > { %v40229_v0 = vpop.f32.mrf.mxu0 }
 0xe09   : > { %v40231_v27 = vpop.f32.mrf.mxu1 }
 0xe0a   : > { %v34224_v57 = vpop.f32.mrf.mxu0 }
 0xe0b   : > { %v34231_v18 = vpop.f32.mrf.mxu1  ;;  %v20751_v57 = vadd.f32 %v40225_v4, %v40029_v46  ;;  %v40334_v4 = vld [vmem:[%s42055_s12 + $0x8] sm:$0xff] }
 0xe0c   : > { %v40323_v18 = vld [vmem:[%s42055_s12 + $0x10] sm:$0xff] }
 0xe12   : > { %v40233_v9 = vpop.f32.mrf.mxu0 }
 0xe13   : > { %v40235_v36 = vpop.f32.mrf.mxu1 }
 0xe14   : > { %v34238_v26 = vpop.f32.mrf.mxu0 }
 0xe15   : > { %v34245_v3 = vpop.f32.mrf.mxu1  ;;  %v20824_v26 = vadd.f32 %v40227_v32, %v40031_v58  ;;  %v40346_v32 = vld [vmem:[%s42055_s12] sm:$0xff] }
 0xe16   : > { %v42518_v3 = vld [vmem:[#allocation85_spill] sm:$0xff] }
 0xe1c   : > { %v40237_v62 = vpop.f32.mrf.mxu0 }
 0xe1d   : > { %v40239_v52 = vpop.f32.mrf.mxu1 }
 0xe1e   : > { %v34252_v31 = vpop.f32.mrf.mxu0 }
 0xe1f   : > { %v34259_v11 = vpop.f32.mrf.mxu1  ;;  %v40340_v31 = vmul.f32 %v42518_v3, %v20751_v57 }
 0xe20   : > { %v42519_v11 = vld [vmem:[#allocation86_spill] sm:$0xff] }
 0xe21   : > { %v34264_v16 = vpop.f32.mrf.mxu0 }
 0xe22   : > { %v21345_v28 = vadd.f32 %v34264_v16, %v42470_v21  ;;  %v34269_v56 = vpop.f32.mrf.mxu1  ;;  %v40350_v16 = vmul.f32 %v42519_v11, %v20824_v26  ;;  %v42530_v11 = vld [vmem:[#allocation67_spill] sm:$0xff] }
 0xe23   : > { %v21420_v23 = vadd.f32 %v34269_v56, %v42471_v50  ;;  %v21339_v42 = vpop.f32.mrf.mxu0  ;;  %v20970_v56 = vadd.f32 %v40231_v27, %v40051_v25  ;;  %v42521_v27 = vld [vmem:[#allocation60_spill] sm:$0xff] }
 0xe24   : > { %v21340_v22 = vadd.f32 %v21339_v42, %v42472_v10  ;;  %v21414_v33 = vpop.f32.mrf.mxu1  ;;  %34301 = vmatpush3.msk.msra.mxu0 %vm1433_vm1, %v21345_v28  ;;  %v42510_v10 = vld [vmem:[#allocation36_spill] sm:$0xff]  ;;  %v20897_v28 = vadd.f32 %v40229_v0, %v40049_v29  ;;  %v42520_v0 = vld [vmem:[#allocation59_spill] sm:$0xff] }
 0xe25   : > { %v21415_v24 = vadd.f32 %v21414_v33, %v42473_v63  ;;  %34308 = vmatpush3.msk.msra.mxu1 %vm1433_vm1, %v21420_v23  ;;  %v34274_v2 = vpop.f32.mrf.mxu0  ;;  %34302 = vmatprep.subr.mxu0 %v42324_v14  ;;  %v40384_v42 = vmul.f32 %v42521_v27, %v20970_v56  ;;  %v21116_v33 = vadd.f32 %v40235_v36, %v40071_v19  ;;  %v42523_v36 = vld [vmem:[#allocation62_spill] sm:$0xff]  ;;  %v42531_v56 = vld [vmem:[#allocation68_spill] sm:$0xff] }
 0xe26   : > { %v21495_v7 = vadd.f32 %v34274_v2, %v42476_v48  ;;  %v34279_v55 = vpop.f32.mrf.mxu1  ;;  %34309 = vmatprep.subr.mxu1 %v42324_v14  ;;  %34303 = vmatpush3.msra.mxu0 %v21340_v22  ;;  %v40379_v23 = vmul.f32 %v42520_v0, %v20897_v28  ;;  %v21043_v22 = vadd.f32 %v40233_v9, %v40069_v40  ;;  %v42522_v9 = vld [vmem:[#allocation61_spill] sm:$0xff] }
 0xe27   : > { %v21570_v21 = vadd.f32 %v34279_v55, %v42477_v43  ;;  %34310 = vmatpush3.msra.mxu1 %v21415_v24  ;;  %v21489_v50 = vpop.f32.mrf.mxu0  ;;  %34305 = vmatmul.mubr.msk.f32.vlgmr.msra.gmra.mxu0 %vm1429_vm2, %v42510_v10  ;;  %v40418_v2 = vmul.f32 %v42523_v36, %v21116_v33  ;;  %v21262_v55 = vadd.f32 %v40239_v52, %v40089_v54  ;;  %v42525_v52 = vld [vmem:[#allocation88_spill] sm:$0xff] }
 0xe28   : > { %v21490_v63 = vadd.f32 %v21489_v50, %v42478_v59  ;;  %v21564_v1 = vpop.f32.mrf.mxu1  ;;  %34312 = vmatmul.mubr.msk.f32.vlgmr.msra.gmra.mxu1 %vm1429_vm2, %v42511_v20  ;;  %34314 = vmatprep.subr.mxu0 %v42324_v14  ;;  %v40413_v24 = vmul.f32 %v42522_v9, %v21043_v22  ;;  %v40468_v10 = vld [vmem:[%s42054_s11 + $0x18] sm:$0xff]  ;;  %v40495_v20 = vld [vmem:[%s42054_s11] sm:$0xff] }
 0xe29   : > { %v21565_v48 = vadd.f32 %v21564_v1, %v42479_v8  ;;  %34321 = vmatprep.subr.mxu1 %v42324_v14  ;;  %34315 = vmatpush3.msk.msra.mxu0 %vm1433_vm1, %v21495_v7  ;;  %v34284_v43 = vpop.f32.mrf.mxu0  ;;  %v21189_v7 = vadd.f32 %v40237_v62, %v40087_v60  ;;  %v42524_v62 = vld [vmem:[#allocation87_spill] sm:$0xff]  ;;  %v40452_v50 = vmul.f32 %v42525_v52, %v21262_v55  ;;  %v40486_v1 = vld [vmem:[%s42054_s11 + $0x8] sm:$0xff]  ;;  %v42532_v55 = vld [vmem:[#allocation89_spill] sm:$0xff] }
 0xe2a   : > { %34322 = vmatpush3.msk.msra.mxu1 %vm1433_vm1, %v21570_v21  ;;  %v34289_v12 = vpop.f32.mrf.mxu1  ;;  %34316 = vmatprep.subr.mxu0 %v42324_v14  ;;  %v21645_v59 = vadd.f32 %v34284_v43, %v42482_v38  ;;  %v42533_v52 = vld [vmem:[#allocation90_spill] sm:$0xff] }
 0xe2b   : > { %34323 = vmatprep.subr.mxu1 %v42324_v14  ;;  %34317 = vmatpush3.msra.mxu0 %v21490_v63  ;;  %v21639_v53 = vpop.f32.mrf.mxu0  ;;  %v21720_v51 = vadd.f32 %v34289_v12, %v42483_v6  ;;  %v40447_v21 = vmul.f32 %v42524_v62, %v21189_v7  ;;  %v40477_v63 = vld [vmem:[%s42054_s11 + $0x10] sm:$0xff] }
 0xe2c   : > { %34318 = vmatprep.mubr.msk.f32.mxu0 %vm36022_vm3, %v42324_v14  ;;  %34324 = vmatpush3.msra.mxu1 %v21565_v48  ;;  %v21714_v8 = vpop.f32.mrf.mxu1  ;;  %v21640_v13 = vadd.f32 %v21639_v53, %v42484_v15 }
 0xe2d   : > { %34325 = vmatprep.mubr.msk.f32.mxu1 %vm36022_vm3, %v42324_v14  ;;  %34319 = vmatmul.mubr.msk.f32.vlgmr.msra.gmra.mxu0 %vm1429_vm2, %v42512_v49  ;;  %v34294_v38 = vpop.f32.mrf.mxu0  ;;  %v21715_v44 = vadd.f32 %v21714_v8, %v42485_v30  ;;  %v42527_v49 = vld [vmem:[#allocation64_spill] sm:$0xff] }
 0xe2e   : > { %34326 = vmatmul.mubr.msk.f32.vlgmr.msra.gmra.mxu1 %vm1429_vm2, %v42513_v41  ;;  %34328 = vmatprep.subr.mxu0 %v42324_v14  ;;  %v34299_v6 = vpop.f32.mrf.mxu1  ;;  %v21795_v47 = vadd.f32 %v34294_v38, %v42488_v34 }
 0xe2f   : > { %34335 = vmatprep.subr.mxu1 %v42324_v14  ;;  %34329 = vmatpush3.msk.msra.mxu0 %vm1433_vm1, %v21645_v59  ;;  %v21789_v15 = vpop.f32.mrf.mxu0  ;;  %v21870_v17 = vadd.f32 %v34299_v6, %v42489_v61  ;;  %v42516_v61 = vld [vmem:[#allocation42_spill] sm:$0xff] }
 0xe30   : > { %34336 = vmatpush3.msk.msra.mxu1 %vm1433_vm1, %v21720_v51  ;;  %34330 = vmatprep.subr.mxu0 %v42324_v14  ;;  %v21864_v30 = vpop.f32.mrf.mxu1  ;;  %v21790_v37 = vadd.f32 %v21789_v15, %v42490_v35  ;;  %v42517_v35 = vld [vmem:[#allocation41_spill] sm:$0xff]  ;;  %v42526_v51 = vld [vmem:[#allocation63_spill] sm:$0xff] }
 0xe31   : > { %34337 = vmatprep.subr.mxu1 %v42324_v14  ;;  %34331 = vmatpush3.msra.mxu0 %v21640_v13  ;;  %v21865_v34 = vadd.f32 %v21864_v30, %v42491_v5  ;;  %v40312_v5 = vld [vmem:[%s42055_s12 + $0x18] sm:$0xff] }
 0xe32   : > { %34332 = vmatprep.mubr.msk.f32.mxu0 %vm36022_vm3, %v42324_v14  ;;  %34338 = vmatpush3.msra.mxu1 %v21715_v44 }
 0xe33   : > { %34339 = vmatprep.mubr.msk.f32.mxu1 %vm36022_vm3, %v42324_v14  ;;  %34333 = vmatmul.mubr.msk.f32.vlgmr.msra.gmra.mxu0 %vm1429_vm2, %v42514_v39 }
 0xe34   : > { %34340 = vmatmul.mubr.msk.f32.vlgmr.msra.gmra.mxu1 %vm1429_vm2, %v42515_v45  ;;  %34342 = vmatprep.subr.mxu0 %v42324_v14 }
 0xe35   : > { %34349 = vmatprep.subr.mxu1 %v42324_v14  ;;  %34343 = vmatpush3.msk.msra.mxu0 %vm1433_vm1, %v21795_v47 }
 0xe36   : > { %34350 = vmatpush3.msk.msra.mxu1 %vm1433_vm1, %v21870_v17  ;;  %34344 = vmatprep.subr.mxu0 %v42324_v14  ;;  %v42528_v17 = vld [vmem:[#allocation65_spill] sm:$0xff] }
 0xe37   : > { %34351 = vmatprep.subr.mxu1 %v42324_v14  ;;  %34345 = vmatpush3.msra.mxu0 %v21790_v37 }
 0xe38   : > { %34346 = vmatprep.mubr.msk.f32.mxu0 %vm36022_vm3, %v42324_v14  ;;  %34352 = vmatpush3.msra.mxu1 %v21865_v34  ;;  %v42529_v34 = vld [vmem:[#allocation66_spill] sm:$0xff] }
 0xe39   : > { %34353 = vmatprep.mubr.msk.f32.mxu1 %vm36022_vm3, %v42324_v14  ;;  %34347 = vmatmul.mubr.msk.f32.vlgmr.msra.gmra.mxu0 %vm1429_vm2, %v42516_v61 }
 0xe3a   : > { %34354 = vmatmul.mubr.msk.f32.vlgmr.msra.gmra.mxu1 %vm1429_vm2, %v42517_v35  ;;  %34356 = vmatprep.subr.mxu0 %v42324_v14 }
 0xe3b   : > { %34367 = vmatprep.subr.mxu1 %v42324_v14  ;;  %34357 = vmatpush3.msra.mxu0 %v40312_v5 }
 0xe3c   : > { %34368 = vmatpush3.msra.mxu1 %v40312_v5  ;;  %34358 = vmatprep.subr.mxu0 %v42324_v14 }
 0xe3d   : > { %34369 = vmatprep.subr.mxu1 %v42324_v14  ;;  %34359 = vmatpush3.msra.mxu0 %v40323_v18 }
 0xe3e   : > { %34370 = vmatpush3.msra.mxu1 %v40323_v18  ;;  %34360 = vmatprep.subr.mxu0 %v42324_v14 }
 0xe3f   : > { %34371 = vmatprep.subr.mxu1 %v42324_v14  ;;  %34361 = vmatpush3.msra.mxu0 %v40334_v4 }
 0xe40   : > { %34372 = vmatpush3.msra.mxu1 %v40334_v4  ;;  %34362 = vmatprep.subr.mxu0 %v42324_v14 }
 0xe41   : > { %34373 = vmatprep.subr.mxu1 %v42324_v14  ;;  %34363 = vmatpush3.msra.mxu0 %v40346_v32 }
 0xe42   : > { %34364 = vmatprep.mubr.msk.f32.mxu0 %vm36022_vm3, %v42324_v14  ;;  %34374 = vmatpush3.msra.mxu1 %v40346_v32 }
 0xe43   : > { %34375 = vmatprep.mubr.msk.f32.mxu1 %vm36022_vm3, %v42324_v14  ;;  %34365 = vmatmul.mubr.msk.f32.vlgmr.msra.gmra.mxu0 %vm780_vm0, %v40340_v31 }
 0xe44   : > { %34376 = vmatmul.mubr.msk.f32.vlgmr.msra.gmra.mxu1 %vm780_vm0, %v40350_v16  ;;  %34378 = vmatprep.subr.mxu0 %v42324_v14 }
 0xe45   : > { %34389 = vmatprep.subr.mxu1 %v42324_v14  ;;  %34379 = vmatpush3.msra.mxu0 %v40312_v5 }
 0xe46   : > { %34390 = vmatpush3.msra.mxu1 %v40312_v5  ;;  %34380 = vmatprep.subr.mxu0 %v42324_v14 }
 0xe47   : > { %34391 = vmatprep.subr.mxu1 %v42324_v14  ;;  %34381 = vmatpush3.msra.mxu0 %v40323_v18 }
 0xe48   : > { %34392 = vmatpush3.msra.mxu1 %v40323_v18  ;;  %34382 = vmatprep.subr.mxu0 %v42324_v14 }
 0xe49   : > { %34393 = vmatprep.subr.mxu1 %v42324_v14  ;;  %34383 = vmatpush3.msra.mxu0 %v40334_v4 }
 0xe4a   : > { %34394 = vmatpush3.msra.mxu1 %v40334_v4  ;;  %34384 = vmatprep.subr.mxu0 %v42324_v14 }
 0xe4b   : > { %34395 = vmatprep.subr.mxu1 %v42324_v14  ;;  %34385 = vmatpush3.msra.mxu0 %v40346_v32 }
 0xe4c   : > { %34386 = vmatprep.mubr.msk.f32.mxu0 %vm36022_vm3, %v42324_v14  ;;  %34396 = vmatpush3.msra.mxu1 %v40346_v32 }
 0xe4d   : > { %34397 = vmatprep.mubr.msk.f32.mxu1 %vm36022_vm3, %v42324_v14  ;;  %34387 = vmatmul.mubr.msk.f32.vlgmr.msra.gmra.mxu0 %vm780_vm0, %v40379_v23 }
 0xe4e   : > { %34398 = vmatmul.mubr.msk.f32.vlgmr.msra.gmra.mxu1 %vm780_vm0, %v40384_v42  ;;  %34400 = vmatprep.subr.mxu0 %v42324_v14 }
 0xe4f   : > { %34411 = vmatprep.subr.mxu1 %v42324_v14  ;;  %34401 = vmatpush3.msra.mxu0 %v40312_v5 }
 0xe50   : > { %34412 = vmatpush3.msra.mxu1 %v40312_v5  ;;  %34402 = vmatprep.subr.mxu0 %v42324_v14 }
 0xe51   : > { %34413 = vmatprep.subr.mxu1 %v42324_v14  ;;  %34403 = vmatpush3.msra.mxu0 %v40323_v18 }
 0xe52   : > { %34414 = vmatpush3.msra.mxu1 %v40323_v18  ;;  %34404 = vmatprep.subr.mxu0 %v42324_v14 }
 0xe53   : > { %34415 = vmatprep.subr.mxu1 %v42324_v14  ;;  %34405 = vmatpush3.msra.mxu0 %v40334_v4 }
 0xe54   : > { %34416 = vmatpush3.msra.mxu1 %v40334_v4  ;;  %34406 = vmatprep.subr.mxu0 %v42324_v14 }
 0xe55   : > { %34417 = vmatprep.subr.mxu1 %v42324_v14  ;;  %34407 = vmatpush3.msra.mxu0 %v40346_v32 }
 0xe56   : > { %34408 = vmatprep.mubr.msk.f32.mxu0 %vm36022_vm3, %v42324_v14  ;;  %34418 = vmatpush3.msra.mxu1 %v40346_v32 }
 0xe57   : > { %34419 = vmatprep.mubr.msk.f32.mxu1 %vm36022_vm3, %v42324_v14  ;;  %34409 = vmatmul.mubr.msk.f32.vlgmr.msra.gmra.mxu0 %vm780_vm0, %v40413_v24 }
 0xe58   : > { %34420 = vmatmul.mubr.msk.f32.vlgmr.msra.gmra.mxu1 %vm780_vm0, %v40418_v2  ;;  %34422 = vmatprep.subr.mxu0 %v42324_v14 }
 0xe59   : > { %34433 = vmatprep.subr.mxu1 %v42324_v14  ;;  %34423 = vmatpush3.msra.mxu0 %v40312_v5 }
 0xe5a   : > { %34434 = vmatpush3.msra.mxu1 %v40312_v5  ;;  %34424 = vmatprep.subr.mxu0 %v42324_v14 }
 0xe5b   : > { %34435 = vmatprep.subr.mxu1 %v42324_v14  ;;  %34425 = vmatpush3.msra.mxu0 %v40323_v18 }
 0xe5c   : > { %34436 = vmatpush3.msra.mxu1 %v40323_v18  ;;  %34426 = vmatprep.subr.mxu0 %v42324_v14 }
 0xe5d   : > { %34437 = vmatprep.subr.mxu1 %v42324_v14  ;;  %34427 = vmatpush3.msra.mxu0 %v40334_v4 }
 0xe5e   : > { %34438 = vmatpush3.msra.mxu1 %v40334_v4  ;;  %34428 = vmatprep.subr.mxu0 %v42324_v14 }
 0xe5f   : > { %34439 = vmatprep.subr.mxu1 %v42324_v14  ;;  %34429 = vmatpush3.msra.mxu0 %v40346_v32 }
 0xe60   : > { %34430 = vmatprep.mubr.msk.f32.mxu0 %vm36022_vm3, %v42324_v14  ;;  %34440 = vmatpush3.msra.mxu1 %v40346_v32 }
 0xe61   : > { %34441 = vmatprep.mubr.msk.f32.mxu1 %vm36022_vm3, %v42324_v14  ;;  %34431 = vmatmul.mubr.msk.f32.vlgmr.msra.gmra.mxu0 %vm780_vm0, %v40447_v21 }
 0xe62   : > { %34442 = vmatmul.mubr.msk.f32.vlgmr.msra.gmra.mxu1 %vm780_vm0, %v40452_v50  ;;  %34444 = vmatprep.subr.mxu0 %v42324_v14 }
 0xe63   : > { %34455 = vmatprep.subr.mxu1 %v42324_v14  ;;  %34445 = vmatpush3.msra.mxu0 %v40468_v10 }
 0xe64   : > { %34456 = vmatpush3.msra.mxu1 %v40468_v10  ;;  %34446 = vmatprep.subr.mxu0 %v42324_v14 }
 0xe65   : > { %34457 = vmatprep.subr.mxu1 %v42324_v14  ;;  %34447 = vmatpush3.msra.mxu0 %v40477_v63 }
 0xe66   : > { %34458 = vmatpush3.msra.mxu1 %v40477_v63  ;;  %34448 = vmatprep.subr.mxu0 %v42324_v14 }
 0xe67   : > { %34459 = vmatprep.subr.mxu1 %v42324_v14  ;;  %34449 = vmatpush3.msra.mxu0 %v40486_v1 }
 0xe68   : > { %34460 = vmatpush3.msra.mxu1 %v40486_v1  ;;  %34450 = vmatprep.subr.mxu0 %v42324_v14 }
 0xe69   : > { %34461 = vmatprep.subr.mxu1 %v42324_v14  ;;  %34451 = vmatpush3.msra.mxu0 %v40495_v20 }
 0xe6a   : > { %34462 = vmatpush3.msra.mxu1 %v40495_v20  ;;  %34452 = vmatprep.mubr.msk.f32.mxu0 %vm36022_vm3, %v42324_v14 }
 0xe6b   : > { %34463 = vmatprep.mubr.msk.f32.mxu1 %vm36022_vm3, %v42324_v14  ;;  %34466 = vmatprep.subr.mxu0 %v42324_v14 }
 0xe6c   : > { %34477 = vmatprep.subr.mxu1 %v42324_v14 }
 0xee7   : > { %v21942_v48 = vpop.f32.mrf.mxu0 }
 0xee8   : > { %v21943_v43 = vadd.f32 %v21942_v48, %v40029_v46  ;;  %v22015_v12 = vpop.f32.mrf.mxu1 }
 0xee9   : > { %v22016_v59 = vadd.f32 %v22015_v12, %v40031_v58  ;;  %v34306_v53 = vpop.f32.mrf.mxu0  ;;  %v40642_v12 = vld [vmem:[%s42056_s13 + $0x8] sm:$0xff] }
 0xeea   : > { %v40508_v8 = vmul.f32 %v42526_v51, %v21943_v43  ;;  %v34313_v13 = vpop.f32.mrf.mxu1  ;;  %v40653_v51 = vld [vmem:[%s42056_s13] sm:$0xff] }
 0xeeb   : > { %v40511_v38 = vmul.f32 %v42527_v49, %v22016_v59 }
 0xeec   : > { %34453 = vmatmul.mubr.msk.f32.vlgmr.msra.gmra.mxu0 %vm780_vm0, %v40508_v8  ;;  %v23633_v53 = vmul.f32 %v40508_v8, %v40340_v31 }
 0xeed   : > { %v22088_v44 = vpop.f32.mrf.mxu0  ;;  %34464 = vmatmul.mubr.msk.f32.vlgmr.msra.gmra.mxu1 %vm780_vm0, %v40511_v38  ;;  %34467 = vmatpush3.msra.mxu0 %v40468_v10  ;;  %v23634_v13 = vmul.f32 %v40511_v38, %v40350_v16 }
 0xeee   : > { %v22161_v41 = vpop.f32.mrf.mxu1  ;;  %34478 = vmatpush3.msra.mxu1 %v40468_v10  ;;  %34468 = vmatprep.subr.mxu0 %v42324_v14  ;;  %v22089_v6 = vadd.f32 %v22088_v44, %v40049_v29 }
 0xeef   : > { %v34320_v15 = vpop.f32.mrf.mxu0  ;;  %34479 = vmatprep.subr.mxu1 %v42324_v14  ;;  %34469 = vmatpush3.msra.mxu0 %v40477_v63  ;;  %v22162_v47 = vadd.f32 %v22161_v41, %v40051_v25 }
 0xef0   : > { %v34327_v30 = vpop.f32.mrf.mxu1  ;;  %34480 = vmatpush3.msra.mxu1 %v40477_v63  ;;  %34470 = vmatprep.subr.mxu0 %v42324_v14  ;;  %v40531_v37 = vmul.f32 %v42528_v17, %v22089_v6 }
 0xef1   : > { %34481 = vmatprep.subr.mxu1 %v42324_v14  ;;  %34471 = vmatpush3.msra.mxu0 %v40486_v1  ;;  %v40536_v45 = vmul.f32 %v42529_v34, %v22162_v47 }
 0xef2   : > { %34482 = vmatpush3.msra.mxu1 %v40486_v1  ;;  %34472 = vmatprep.subr.mxu0 %v42324_v14  ;;  %v23635_v15 = vmul.f32 %v40531_v37, %v40379_v23 }
 0xef3   : > { %v22234_v39 = vpop.f32.mrf.mxu0  ;;  %34483 = vmatprep.subr.mxu1 %v42324_v14  ;;  %34473 = vmatpush3.msra.mxu0 %v40495_v20  ;;  %v23636_v47 = vmul.f32 %v40536_v45, %v40384_v42 }
 0xef4   : > { %v22307_v61 = vpop.f32.mrf.mxu1  ;;  %34474 = vmatprep.mubr.msk.f32.mxu0 %vm36022_vm3, %v42324_v14  ;;  %34484 = vmatpush3.msra.mxu1 %v40495_v20  ;;  %v22235_v57 = vadd.f32 %v22234_v39, %v40069_v40 }
 0xef5   : > { %v34334_v35 = vpop.f32.mrf.mxu0  ;;  %34485 = vmatprep.mubr.msk.f32.mxu1 %vm36022_vm3, %v42324_v14  ;;  %34475 = vmatmul.mubr.msk.f32.vlgmr.msra.gmra.mxu0 %vm780_vm0, %v40531_v37  ;;  %v22308_v26 = vadd.f32 %v22307_v61, %v40071_v19 }
 0xef6   : > { %v34341_v5 = vpop.f32.mrf.mxu1  ;;  %34486 = vmatmul.mubr.msk.f32.vlgmr.msra.gmra.mxu1 %vm780_vm0, %v40536_v45  ;;  %34488 = vmatprep.subr.mxu0 %v42324_v14  ;;  %v40563_v28 = vmul.f32 %v42530_v11, %v22235_v57  ;;  %v24234_v11 = vsub.f32 %v40511_v38, %v40350_v16 }
 0xef7   : > { %34499 = vmatprep.subr.mxu1 %v42324_v14  ;;  %34489 = vmatpush3.msra.mxu0 %v40468_v10  ;;  %v40568_v0 = vmul.f32 %v42531_v56, %v22308_v26  ;;  %v40765_v26 = vld [vmem:[%s42057_s14 + $0x10] sm:$0xff]  ;;  %v24235_v56 = vsub.f32 %v40531_v37, %v40379_v23 }
 0xef8   : > { %34500 = vmatpush3.msra.mxu1 %v40468_v10  ;;  %34490 = vmatprep.subr.mxu0 %v42324_v14  ;;  %v23637_v61 = vmul.f32 %v40563_v28, %v40413_v24 }
 0xef9   : > { %v22380_v18 = vpop.f32.mrf.mxu0  ;;  %34501 = vmatprep.subr.mxu1 %v42324_v14  ;;  %34491 = vmatpush3.msra.mxu0 %v40477_v63  ;;  %v23638_v35 = vmul.f32 %v40568_v0, %v40418_v2 }
 0xefa   : > { %v22453_v4 = vpop.f32.mrf.mxu1  ;;  %34502 = vmatpush3.msra.mxu1 %v40477_v63  ;;  %34492 = vmatprep.subr.mxu0 %v42324_v14  ;;  %v22381_v27 = vadd.f32 %v22380_v18, %v40087_v60  ;;  %v40756_v18 = vld [vmem:[%s42057_s14 + $0x18] sm:$0xff] }
 0xefb   : > { %v34348_v3 = vpop.f32.mrf.mxu0  ;;  %34503 = vmatprep.subr.mxu1 %v42324_v14  ;;  %34493 = vmatpush3.msra.mxu0 %v40486_v1  ;;  %v22454_v33 = vadd.f32 %v22453_v4, %v40089_v54  ;;  %v40774_v4 = vld [vmem:[%s42057_s14 + $0x8] sm:$0xff] }
 0xefc   : > { %v34355_v32 = vpop.f32.mrf.mxu1  ;;  %34504 = vmatpush3.msra.mxu1 %v40486_v1  ;;  %34494 = vmatprep.subr.mxu0 %v42324_v14  ;;  %v40599_v62 = vmul.f32 %v42532_v55, %v22381_v27  ;;  %v24233_v3 = vsub.f32 %v40508_v8, %v40340_v31  ;;  %v24236_v27 = vsub.f32 %v40536_v45, %v40384_v42 }
 0xefd   : > { %34505 = vmatprep.subr.mxu1 %v42324_v14  ;;  %34495 = vmatpush3.msra.mxu0 %v40495_v20  ;;  %v40785_v32 = vld [vmem:[%s42057_s14] sm:$0xff] }
 0xefe   : > { %34496 = vmatprep.mubr.msk.f32.mxu0 %vm36022_vm3, %v42324_v14  ;;  %34506 = vmatpush3.msra.mxu1 %v40495_v20  ;;  %v23639_v5 = vmul.f32 %v40599_v62, %v40447_v21 }
 0xeff   : > { %34507 = vmatprep.mubr.msk.f32.mxu1 %vm36022_vm3, %v42324_v14  ;;  %34497 = vmatmul.mubr.msk.f32.vlgmr.msra.gmra.mxu0 %vm780_vm0, %v40563_v28 }
 0xf00   : > { %34508 = vmatmul.mubr.msk.f32.vlgmr.msra.gmra.mxu1 %vm780_vm0, %v40568_v0  ;;  %34510 = vmatprep.subr.mxu0 %v42324_v14 }
 0xf01   : > { %34521 = vmatprep.subr.mxu1 %v42324_v14  ;;  %34511 = vmatpush3.msra.mxu0 %v40468_v10 }
 0xf02   : > { %34522 = vmatpush3.msra.mxu1 %v40468_v10  ;;  %34512 = vmatprep.subr.mxu0 %v42324_v14  ;;  %v40604_v10 = vmul.f32 %v42533_v52, %v22454_v33  ;;  %v24237_v33 = vsub.f32 %v40563_v28, %v40413_v24  ;;  %v40880_v52 = vld [vmem:[%s42369_s6 + $0x18] sm:$0xff] }
 0xf03   : > { %v40585_v22 = vpop.f32.mrf.mxu0  ;;  %34523 = vmatprep.subr.mxu1 %v42324_v14  ;;  %34513 = vmatpush3.msra.mxu0 %v40477_v63 }
 0xf04   : > { %v40590_v9 = vpop.f32.mrf.mxu1  ;;  %34524 = vmatpush3.msra.mxu1 %v40477_v63  ;;  %34514 = vmatprep.subr.mxu0 %v42324_v14  ;;  %v40620_v63 = vld [vmem:[%s42056_s13 + $0x18] sm:$0xff]  ;;  %v23640_v57 = vmul.f32 %v40604_v10, %v40452_v50  ;;  %v24240_v55 = vsub.f32 %v40604_v10, %v40452_v50 }
 0xf05   : > { %v34366_v36 = vpop.f32.mrf.mxu0  ;;  %34525 = vmatprep.subr.mxu1 %v42324_v14  ;;  %34515 = vmatpush3.msra.mxu0 %v40486_v1 }
 0xf06   : > { %v34377_v7 = vpop.f32.mrf.mxu1  ;;  %34526 = vmatpush3.msra.mxu1 %v40486_v1  ;;  %34516 = vmatprep.subr.mxu0 %v42324_v14  ;;  %v24238_v36 = vsub.f32 %v40568_v0, %v40418_v2 }
 0xf07   : > { %34527 = vmatprep.subr.mxu1 %v42324_v14  ;;  %34517 = vmatpush3.msra.mxu0 %v40495_v20  ;;  %v24239_v7 = vsub.f32 %v40599_v62, %v40447_v21 }
 0xf08   : > { %34518 = vmatprep.mubr.msk.f32.mxu0 %vm36022_vm3, %v42324_v14  ;;  %34528 = vmatpush3.msra.mxu1 %v40495_v20  ;;  %v40631_v20 = vld [vmem:[%s42056_s13 + $0x10] sm:$0xff] }
 0xf09   : > { %34529 = vmatprep.mubr.msk.f32.mxu1 %vm36022_vm3, %v42324_v14  ;;  %34519 = vmatmul.mubr.msk.f32.vlgmr.msra.gmra.mxu0 %vm780_vm0, %v40599_v62 }
 0xf0a   : > { %34530 = vmatmul.mubr.msk.f32.vlgmr.msra.gmra.mxu1 %vm780_vm0, %v40604_v10  ;;  %34532 = vmatprep.subr.mxu0 %v42324_v14 }
 0xf0b   : > { %34543 = vmatprep.subr.mxu1 %v42324_v14  ;;  %34533 = vmatpush3.msra.mxu0 %v40620_v63 }
 0xf0c   : > { %34544 = vmatpush3.msra.mxu1 %v40620_v63  ;;  %34534 = vmatprep.subr.mxu0 %v42324_v14 }
 0xf0d   : > { %v40625_v1 = vpop.f32.mrf.mxu0  ;;  %34545 = vmatprep.subr.mxu1 %v42324_v14  ;;  %34535 = vmatpush3.msra.mxu0 %v40631_v20 }
 0xf0e   : > { %v40634_v48 = vpop.f32.mrf.mxu1  ;;  %34546 = vmatpush3.msra.mxu1 %v40631_v20  ;;  %34536 = vmatprep.subr.mxu0 %v42324_v14 }
 0xf0f   : > { %v34388_v43 = vpop.f32.mrf.mxu0  ;;  %34547 = vmatprep.subr.mxu1 %v42324_v14  ;;  %34537 = vmatpush3.msra.mxu0 %v40642_v12 }
 0xf10   : > { %v34399_v59 = vpop.f32.mrf.mxu1  ;;  %34548 = vmatpush3.msra.mxu1 %v40642_v12  ;;  %34538 = vmatprep.subr.mxu0 %v42324_v14  ;;  %v40907_v43 = vld [vmem:[%s42369_s6] sm:$0xff] }
 0xf11   : > { %34549 = vmatprep.subr.mxu1 %v42324_v14  ;;  %34539 = vmatpush3.msra.mxu0 %v40653_v51 }
 0xf12   : > { %34540 = vmatprep.mubr.msk.f32.mxu0 %vm36022_vm3, %v42324_v14  ;;  %34550 = vmatpush3.msra.mxu1 %v40653_v51 }
 0xf13   : > { %34551 = vmatprep.mubr.msk.f32.mxu1 %vm36022_vm3, %v42324_v14  ;;  %34541 = vmatmul.mubr.msk.f32.vlgmr.msra.gmra.mxu0 %vm780_vm0, %v23633_v53 }
 0xf14   : > { %34552 = vmatmul.mubr.msk.f32.vlgmr.msra.gmra.mxu1 %vm780_vm0, %v23634_v13  ;;  %34554 = vmatprep.subr.mxu0 %v42324_v14 }
 0xf15   : > { %34565 = vmatprep.subr.mxu1 %v42324_v14  ;;  %34555 = vmatpush3.msra.mxu0 %v40620_v63 }
 0xf16   : > { %34566 = vmatpush3.msra.mxu1 %v40620_v63  ;;  %34556 = vmatprep.subr.mxu0 %v42324_v14 }
 0xf17   : > { %v40670_v49 = vpop.f32.mrf.mxu0  ;;  %34567 = vmatprep.subr.mxu1 %v42324_v14  ;;  %34557 = vmatpush3.msra.mxu0 %v40631_v20 }
 0xf18   : > { %v40674_v44 = vpop.f32.mrf.mxu1  ;;  %34568 = vmatpush3.msra.mxu1 %v40631_v20  ;;  %34558 = vmatprep.subr.mxu0 %v42324_v14 }
 0xf19   : > { %v34410_v41 = vpop.f32.mrf.mxu0  ;;  %34569 = vmatprep.subr.mxu1 %v42324_v14  ;;  %34559 = vmatpush3.msra.mxu0 %v40642_v12 }
 0xf1a   : > { %v34421_v6 = vpop.f32.mrf.mxu1  ;;  %34570 = vmatpush3.msra.mxu1 %v40642_v12  ;;  %34560 = vmatprep.subr.mxu0 %v42324_v14 }
 0xf1b   : > { %34571 = vmatprep.subr.mxu1 %v42324_v14  ;;  %34561 = vmatpush3.msra.mxu0 %v40653_v51 }
 0xf1c   : > { %34562 = vmatprep.mubr.msk.f32.mxu0 %vm36022_vm3, %v42324_v14  ;;  %34572 = vmatpush3.msra.mxu1 %v40653_v51 }
 0xf1d   : > { %34573 = vmatprep.mubr.msk.f32.mxu1 %vm36022_vm3, %v42324_v14  ;;  %34563 = vmatmul.mubr.msk.f32.vlgmr.msra.gmra.mxu0 %vm780_vm0, %v23635_v15 }
 0xf1e   : > { %34574 = vmatmul.mubr.msk.f32.vlgmr.msra.gmra.mxu1 %vm780_vm0, %v23636_v47  ;;  %34576 = vmatprep.subr.mxu0 %v42324_v14 }
 0xf1f   : > { %34587 = vmatprep.subr.mxu1 %v42324_v14  ;;  %34577 = vmatpush3.msra.mxu0 %v40620_v63 }
 0xf20   : > { %34588 = vmatpush3.msra.mxu1 %v40620_v63  ;;  %34578 = vmatprep.subr.mxu0 %v42324_v14 }
 0xf21   : > { %v40700_v30 = vpop.f32.mrf.mxu0  ;;  %34589 = vmatprep.subr.mxu1 %v42324_v14  ;;  %34579 = vmatpush3.msra.mxu0 %v40631_v20 }
 0xf22   : > { %v40704_v17 = vpop.f32.mrf.mxu1  ;;  %34590 = vmatpush3.msra.mxu1 %v40631_v20  ;;  %34580 = vmatprep.subr.mxu0 %v42324_v14 }
 0xf23   : > { %v34432_v39 = vpop.f32.mrf.mxu0  ;;  %34591 = vmatprep.subr.mxu1 %v42324_v14  ;;  %34581 = vmatpush3.msra.mxu0 %v40642_v12 }
 0xf24   : > { %v34443_v34 = vpop.f32.mrf.mxu1  ;;  %34592 = vmatpush3.msra.mxu1 %v40642_v12  ;;  %34582 = vmatprep.subr.mxu0 %v42324_v14 }
 0xf25   : > { %34593 = vmatprep.subr.mxu1 %v42324_v14  ;;  %34583 = vmatpush3.msra.mxu0 %v40653_v51 }
 0xf26   : > { %34584 = vmatprep.mubr.msk.f32.mxu0 %vm36022_vm3, %v42324_v14  ;;  %34594 = vmatpush3.msra.mxu1 %v40653_v51 }
 0xf27   : > { %34595 = vmatprep.mubr.msk.f32.mxu1 %vm36022_vm3, %v42324_v14  ;;  %34585 = vmatmul.mubr.msk.f32.vlgmr.msra.gmra.mxu0 %vm780_vm0, %v23637_v61 }
 0xf28   : > { %34596 = vmatmul.mubr.msk.f32.vlgmr.msra.gmra.mxu1 %vm780_vm0, %v23638_v35  ;;  %34598 = vmatprep.subr.mxu0 %v42324_v14 }
 0xf29   : > { %34609 = vmatprep.subr.mxu1 %v42324_v14  ;;  %34599 = vmatpush3.msra.mxu0 %v40620_v63 }
 0xf2a   : > { %34610 = vmatpush3.msra.mxu1 %v40620_v63  ;;  %34600 = vmatprep.subr.mxu0 %v42324_v14  ;;  %v40889_v63 = vld [vmem:[%s42369_s6 + $0x10] sm:$0xff] }
 0xf2b   : > { %34611 = vmatprep.subr.mxu1 %v42324_v14  ;;  %34601 = vmatpush3.msra.mxu0 %v40631_v20 }
 0xf2c   : > { %34612 = vmatpush3.msra.mxu1 %v40631_v20  ;;  %34602 = vmatprep.subr.mxu0 %v42324_v14  ;;  %v40898_v20 = vld [vmem:[%s42369_s6 + $0x8] sm:$0xff] }
 0xf2d   : > { %34613 = vmatprep.subr.mxu1 %v42324_v14  ;;  %34603 = vmatpush3.msra.mxu0 %v40642_v12 }
 0xf2e   : > { %34614 = vmatpush3.msra.mxu1 %v40642_v12  ;;  %34604 = vmatprep.subr.mxu0 %v42324_v14 }
 0xf2f   : > { %34615 = vmatprep.subr.mxu1 %v42324_v14  ;;  %34605 = vmatpush3.msra.mxu0 %v40653_v51 }
 0xf30   : > { %34606 = vmatprep.mubr.msk.f32.mxu0 %vm36022_vm3, %v42324_v14  ;;  %34616 = vmatpush3.msra.mxu1 %v40653_v51 }
 0xf31   : > { %34617 = vmatprep.mubr.msk.f32.mxu1 %vm36022_vm3, %v42324_v14  ;;  %34607 = vmatmul.mubr.msk.f32.vlgmr.msra.gmra.mxu0 %vm780_vm0, %v23639_v5 }
 0xf32   : > { %34618 = vmatmul.mubr.msk.f32.vlgmr.msra.gmra.mxu1 %vm780_vm0, %v23640_v57  ;;  %34620 = vmatprep.subr.mxu0 %v42324_v14 }
 0xf33   : > { %34631 = vmatprep.subr.mxu1 %v42324_v14  ;;  %34621 = vmatpush3.msra.mxu0 %v40756_v18 }
 0xf34   : > { %34632 = vmatpush3.msra.mxu1 %v40756_v18  ;;  %34622 = vmatprep.subr.mxu0 %v42324_v14 }
 0xf35   : > { %34633 = vmatprep.subr.mxu1 %v42324_v14  ;;  %34623 = vmatpush3.msra.mxu0 %v40765_v26 }
 0xf36   : > { %34634 = vmatpush3.msra.mxu1 %v40765_v26  ;;  %34624 = vmatprep.subr.mxu0 %v42324_v14 }
 0xf37   : > { %34635 = vmatprep.subr.mxu1 %v42324_v14  ;;  %34625 = vmatpush3.msra.mxu0 %v40774_v4 }
 0xf38   : > { %34636 = vmatpush3.msra.mxu1 %v40774_v4  ;;  %34626 = vmatprep.subr.mxu0 %v42324_v14 }
 0xf39   : > { %34637 = vmatprep.subr.mxu1 %v42324_v14  ;;  %34627 = vmatpush3.msra.mxu0 %v40785_v32 }
 0xf3a   : > { %34628 = vmatprep.mubr.msk.f32.mxu0 %vm36022_vm3, %v42324_v14  ;;  %34638 = vmatpush3.msra.mxu1 %v40785_v32 }
 0xf3b   : > { %34639 = vmatprep.mubr.msk.f32.mxu1 %vm36022_vm3, %v42324_v14  ;;  %34629 = vmatmul.mubr.msk.f32.vlgmr.msra.gmra.mxu0 %vm780_vm0, %v24233_v3 }
 0xf3c   : > { %34640 = vmatmul.mubr.msk.f32.vlgmr.msra.gmra.mxu1 %vm780_vm0, %v24234_v11  ;;  %34642 = vmatprep.subr.mxu0 %v42324_v14 }
 0xf3d   : > { %34653 = vmatprep.subr.mxu1 %v42324_v14  ;;  %34643 = vmatpush3.msra.mxu0 %v40756_v18 }
 0xf3e   : > { %34654 = vmatpush3.msra.mxu1 %v40756_v18  ;;  %34644 = vmatprep.subr.mxu0 %v42324_v14 }
 0xf3f   : > { %34655 = vmatprep.subr.mxu1 %v42324_v14  ;;  %34645 = vmatpush3.msra.mxu0 %v40765_v26 }
 0xf40   : > { %34656 = vmatpush3.msra.mxu1 %v40765_v26  ;;  %34646 = vmatprep.subr.mxu0 %v42324_v14 }
 0xf41   : > { %34657 = vmatprep.subr.mxu1 %v42324_v14  ;;  %34647 = vmatpush3.msra.mxu0 %v40774_v4 }
 0xf42   : > { %34658 = vmatpush3.msra.mxu1 %v40774_v4  ;;  %34648 = vmatprep.subr.mxu0 %v42324_v14 }
 0xf43   : > { %34659 = vmatprep.subr.mxu1 %v42324_v14  ;;  %34649 = vmatpush3.msra.mxu0 %v40785_v32 }
 0xf44   : > { %34650 = vmatprep.mubr.msk.f32.mxu0 %vm36022_vm3, %v42324_v14  ;;  %34660 = vmatpush3.msra.mxu1 %v40785_v32 }
 0xf45   : > { %34661 = vmatprep.mubr.msk.f32.mxu1 %vm36022_vm3, %v42324_v14  ;;  %34651 = vmatmul.mubr.msk.f32.vlgmr.msra.gmra.mxu0 %vm780_vm0, %v24235_v56 }
 0xf46   : > { %34662 = vmatmul.mubr.msk.f32.vlgmr.msra.gmra.mxu1 %vm780_vm0, %v24236_v27  ;;  %34664 = vmatprep.subr.mxu0 %v42324_v14 }
 0xf47   : > { %34675 = vmatprep.subr.mxu1 %v42324_v14  ;;  %34665 = vmatpush3.msra.mxu0 %v40756_v18 }
 0xf48   : > { %34676 = vmatpush3.msra.mxu1 %v40756_v18  ;;  %34666 = vmatprep.subr.mxu0 %v42324_v14 }
 0xf49   : > { %34677 = vmatprep.subr.mxu1 %v42324_v14  ;;  %34667 = vmatpush3.msra.mxu0 %v40765_v26 }
 0xf4a   : > { %34678 = vmatpush3.msra.mxu1 %v40765_v26  ;;  %34668 = vmatprep.subr.mxu0 %v42324_v14 }
 0xf4b   : > { %34679 = vmatprep.subr.mxu1 %v42324_v14  ;;  %34669 = vmatpush3.msra.mxu0 %v40774_v4 }
 0xf4c   : > { %34680 = vmatpush3.msra.mxu1 %v40774_v4  ;;  %34670 = vmatprep.subr.mxu0 %v42324_v14 }
 0xf4d   : > { %34681 = vmatprep.subr.mxu1 %v42324_v14  ;;  %34671 = vmatpush3.msra.mxu0 %v40785_v32 }
 0xf4e   : > { %34672 = vmatprep.mubr.msk.f32.mxu0 %vm36022_vm3, %v42324_v14  ;;  %34682 = vmatpush3.msra.mxu1 %v40785_v32 }
 0xf4f   : > { %34683 = vmatprep.mubr.msk.f32.mxu1 %vm36022_vm3, %v42324_v14  ;;  %34673 = vmatmul.mubr.msk.f32.vlgmr.msra.gmra.mxu0 %vm780_vm0, %v24237_v33 }
 0xf50   : > { %34684 = vmatmul.mubr.msk.f32.vlgmr.msra.gmra.mxu1 %vm780_vm0, %v24238_v36  ;;  %34686 = vmatprep.subr.mxu0 %v42324_v14 }
 0xf51   : > { %34697 = vmatprep.subr.mxu1 %v42324_v14  ;;  %34687 = vmatpush3.msra.mxu0 %v40756_v18 }
 0xf52   : > { %34698 = vmatpush3.msra.mxu1 %v40756_v18  ;;  %34688 = vmatprep.subr.mxu0 %v42324_v14 }
 0xf53   : > { %34699 = vmatprep.subr.mxu1 %v42324_v14  ;;  %34689 = vmatpush3.msra.mxu0 %v40765_v26 }
 0xf54   : > { %34700 = vmatpush3.msra.mxu1 %v40765_v26  ;;  %34690 = vmatprep.subr.mxu0 %v42324_v14 }
 0xf55   : > { %34701 = vmatprep.subr.mxu1 %v42324_v14  ;;  %34691 = vmatpush3.msra.mxu0 %v40774_v4 }
 0xf56   : > { %34702 = vmatpush3.msra.mxu1 %v40774_v4  ;;  %34692 = vmatprep.subr.mxu0 %v42324_v14 }
 0xf57   : > { %34703 = vmatprep.subr.mxu1 %v42324_v14  ;;  %34693 = vmatpush3.msra.mxu0 %v40785_v32 }
 0xf58   : > { %34694 = vmatprep.mubr.msk.f32.mxu0 %vm36022_vm3, %v42324_v14  ;;  %34704 = vmatpush3.msra.mxu1 %v40785_v32 }
 0xf59   : > { %34705 = vmatprep.mubr.msk.f32.mxu1 %vm36022_vm3, %v42324_v14  ;;  %34695 = vmatmul.mubr.msk.f32.vlgmr.msra.gmra.mxu0 %vm780_vm0, %v24239_v7 }
 0xf5a   : > { %34706 = vmatmul.mubr.msk.f32.vlgmr.msra.gmra.mxu1 %vm780_vm0, %v24240_v55  ;;  %34708 = vmatprep.subr.mxu0 %v42324_v14 }
 0xf5b   : > { %34719 = vmatprep.subr.mxu1 %v42324_v14  ;;  %34709 = vmatpush3.msra.mxu0 %v40880_v52 }
 0xf5c   : > { %34720 = vmatpush3.msra.mxu1 %v40880_v52  ;;  %34710 = vmatprep.subr.mxu0 %v42324_v14 }
 0xf5d   : > { %34721 = vmatprep.subr.mxu1 %v42324_v14  ;;  %34711 = vmatpush3.msra.mxu0 %v40889_v63 }
 0xf5e   : > { %34722 = vmatpush3.msra.mxu1 %v40889_v63  ;;  %34712 = vmatprep.subr.mxu0 %v42324_v14 }
 0xf5f   : > { %34723 = vmatprep.subr.mxu1 %v42324_v14  ;;  %34713 = vmatpush3.msra.mxu0 %v40898_v20 }
 0xf60   : > { %34724 = vmatpush3.msra.mxu1 %v40898_v20  ;;  %34714 = vmatprep.subr.mxu0 %v42324_v14 }
 0xf61   : > { %34725 = vmatprep.subr.mxu1 %v42324_v14  ;;  %34715 = vmatpush3.msra.mxu0 %v40907_v43 }
 0xf62   : > { %34726 = vmatpush3.msra.mxu1 %v40907_v43  ;;  %34716 = vmatprep.mubr.msk.f32.mxu0 %vm36022_vm3, %v42324_v14 }
 0xf63   : > { %34727 = vmatprep.mubr.msk.f32.mxu1 %vm36022_vm3, %v42324_v14  ;;  %34730 = vmatprep.subr.mxu0 %v42324_v14 }
 0xf64   : > { %34741 = vmatprep.subr.mxu1 %v42324_v14 }
 0xfac   : > { %v23118_v12 = vpop.f32.mrf.mxu0 }
 0xfad   : > { %v23191_v59 = vpop.f32.mrf.mxu1 }
 0xfae   : > { %v34454_v53 = vpop.f32.mrf.mxu0 }
 0xfaf   : > { %v34465_v51 = vpop.f32.mrf.mxu1 }
 0xfb5   : > { %v23264_v13 = vpop.f32.mrf.mxu0 }
 0xfb6   : > { %v23337_v41 = vpop.f32.mrf.mxu1 }
 0xfb7   : > { %v34476_v6 = vpop.f32.mrf.mxu0 }
 0xfb8   : > { %v34487_v15 = vpop.f32.mrf.mxu1 }
 0xfbf   : > { %v23410_v47 = vpop.f32.mrf.mxu0 }
 0xfc0   : > { %v23483_v39 = vpop.f32.mrf.mxu1 }
 0xfc1   : > { %v34498_v34 = vpop.f32.mrf.mxu0 }
 0xfc2   : > { %v34509_v61 = vpop.f32.mrf.mxu1 }
 0xfc3   : > { %v23119_v61 = vadd.f32 %v23118_v12, %v40585_v22 }
 0xfc9   : > { %v40917_v35 = vpop.f32.mrf.mxu0 }
 0xfca   : > { %v40919_v5 = vpop.f32.mrf.mxu1 }
 0xfcb   : > { %v34520_v57 = vpop.f32.mrf.mxu0 }
 0xfcc   : > { %v34531_v18 = vpop.f32.mrf.mxu1  ;;  %v23192_v57 = vadd.f32 %v23191_v59, %v40590_v9  ;;  %v23265_v9 = vadd.f32 %v23264_v13, %v40625_v1  ;;  %v23338_v59 = vadd.f32 %v23337_v41, %v40634_v48  ;;  %v23411_v1 = vadd.f32 %v23410_v47, %v40670_v49 }
 0xfcd   : > { %v23484_v48 = vadd.f32 %v23483_v39, %v40674_v44  ;;  %v23557_v39 = vadd.f32 %v40917_v35, %v40700_v30 }
 0xfd3   : > { %v23710_v26 = vpop.f32.mrf.mxu0 }
 0xfd4   : > { %v23783_v4 = vpop.f32.mrf.mxu1  ;;  %v24225_v18 = vadd.f32 %v23710_v26, %v23119_v61 }
 0xfd5   : > { %v34542_v3 = vpop.f32.mrf.mxu0  ;;  %v24226_v54 = vadd.f32 %v23783_v4, %v23192_v57 }
 0xfd6   : > { %v34553_v32 = vpop.f32.mrf.mxu1 }
 0xfdd   : > { %v23856_v11 = vpop.f32.mrf.mxu0 }
 0xfde   : > { %v23929_v56 = vpop.f32.mrf.mxu1 }
 0xfdf   : > { %v34564_v27 = vpop.f32.mrf.mxu0 }
 0xfe0   : > { %v34575_v33 = vpop.f32.mrf.mxu1 }
 0xfe1   : > { %v40926_v33 = vld [vmem:[%s42058_s15] ss:$0 sm:$0xff] }
 0xfe7   : > { %v24002_v36 = vpop.f32.mrf.mxu0 }
 0xfe8   : > { %v24075_v7 = vpop.f32.mrf.mxu1  ;;  %v24229_v13 = vadd.f32 %v24002_v36, %v23411_v1  ;;  %v23630_v36 = vadd.f32 %v40919_v5, %v40704_v17 }
 0xfe9   : > { %v34586_v55 = vpop.f32.mrf.mxu0 }
 0xfea   : > { %v34597_v53 = vpop.f32.mrf.mxu1 }
 0xff1   : > { %v24148_v51 = vpop.f32.mrf.mxu0 }
 0xff2   : > { %v24221_v6 = vpop.f32.mrf.mxu1 }
 0xff3   : > { %v34608_v15 = vpop.f32.mrf.mxu0 }
 0xff4   : > { %v34619_v34 = vpop.f32.mrf.mxu1 }
 0xffb   : > { %v24310_v3 = vpop.f32.mrf.mxu0 }
 0xffc   : > { %v24825_v32 = vadd.f32 %v24310_v3, %v24225_v18  ;;  %v24383_v60 = vpop.f32.mrf.mxu1 }
 0xffd   : > { %v24826_v19 = vadd.f32 %v24383_v60, %v24226_v54  ;;  %v34630_v27 = vpop.f32.mrf.mxu0  ;;  %v24227_v60 = vadd.f32 %v23856_v11, %v23265_v9  ;;  %v24228_v54 = vadd.f32 %v23929_v56, %v23338_v59  ;;  %v24230_v11 = vadd.f32 %v24075_v7, %v23484_v48 }
 0xffe   : > { %v24833_v55 = vadd.f32 %v40926_v33, %v24825_v32  ;;  %v34641_v53 = vpop.f32.mrf.mxu1  ;;  %v24231_v7 = vadd.f32 %v24148_v51, %v23557_v39 }
 0xfff   : > { %v24834_v15 = vadd.f32 %v40926_v33, %v24826_v19 }
0x1000   : > { %v30087_v22 = vmul.f32 -1.442695, %v24833_v55 }
0x1001   : > { %v30088_v12 = vmul.f32 -1.442695, %v24834_v15 }
0x1002   : > { %35714 = vpow2.f32 %v30087_v22 }
0x1003   : > { %35716 = vpow2.f32 %v30088_v12 }
0x1005   : > { %v24456_v26 = vpop.f32.mrf.mxu0 }
0x1006   : > { %v24827_v4 = vadd.f32 %v24456_v26, %v24227_v60  ;;  %v24529_v34 = vpop.f32.mrf.mxu1 }
0x1007   : > { %v24828_v61 = vadd.f32 %v24529_v34, %v24228_v54  ;;  %v34652_v57 = vpop.f32.mrf.mxu0 }
0x1008   : > { %v24835_v18 = vadd.f32 %v40926_v33, %v24827_v4  ;;  %v34663_v3 = vpop.f32.mrf.mxu1  ;;  %v24232_v4 = vadd.f32 %v24221_v6, %v23630_v36 }
0x1009   : > { %v24836_v19 = vadd.f32 %v40926_v33, %v24828_v61 }
0x100a   : > { %v30089_v32 = vmul.f32 -1.442695, %v24835_v18 }
0x100b   : > { %v30090_v27 = vmul.f32 -1.442695, %v24836_v19 }
0x100c   : > { %35718 = vpow2.f32 %v30089_v32 }
0x100d   : > { %35720 = vpow2.f32 %v30090_v27 }
0x100f   : > { %v35715_v41 = vpop.eup %35714  ;;  %v24602_v56 = vpop.f32.mrf.mxu0 }
0x1010   : > { %v35717_v55 = vpop.eup %35716  ;;  %v24865_v53 = vadd.f32 1.0, %v35715_v41  ;;  %v24829_v15 = vadd.f32 %v24602_v56, %v24229_v13  ;;  %v24675_v22 = vpop.f32.mrf.mxu1 }
0x1011   : > { %v24866_v12 = vadd.f32 1.0, %v35717_v55  ;;  %v24830_v9 = vadd.f32 %v24675_v22, %v24230_v11  ;;  %v34674_v59 = vpop.f32.mrf.mxu0 }
0x1012   : > { %35722 = vrcp.f32 %v24865_v53  ;;  %v24837_v60 = vadd.f32 %v40926_v33, %v24829_v15  ;;  %v34685_v54 = vpop.f32.mrf.mxu1 }
0x1013   : > { %35724 = vrcp.f32 %v24866_v12  ;;  %v24838_v49 = vadd.f32 %v40926_v33, %v24830_v9 }
0x1014   : > { %v30091_v44 = vmul.f32 -1.442695, %v24837_v60 }
0x1015   : > { %v30092_v47 = vmul.f32 -1.442695, %v24838_v49 }
0x1016   : > { %35726 = vpow2.f32 %v30091_v44 }
0x1017   : > { %35728 = vpow2.f32 %v30092_v47 }
0x1019   : > { %v35719_v26 = vpop.eup %35718  ;;  %v24748_v34 = vpop.f32.mrf.mxu0 }
0x101a   : > { %v35721_v61 = vpop.eup %35720  ;;  %v24867_v57 = vadd.f32 1.0, %v35719_v26  ;;  %v24831_v18 = vadd.f32 %v24748_v34, %v24231_v7  ;;  %v24821_v3 = vpop.f32.mrf.mxu1 }
0x101b   : > { %v24868_v19 = vadd.f32 1.0, %v35721_v61  ;;  %v24832_v32 = vadd.f32 %v24821_v3, %v24232_v4  ;;  %v34696_v27 = vpop.f32.mrf.mxu0 }
0x101c   : > { %35730 = vrcp.f32 %v24867_v57  ;;  %v24839_v1 = vadd.f32 %v40926_v33, %v24831_v18  ;;  %v34707_v30 = vpop.f32.mrf.mxu1  ;;  %v42534_v27 = vld [vmem:[#allocation91_spill] sm:$0xff] }
0x101d   : > { %35732 = vrcp.f32 %v24868_v19  ;;  %v24840_v35 = vadd.f32 %v40926_v33, %v24832_v32  ;;  %v42536_v30 = vld [vmem:[#allocation93_spill] sm:$0xff] }
0x101e   : > { %v30093_v17 = vmul.f32 -1.442695, %v24839_v1  ;;  %v42535_v1 = vld [vmem:[#allocation92_spill] sm:$0xff] }
0x101f   : > { %v35723_v5 = vpop.eup %35722  ;;  %v30094_v51 = vmul.f32 -1.442695, %v24840_v35  ;;  %v41161_v35 = vld [vmem:[%s42051_s8 + $0x18] sm:$0xff] }
0x1020   : > { %v35725_v48 = vpop.eup %35724  ;;  %35734 = vpow2.f32 %v30093_v17  ;;  %v24889_v6 = vsub.f32 1.0, %v35723_v5  ;;  %v24905_v11 = vmul.f32 %v35723_v5, %v40340_v31  ;;  %v41170_v17 = vld [vmem:[%s42051_s8 + $0x10] sm:$0xff]  ;;  %v35914_v5 = vld [vmem:[%s42051_s8 + $0x8] sm:$0xff] }
0x1021   : > { %35736 = vpow2.f32 %v30094_v51  ;;  %v24890_v13 = vsub.f32 1.0, %v35725_v48  ;;  %v24906_v53 = vmul.f32 %v35725_v48, %v40350_v16  ;;  %v41184_v51 = vld [vmem:[%s42051_s8] sm:$0xff]  ;;  %v41267_v48 = vld [vmem:[%s42050_s7 + $0x18] sm:$0xff] }
0x1022   : > { %v24897_v41 = vmul.f32 %v24889_v6, %v40508_v8  ;;  %v41276_v6 = vld [vmem:[%s42050_s7 + $0x10] sm:$0xff] }
0x1023   : > { %v35727_v56 = vpop.eup %35726  ;;  %v24898_v55 = vmul.f32 %v24890_v13, %v40511_v38  ;;  %v35918_v13 = vld [vmem:[%s42050_s7 + $0x8] sm:$0xff] }
0x1024   : > { %v35729_v15 = vpop.eup %35728  ;;  %v24869_v22 = vadd.f32 1.0, %v35727_v56  ;;  %v40948_v33 = vadd.f32 %v24905_v11, %v24897_v41  ;;  %v41290_v41 = vld [vmem:[%s42050_s7] sm:$0xff]  ;;  %v41373_v11 = vld [vmem:[%s42053_s10 + $0x18] sm:$0xff]  ;;  %v41382_v56 = vld [vmem:[%s42053_s10 + $0x10] sm:$0xff] }
0x1025   : > { %v24870_v12 = vadd.f32 1.0, %v35729_v15  ;;  %v40950_v9 = vadd.f32 %v24906_v53, %v24898_v55  ;;  %v35922_v55 = vld [vmem:[%s42053_s10 + $0x8] sm:$0xff]  ;;  %v41396_v53 = vld [vmem:[%s42053_s10] sm:$0xff]  ;;  %v41479_v15 = vld [vmem:[%s42052_s9 + $0x18] sm:$0xff] }
0x1026   : > { %35738 = vrcp.f32 %v24869_v22  ;;  %34717 = vmatmul.mubr.msk.f32.vlgmr.msra.gmra.mxu0 %vm780_vm0, %v40948_v33 }
0x1027   : > { %35740 = vrcp.f32 %v24870_v12  ;;  %34728 = vmatmul.mubr.msk.f32.vlgmr.msra.gmra.mxu1 %vm780_vm0, %v40950_v9  ;;  %34731 = vmatpush3.msra.mxu0 %v40880_v52  ;;  %v41488_v12 = vld [vmem:[%s42052_s9 + $0x10] sm:$0xff] }
0x1028   : > { %34742 = vmatpush3.msra.mxu1 %v40880_v52  ;;  %34732 = vmatprep.subr.mxu0 %v42324_v14 }
0x1029   : > { %v35731_v31 = vpop.eup %35730  ;;  %34743 = vmatprep.subr.mxu1 %v42324_v14  ;;  %34733 = vmatpush3.msra.mxu0 %v40889_v63 }
0x102a   : > { %v35733_v16 = vpop.eup %35732  ;;  %34744 = vmatpush3.msra.mxu1 %v40889_v63  ;;  %34734 = vmatprep.subr.mxu0 %v42324_v14  ;;  %v24891_v8 = vsub.f32 1.0, %v35731_v31  ;;  %v24907_v60 = vmul.f32 %v35731_v31, %v40379_v23 }
0x102b   : > { %34745 = vmatprep.subr.mxu1 %v42324_v14  ;;  %34735 = vmatpush3.msra.mxu0 %v40898_v20  ;;  %v24892_v38 = vsub.f32 1.0, %v35733_v16  ;;  %v24908_v44 = vmul.f32 %v35733_v16, %v40384_v42  ;;  %v41497_v16 = vld [vmem:[%s42052_s9 + $0x8] sm:$0xff] }
0x102c   : > { %34746 = vmatpush3.msra.mxu1 %v40898_v20  ;;  %34736 = vmatprep.subr.mxu0 %v42324_v14  ;;  %v24899_v59 = vmul.f32 %v24891_v8, %v40531_v37  ;;  %v41506_v8 = vld [vmem:[%s42052_s9] sm:$0xff] }
0x102d   : > { %v35735_v54 = vpop.eup %35734  ;;  %34747 = vmatprep.subr.mxu1 %v42324_v14  ;;  %34737 = vmatpush3.msra.mxu0 %v40907_v43  ;;  %v24900_v49 = vmul.f32 %v24892_v38, %v40536_v45 }
0x102e   : > { %v35737_v47 = vpop.eup %35736  ;;  %v24871_v39 = vadd.f32 1.0, %v35735_v54  ;;  %34748 = vmatpush3.msra.mxu1 %v40907_v43  ;;  %34738 = vmatprep.mubr.msk.f32.mxu0 %vm36022_vm3, %v42324_v14  ;;  %v40976_v36 = vadd.f32 %v24907_v60, %v24899_v59 }
0x102f   : > { %v24872_v37 = vadd.f32 1.0, %v35737_v47  ;;  %34749 = vmatprep.mubr.msk.f32.mxu1 %vm36022_vm3, %v42324_v14  ;;  %34752 = vmatprep.subr.mxu0 %v42324_v14  ;;  %v40981_v23 = vadd.f32 %v24908_v44, %v24900_v49 }
0x1030   : > { %35742 = vrcp.f32 %v24871_v39  ;;  %34763 = vmatprep.subr.mxu1 %v42324_v14  ;;  %34739 = vmatmul.mubr.msk.f32.vlgmr.msra.gmra.mxu0 %vm780_vm0, %v40976_v36 }
0x1031   : > { %35744 = vrcp.f32 %v24872_v37  ;;  %34750 = vmatmul.mubr.msk.f32.vlgmr.msra.gmra.mxu1 %vm780_vm0, %v40981_v23  ;;  %34753 = vmatpush3.msra.mxu0 %v40880_v52 }
0x1032   : > { %34764 = vmatpush3.msra.mxu1 %v40880_v52  ;;  %34754 = vmatprep.subr.mxu0 %v42324_v14 }
0x1033   : > { %v35739_v42 = vpop.eup %35738  ;;  %34765 = vmatprep.subr.mxu1 %v42324_v14  ;;  %34755 = vmatpush3.msra.mxu0 %v40889_v63 }
0x1034   : > { %v35741_v45 = vpop.eup %35740  ;;  %34766 = vmatpush3.msra.mxu1 %v40889_v63  ;;  %34756 = vmatprep.subr.mxu0 %v42324_v14  ;;  %v24893_v7 = vsub.f32 1.0, %v35739_v42  ;;  %v24909_v34 = vmul.f32 %v35739_v42, %v40413_v24 }
0x1035   : > { %34767 = vmatprep.subr.mxu1 %v42324_v14  ;;  %34757 = vmatpush3.msra.mxu0 %v40898_v20  ;;  %v24894_v26 = vsub.f32 1.0, %v35741_v45  ;;  %v24910_v57 = vmul.f32 %v35741_v45, %v40418_v2 }
0x1036   : > { %34768 = vmatpush3.msra.mxu1 %v40898_v20  ;;  %34758 = vmatprep.subr.mxu0 %v42324_v14  ;;  %v24901_v4 = vmul.f32 %v24893_v7, %v40563_v28 }
0x1037   : > { %34769 = vmatprep.subr.mxu1 %v42324_v14  ;;  %34759 = vmatpush3.msra.mxu0 %v40907_v43  ;;  %v24902_v61 = vmul.f32 %v24894_v26, %v40568_v0 }
0x1038   : > { %34770 = vmatpush3.msra.mxu1 %v40907_v43  ;;  %34760 = vmatprep.mubr.msk.f32.mxu0 %vm36022_vm3, %v42324_v14  ;;  %v41008_v18 = vadd.f32 %v24909_v34, %v24901_v4 }
0x1039   : > { %34771 = vmatprep.mubr.msk.f32.mxu1 %vm36022_vm3, %v42324_v14  ;;  %34774 = vmatprep.subr.mxu0 %v42324_v14  ;;  %v41013_v24 = vadd.f32 %v24910_v57, %v24902_v61 }
0x103a   : > { %34785 = vmatprep.subr.mxu1 %v42324_v14  ;;  %34761 = vmatmul.mubr.msk.f32.vlgmr.msra.gmra.mxu0 %vm780_vm0, %v41008_v18 }
0x103b   : > { %34772 = vmatmul.mubr.msk.f32.vlgmr.msra.gmra.mxu1 %vm780_vm0, %v41013_v24  ;;  %34775 = vmatpush3.msra.mxu0 %v40880_v52 }
0x103c   : > { %34786 = vmatpush3.msra.mxu1 %v40880_v52  ;;  %34776 = vmatprep.subr.mxu0 %v42324_v14 }
0x103d   : > { %v35743_v2 = vpop.eup %35742  ;;  %34787 = vmatprep.subr.mxu1 %v42324_v14  ;;  %34777 = vmatpush3.msra.mxu0 %v40889_v63 }
0x103e   : > { %v35745_v28 = vpop.eup %35744  ;;  %34788 = vmatpush3.msra.mxu1 %v40889_v63  ;;  %34778 = vmatprep.subr.mxu0 %v42324_v14  ;;  %v24895_v0 = vsub.f32 1.0, %v35743_v2  ;;  %v24911_v19 = vmul.f32 %v35743_v2, %v40447_v21 }
0x103f   : > { %34789 = vmatprep.subr.mxu1 %v42324_v14  ;;  %34779 = vmatpush3.msra.mxu0 %v40898_v20  ;;  %v24896_v3 = vsub.f32 1.0, %v35745_v28  ;;  %v24912_v32 = vmul.f32 %v35745_v28, %v40452_v50  ;;  %v41055_v50 = vld [vmem:[%s42370_s5 + $0x18] sm:$0xff] }
0x1040   : > { %34790 = vmatpush3.msra.mxu1 %v40898_v20  ;;  %34780 = vmatprep.subr.mxu0 %v42324_v14  ;;  %v24903_v52 = vmul.f32 %v24895_v0, %v40599_v62  ;;  %v41064_v62 = vld [vmem:[%s42370_s5 + $0x10] sm:$0xff] }
0x1041   : > { %34791 = vmatprep.subr.mxu1 %v42324_v14  ;;  %34781 = vmatpush3.msra.mxu0 %v40907_v43  ;;  %v24904_v63 = vmul.f32 %v24896_v3, %v40604_v10  ;;  %v35910_v10 = vld [vmem:[%s42370_s5 + $0x8] sm:$0xff] }
0x1042   : > { %34792 = vmatpush3.msra.mxu1 %v40907_v43  ;;  %34782 = vmatprep.mubr.msk.f32.mxu0 %vm36022_vm3, %v42324_v14  ;;  %v41040_v20 = vadd.f32 %v24911_v19, %v24903_v52  ;;  %v41078_v43 = vld [vmem:[%s42370_s5] sm:$0xff]  ;;  %s35934_s5 = scalar_lea.vmem %s35933_s4, 512 }
0x1043   : > { %34793 = vmatprep.mubr.msk.f32.mxu1 %vm36022_vm3, %v42324_v14  ;;  %34796 = vmatprep.subr.mxu0 %v42324_v14  ;;  %v41045_v21 = vadd.f32 %v24912_v32, %v24904_v63  ;;  %p35936_p1 = scmp.lt.s32.totalorder %s35934_s5, %s35928_s3 }
0x1044   : > { %34807 = vmatprep.subr.mxu1 %v42324_v14  ;;  %34783 = vmatmul.mubr.msk.f32.vlgmr.msra.gmra.mxu0 %vm780_vm0, %v41040_v20 }
0x1045   : > { %34794 = vmatmul.mubr.msk.f32.vlgmr.msra.gmra.mxu1 %vm780_vm0, %v41045_v21  ;;  %34797 = vmatpush3.msra.mxu0 %v41055_v50  ;;  %p35937_p2 = por %p35936_p1, %p35935_p0 }
0x1046   : > { %34808 = vmatpush3.msra.mxu1 %v41055_v50  ;;  %34798 = vmatprep.subr.mxu0 %v42324_v14 }
0x1047   : > { %34809 = vmatprep.subr.mxu1 %v42324_v14  ;;  %34799 = vmatpush3.msra.mxu0 %v41064_v62  ;;  %p35938_p3 = pnand %p35937_p2, %p35931_p13 }
0x1048   : > { %34810 = vmatpush3.msra.mxu1 %v41064_v62  ;;  %34800 = vmatprep.subr.mxu0 %v42324_v14 }
0x1049   : > { %34811 = vmatprep.subr.mxu1 %v42324_v14  ;;  %34801 = vmatpush3.msra.mxu0 %v35910_v10 }
0x104a   : > { %34812 = vmatpush3.msra.mxu1 %v35910_v10  ;;  %34802 = vmatprep.subr.mxu0 %v42324_v14 }
0x104b   : > { %34813 = vmatprep.subr.mxu1 %v42324_v14  ;;  %34803 = vmatpush3.msra.mxu0 %v41078_v43 }
0x104c   : > { %34804 = vmatprep.mubr.msk.f32.mxu0 %vm36022_vm3, %v42324_v14  ;;  %34814 = vmatpush3.msra.mxu1 %v41078_v43 }
0x104d   : > { %34815 = vmatprep.mubr.msk.f32.mxu1 %vm36022_vm3, %v42324_v14  ;;  %34805 = vmatmul.mubr.msk.f32.vlgmr.msra.gmra.mxu0 %vm780_vm0, %v40029_v46 }
0x104e   : > { %34816 = vmatmul.mubr.msk.f32.vlgmr.msra.gmra.mxu1 %vm780_vm0, %v40031_v58  ;;  %34818 = vmatprep.subr.mxu0 %v42324_v14 }
0x104f   : > { %34829 = vmatprep.subr.mxu1 %v42324_v14  ;;  %34819 = vmatpush3.msra.mxu0 %v41055_v50 }
0x1050   : > { %34830 = vmatpush3.msra.mxu1 %v41055_v50  ;;  %34820 = vmatprep.subr.mxu0 %v42324_v14 }
0x1051   : > { %34831 = vmatprep.subr.mxu1 %v42324_v14  ;;  %34821 = vmatpush3.msra.mxu0 %v41064_v62 }
0x1052   : > { %34832 = vmatpush3.msra.mxu1 %v41064_v62  ;;  %34822 = vmatprep.subr.mxu0 %v42324_v14 }
0x1053   : > { %34833 = vmatprep.subr.mxu1 %v42324_v14  ;;  %34823 = vmatpush3.msra.mxu0 %v35910_v10 }
0x1054   : > { %34834 = vmatpush3.msra.mxu1 %v35910_v10  ;;  %34824 = vmatprep.subr.mxu0 %v42324_v14 }
0x1055   : > { %34835 = vmatprep.subr.mxu1 %v42324_v14  ;;  %34825 = vmatpush3.msra.mxu0 %v41078_v43 }
0x1056   : > { %34826 = vmatprep.mubr.msk.f32.mxu0 %vm36022_vm3, %v42324_v14  ;;  %34836 = vmatpush3.msra.mxu1 %v41078_v43 }
0x1057   : > { %34837 = vmatprep.mubr.msk.f32.mxu1 %vm36022_vm3, %v42324_v14  ;;  %34827 = vmatmul.mubr.msk.f32.vlgmr.msra.gmra.mxu0 %vm780_vm0, %v40049_v29 }
0x1058   : > { %34838 = vmatmul.mubr.msk.f32.vlgmr.msra.gmra.mxu1 %vm780_vm0, %v40051_v25  ;;  %34840 = vmatprep.subr.mxu0 %v42324_v14 }
0x1059   : > { %34851 = vmatprep.subr.mxu1 %v42324_v14  ;;  %34841 = vmatpush3.msra.mxu0 %v41055_v50 }
0x105a   : > { %34852 = vmatpush3.msra.mxu1 %v41055_v50  ;;  %34842 = vmatprep.subr.mxu0 %v42324_v14 }
0x105b   : > { %34853 = vmatprep.subr.mxu1 %v42324_v14  ;;  %34843 = vmatpush3.msra.mxu0 %v41064_v62 }
0x105c   : > { %34854 = vmatpush3.msra.mxu1 %v41064_v62  ;;  %34844 = vmatprep.subr.mxu0 %v42324_v14 }
0x105d   : > { %34855 = vmatprep.subr.mxu1 %v42324_v14  ;;  %34845 = vmatpush3.msra.mxu0 %v35910_v10 }
0x105e   : > { %34856 = vmatpush3.msra.mxu1 %v35910_v10  ;;  %34846 = vmatprep.subr.mxu0 %v42324_v14 }
0x105f   : > { %34857 = vmatprep.subr.mxu1 %v42324_v14  ;;  %34847 = vmatpush3.msra.mxu0 %v41078_v43 }
0x1060   : > { %34848 = vmatprep.mubr.msk.f32.mxu0 %vm36022_vm3, %v42324_v14  ;;  %34858 = vmatpush3.msra.mxu1 %v41078_v43 }
0x1061   : > { %34859 = vmatprep.mubr.msk.f32.mxu1 %vm36022_vm3, %v42324_v14  ;;  %34849 = vmatmul.mubr.msk.f32.vlgmr.msra.gmra.mxu0 %vm780_vm0, %v40069_v40 }
0x1062   : > { %34860 = vmatmul.mubr.msk.f32.vlgmr.msra.gmra.mxu1 %vm780_vm0, %v42534_v27  ;;  %34862 = vmatprep.subr.mxu0 %v42324_v14 }
0x1063   : > { %34873 = vmatprep.subr.mxu1 %v42324_v14  ;;  %34863 = vmatpush3.msra.mxu0 %v41055_v50 }
0x1064   : > { %34874 = vmatpush3.msra.mxu1 %v41055_v50  ;;  %34864 = vmatprep.subr.mxu0 %v42324_v14 }
0x1065   : > { %34875 = vmatprep.subr.mxu1 %v42324_v14  ;;  %34865 = vmatpush3.msra.mxu0 %v41064_v62 }
0x1066   : > { %34876 = vmatpush3.msra.mxu1 %v41064_v62  ;;  %34866 = vmatprep.subr.mxu0 %v42324_v14 }
0x1067   : > { %34877 = vmatprep.subr.mxu1 %v42324_v14  ;;  %34867 = vmatpush3.msra.mxu0 %v35910_v10 }
0x1068   : > { %34878 = vmatpush3.msra.mxu1 %v35910_v10  ;;  %34868 = vmatprep.subr.mxu0 %v42324_v14 }
0x1069   : > { %34879 = vmatprep.subr.mxu1 %v42324_v14  ;;  %34869 = vmatpush3.msra.mxu0 %v41078_v43 }
0x106a   : > { %34870 = vmatprep.mubr.msk.f32.mxu0 %vm36022_vm3, %v42324_v14  ;;  %34880 = vmatpush3.msra.mxu1 %v41078_v43 }
0x106b   : > { %34881 = vmatprep.mubr.msk.f32.mxu1 %vm36022_vm3, %v42324_v14  ;;  %34871 = vmatmul.mubr.msk.f32.vlgmr.msra.gmra.mxu0 %vm780_vm0, %v42535_v1 }
0x106c   : > { %34882 = vmatmul.mubr.msk.f32.vlgmr.msra.gmra.mxu1 %vm780_vm0, %v42536_v30  ;;  %34884 = vmatprep.subr.mxu0 %v42324_v14 }
0x106d   : > { %34895 = vmatprep.subr.mxu1 %v42324_v14  ;;  %34885 = vmatpush3.msra.mxu0 %v41161_v35 }
0x106e   : > { %34896 = vmatpush3.msra.mxu1 %v41161_v35  ;;  %34886 = vmatprep.subr.mxu0 %v42324_v14 }
0x106f   : > { %34897 = vmatprep.subr.mxu1 %v42324_v14  ;;  %34887 = vmatpush3.msra.mxu0 %v41170_v17 }
0x1070   : > { %34898 = vmatpush3.msra.mxu1 %v41170_v17  ;;  %34888 = vmatprep.subr.mxu0 %v42324_v14 }
0x1071   : > { %34899 = vmatprep.subr.mxu1 %v42324_v14  ;;  %34889 = vmatpush3.msra.mxu0 %v35914_v5 }
0x1072   : > { %34900 = vmatpush3.msra.mxu1 %v35914_v5  ;;  %34890 = vmatprep.subr.mxu0 %v42324_v14 }
0x1073   : > { %34901 = vmatprep.subr.mxu1 %v42324_v14  ;;  %34891 = vmatpush3.msra.mxu0 %v41184_v51 }
0x1074   : > { %34892 = vmatprep.mubr.msk.f32.mxu0 %vm36022_vm3, %v42324_v14  ;;  %34902 = vmatpush3.msra.mxu1 %v41184_v51 }
0x1075   : > { %34903 = vmatprep.mubr.msk.f32.mxu1 %vm36022_vm3, %v42324_v14  ;;  %34893 = vmatmul.mubr.msk.f32.vlgmr.msra.gmra.mxu0 %vm780_vm0, %v40948_v33 }
0x1076   : > { %34904 = vmatmul.mubr.msk.f32.vlgmr.msra.gmra.mxu1 %vm780_vm0, %v40950_v9  ;;  %34906 = vmatprep.subr.mxu0 %v42324_v14 }
0x1077   : > { %34917 = vmatprep.subr.mxu1 %v42324_v14  ;;  %34907 = vmatpush3.msra.mxu0 %v41161_v35 }
0x1078   : > { %34918 = vmatpush3.msra.mxu1 %v41161_v35  ;;  %34908 = vmatprep.subr.mxu0 %v42324_v14 }
0x1079   : > { %34919 = vmatprep.subr.mxu1 %v42324_v14  ;;  %34909 = vmatpush3.msra.mxu0 %v41170_v17 }
0x107a   : > { %34920 = vmatpush3.msra.mxu1 %v41170_v17  ;;  %34910 = vmatprep.subr.mxu0 %v42324_v14 }
0x107b   : > { %34921 = vmatprep.subr.mxu1 %v42324_v14  ;;  %34911 = vmatpush3.msra.mxu0 %v35914_v5 }
0x107c   : > { %34922 = vmatpush3.msra.mxu1 %v35914_v5  ;;  %34912 = vmatprep.subr.mxu0 %v42324_v14 }
0x107d   : > { %34923 = vmatprep.subr.mxu1 %v42324_v14  ;;  %34913 = vmatpush3.msra.mxu0 %v41184_v51 }
0x107e   : > { %34914 = vmatprep.mubr.msk.f32.mxu0 %vm36022_vm3, %v42324_v14  ;;  %34924 = vmatpush3.msra.mxu1 %v41184_v51 }
0x107f   : > { %34925 = vmatprep.mubr.msk.f32.mxu1 %vm36022_vm3, %v42324_v14  ;;  %34915 = vmatmul.mubr.msk.f32.vlgmr.msra.gmra.mxu0 %vm780_vm0, %v40976_v36 }
0x1080   : > { %34926 = vmatmul.mubr.msk.f32.vlgmr.msra.gmra.mxu1 %vm780_vm0, %v40981_v23  ;;  %34928 = vmatprep.subr.mxu0 %v42324_v14 }
0x1081   : > { %34939 = vmatprep.subr.mxu1 %v42324_v14  ;;  %34929 = vmatpush3.msra.mxu0 %v41161_v35 }
0x1082   : > { %34940 = vmatpush3.msra.mxu1 %v41161_v35  ;;  %34930 = vmatprep.subr.mxu0 %v42324_v14 }
0x1083   : > { %34941 = vmatprep.subr.mxu1 %v42324_v14  ;;  %34931 = vmatpush3.msra.mxu0 %v41170_v17 }
0x1084   : > { %34942 = vmatpush3.msra.mxu1 %v41170_v17  ;;  %34932 = vmatprep.subr.mxu0 %v42324_v14 }
0x1085   : > { %34943 = vmatprep.subr.mxu1 %v42324_v14  ;;  %34933 = vmatpush3.msra.mxu0 %v35914_v5 }
0x1086   : > { %34944 = vmatpush3.msra.mxu1 %v35914_v5  ;;  %34934 = vmatprep.subr.mxu0 %v42324_v14 }
0x1087   : > { %34945 = vmatprep.subr.mxu1 %v42324_v14  ;;  %34935 = vmatpush3.msra.mxu0 %v41184_v51 }
0x1088   : > { %34936 = vmatprep.mubr.msk.f32.mxu0 %vm36022_vm3, %v42324_v14  ;;  %34946 = vmatpush3.msra.mxu1 %v41184_v51 }
0x1089   : > { %34947 = vmatprep.mubr.msk.f32.mxu1 %vm36022_vm3, %v42324_v14  ;;  %34937 = vmatmul.mubr.msk.f32.vlgmr.msra.gmra.mxu0 %vm780_vm0, %v41008_v18 }
0x108a   : > { %34948 = vmatmul.mubr.msk.f32.vlgmr.msra.gmra.mxu1 %vm780_vm0, %v41013_v24  ;;  %34950 = vmatprep.subr.mxu0 %v42324_v14 }
0x108b   : > { %34961 = vmatprep.subr.mxu1 %v42324_v14  ;;  %34951 = vmatpush3.msra.mxu0 %v41161_v35 }
0x108c   : > { %34962 = vmatpush3.msra.mxu1 %v41161_v35  ;;  %34952 = vmatprep.subr.mxu0 %v42324_v14 }
0x108d   : > { %34963 = vmatprep.subr.mxu1 %v42324_v14  ;;  %34953 = vmatpush3.msra.mxu0 %v41170_v17 }
0x108e   : > { %34964 = vmatpush3.msra.mxu1 %v41170_v17  ;;  %34954 = vmatprep.subr.mxu0 %v42324_v14 }
0x108f   : > { %34965 = vmatprep.subr.mxu1 %v42324_v14  ;;  %34955 = vmatpush3.msra.mxu0 %v35914_v5 }
0x1090   : > { %34966 = vmatpush3.msra.mxu1 %v35914_v5  ;;  %34956 = vmatprep.subr.mxu0 %v42324_v14 }
0x1091   : > { %34967 = vmatprep.subr.mxu1 %v42324_v14  ;;  %34957 = vmatpush3.msra.mxu0 %v41184_v51 }
0x1092   : > { %34958 = vmatprep.mubr.msk.f32.mxu0 %vm36022_vm3, %v42324_v14  ;;  %34968 = vmatpush3.msra.mxu1 %v41184_v51 }
0x1093   : > { %34969 = vmatprep.mubr.msk.f32.mxu1 %vm36022_vm3, %v42324_v14  ;;  %34959 = vmatmul.mubr.msk.f32.vlgmr.msra.gmra.mxu0 %vm780_vm0, %v41040_v20 }
0x1094   : > { %34970 = vmatmul.mubr.msk.f32.vlgmr.msra.gmra.mxu1 %vm780_vm0, %v41045_v21  ;;  %34972 = vmatprep.subr.mxu0 %v42324_v14 }
0x1095   : > { %34983 = vmatprep.subr.mxu1 %v42324_v14  ;;  %34973 = vmatpush3.msra.mxu0 %v41267_v48 }
0x1096   : > { %34984 = vmatpush3.msra.mxu1 %v41267_v48  ;;  %34974 = vmatprep.subr.mxu0 %v42324_v14 }
0x1097   : > { %34985 = vmatprep.subr.mxu1 %v42324_v14  ;;  %34975 = vmatpush3.msra.mxu0 %v41276_v6 }
0x1098   : > { %34986 = vmatpush3.msra.mxu1 %v41276_v6  ;;  %34976 = vmatprep.subr.mxu0 %v42324_v14 }
0x1099   : > { %34987 = vmatprep.subr.mxu1 %v42324_v14  ;;  %34977 = vmatpush3.msra.mxu0 %v35918_v13 }
0x109a   : > { %34988 = vmatpush3.msra.mxu1 %v35918_v13  ;;  %34978 = vmatprep.subr.mxu0 %v42324_v14 }
0x109b   : > { %34989 = vmatprep.subr.mxu1 %v42324_v14  ;;  %34979 = vmatpush3.msra.mxu0 %v41290_v41 }
0x109c   : > { %34980 = vmatprep.mubr.msk.f32.mxu0 %vm36022_vm3, %v42324_v14  ;;  %34990 = vmatpush3.msra.mxu1 %v41290_v41 }
0x109d   : > { %34991 = vmatprep.mubr.msk.f32.mxu1 %vm36022_vm3, %v42324_v14  ;;  %34981 = vmatmul.mubr.msk.f32.vlgmr.msra.gmra.mxu0 %vm780_vm0, %v40029_v46 }
0x109e   : > { %34992 = vmatmul.mubr.msk.f32.vlgmr.msra.gmra.mxu1 %vm780_vm0, %v40031_v58  ;;  %34994 = vmatprep.subr.mxu0 %v42324_v14 }
0x109f   : > { %35005 = vmatprep.subr.mxu1 %v42324_v14  ;;  %34995 = vmatpush3.msra.mxu0 %v41267_v48 }
0x10a0   : > { %35006 = vmatpush3.msra.mxu1 %v41267_v48  ;;  %34996 = vmatprep.subr.mxu0 %v42324_v14 }
0x10a1   : > { %35007 = vmatprep.subr.mxu1 %v42324_v14  ;;  %34997 = vmatpush3.msra.mxu0 %v41276_v6 }
0x10a2   : > { %35008 = vmatpush3.msra.mxu1 %v41276_v6  ;;  %34998 = vmatprep.subr.mxu0 %v42324_v14 }
0x10a3   : > { %35009 = vmatprep.subr.mxu1 %v42324_v14  ;;  %34999 = vmatpush3.msra.mxu0 %v35918_v13 }
0x10a4   : > { %35010 = vmatpush3.msra.mxu1 %v35918_v13  ;;  %35000 = vmatprep.subr.mxu0 %v42324_v14 }
0x10a5   : > { %35011 = vmatprep.subr.mxu1 %v42324_v14  ;;  %35001 = vmatpush3.msra.mxu0 %v41290_v41 }
0x10a6   : > { %35002 = vmatprep.mubr.msk.f32.mxu0 %vm36022_vm3, %v42324_v14  ;;  %35012 = vmatpush3.msra.mxu1 %v41290_v41 }
0x10a7   : > { %35013 = vmatprep.mubr.msk.f32.mxu1 %vm36022_vm3, %v42324_v14  ;;  %35003 = vmatmul.mubr.msk.f32.vlgmr.msra.gmra.mxu0 %vm780_vm0, %v40049_v29 }
0x10a8   : > { %35014 = vmatmul.mubr.msk.f32.vlgmr.msra.gmra.mxu1 %vm780_vm0, %v40051_v25  ;;  %35016 = vmatprep.subr.mxu0 %v42324_v14 }
0x10a9   : > { %35027 = vmatprep.subr.mxu1 %v42324_v14  ;;  %35017 = vmatpush3.msra.mxu0 %v41267_v48 }
0x10aa   : > { %35028 = vmatpush3.msra.mxu1 %v41267_v48  ;;  %35018 = vmatprep.subr.mxu0 %v42324_v14 }
0x10ab   : > { %35029 = vmatprep.subr.mxu1 %v42324_v14  ;;  %35019 = vmatpush3.msra.mxu0 %v41276_v6 }
0x10ac   : > { %35030 = vmatpush3.msra.mxu1 %v41276_v6  ;;  %35020 = vmatprep.subr.mxu0 %v42324_v14 }
0x10ad   : > { %35031 = vmatprep.subr.mxu1 %v42324_v14  ;;  %35021 = vmatpush3.msra.mxu0 %v35918_v13 }
0x10ae   : > { %35032 = vmatpush3.msra.mxu1 %v35918_v13  ;;  %35022 = vmatprep.subr.mxu0 %v42324_v14 }
0x10af   : > { %35033 = vmatprep.subr.mxu1 %v42324_v14  ;;  %35023 = vmatpush3.msra.mxu0 %v41290_v41 }
0x10b0   : > { %35024 = vmatprep.mubr.msk.f32.mxu0 %vm36022_vm3, %v42324_v14  ;;  %35034 = vmatpush3.msra.mxu1 %v41290_v41 }
0x10b1   : > { %35035 = vmatprep.mubr.msk.f32.mxu1 %vm36022_vm3, %v42324_v14  ;;  %35025 = vmatmul.mubr.msk.f32.vlgmr.msra.gmra.mxu0 %vm780_vm0, %v40069_v40 }
0x10b2   : > { %35036 = vmatmul.mubr.msk.f32.vlgmr.msra.gmra.mxu1 %vm780_vm0, %v42534_v27  ;;  %35038 = vmatprep.subr.mxu0 %v42324_v14 }
0x10b3   : > { %35049 = vmatprep.subr.mxu1 %v42324_v14  ;;  %35039 = vmatpush3.msra.mxu0 %v41267_v48 }
0x10b4   : > { %35050 = vmatpush3.msra.mxu1 %v41267_v48  ;;  %35040 = vmatprep.subr.mxu0 %v42324_v14 }
0x10b5   : > { %35051 = vmatprep.subr.mxu1 %v42324_v14  ;;  %35041 = vmatpush3.msra.mxu0 %v41276_v6 }
0x10b6   : > { %35052 = vmatpush3.msra.mxu1 %v41276_v6  ;;  %35042 = vmatprep.subr.mxu0 %v42324_v14 }
0x10b7   : > { %35053 = vmatprep.subr.mxu1 %v42324_v14  ;;  %35043 = vmatpush3.msra.mxu0 %v35918_v13 }
0x10b8   : > { %35054 = vmatpush3.msra.mxu1 %v35918_v13  ;;  %35044 = vmatprep.subr.mxu0 %v42324_v14 }
0x10b9   : > { %35055 = vmatprep.subr.mxu1 %v42324_v14  ;;  %35045 = vmatpush3.msra.mxu0 %v41290_v41 }
0x10ba   : > { %35046 = vmatprep.mubr.msk.f32.mxu0 %vm36022_vm3, %v42324_v14  ;;  %35056 = vmatpush3.msra.mxu1 %v41290_v41 }
0x10bb   : > { %35057 = vmatprep.mubr.msk.f32.mxu1 %vm36022_vm3, %v42324_v14  ;;  %35047 = vmatmul.mubr.msk.f32.vlgmr.msra.gmra.mxu0 %vm780_vm0, %v42535_v1 }
0x10bc   : > { %35058 = vmatmul.mubr.msk.f32.vlgmr.msra.gmra.mxu1 %vm780_vm0, %v42536_v30  ;;  %35060 = vmatprep.subr.mxu0 %v42324_v14 }
0x10bd   : > { %35071 = vmatprep.subr.mxu1 %v42324_v14  ;;  %35061 = vmatpush3.msra.mxu0 %v41373_v11 }
0x10be   : > { %35072 = vmatpush3.msra.mxu1 %v41373_v11  ;;  %35062 = vmatprep.subr.mxu0 %v42324_v14 }
0x10bf   : > { %35073 = vmatprep.subr.mxu1 %v42324_v14  ;;  %35063 = vmatpush3.msra.mxu0 %v41382_v56 }
0x10c0   : > { %35074 = vmatpush3.msra.mxu1 %v41382_v56  ;;  %35064 = vmatprep.subr.mxu0 %v42324_v14 }
0x10c1   : > { %35075 = vmatprep.subr.mxu1 %v42324_v14  ;;  %35065 = vmatpush3.msra.mxu0 %v35922_v55 }
0x10c2   : > { %35076 = vmatpush3.msra.mxu1 %v35922_v55  ;;  %35066 = vmatprep.subr.mxu0 %v42324_v14 }
0x10c3   : > { %35077 = vmatprep.subr.mxu1 %v42324_v14  ;;  %35067 = vmatpush3.msra.mxu0 %v41396_v53 }
0x10c4   : > { %35068 = vmatprep.mubr.msk.f32.mxu0 %vm36022_vm3, %v42324_v14  ;;  %35078 = vmatpush3.msra.mxu1 %v41396_v53 }
0x10c5   : > { %35079 = vmatprep.mubr.msk.f32.mxu1 %vm36022_vm3, %v42324_v14  ;;  %35069 = vmatmul.mubr.msk.f32.vlgmr.msra.gmra.mxu0 %vm780_vm0, %v40948_v33 }
0x10c6   : > { %35080 = vmatmul.mubr.msk.f32.vlgmr.msra.gmra.mxu1 %vm780_vm0, %v40950_v9  ;;  %35082 = vmatprep.subr.mxu0 %v42324_v14 }
0x10c7   : > { %35093 = vmatprep.subr.mxu1 %v42324_v14  ;;  %35083 = vmatpush3.msra.mxu0 %v41373_v11 }
0x10c8   : > { %35094 = vmatpush3.msra.mxu1 %v41373_v11  ;;  %35084 = vmatprep.subr.mxu0 %v42324_v14 }
0x10c9   : > { %35095 = vmatprep.subr.mxu1 %v42324_v14  ;;  %35085 = vmatpush3.msra.mxu0 %v41382_v56 }
0x10ca   : > { %35096 = vmatpush3.msra.mxu1 %v41382_v56  ;;  %35086 = vmatprep.subr.mxu0 %v42324_v14 }
0x10cb   : > { %35097 = vmatprep.subr.mxu1 %v42324_v14  ;;  %35087 = vmatpush3.msra.mxu0 %v35922_v55 }
0x10cc   : > { %35098 = vmatpush3.msra.mxu1 %v35922_v55  ;;  %35088 = vmatprep.subr.mxu0 %v42324_v14 }
0x10cd   : > { %35099 = vmatprep.subr.mxu1 %v42324_v14  ;;  %35089 = vmatpush3.msra.mxu0 %v41396_v53 }
0x10ce   : > { %35090 = vmatprep.mubr.msk.f32.mxu0 %vm36022_vm3, %v42324_v14  ;;  %35100 = vmatpush3.msra.mxu1 %v41396_v53 }
0x10cf   : > { %35101 = vmatprep.mubr.msk.f32.mxu1 %vm36022_vm3, %v42324_v14  ;;  %35091 = vmatmul.mubr.msk.f32.vlgmr.msra.gmra.mxu0 %vm780_vm0, %v40976_v36 }
0x10d0   : > { %35102 = vmatmul.mubr.msk.f32.vlgmr.msra.gmra.mxu1 %vm780_vm0, %v40981_v23  ;;  %35104 = vmatprep.subr.mxu0 %v42324_v14 }
0x10d1   : > { %35115 = vmatprep.subr.mxu1 %v42324_v14  ;;  %35105 = vmatpush3.msra.mxu0 %v41373_v11 }
0x10d2   : > { %35116 = vmatpush3.msra.mxu1 %v41373_v11  ;;  %35106 = vmatprep.subr.mxu0 %v42324_v14 }
0x10d3   : > { %35117 = vmatprep.subr.mxu1 %v42324_v14  ;;  %35107 = vmatpush3.msra.mxu0 %v41382_v56 }
0x10d4   : > { %35118 = vmatpush3.msra.mxu1 %v41382_v56  ;;  %35108 = vmatprep.subr.mxu0 %v42324_v14 }
0x10d5   : > { %35119 = vmatprep.subr.mxu1 %v42324_v14  ;;  %35109 = vmatpush3.msra.mxu0 %v35922_v55 }
0x10d6   : > { %35120 = vmatpush3.msra.mxu1 %v35922_v55  ;;  %35110 = vmatprep.subr.mxu0 %v42324_v14 }
0x10d7   : > { %35121 = vmatprep.subr.mxu1 %v42324_v14  ;;  %35111 = vmatpush3.msra.mxu0 %v41396_v53 }
0x10d8   : > { %35112 = vmatprep.mubr.msk.f32.mxu0 %vm36022_vm3, %v42324_v14  ;;  %35122 = vmatpush3.msra.mxu1 %v41396_v53 }
0x10d9   : > { %35123 = vmatprep.mubr.msk.f32.mxu1 %vm36022_vm3, %v42324_v14  ;;  %35113 = vmatmul.mubr.msk.f32.vlgmr.msra.gmra.mxu0 %vm780_vm0, %v41008_v18 }
0x10da   : > { %35124 = vmatmul.mubr.msk.f32.vlgmr.msra.gmra.mxu1 %vm780_vm0, %v41013_v24  ;;  %35126 = vmatprep.subr.mxu0 %v42324_v14 }
0x10db   : > { %35137 = vmatprep.subr.mxu1 %v42324_v14  ;;  %35127 = vmatpush3.msra.mxu0 %v41373_v11 }
0x10dc   : > { %35138 = vmatpush3.msra.mxu1 %v41373_v11  ;;  %35128 = vmatprep.subr.mxu0 %v42324_v14 }
0x10dd   : > { %35139 = vmatprep.subr.mxu1 %v42324_v14  ;;  %35129 = vmatpush3.msra.mxu0 %v41382_v56 }
0x10de   : > { %35140 = vmatpush3.msra.mxu1 %v41382_v56  ;;  %35130 = vmatprep.subr.mxu0 %v42324_v14 }
0x10df   : > { %35141 = vmatprep.subr.mxu1 %v42324_v14  ;;  %35131 = vmatpush3.msra.mxu0 %v35922_v55 }
0x10e0   : > { %35142 = vmatpush3.msra.mxu1 %v35922_v55  ;;  %35132 = vmatprep.subr.mxu0 %v42324_v14 }
0x10e1   : > { %35143 = vmatprep.subr.mxu1 %v42324_v14  ;;  %35133 = vmatpush3.msra.mxu0 %v41396_v53 }
0x10e2   : > { %35134 = vmatprep.mubr.msk.f32.mxu0 %vm36022_vm3, %v42324_v14  ;;  %35144 = vmatpush3.msra.mxu1 %v41396_v53 }
0x10e3   : > { %35145 = vmatprep.mubr.msk.f32.mxu1 %vm36022_vm3, %v42324_v14  ;;  %35135 = vmatmul.mubr.msk.f32.vlgmr.msra.gmra.mxu0 %vm780_vm0, %v41040_v20 }
0x10e4   : > { %35146 = vmatmul.mubr.msk.f32.vlgmr.msra.gmra.mxu1 %vm780_vm0, %v41045_v21  ;;  %35148 = vmatprep.subr.mxu0 %v42324_v14 }
0x10e5   : > { %35159 = vmatprep.subr.mxu1 %v42324_v14  ;;  %35149 = vmatpush3.msra.mxu0 %v41479_v15 }
0x10e6   : > { %v24990_v22 = vpop.f32.mrf.mxu0  ;;  %35160 = vmatpush3.msra.mxu1 %v41479_v15  ;;  %35150 = vmatprep.subr.mxu0 %v42324_v14 }
0x10e7   : > { %v25063_v33 = vpop.f32.mrf.mxu1  ;;  %35161 = vmatprep.subr.mxu1 %v42324_v14  ;;  %35151 = vmatpush3.msra.mxu0 %v41488_v12 }
0x10e8   : > { %v34718_v9 = vpop.f32.mrf.mxu0  ;;  %35162 = vmatpush3.msra.mxu1 %v41488_v12  ;;  %35152 = vmatprep.subr.mxu0 %v42324_v14 }
0x10e9   : > { %v34729_v31 = vpop.f32.mrf.mxu1  ;;  %35163 = vmatprep.subr.mxu1 %v42324_v14  ;;  %35153 = vmatpush3.msra.mxu0 %v41497_v16 }
0x10ea   : > { %35164 = vmatpush3.msra.mxu1 %v41497_v16  ;;  %35154 = vmatprep.subr.mxu0 %v42324_v14 }
0x10eb   : > { %35165 = vmatprep.subr.mxu1 %v42324_v14  ;;  %35155 = vmatpush3.msra.mxu0 %v41506_v8 }
0x10ec   : > { %35156 = vmatprep.mubr.msk.f32.mxu0 %vm36022_vm3, %v42324_v14  ;;  %35166 = vmatpush3.msra.mxu1 %v41506_v8 }
0x10ed   : > { %35167 = vmatprep.mubr.msk.f32.mxu1 %vm36022_vm3, %v42324_v14  ;;  %35170 = vmatprep.subr.mxu0 %v42324_v14 }
0x10ee   : > { %35181 = vmatprep.subr.mxu1 %v42324_v14 }
0x10f0   : > { %v25136_v38 = vpop.f32.mrf.mxu0 }
0x10f1   : > { %v25209_v59 = vpop.f32.mrf.mxu1 }
0x10f2   : > { %v34740_v60 = vpop.f32.mrf.mxu0 }
0x10f3   : > { %v34751_v54 = vpop.f32.mrf.mxu1 }
0x10fa   : > { %v25282_v49 = vpop.f32.mrf.mxu0 }
0x10fb   : > { %v25355_v44 = vpop.f32.mrf.mxu1 }
0x10fc   : > { %v34762_v47 = vpop.f32.mrf.mxu0 }
0x10fd   : > { %v34773_v39 = vpop.f32.mrf.mxu1 }
0x1104   : > { %v25428_v36 = vpop.f32.mrf.mxu0 }
0x1105   : > { %v25501_v37 = vpop.f32.mrf.mxu1 }
0x1106   : > { %v34784_v23 = vpop.f32.mrf.mxu0 }
0x1107   : > { %v34795_v42 = vpop.f32.mrf.mxu1 }
0x110d   : > { %v25574_v45 = vpop.f32.mrf.mxu0 }
0x110e   : > { %v41516_v7 = vadd.f32 %v25574_v45, %v24990_v22  ;;  %v25647_v26 = vpop.f32.mrf.mxu1 }
0x110f   : > { %v41518_v4 = vadd.f32 %v25647_v26, %v25063_v33  ;;  %v34806_v34 = vpop.f32.mrf.mxu0 }
0x1110   : > { %v34817_v61 = vpop.f32.mrf.mxu1 }
0x1117   : > { %v25720_v57 = vpop.f32.mrf.mxu0 }
0x1118   : > { %v41520_v18 = vadd.f32 %v25720_v57, %v25136_v38  ;;  %v25793_v24 = vpop.f32.mrf.mxu1 }
0x1119   : > { %v41522_v2 = vadd.f32 %v25793_v24, %v25209_v59  ;;  %v34828_v28 = vpop.f32.mrf.mxu0 }
0x111a   : > { %v34839_v0 = vpop.f32.mrf.mxu1 }
0x1121   : > { %v25866_v3 = vpop.f32.mrf.mxu0 }
0x1122   : > { %v41524_v52 = vadd.f32 %v25866_v3, %v25282_v49  ;;  %v25939_v19 = vpop.f32.mrf.mxu1 }
0x1123   : > { %v41526_v63 = vadd.f32 %v25939_v19, %v25355_v44  ;;  %v34850_v32 = vpop.f32.mrf.mxu0 }
0x1124   : > { %v34861_v20 = vpop.f32.mrf.mxu1 }
0x112b   : > { %v26012_v21 = vpop.f32.mrf.mxu0 }
0x112c   : > { %v41528_v50 = vadd.f32 %v26012_v21, %v25428_v36  ;;  %v26085_v62 = vpop.f32.mrf.mxu1 }
0x112d   : > { %v41530_v10 = vadd.f32 %v26085_v62, %v25501_v37  ;;  %v34872_v43 = vpop.f32.mrf.mxu0 }
0x112e   : > { %v34883_v35 = vpop.f32.mrf.mxu1 }
0x1135   : > { %v26203_v17 = vpop.f32.mrf.mxu0 }
0x1136   : > { %v26273_v5 = vpop.f32.mrf.mxu1 }
0x1137   : > { %v34894_v51 = vpop.f32.mrf.mxu0 }
0x1138   : > { %v34905_v48 = vpop.f32.mrf.mxu1 }
0x113f   : > { %v26343_v6 = vpop.f32.mrf.mxu0 }
0x1140   : > { %v26413_v13 = vpop.f32.mrf.mxu1 }
0x1141   : > { %v34916_v41 = vpop.f32.mrf.mxu0 }
0x1142   : > { %v34927_v11 = vpop.f32.mrf.mxu1 }
0x1149   : > { %v26483_v56 = vpop.f32.mrf.mxu0 }
0x114a   : > { %v26553_v55 = vpop.f32.mrf.mxu1 }
0x114b   : > { %v34938_v53 = vpop.f32.mrf.mxu0 }
0x114c   : > { %v34949_v22 = vpop.f32.mrf.mxu1 }
0x1153   : > { %v26623_v33 = vpop.f32.mrf.mxu0 }
0x1154   : > { %v26693_v9 = vpop.f32.mrf.mxu1 }
0x1155   : > { %v34960_v31 = vpop.f32.mrf.mxu0 }
0x1156   : > { %v34971_v38 = vpop.f32.mrf.mxu1 }
0x115d   : > { %v26763_v59 = vpop.f32.mrf.mxu0 }
0x115e   : > { %v26764_v60 = vadd.f32 %v26763_v59, %v26203_v17  ;;  %v26833_v54 = vpop.f32.mrf.mxu1 }
0x115f   : > { %v26834_v49 = vadd.f32 %v26833_v54, %v26273_v5  ;;  %v34982_v44 = vpop.f32.mrf.mxu0 }
0x1160   : > { %v30135_v47 = vmul.f32 -1.442695, %v26764_v60  ;;  %v34993_v39 = vpop.f32.mrf.mxu1 }
0x1161   : > { %v30136_v36 = vmul.f32 -1.442695, %v26834_v49 }
0x1162   : > { %35746 = vpow2.f32 %v30135_v47 }
0x1163   : > { %35748 = vpow2.f32 %v30136_v36 }
0x1167   : > { %v26903_v37 = vpop.f32.mrf.mxu0 }
0x1168   : > { %v26904_v23 = vadd.f32 %v26903_v37, %v26343_v6  ;;  %v26973_v42 = vpop.f32.mrf.mxu1 }
0x1169   : > { %v26974_v45 = vadd.f32 %v26973_v42, %v26413_v13  ;;  %v35004_v26 = vpop.f32.mrf.mxu0 }
0x116a   : > { %v30137_v34 = vmul.f32 -1.442695, %v26904_v23  ;;  %v35015_v61 = vpop.f32.mrf.mxu1 }
0x116b   : > { %v30138_v57 = vmul.f32 -1.442695, %v26974_v45 }
0x116c   : > { %35750 = vpow2.f32 %v30137_v34 }
0x116d   : > { %35752 = vpow2.f32 %v30138_v57 }
0x116f   : > { %v35747_v24 = vpop.eup %35746 }
0x1170   : > { %v35749_v28 = vpop.eup %35748  ;;  %v27281_v0 = vadd.f32 1.0, %v35747_v24 }
0x1171   : > { %v27282_v3 = vadd.f32 1.0, %v35749_v28  ;;  %v27043_v19 = vpop.f32.mrf.mxu0 }
0x1172   : > { %35754 = vrcp.f32 %v27281_v0  ;;  %v27044_v32 = vadd.f32 %v27043_v19, %v26483_v56  ;;  %v27113_v20 = vpop.f32.mrf.mxu1 }
0x1173   : > { %35756 = vrcp.f32 %v27282_v3  ;;  %v27114_v21 = vadd.f32 %v27113_v20, %v26553_v55  ;;  %v35026_v62 = vpop.f32.mrf.mxu0 }
0x1174   : > { %v30139_v43 = vmul.f32 -1.442695, %v27044_v32  ;;  %v35037_v35 = vpop.f32.mrf.mxu1 }
0x1175   : > { %v30140_v17 = vmul.f32 -1.442695, %v27114_v21 }
0x1176   : > { %35758 = vpow2.f32 %v30139_v43 }
0x1177   : > { %35760 = vpow2.f32 %v30140_v17 }
0x1179   : > { %v35751_v5 = vpop.eup %35750 }
0x117a   : > { %v35753_v51 = vpop.eup %35752  ;;  %v27283_v48 = vadd.f32 1.0, %v35751_v5 }
0x117b   : > { %v27284_v6 = vadd.f32 1.0, %v35753_v51  ;;  %v27183_v13 = vpop.f32.mrf.mxu0 }
0x117c   : > { %35762 = vrcp.f32 %v27283_v48  ;;  %v27184_v41 = vadd.f32 %v27183_v13, %v26623_v33  ;;  %v27253_v11 = vpop.f32.mrf.mxu1 }
0x117d   : > { %35764 = vrcp.f32 %v27284_v6  ;;  %v27254_v53 = vadd.f32 %v27253_v11, %v26693_v9  ;;  %v35048_v56 = vpop.f32.mrf.mxu0  ;;  %v41640_v11 = vld [vmem:[%s42059_s16 + $0x10] sm:$0xff] }
0x117e   : > { %v30141_v22 = vmul.f32 -1.442695, %v27184_v41  ;;  %v35059_v31 = vpop.f32.mrf.mxu1  ;;  %v41631_v41 = vld [vmem:[%s42059_s16 + $0x18] sm:$0xff]  ;;  %v41658_v56 = vld [vmem:[%s42059_s16] sm:$0xff] }
0x117f   : > { %v35755_v55 = vpop.eup %35754  ;;  %v30142_v38 = vmul.f32 -1.442695, %v27254_v53  ;;  %v41649_v53 = vld [vmem:[%s42059_s16 + $0x8] sm:$0xff]  ;;  %v30112_v31 = vmul.f32 -1.442695, %v41518_v4 }
0x1180   : > { %v35757_v59 = vpop.eup %35756  ;;  %35766 = vpow2.f32 %v30141_v22  ;;  %v27305_v60 = vmul.f32 %v35755_v55, %v40029_v46  ;;  %v30111_v22 = vmul.f32 -1.442695, %v41516_v7  ;;  %v30113_v55 = vmul.f32 -1.442695, %v41520_v18 }
0x1181   : > { %35768 = vpow2.f32 %v30142_v38  ;;  %v27306_v54 = vmul.f32 %v35757_v59, %v40031_v58  ;;  %v30114_v38 = vmul.f32 -1.442695, %v41522_v2  ;;  %v30115_v59 = vmul.f32 -1.442695, %v41524_v52 }
0x1182   : > { %35157 = vmatmul.mubr.msk.f32.vlgmr.msra.gmra.mxu0 %vm780_vm0, %v27305_v60  ;;  %v30116_v60 = vmul.f32 -1.442695, %v41526_v63  ;;  %v30118_v7 = vmul.f32 -1.442695, %v41530_v10 }
0x1183   : > { %v35759_v49 = vpop.eup %35758  ;;  %35168 = vmatmul.mubr.msk.f32.vlgmr.msra.gmra.mxu1 %vm780_vm0, %v27306_v54  ;;  %35171 = vmatpush3.msra.mxu0 %v41479_v15  ;;  %v30117_v54 = vmul.f32 -1.442695, %v41528_v50 }
0x1184   : > { %v35761_v33 = vpop.eup %35760  ;;  %v27285_v9 = vadd.f32 1.0, %v35759_v49  ;;  %35182 = vmatpush3.msra.mxu1 %v41479_v15  ;;  %35172 = vmatprep.subr.mxu0 %v42324_v14 }
0x1185   : > { %v27286_v44 = vadd.f32 1.0, %v35761_v33  ;;  %v41539_v47 = vpop.f32.mrf.mxu0  ;;  %35183 = vmatprep.subr.mxu1 %v42324_v14  ;;  %35173 = vmatpush3.msra.mxu0 %v41488_v12 }
0x1186   : > { %35770 = vrcp.f32 %v27285_v9  ;;  %v41543_v39 = vpop.f32.mrf.mxu1  ;;  %35184 = vmatpush3.msra.mxu1 %v41488_v12  ;;  %35174 = vmatprep.subr.mxu0 %v42324_v14 }
0x1187   : > { %35772 = vrcp.f32 %v27286_v44  ;;  %v35070_v36 = vpop.f32.mrf.mxu0  ;;  %35185 = vmatprep.subr.mxu1 %v42324_v14  ;;  %35175 = vmatpush3.msra.mxu0 %v41497_v16 }
0x1188   : > { %v35081_v37 = vpop.f32.mrf.mxu1  ;;  %35186 = vmatpush3.msra.mxu1 %v41497_v16  ;;  %35176 = vmatprep.subr.mxu0 %v42324_v14 }
0x1189   : > { %v35763_v23 = vpop.eup %35762  ;;  %35187 = vmatprep.subr.mxu1 %v42324_v14  ;;  %35177 = vmatpush3.msra.mxu0 %v41506_v8 }
0x118a   : > { %v35765_v42 = vpop.eup %35764  ;;  %35178 = vmatprep.mubr.msk.f32.mxu0 %vm36022_vm3, %v42324_v14  ;;  %35188 = vmatpush3.msra.mxu1 %v41506_v8  ;;  %v27307_v45 = vmul.f32 %v35763_v23, %v40049_v29 }
0x118b   : > { %35189 = vmatprep.mubr.msk.f32.mxu1 %vm36022_vm3, %v42324_v14  ;;  %v27308_v26 = vmul.f32 %v35765_v42, %v40051_v25  ;;  %35192 = vmatprep.subr.mxu0 %v42324_v14 }
0x118c   : > { %35179 = vmatmul.mubr.msk.f32.vlgmr.msra.gmra.mxu0 %vm780_vm0, %v27307_v45  ;;  %35203 = vmatprep.subr.mxu1 %v42324_v14 }
0x118d   : > { %v35767_v34 = vpop.eup %35766  ;;  %35190 = vmatmul.mubr.msk.f32.vlgmr.msra.gmra.mxu1 %vm780_vm0, %v27308_v26  ;;  %35193 = vmatpush3.msra.mxu0 %v41479_v15 }
0x118e   : > { %v35769_v61 = vpop.eup %35768  ;;  %v27287_v57 = vadd.f32 1.0, %v35767_v34  ;;  %35204 = vmatpush3.msra.mxu1 %v41479_v15  ;;  %35194 = vmatprep.subr.mxu0 %v42324_v14 }
0x118f   : > { %v27288_v24 = vadd.f32 1.0, %v35769_v61  ;;  %v41567_v28 = vpop.f32.mrf.mxu0  ;;  %35205 = vmatprep.subr.mxu1 %v42324_v14  ;;  %35195 = vmatpush3.msra.mxu0 %v41488_v12 }
0x1190   : > { %35774 = vrcp.f32 %v27287_v57  ;;  %v41571_v0 = vpop.f32.mrf.mxu1  ;;  %35206 = vmatpush3.msra.mxu1 %v41488_v12  ;;  %35196 = vmatprep.subr.mxu0 %v42324_v14 }
0x1191   : > { %35776 = vrcp.f32 %v27288_v24  ;;  %v35092_v3 = vpop.f32.mrf.mxu0  ;;  %35207 = vmatprep.subr.mxu1 %v42324_v14  ;;  %35197 = vmatpush3.msra.mxu0 %v41497_v16 }
0x1192   : > { %v35103_v19 = vpop.f32.mrf.mxu1  ;;  %35208 = vmatpush3.msra.mxu1 %v41497_v16  ;;  %35198 = vmatprep.subr.mxu0 %v42324_v14  ;;  %35778 = vpow2.f32 %v30111_v22 }
0x1193   : > { %v35771_v32 = vpop.eup %35770  ;;  %35209 = vmatprep.subr.mxu1 %v42324_v14  ;;  %35199 = vmatpush3.msra.mxu0 %v41506_v8  ;;  %35780 = vpow2.f32 %v30112_v31 }
0x1194   : > { %v35773_v20 = vpop.eup %35772  ;;  %35200 = vmatprep.mubr.msk.f32.mxu0 %vm36022_vm3, %v42324_v14  ;;  %35210 = vmatpush3.msra.mxu1 %v41506_v8  ;;  %v27309_v21 = vmul.f32 %v35771_v32, %v40069_v40  ;;  %35782 = vpow2.f32 %v30113_v55 }
0x1195   : > { %35211 = vmatprep.mubr.msk.f32.mxu1 %vm36022_vm3, %v42324_v14  ;;  %v27310_v62 = vmul.f32 %v35773_v20, %v42534_v27  ;;  %35214 = vmatprep.subr.mxu0 %v42324_v14  ;;  %35784 = vpow2.f32 %v30114_v38 }
0x1196   : > { %35201 = vmatmul.mubr.msk.f32.vlgmr.msra.gmra.mxu0 %vm780_vm0, %v27309_v21  ;;  %35225 = vmatprep.subr.mxu1 %v42324_v14  ;;  %35786 = vpow2.f32 %v30115_v59 }
0x1197   : > { %35212 = vmatmul.mubr.msk.f32.vlgmr.msra.gmra.mxu1 %vm780_vm0, %v27310_v62  ;;  %35215 = vmatpush3.msra.mxu0 %v41479_v15  ;;  %35788 = vpow2.f32 %v30116_v60 }
0x1198   : > { %35226 = vmatpush3.msra.mxu1 %v41479_v15  ;;  %35216 = vmatprep.subr.mxu0 %v42324_v14  ;;  %35790 = vpow2.f32 %v30117_v54 }
0x1199   : > { %v41595_v43 = vpop.f32.mrf.mxu0  ;;  %35227 = vmatprep.subr.mxu1 %v42324_v14  ;;  %35217 = vmatpush3.msra.mxu0 %v41488_v12  ;;  %35792 = vpow2.f32 %v30118_v7 }
0x119a   : > { %v41599_v35 = vpop.f32.mrf.mxu1  ;;  %35228 = vmatpush3.msra.mxu1 %v41488_v12  ;;  %35218 = vmatprep.subr.mxu0 %v42324_v14 }
0x119b   : > { %v35114_v17 = vpop.f32.mrf.mxu0  ;;  %35229 = vmatprep.subr.mxu1 %v42324_v14  ;;  %35219 = vmatpush3.msra.mxu0 %v41497_v16 }
0x119c   : > { %v35125_v15 = vpop.f32.mrf.mxu1  ;;  %35230 = vmatpush3.msra.mxu1 %v41497_v16  ;;  %35220 = vmatprep.subr.mxu0 %v42324_v14 }
0x119d   : > { %v35775_v5 = vpop.eup %35774  ;;  %35231 = vmatprep.subr.mxu1 %v42324_v14  ;;  %35221 = vmatpush3.msra.mxu0 %v41506_v8 }
0x119e   : > { %v35777_v51 = vpop.eup %35776  ;;  %35222 = vmatprep.mubr.msk.f32.mxu0 %vm36022_vm3, %v42324_v14  ;;  %35232 = vmatpush3.msra.mxu1 %v41506_v8  ;;  %v27311_v12 = vmul.f32 %v35775_v5, %v42535_v1 }
0x119f   : > { %35233 = vmatprep.mubr.msk.f32.mxu1 %vm36022_vm3, %v42324_v14  ;;  %v27312_v16 = vmul.f32 %v35777_v51, %v42536_v30  ;;  %35236 = vmatprep.subr.mxu0 %v42324_v14  ;;  %v35779_v4 = vpop.eup %35778 }
0x11a0   : > { %35223 = vmatmul.mubr.msk.f32.vlgmr.msra.gmra.mxu0 %vm780_vm0, %v27311_v12  ;;  %35247 = vmatprep.subr.mxu1 %v42324_v14  ;;  %v35781_v49 = vpop.eup %35780  ;;  %v26113_v33 = vadd.f32 1.0, %v35779_v4 }
0x11a1   : > { %35234 = vmatmul.mubr.msk.f32.vlgmr.msra.gmra.mxu1 %vm780_vm0, %v27312_v16  ;;  %35244 = vmatprep.mubr.msk.f32.mxu0 %vm36022_vm3, %v42324_v14  ;;  %v35783_v18 = vpop.eup %35782  ;;  %v26114_v52 = vadd.f32 1.0, %v35781_v49 }
0x11a2   : > { %35255 = vmatprep.mubr.msk.f32.mxu1 %vm36022_vm3, %v42324_v14  ;;  %35237 = vmatpush3.msra.mxu0 %v41631_v41  ;;  %v35785_v2 = vpop.eup %35784  ;;  %v26115_v36 = vadd.f32 1.0, %v35783_v18  ;;  %35794 = vrcp.f32 %v26113_v33 }
0x11a3   : > { %v41624_v8 = vpop.f32.mrf.mxu0  ;;  %35248 = vmatpush3.msra.mxu1 %v41631_v41  ;;  %35238 = vmatprep.subr.mxu0 %v42324_v14  ;;  %v35787_v9 = vpop.eup %35786  ;;  %v26116_v37 = vadd.f32 1.0, %v35785_v2  ;;  %35796 = vrcp.f32 %v26114_v52 }
0x11a4   : > { %v41626_v48 = vpop.f32.mrf.mxu1  ;;  %35249 = vmatprep.subr.mxu1 %v42324_v14  ;;  %35239 = vmatpush3.msra.mxu0 %v41640_v11  ;;  %v35789_v44 = vpop.eup %35788  ;;  %v26117_v50 = vadd.f32 1.0, %v35787_v9  ;;  %35798 = vrcp.f32 %v26115_v36 }
0x11a5   : > { %v35136_v6 = vpop.f32.mrf.mxu0  ;;  %35250 = vmatpush3.msra.mxu1 %v41640_v11  ;;  %35240 = vmatprep.subr.mxu0 %v42324_v14  ;;  %v35791_v63 = vpop.eup %35790  ;;  %v26118_v23 = vadd.f32 1.0, %v35789_v44  ;;  %35800 = vrcp.f32 %v26116_v37 }
0x11a6   : > { %v35147_v13 = vpop.f32.mrf.mxu1  ;;  %35251 = vmatprep.subr.mxu1 %v42324_v14  ;;  %35241 = vmatpush3.msra.mxu0 %v41649_v53  ;;  %v26119_v42 = vadd.f32 1.0, %v35791_v63  ;;  %35802 = vrcp.f32 %v26117_v50  ;;  %v35793_v57 = vpop.eup %35792 }
0x11a7   : > { %35252 = vmatpush3.msra.mxu1 %v41649_v53  ;;  %35242 = vmatprep.subr.mxu0 %v42324_v14  ;;  %35804 = vrcp.f32 %v26118_v23  ;;  %v26120_v3 = vadd.f32 1.0, %v35793_v57 }
0x11a8   : > { %35253 = vmatprep.subr.mxu1 %v42324_v14  ;;  %35243 = vmatpush3.msra.mxu0 %v41658_v56  ;;  %35806 = vrcp.f32 %v26119_v42 }
0x11a9   : > { %35254 = vmatpush3.msra.mxu1 %v41658_v56  ;;  %35258 = vmatprep.subr.mxu0 %v42324_v14 }
0x11aa   : > { %35269 = vmatprep.subr.mxu1 %v42324_v14 }
0x11af   : > { %v35795_v19 = vpop.eup %35794 }
0x11b0   : > { %v35797_v32 = vpop.eup %35796  ;;  %v28465_v51 = vsub.f32 1.0, %v35795_v19 }
0x11b1   : > { %v41674_v21 = vpop.eup %35798  ;;  %v28466_v6 = vsub.f32 1.0, %v35797_v32 }
0x11b2   : > { %v28467_v22 = vsub.f32 1.0, %v41674_v21 }
0x11b3   : > { %v28474_v59 = vmul.f32 %v28466_v6, %v40031_v58 }
0x11b4   : > { %v28475_v4 = vmul.f32 %v28467_v22, %v40049_v29 }
0x1242   : > { %v27942_v10 = vpop.f32.mrf.mxu0 }
0x1243   : > { %v27943_v45 = vadd.f32 %v27942_v10, %v41539_v47  ;;  %v28015_v26 = vpop.f32.mrf.mxu1  ;;  %v41677_v47 = vpop.eup %35800 }
0x1244   : > { %v28016_v34 = vadd.f32 %v28015_v26, %v41543_v39  ;;  %v35158_v61 = vpop.f32.mrf.mxu0  ;;  %v41680_v5 = vpop.eup %35802 }
0x1245   : > { %35808 = vtanh.f32 %v27943_v45  ;;  %v35169_v24 = vpop.f32.mrf.mxu1  ;;  %v41682_v16 = vpop.eup %35804  ;;  %v28469_v54 = vsub.f32 1.0, %v41680_v5 }
0x1246   : > { %35810 = vtanh.f32 %v28016_v34  ;;  %v41684_v13 = vpop.eup %35806  ;;  %v28470_v18 = vsub.f32 1.0, %v41682_v16 }
0x1247   : > { %35812 = vrcp.f32 %v26120_v3  ;;  %v28471_v2 = vsub.f32 1.0, %v41684_v13  ;;  %v41731_v22 = vmul.f32 %v28469_v54, %v40069_v40 }
0x124c   : > { %v28088_v20 = vpop.f32.mrf.mxu0 }
0x124d   : > { %v28089_v62 = vadd.f32 %v28088_v20, %v41567_v28  ;;  %v28161_v17 = vpop.f32.mrf.mxu1  ;;  %v28468_v28 = vsub.f32 1.0, %v41677_v47 }
0x124e   : > { %v28162_v15 = vadd.f32 %v28161_v17, %v41571_v0  ;;  %v35180_v39 = vpop.f32.mrf.mxu0  ;;  %v28473_v0 = vmul.f32 %v28465_v51, %v40029_v46 }
0x124f   : > { %35814 = vtanh.f32 %v28089_v62  ;;  %v35191_v12 = vpop.f32.mrf.mxu1  ;;  %v28476_v49 = vmul.f32 %v28468_v28, %v40051_v25 }
0x1250   : > { %35816 = vtanh.f32 %v28162_v15 }
0x1252   : > { %v35809_v31 = vpop.eup %35808 }
0x1253   : > { %v35811_v55 = vpop.eup %35810  ;;  %v28481_v38 = vmul.f32 %v35809_v31, %v35795_v19  ;;  %v41741_v31 = vmul.f32 %v28470_v18, %v42534_v27 }
0x1254   : > { %v28482_v60 = vmul.f32 %v35811_v55, %v35797_v32  ;;  %v41700_v23 = vpop.eup %35812  ;;  %v41744_v55 = vmul.f32 %v28471_v2, %v42535_v1 }
0x1255   : > { %v28489_v7 = vadd.f32 %v28481_v38, %v28473_v0  ;;  %v28472_v32 = vsub.f32 1.0, %v41700_v23 }
0x1256   : > { %v28490_v33 = vadd.f32 %v28482_v60, %v28474_v59  ;;  %v28234_v9 = vpop.f32.mrf.mxu0 }
0x1257   : > { %v28235_v46 = vadd.f32 %v28234_v9, %v41595_v43  ;;  %v28307_v52 = vpop.f32.mrf.mxu1  ;;  %35245 = vmatmul.mubr.msk.f32.vlgmr.msra.gmra.mxu0 %vm780_vm0, %v28489_v7  ;;  %v28610_v58 = vrot.slane %v28489_v7, 6  ;;  %v28527_v44 = vrot.slane %v28489_v7, 1  ;;  %v28593_v36 = vrot.slane %v28489_v7, 5 }
0x1258   : > { %v28308_v63 = vadd.f32 %v28307_v52, %v41599_v35  ;;  %v35202_v29 = vpop.f32.mrf.mxu0  ;;  %35256 = vmatmul.mubr.msk.f32.vlgmr.msra.gmra.mxu1 %vm780_vm0, %v28490_v33  ;;  %35259 = vmatpush3.msra.mxu0 %v41631_v41  ;;  %v28611_v25 = vrot.slane %v28490_v33, 5  ;;  %v28594_v37 = vrot.slane %v28490_v33, 4  ;;  %v28627_v50 = vrot.slane %v28489_v7, 7 }
0x1259   : > { %35818 = vtanh.f32 %v28235_v46  ;;  %v35213_v43 = vpop.f32.mrf.mxu1  ;;  %35270 = vmatpush3.msra.mxu1 %v41631_v41  ;;  %35260 = vmatprep.subr.mxu0 %v42324_v14  ;;  %v41705_v42 = vsel %vm28506_vm5, %v28490_v33, %v28527_v44  ;;  %v28628_v35 = vrot.slane %v28490_v33, 6  ;;  %v28544_v10 = vrot.slane %v28489_v7, 2 }
0x125a   : > { %35820 = vtanh.f32 %v28308_v63  ;;  %35271 = vmatprep.subr.mxu1 %v42324_v14  ;;  %35261 = vmatpush3.msra.mxu0 %v41640_v11  ;;  %v28612_v45 = vsel %vm28506_vm5, %v28611_v25, %v28610_v58  ;;  %v28595_v26 = vsel %vm28506_vm5, %v28594_v37, %v28593_v36  ;;  %v28545_v34 = vrot.slane %v28490_v33, 1 }
0x125b   : > { %35272 = vmatpush3.msra.mxu1 %v41640_v11  ;;  %35262 = vmatprep.subr.mxu0 %v42324_v14  ;;  %v41714_v61 = vsel %vm28506_vm5, %v28628_v35, %v28627_v50  ;;  %v28561_v57 = vrot.slane %v28489_v7, 3  ;;  %v28562_v24 = vrot.slane %v28490_v33, 2  ;;  %v28505_v3 = vrot.slane %v28490_v33, 7 }
0x125c   : > { %v35815_v19 = vpop.eup %35814  ;;  %35273 = vmatprep.subr.mxu1 %v42324_v14  ;;  %35263 = vmatpush3.msra.mxu0 %v41649_v53  ;;  %v28546_v20 = vsel %vm28506_vm5, %v28545_v34, %v28544_v10  ;;  %v28578_v62 = vrot.slane %v28489_v7, 4  ;;  %v28579_v17 = vrot.slane %v28490_v33, 3  ;;  %v41752_v0 = vmul.f32 %v28472_v32, %v42536_v30 }
0x125d   : > { %v35817_v15 = vpop.eup %35816  ;;  %v28483_v39 = vmul.f32 %v35815_v19, %v41674_v21  ;;  %35274 = vmatpush3.msra.mxu1 %v41649_v53  ;;  %35264 = vmatprep.subr.mxu0 %v42324_v14  ;;  %v41724_v51 = vsel %vm28506_vm5, %v28562_v24, %v28561_v57  ;;  %v41727_v12 = vsel %vm28506_vm5, %v28505_v3, %v28489_v7 }
0x125e   : > { %v28484_v6 = vmul.f32 %v35817_v15, %v41677_v47  ;;  %35275 = vmatprep.subr.mxu1 %v42324_v14  ;;  %35265 = vmatpush3.msra.mxu0 %v41658_v56  ;;  %v41736_v21 = vsel %vm28506_vm5, %v28579_v17, %v28578_v62 }
0x125f   : > { %v41738_v28 = vadd.f32 %v28483_v39, %v28475_v4  ;;  %35266 = vmatprep.mubr.msk.f32.mxu0 %vm36022_vm3, %v42324_v14  ;;  %35276 = vmatpush3.msra.mxu1 %v41658_v56 }
0x1260   : > { %v41749_v40 = vadd.f32 %v28484_v6, %v28476_v49  ;;  %v28380_v47 = vpop.f32.mrf.mxu0  ;;  %35277 = vmatprep.mubr.msk.f32.mxu1 %vm36022_vm3, %v42324_v14  ;;  %35280 = vmatprep.subr.mxu0 %v42324_v14 }
0x1261   : > { %v28381_v27 = vadd.f32 %v28380_v47, %v41624_v8  ;;  %v28453_v1 = vpop.f32.mrf.mxu1  ;;  %35267 = vmatmul.mubr.msk.f32.vlgmr.msra.gmra.mxu0 %vm780_vm0, %v41738_v28  ;;  %35291 = vmatprep.subr.mxu1 %v42324_v14  ;;  %v28613_v38 = vrot.slane %v41738_v28, 4  ;;  %v28529_v30 = vrot.slane %v41738_v28, 7  ;;  %v28596_v59 = vrot.slane %v41738_v28, 3 }
0x1262   : > { %v28454_v60 = vadd.f32 %v28453_v1, %v41626_v48  ;;  %v35224_v54 = vpop.f32.mrf.mxu0  ;;  %35278 = vmatmul.mubr.msk.f32.vlgmr.msra.gmra.mxu1 %vm780_vm0, %v41749_v40  ;;  %35281 = vmatpush3.msra.mxu0 %v41631_v41  ;;  %v28615_v8 = vrot.slane %v41749_v40, 3  ;;  %v28531_v7 = vrot.slane %v41749_v40, 6  ;;  %v28598_v4 = vrot.slane %v41749_v40, 2 }
0x1263   : > { %35822 = vtanh.f32 %v28381_v27  ;;  %v35235_v49 = vpop.f32.mrf.mxu1  ;;  %35292 = vmatpush3.msra.mxu1 %v41631_v41  ;;  %35282 = vmatprep.subr.mxu0 %v42324_v14  ;;  %v28614_v48 = vsel %vm28509_vm6, %v28613_v38, %v28612_v45  ;;  %v28530_v18 = vsel %vm28509_vm6, %v28529_v30, %v41705_v42  ;;  %v28597_v2 = vsel %vm28509_vm6, %v28596_v59, %v28595_v26 }
0x1264   : > { %35824 = vtanh.f32 %v28454_v60  ;;  %35293 = vmatprep.subr.mxu1 %v42324_v14  ;;  %35283 = vmatpush3.msra.mxu0 %v41640_v11  ;;  %v28616_v33 = vsel %vm28512_vm7, %v28615_v8, %v28614_v48  ;;  %v28532_v9 = vsel %vm28512_vm7, %v28531_v7, %v28530_v18  ;;  %v28599_v46 = vsel %vm28512_vm7, %v28598_v4, %v28597_v2 }
0x1265   : > { %35294 = vmatpush3.msra.mxu1 %v41640_v11  ;;  %35284 = vmatprep.subr.mxu0 %v42324_v14  ;;  %v28630_v52 = vrot.slane %v41738_v28, 5  ;;  %v28632_v58 = vrot.slane %v41749_v40, 4  ;;  %v28547_v44 = vsel %vm28509_vm6, %v41738_v28, %v28546_v20  ;;  %v28548_v36 = vrot.slane %v41749_v40, 7 }
0x1266   : > { %v35819_v63 = vpop.eup %35818  ;;  %35295 = vmatprep.subr.mxu1 %v42324_v14  ;;  %35285 = vmatpush3.msra.mxu0 %v41649_v53  ;;  %v28564_v29 = vrot.slane %v41738_v28, 1  ;;  %v28508_v25 = vrot.slane %v41738_v28, 6  ;;  %v28511_v37 = vrot.slane %v41749_v40, 5  ;;  %v28581_v50 = vrot.slane %v41738_v28, 2 }
0x1267   : > { %v35821_v43 = vpop.eup %35820  ;;  %v28485_v42 = vmul.f32 %v35819_v63, %v41680_v5  ;;  %35296 = vmatpush3.msra.mxu1 %v41649_v53  ;;  %35286 = vmatprep.subr.mxu0 %v42324_v14  ;;  %v28631_v35 = vsel %vm28509_vm6, %v28630_v52, %v41714_v61  ;;  %v28549_v10 = vsel %vm28512_vm7, %v28548_v36, %v28547_v44  ;;  %v28583_v19 = vrot.slane %v41749_v40, 1 }
0x1268   : > { %v28486_v45 = vmul.f32 %v35821_v43, %v41682_v16  ;;  %35297 = vmatprep.subr.mxu1 %v42324_v14  ;;  %35287 = vmatpush3.msra.mxu0 %v41658_v56  ;;  %v28633_v26 = vsel %vm28512_vm7, %v28632_v58, %v28631_v35  ;;  %v28565_v5 = vsel %vm28509_vm6, %v28564_v29, %v41724_v51 }
0x1269   : > { %v41808_v34 = vadd.f32 %v28485_v42, %v41731_v22  ;;  %35288 = vmatprep.mubr.msk.f32.mxu0 %vm36022_vm3, %v42324_v14  ;;  %35298 = vmatpush3.msra.mxu1 %v41658_v56  ;;  %v28566_v16 = vsel %vm28512_vm7, %v41749_v40, %v28565_v5  ;;  %v28510_v61 = vsel %vm28509_vm6, %v28508_v25, %v41727_v12 }
0x126a   : > { %v41818_v57 = vadd.f32 %v28486_v45, %v41741_v31  ;;  %35299 = vmatprep.mubr.msk.f32.mxu1 %vm36022_vm3, %v42324_v14  ;;  %35302 = vmatprep.subr.mxu0 %v42324_v14  ;;  %v28513_v24 = vsel %vm28512_vm7, %v28511_v37, %v28510_v61  ;;  %v28582_v3 = vsel %vm28509_vm6, %v28581_v50, %v41736_v21 }
0x126b   : > { %35289 = vmatmul.mubr.msk.f32.vlgmr.msra.gmra.mxu0 %vm780_vm0, %v41808_v34  ;;  %35313 = vmatprep.subr.mxu1 %v42324_v14  ;;  %v28617_v32 = vrot.slane %v41808_v34, 2  ;;  %v28533_v20 = vrot.slane %v41808_v34, 5  ;;  %v28600_v62 = vrot.slane %v41808_v34, 1  ;;  %v28634_v17 = vrot.slane %v41808_v34, 3 }
0x126c   : > { %35300 = vmatmul.mubr.msk.f32.vlgmr.msra.gmra.mxu1 %vm780_vm0, %v41818_v57  ;;  %35303 = vmatpush3.msra.mxu0 %v41631_v41  ;;  %v28619_v15 = vrot.slane %v41818_v57, 1  ;;  %v28535_v39 = vrot.slane %v41818_v57, 4  ;;  %v28636_v51 = vrot.slane %v41818_v57, 2  ;;  %v28550_v12 = vrot.slane %v41808_v34, 6 }
0x126d   : > { %35314 = vmatpush3.msra.mxu1 %v41631_v41  ;;  %35304 = vmatprep.subr.mxu0 %v42324_v14  ;;  %v28618_v6 = vsel %vm28515_vm8, %v28617_v32, %v28616_v33  ;;  %v28534_v22 = vsel %vm28515_vm8, %v28533_v20, %v28532_v9  ;;  %v28601_v21 = vsel %vm28515_vm8, %v28600_v62, %v28599_v46  ;;  %v28552_v28 = vrot.slane %v41818_v57, 5 }
0x126e   : > { %35315 = vmatprep.subr.mxu1 %v42324_v14  ;;  %35305 = vmatpush3.msra.mxu0 %v41640_v11  ;;  %v28620_v31 = vsel %vm28518_vm9, %v28619_v15, %v28618_v6  ;;  %v28536_v40 = vsel %vm28518_vm9, %v28535_v39, %v28534_v22  ;;  %v28602_v41 = vsel %vm28518_vm9, %v41818_v57, %v28601_v21  ;;  %v28567_v47 = vrot.slane %v41808_v34, 7 }
0x126f   : > { %35316 = vmatpush3.msra.mxu1 %v41640_v11  ;;  %35306 = vmatprep.subr.mxu0 %v42324_v14  ;;  %v28635_v27 = vsel %vm28515_vm8, %v28634_v17, %v28633_v26  ;;  %v28551_v1 = vsel %vm28515_vm8, %v28550_v12, %v28549_v10  ;;  %v28569_v38 = vrot.slane %v41818_v57, 6  ;;  %v28514_v30 = vrot.slane %v41808_v34, 4 }
0x1270   : > { %v35823_v59 = vpop.eup %35822  ;;  %35317 = vmatprep.subr.mxu1 %v42324_v14  ;;  %35307 = vmatpush3.msra.mxu0 %v41649_v53  ;;  %v28637_v60 = vsel %vm28518_vm9, %v28636_v51, %v28635_v27  ;;  %v28553_v54 = vsel %vm28518_vm9, %v28552_v28, %v28551_v1  ;;  %v28568_v11 = vsel %vm28515_vm8, %v28567_v47, %v28566_v16  ;;  %v28517_v8 = vrot.slane %v41818_v57, 3 }
0x1271   : > { %v35825_v7 = vpop.eup %35824  ;;  %v28487_v4 = vmul.f32 %v35823_v59, %v41684_v13  ;;  %35318 = vmatpush3.msra.mxu1 %v41649_v53  ;;  %35308 = vmatprep.subr.mxu0 %v42324_v14  ;;  %v28570_v49 = vsel %vm28518_vm9, %v28569_v38, %v28568_v11  ;;  %v28516_v48 = vsel %vm28515_vm8, %v28514_v30, %v28513_v24  ;;  %v28586_v18 = vrot.slane %v41818_v57, 7 }
0x1272   : > { %v28488_v2 = vmul.f32 %v35825_v7, %v41700_v23  ;;  %35319 = vmatprep.subr.mxu1 %v42324_v14  ;;  %35309 = vmatpush3.msra.mxu0 %v41658_v56  ;;  %v28519_v33 = vsel %vm28518_vm9, %v28517_v8, %v28516_v48  ;;  %v28584_v13 = vsel %vm28512_vm7, %v28583_v19, %v28582_v3 }
0x1273   : > { %v28495_v53 = vadd.f32 %v28487_v4, %v41744_v55  ;;  %35310 = vmatprep.mubr.msk.f32.mxu0 %vm36022_vm3, %v42324_v14  ;;  %35320 = vmatpush3.msra.mxu1 %v41658_v56  ;;  %v28585_v9 = vsel %vm28515_vm8, %v41808_v34, %v28584_v13 }
0x1274   : > { %v28496_v23 = vadd.f32 %v28488_v2, %v41752_v0  ;;  %35321 = vmatprep.mubr.msk.f32.mxu1 %vm36022_vm3, %v42324_v14  ;;  %v28587_v46 = vsel %vm28518_vm9, %v28586_v18, %v28585_v9 }
0x1275   : > { %35311 = vmatmul.mubr.msk.f32.vlgmr.msra.gmra.mxu0 %vm780_vm0, %v28495_v53  ;;  %v28621_v55 = vsel %vm28521_vm10, %v28495_v53, %v28620_v31  ;;  %v28537_v52 = vrot.slane %v28495_v53, 3  ;;  %v28603_v58 = vrot.slane %v28495_v53, 7  ;;  %v28638_v44 = vrot.slane %v28495_v53, 1 }
0x1276   : > { %35322 = vmatmul.mubr.msk.f32.vlgmr.msra.gmra.mxu1 %vm780_vm0, %v28496_v23  ;;  %v28622_v56 = vrot.slane %v28496_v23, 7  ;;  %v28539_v36 = vrot.slane %v28496_v23, 2  ;;  %v28605_v63 = vrot.slane %v28496_v23, 6  ;;  %v28554_v29 = vrot.slane %v28495_v53, 4 }
0x1277   : > { %v28538_v0 = vsel %vm28521_vm10, %v28537_v52, %v28536_v40  ;;  %v28604_v14 = vsel %vm28521_vm10, %v28603_v58, %v28602_v41  ;;  %v28639_v25 = vsel %vm28521_vm10, %v28638_v44, %v28637_v60  ;;  %v28556_v37 = vrot.slane %v28496_v23, 3 }
0x1278   : > { %v28623_v50 = vsel %vm28524_vm11, %v28622_v56, %v28621_v55  ;;  %v28540_v43 = vsel %vm28524_vm11, %v28539_v36, %v28538_v0  ;;  %v28606_v42 = vsel %vm28524_vm11, %v28605_v63, %v28604_v14  ;;  %v28640_v35 = vsel %vm28524_vm11, %v28496_v23, %v28639_v25 }
0x1279   : > { %28624 = vrot.lane.b32.xlu1 %v28623_v50, %s36023_s19  ;;  %28541 = vrot.lane.b32.xlu0 %v28540_v43, %s36024_s21  ;;  %v28555_v10 = vsel %vm28521_vm10, %v28554_v29, %v28553_v54  ;;  %v28571_v45 = vrot.slane %v28495_v53, 5  ;;  %v28573_v26 = vrot.slane %v28496_v23, 4  ;;  %v28523_v5 = vrot.slane %v28496_v23, 1 }
0x127a   : > { %v28557_v34 = vsel %vm28524_vm11, %v28556_v37, %v28555_v10  ;;  %v28520_v16 = vrot.slane %v28495_v53, 2  ;;  %v28590_v61 = vrot.slane %v28496_v23, 5  ;;  %v28588_v57 = vrot.slane %v28495_v53, 6 }
0x127b   : > { %v28572_v24 = vsel %vm28521_vm10, %v28571_v45, %v28570_v49 }
0x127c   : > { %v28574_v3 = vsel %vm28524_vm11, %v28573_v26, %v28572_v24  ;;  %v28522_v19 = vsel %vm28521_vm10, %v28520_v16, %v28519_v33  ;;  %v28589_v32 = vsel %vm28521_vm10, %v28588_v57, %v28587_v46 }
0x127d   : > { %28607 = vrot.lane.b32.xlu1 %v28606_v42, %s36024_s21  ;;  %28641 = vrot.lane.b32.xlu0 %v28640_v35, %s36025_s29  ;;  %v28525_v20 = vsel %vm28524_vm11, %v28523_v5, %v28522_v19  ;;  %v28591_v62 = vsel %vm28524_vm11, %v28590_v61, %v28589_v32  ;;  %s41915_s21 = scalar_lea.hbm %s42060_s17, %s30176_s24 }
0x1281   : > { %28558 = vrot.lane.b32.xlu1 %v28557_v34, %s36023_s19 }
0x1285   : > { %28575 = vrot.lane.b32.xlu1 %v28574_v3, %s36025_s29  ;;  %s29431_s29 = scalar_lea.sflag [#allocation3], %s41906_s25 }
0x12eb   : > { %v28625_v17 = vpop.permute.xlu1 %28624  ;;  %v28542_v15 = vpop.permute.xlu0 %28541 }
0x12ec   : > { %v28644_v28 = vsel %vm780_vm0, %v28525_v20, %v28542_v15 }
0x12ef   : > { %v28608_v39 = vpop.permute.xlu1 %28607  ;;  %v28642_v51 = vpop.permute.xlu0 %28641 }
0x12f0   : > { %v28649_v12 = vsel %vm780_vm0, %v28591_v62, %v28608_v39 }
0x12f1   : > { %v28650_v6 = vsel %vm28645_vm12, %v28649_v12, %v28625_v17 }
0x12f2   : > { %v28651_v22 = vsel %vm28647_vm13, %v28650_v6, %v28642_v51 }
0x12f3   : > { %28653 = vst [vmem:[%s625_s20 + $0x8] sm:$0xff] %v28651_v22  ;;  %v28559_v21 = vpop.permute.xlu1 %28558 }
0x12f4   : > { %v28646_v31 = vsel %vm28645_vm12, %v28644_v28, %v28559_v21 }
0x12f7   : > { %v28576_v40 = vpop.permute.xlu1 %28575 }
0x12f8   : > { %v28648_v41 = vsel %vm28647_vm13, %v28646_v31, %v28576_v40 }
0x12f9   : > { %28652 = vst [vmem:[%s625_s20] sm:$0xff] %v28648_v41 }
0x12fa   : > { %35941 = shalt.err (!%p35938_p3)
}
0x12fb   : > { %s35942_s20 = scalar_lea.hbm %s41915_s21, 256  ;;  %s35946_s19 = scalar_lea.hbm %s42060_s17, 512 }
0x12fc   : > { %p35943_p4 = scmp.ne.s32.totalorder %s41915_s21, %s35942_s20  ;;  %p35947_p9 = scmp.lt.s32.totalorder %s41915_s21, %s42060_s17 }
0x12fd   : > { %p35948_p10 = scmp.lt.s32.totalorder %s35946_s19, %s35942_s20 }
0x12fe   : > { %p35944_p7 = pnand %p35943_p4, %p36161_p5 }
0x12ff   : > { %p35949_p11 = por %p35948_p10, %p35947_p9 }
0x1300   : > { %p35945_p8 = pneg %p35944_p7 }
0x1302   : > { %p35950_p12 = pnand %p35949_p11, %p35945_p8 }
0x1304   : > { %35953 = shalt.err (!%p35950_p12)
}
0x1305   : > { %35324 = dma.vmem_to_hbm [thread:$0]  (%p36161_p5), %s29451_s22, 256, %s41915_s21, %s29431_s29  }
0x1306   : > { %s29595_s3 = sshll.u32 %s41906_s25, 3  ;;  %s30171_s4 = sshll.u32 %s36144_s0, 7 }
0x1307   : > { %s632_s5 = scalar_lea.vmem [#allocation4], %s29595_s3  ;;  %s42005_s29 = scalar_lea.hbm %s42061_s18, %s30171_s4 }
0x1308   : > { %s29463_s6 = sshll.u32 %s632_s5, 4  ;;  %s29436_s20 = scalar_lea.sflag [#allocation5], %s41906_s25  ;;  %s29464_s6 = int_to_ptr.vmem [resolvable:$true] %s29463_s6 }
0x1309   : > { %s35954_s0 = scalar_lea.vmem %s29464_s6, 128  ;;  %s36027_s24 = smov [#allocation4]  }
0x130a   : > { %p35955_p13 = scmp.ne.s32.totalorder %s29464_s6, %s35954_s0  ;;  %s35958_s1 = sshll.u32 %s36027_s24, 4  ;;  %s35959_s1 = int_to_ptr.vmem [resolvable:$false] %s35958_s1 }
0x130b   : > { %s35960_s19 = scalar_lea.vmem %s35959_s1, 256  ;;  %p35961_p2 = scmp.lt.s32.totalorder %s29464_s6, %s35959_s1 }
0x130c   : > { %p35956_p0 = pnand %p35955_p13, %p36161_p5  ;;  %p35962_p3 = scmp.lt.s32.totalorder %s35960_s19, %s35954_s0 }
0x130e   : > { %p35957_p1 = pneg %p35956_p0  ;;  %p35963_p4 = por %p35962_p3, %p35961_p2 }
0x1310   : > { %p35964_p7 = pnand %p35963_p4, %p35957_p1 }
0x1317   : > { %v41934_v47 = vpop.f32.mrf.mxu0 }
0x1318   : > { %v41936_v27 = vpop.f32.mrf.mxu1  ;;  %v29238_v1 = vrot.slane %v41934_v47, 1  ;;  %v29262_v7 = vrot.slane %v41934_v47, 2  ;;  %v29286_v13 = vrot.slane %v41934_v47, 3  ;;  %v29310_v0 = vrot.slane %v41934_v47, 4 }
0x1319   : > { %v29239_v38 = vrot.slane %v41936_v27, 1  ;;  %v35246_v30 = vpop.f32.mrf.mxu0  ;;  %v29263_v54 = vrot.slane %v41936_v27, 2  ;;  %v29287_v4 = vrot.slane %v41936_v27, 3  ;;  %v29311_v53 = vrot.slane %v41936_v27, 4 }
0x131a   : > { %v35257_v59 = vpop.f32.mrf.mxu1  ;;  %v29254_v11 = vmax.f32 %v41934_v47, %v29238_v1  ;;  %v29335_v14 = vrot.slane %v41936_v27, 5  ;;  %v29334_v10 = vrot.slane %v41934_v47, 5  ;;  %v29359_v34 = vrot.slane %v41936_v27, 6 }
0x131b   : > { %v29255_v60 = vmax.f32 %v41936_v27, %v29239_v38  ;;  %v29358_v39 = vrot.slane %v41934_v47, 6  ;;  %v29383_v51 = vrot.slane %v41936_v27, 7  ;;  %v29382_v27 = vrot.slane %v41934_v47, 7 }
0x131c   : > { %v29278_v49 = vmax.f32 %v29254_v11, %v29262_v7 }
0x131d   : > { %v29279_v8 = vmax.f32 %v29255_v60, %v29263_v54 }
0x131e   : > { %v29302_v58 = vmax.f32 %v29278_v49, %v29286_v13 }
0x131f   : > { %v29303_v48 = vmax.f32 %v29279_v8, %v29287_v4 }
0x1320   : > { %v29326_v50 = vmax.f32 %v29302_v58, %v29310_v0 }
0x1321   : > { %v41945_v18 = vpop.f32.mrf.mxu0  ;;  %v29327_v44 = vmax.f32 %v29303_v48, %v29311_v53 }
0x1322   : > { %v29240_v2 = vrot.slane %v41945_v18, 1  ;;  %v41948_v33 = vpop.f32.mrf.mxu1  ;;  %v29264_v46 = vrot.slane %v41945_v18, 2  ;;  %v29288_v36 = vrot.slane %v41945_v18, 3  ;;  %v29312_v43 = vrot.slane %v41945_v18, 4 }
0x1323   : > { %v35268_v9 = vpop.f32.mrf.mxu0  ;;  %v29241_v55 = vrot.slane %v41948_v33, 1  ;;  %v29265_v29 = vrot.slane %v41948_v33, 2  ;;  %v29289_v42 = vrot.slane %v41948_v33, 3  ;;  %v29351_v35 = vmax.f32 %v29327_v44, %v29335_v14 }
0x1324   : > { %v29256_v23 = vmax.f32 %v41945_v18, %v29240_v2  ;;  %v35279_v52 = vpop.f32.mrf.mxu1  ;;  %v29350_v57 = vmax.f32 %v29326_v50, %v29334_v10  ;;  %v29336_v24 = vrot.slane %v41945_v18, 5  ;;  %v29313_v3 = vrot.slane %v41948_v33, 4 }
0x1325   : > { %v29257_v63 = vmax.f32 %v41948_v33, %v29241_v55  ;;  %v29375_v32 = vmax.f32 %v29351_v35, %v29359_v34  ;;  %v29360_v41 = vrot.slane %v41945_v18, 6  ;;  %v29337_v1 = vrot.slane %v41948_v33, 5 }
0x1326   : > { %v29280_v56 = vmax.f32 %v29256_v23, %v29264_v46  ;;  %v29374_v40 = vmax.f32 %v29350_v57, %v29358_v39  ;;  %v29384_v7 = vrot.slane %v41945_v18, 7  ;;  %v29361_v48 = vrot.slane %v41948_v33, 6 }
0x1327   : > { %v29281_v37 = vmax.f32 %v29257_v63, %v29265_v29  ;;  %v29399_v38 = vmax.f32 %v29375_v32, %v29383_v51  ;;  %v29385_v2 = vrot.slane %v41948_v33, 7 }
0x1328   : > { %v29304_v25 = vmax.f32 %v29280_v56, %v29288_v36  ;;  %v29398_v49 = vmax.f32 %v29374_v40, %v29382_v27 }
0x1329   : > { %v29305_v26 = vmax.f32 %v29281_v37, %v29289_v42  ;;  %v29414_v9 = vrot.slane %v29399_v38, 7 }
0x132a   : > { %v29328_v45 = vmax.f32 %v29304_v25, %v29312_v43 }
0x132b   : > { %v41963_v5 = vpop.f32.mrf.mxu0  ;;  %v29329_v6 = vmax.f32 %v29305_v26, %v29313_v3  ;;  %v29415_v51 = vsel %vm28506_vm5, %v29414_v9, %v29398_v49 }
0x132c   : > { %v29242_v16 = vrot.slane %v41963_v5, 1  ;;  %v41967_v61 = vpop.f32.mrf.mxu1  ;;  %v29266_v62 = vrot.slane %v41963_v5, 2  ;;  %v29352_v12 = vmax.f32 %v29328_v45, %v29336_v24  ;;  %v29290_v21 = vrot.slane %v41963_v5, 3 }
0x132d   : > { %v35290_v19 = vpop.f32.mrf.mxu0  ;;  %v29243_v17 = vrot.slane %v41967_v61, 1  ;;  %v29267_v31 = vrot.slane %v41967_v61, 2  ;;  %v29291_v60 = vrot.slane %v41967_v61, 3  ;;  %v29353_v54 = vmax.f32 %v29329_v6, %v29337_v1 }
0x132e   : > { %v29258_v20 = vmax.f32 %v41963_v5, %v29242_v16  ;;  %v35301_v15 = vpop.f32.mrf.mxu1  ;;  %v29314_v11 = vrot.slane %v41963_v5, 4  ;;  %v29376_v8 = vmax.f32 %v29352_v12, %v29360_v41  ;;  %v29338_v23 = vrot.slane %v41963_v5, 5 }
0x132f   : > { %v29259_v28 = vmax.f32 %v41967_v61, %v29243_v17  ;;  %v29315_v46 = vrot.slane %v41967_v61, 4  ;;  %v29362_v52 = vrot.slane %v41963_v5, 6  ;;  %v29339_v58 = vrot.slane %v41967_v61, 5 }
0x1330   : > { %v29282_v22 = vmax.f32 %v29258_v20, %v29266_v62  ;;  %v29377_v56 = vmax.f32 %v29353_v54, %v29361_v48  ;;  %v29400_v36 = vmax.f32 %v29376_v8, %v29384_v7  ;;  %v29363_v50 = vrot.slane %v41967_v61, 6 }
0x1331   : > { %v29283_v59 = vmax.f32 %v29259_v28, %v29267_v31  ;;  %v29386_v10 = vrot.slane %v41963_v5, 7  ;;  %v29387_v62 = vrot.slane %v41967_v61, 7 }
0x1332   : > { %v29306_v30 = vmax.f32 %v29282_v22, %v29290_v21  ;;  %v29401_v16 = vmax.f32 %v29377_v56, %v29385_v2  ;;  %v29416_v19 = vrot.slane %v29400_v36, 6 }
0x1333   : > { %v29307_v4 = vmax.f32 %v29283_v59, %v29291_v60 }
0x1334   : > { %v29330_v13 = vmax.f32 %v29306_v30, %v29314_v11  ;;  %v29418_v22 = vrot.slane %v29401_v16, 5  ;;  %v29417_v31 = vsel %vm28509_vm6, %v29416_v19, %v29415_v51 }
0x1335   : > { %v29154_v53 = vpop.f32.mrf.mxu0  ;;  %v29331_v0 = vmax.f32 %v29307_v4, %v29315_v46 }
0x1336   : > { %v29244_v47 = vrot.slane %v29154_v53, 1  ;;  %v29226_v55 = vpop.f32.mrf.mxu1  ;;  %v29268_v29 = vrot.slane %v29154_v53, 2  ;;  %v29354_v37 = vmax.f32 %v29330_v13, %v29338_v23  ;;  %v29292_v42 = vrot.slane %v29154_v53, 3 }
0x1337   : > { %v29245_v18 = vrot.slane %v29226_v55, 1  ;;  %v35312_v44 = vpop.f32.mrf.mxu0  ;;  %v29269_v25 = vrot.slane %v29226_v55, 2  ;;  %v29355_v35 = vmax.f32 %v29331_v0, %v29339_v58  ;;  %v29293_v45 = vrot.slane %v29226_v55, 3 }
0x1338   : > { %v29260_v63 = vmax.f32 %v29154_v53, %v29244_v47  ;;  %v35323_v33 = vpop.f32.mrf.mxu1  ;;  %v29378_v34 = vmax.f32 %v29354_v37, %v29362_v52  ;;  %v29316_v57 = vrot.slane %v29154_v53, 4  ;;  %v29317_v20 = vrot.slane %v29226_v55, 4 }
0x1339   : > { %v29261_v14 = vmax.f32 %v29226_v55, %v29245_v18  ;;  %v29379_v3 = vmax.f32 %v29355_v35, %v29363_v50  ;;  %v29340_v39 = vrot.slane %v29154_v53, 5  ;;  %v29341_v12 = vrot.slane %v29226_v55, 5 }
0x133a   : > { %v29284_v43 = vmax.f32 %v29260_v63, %v29268_v29  ;;  %v29402_v17 = vmax.f32 %v29378_v34, %v29386_v10  ;;  %v29364_v28 = vrot.slane %v29154_v53, 6  ;;  %v29365_v1 = vrot.slane %v29226_v55, 6 }
0x133b   : > { %v29285_v26 = vmax.f32 %v29261_v14, %v29269_v25  ;;  %v29403_v6 = vmax.f32 %v29379_v3, %v29387_v62  ;;  %v29388_v61 = vrot.slane %v29154_v53, 7  ;;  %v29389_v59 = vrot.slane %v29226_v55, 7 }
0x133c   : > { %v29308_v24 = vmax.f32 %v29284_v43, %v29292_v42  ;;  %v29420_v40 = vrot.slane %v29402_v17, 4  ;;  %v29419_v60 = vsel %vm28512_vm7, %v29418_v22, %v29417_v31 }
0x133d   : > { %v29309_v32 = vmax.f32 %v29285_v26, %v29293_v45  ;;  %v29422_v27 = vrot.slane %v29403_v6, 3 }
0x133e   : > { %v29332_v15 = vmax.f32 %v29308_v24, %v29316_v57  ;;  %v29421_v11 = vsel %vm28515_vm8, %v29420_v40, %v29419_v60 }
0x133f   : > { %v29333_v5 = vmax.f32 %v29309_v32, %v29317_v20  ;;  %v29423_v4 = vsel %vm28518_vm9, %v29422_v27, %v29421_v11 }
0x1340   : > { %v29356_v21 = vmax.f32 %v29332_v15, %v29340_v39 }
0x1341   : > { %v29357_v41 = vmax.f32 %v29333_v5, %v29341_v12 }
0x1342   : > { %v29380_v38 = vmax.f32 %v29356_v21, %v29364_v28 }
0x1343   : > { %v29381_v30 = vmax.f32 %v29357_v41, %v29365_v1 }
0x1344   : > { %v29404_v54 = vmax.f32 %v29380_v38, %v29388_v61 }
0x1345   : > { %v29405_v8 = vmax.f32 %v29381_v30, %v29389_v59 }
0x1346   : > { %v29424_v7 = vrot.slane %v29404_v54, 2 }
0x1347   : > { %v29426_v49 = vrot.slane %v29405_v8, 1 }
0x1348   : > { %v29425_v48 = vsel %vm28521_vm10, %v29424_v7, %v29423_v4 }
0x1349   : > { %v29427_v2 = vsel %vm28524_vm11, %v29426_v49, %v29425_v48 }
0x134a   : > { %29429 = vst.msk [vmem:[%s632_s5] sm:$0xff] %vm780_vm0, %v29427_v2 }
0x134b   : > { %35967 = shalt.err (!%p35964_p7)
}
0x134c   : > { %s35968_s26 = scalar_lea.hbm %s42005_s29, 128  ;;  %s35972_s4 = scalar_lea.hbm %s42061_s18, 256 }
0x134d   : > { %p35969_p8 = scmp.ne.s32.totalorder %s42005_s29, %s35968_s26  ;;  %p35973_p11 = scmp.lt.s32.totalorder %s42005_s29, %s42061_s18 }
0x134e   : > { %p35974_p12 = scmp.lt.s32.totalorder %s35972_s4, %s35968_s26 }
0x134f   : > { %p35970_p9 = pnand %p35969_p8, %p36161_p5 }
0x1350   : > { %p35975_p13 = por %p35974_p12, %p35973_p11 }
0x1351   : > { %p35971_p10 = pneg %p35970_p9 }
0x1353   : > { %p35976_p0 = pnand %p35975_p13, %p35971_p10 }
0x1355   : > { %35979 = shalt.err (!%p35976_p0)
}
0x1356   : > { %35325 = dma.vmem_to_hbm [thread:$0]  (%p36161_p5), %s29464_s6, 128, %s42005_s29, %s29436_s20  }
0x1357 PF: > { %p35335_p1 = scmp.ge.s32.totalorder %s36018_s30, 2  ;;  %s29475_s21 = sand.u32 1, %s36006_s27  }
0x1358   : > { %s29476_s0 = scalar_lea.sflag [#allocation3], %s29475_s21 }
0x1359   : > { %p35329_p2 = pnand %p35335_p1, %p36165_p6 }
0x135b   : > { %p35330_p3 = pneg %p35329_p2 }
0x135d   : > { %35997 = dma.done.wait (%p35330_p3), %s29476_s0, 256  }
0x135e   : > { %35999 = vsyncadd (%p35330_p3), %s29476_s0, 4294967040  ;;  %s29485_s24 = scalar_lea.sflag [#allocation5], %s29475_s21 }
0x135f   : > { %36001 = dma.done.wait (%p35330_p3), %s29485_s24, 128  }
0x1360   : > { %36003 = vsyncadd (%p35330_p3), %s29485_s24, 4294967168  ;;  %s42537_s30 = sld [smem:[#allocation9_spill]]  ;;  %s42540_s27 = smov %s36010_s28 }
0x1361   : > { %s42538_s2 = sld [smem:[#allocation8_spill]] }
0x1362   : > { %s42539_s29 = sld [smem:[#allocation10_spill]] }
0x1366   : > { %p32_p5 = scmp.ge.s32.totalorder %s42537_s30, 4  }
0x1367   : > { %s42541_s28 = smov %s42538_s2 }
0x1368   :  { %34 = sbr.rel (!%p32_p5) target bundleno = 13 (0xd), region = 149 }
0x136d   :  { %29490 = vsyncpa [#allocation3], 1 }
0x136e   :  { %29492 = vsyncpa [#allocation3 + $0x1], 1 }
0x136f   :  { %29493 = vsyncpa [#allocation5], 1 }
0x1370   :  { %29495 = vsyncpa [#allocation5 + $0x1], 1 }

</bundles_post_ra>
